<compile_context>
chip_gen: v5e
topology: v5e:2x2
jax: 0.10.0
libtpu: 0.0.40
codegen_flags: <defaults>
</compile_context>

<pallas_src>
import functools

import jax
import jax.numpy as jnp
from jax.experimental import pallas as pl
from jax.experimental.pallas import tpu as pltpu


def _round_up(x, m):
    return (x + m - 1) // m * m


def _gen_vmem_limit():
    # Generation-aware scoped-VMEM budget: ~48 MiB on v7x (64 MiB physical),
    # ~96-100 MiB on v5e/v6e (128 MiB physical).  Conservative fallback.
    try:
        cap = int(pltpu.get_tpu_info().vmem_capacity_bytes)
    except Exception:
        cap = 64 * 1024 * 1024
    return max(32 * 1024 * 1024, min(cap * 3 // 4, 100 * 1024 * 1024))


_VMEM_LIMIT = _gen_vmem_limit()


# --------------------------------------------------------------------------
# GEMM + bias + activation: full-K / full-N blocks, M tiled (conv & FC GEMMs)
# --------------------------------------------------------------------------
def prep_dense_weight(w, b):
    """Pre-cast a (K, N) weight and (N,) bias once at init time (no padding)."""
    K, N = w.shape
    return {"w": jnp.asarray(w, jnp.bfloat16),
            "b": jnp.asarray(b, jnp.float32).reshape(1, N),
            "K": K, "N": N}


def _choose_m_tile(M, K):
    # keep the (tm, K) bf16 activation block (double-buffered) around <=12 MiB
    cap = (12 * 1024 * 1024) // (4 * max(K, 1))
    tm = 8
    for t in (4096, 2048, 1024, 512, 256, 128, 64, 32, 16, 8):
        if t <= cap:
            tm = t
            break
    if M <= tm:
        return M, M                      # single full-dim block (legal for any M)
    return _round_up(M, tm), tm


def _gemm_kernel(x_ref, w_ref, b_ref, o_ref, *, act):
    r = jnp.dot(x_ref[...], w_ref[...], preferred_element_type=jnp.float32)
    r = r + b_ref[...]
    if act == "leaky_relu":
        r = jnp.where(r > 0, r, 0.2 * r)
    o_ref[...] = r.astype(o_ref.dtype)


def gemm_bias_act(x, pw, act="none", out_dtype=jnp.float32):
    """out = act(x @ w + b).  N and K are single full blocks; M is tiled."""
    M, K = x.shape
    assert K == pw["K"], (K, pw["K"])
    N = pw["N"]
    Mp, tm = _choose_m_tile(M, K)
    xb = x.astype(jnp.bfloat16)                      # bf16 operands, f32 accum
    if Mp != M:
        xb = jnp.pad(xb, ((0, Mp - M), (0, 0)))
    out = pl.pallas_call(
        functools.partial(_gemm_kernel, act=act),
        out_shape=jax.ShapeDtypeStruct((Mp, N), out_dtype),
        grid_spec=pltpu.PrefetchScalarGridSpec(
            num_scalar_prefetch=0,
            grid=(Mp // tm,),
            in_specs=[pl.BlockSpec((tm, K), lambda i: (i, 0)),
                      pl.BlockSpec((K, N), lambda i: (0, 0)),
                      pl.BlockSpec((1, N), lambda i: (0, 0))],
            out_specs=pl.BlockSpec((tm, N), lambda i: (i, 0)),
        ),
        compiler_params=pltpu.CompilerParams(
            dimension_semantics=("parallel",),
            vmem_limit_bytes=_VMEM_LIMIT),
    )(xb, pw["w"], pw["b"])
    if Mp != M:
        out = out[:M]
    return out


# --------------------------------------------------------------------------
# Conv3d (kernel 3, padding 1), channels-last, as im2col + Pallas GEMM
# --------------------------------------------------------------------------
def _conv_extra_taps(cin):
    # append all-zero taps so K = (27+e)*Cin is 16-aligned (bf16 packing);
    # the extra columns come out of the im2col stack for free (no jnp.pad).
    k = 27 * cin
    for e in range(17):
        if (k + e * cin) % 16 == 0:
            return e
    return 0


def prep_conv_weight(w27, b, cin, cout):
    e = _conv_extra_taps(cin)
    kp = (27 + e) * cin
    w = jnp.zeros((kp, cout), jnp.bfloat16).at[:27 * cin, :].set(
        w27.astype(jnp.bfloat16))
    return {"w": w, "b": jnp.asarray(b, jnp.float32).reshape(1, cout),
            "K": kp, "N": cout, "extra_taps": e}


def conv3d_block(x, pw, stride, act="leaky_relu"):
    """x:(B,D1,D2,D3,Cin) channels-last; 3x3x3 conv, padding 1, bf16 output."""
    B, D1, D2, D3, Cin = x.shape
    Cout = pw["N"]
    O1 = (D1 - 1) // stride + 1
    O2 = (D2 - 1) // stride + 1
    O3 = (D3 - 1) // stride + 1
    xp = jnp.pad(x.astype(jnp.bfloat16),
                 ((0, 0), (1, 1), (1, 1), (1, 1), (0, 0)))
    # TODO(synk): fusing the 27-tap patch extraction directly into the Pallas
    # GEMM (haloed VMEM slab + in-kernel pl.ds windows) would remove this
    # im2col materialization entirely; kept in XLA for lowering safety.
    patches = []
    for kd in range(3):
        for kh in range(3):
            for kw in range(3):
                patches.append(jax.lax.slice(
                    xp, (0, kd, kh, kw, 0),
                    (B, kd + (O1 - 1) * stride + 1,
                     kh + (O2 - 1) * stride + 1,
                     kw + (O3 - 1) * stride + 1, Cin),
                    (1, stride, stride, stride, 1)))
    for _ in range(pw["extra_taps"]):
        patches.append(jnp.zeros_like(patches[0]))
    p = jnp.stack(patches, axis=4)                   # (B,O1,O2,O3,27+e,Cin)
    M = B * O1 * O2 * O3
    out = gemm_bias_act(p.reshape(M, pw["K"]), pw, act=act,
                        out_dtype=jnp.bfloat16)
    return out.reshape(B, O1, O2, O3, Cout)


# --------------------------------------------------------------------------
# PCA projection: one wide-N GEMM emitting disp (+mean) and deform (+mean+id)
# --------------------------------------------------------------------------
def _choose_pca_n_tile(N, K, m=8, n_out=2):
    cap = max(128, _round_up(N, 128))
    budget = 16 * 1024 * 1024
    for tn in (32768, 16384, 8192, 4096, 2048, 1024, 512, 256, 128):
        need = 2 * (K * tn * 2) + n_out * 2 * (m * tn * 4) + n_out * 2 * (tn * 4)
        if tn <= cap and need <= budget:
            return tn
    return 128


def prep_pca(pca_V, pca_mean, id_flat):
    """pca_V:(latent, 3*D*W*H).  Identity map folded into a second bias."""
    K, N = pca_V.shape
    tn = _choose_pca_n_tile(N, K)
    Np = _round_up(N, tn)
    w = jnp.zeros((K, Np), jnp.bfloat16).at[:, :N].set(pca_V.astype(jnp.bfloat16))
    bm = jnp.zeros((1, Np), jnp.float32).at[0, :N].set(pca_mean.astype(jnp.float32))
    bd = jnp.zeros((1, Np), jnp.float32).at[0, :N].set(
        (pca_mean + id_flat).astype(jnp.float32))
    return {"w": w, "b_mean": bm, "b_def": bd,
            "K": K, "N": N, "Np": Np, "tn": tn}


def _pca_kernel(x_ref, w_ref, bm_ref, bd_ref, disp_ref, def_ref):
    r = jnp.dot(x_ref[...], w_ref[...], preferred_element_type=jnp.float32)
    disp_ref[...] = r + bm_ref[...]
    def_ref[...] = r + bd_ref[...]


def pca_project(coefs, pp):
    M, K = coefs.shape
    assert K == pp["K"]
    Np, tn = pp["Np"], pp["tn"]
    xb = coefs.astype(jnp.bfloat16)
    disp, deform = pl.pallas_call(
        _pca_kernel,
        out_shape=(jax.ShapeDtypeStruct((M, Np), jnp.float32),
                   jax.ShapeDtypeStruct((M, Np), jnp.float32)),
        grid_spec=pltpu.PrefetchScalarGridSpec(
            num_scalar_prefetch=0,
            grid=(Np // tn,),            # big axis leading -> megacore-shardable
            in_specs=[pl.BlockSpec((M, K), lambda j: (0, 0)),
                      pl.BlockSpec((K, tn), lambda j: (0, j)),
                      pl.BlockSpec((1, tn), lambda j: (0, j)),
                      pl.BlockSpec((1, tn), lambda j: (0, j))],
            out_specs=[pl.BlockSpec((M, tn), lambda j: (0, j)),
                       pl.BlockSpec((M, tn), lambda j: (0, j))],
        ),
        compiler_params=pltpu.CompilerParams(
            dimension_semantics=("parallel",),
            vmem_limit_bytes=_VMEM_LIMIT),
    )(xb, pp["w"], pp["b_mean"], pp["b_def"])
    if Np != pp["N"]:
        disp, deform = disp[:, :pp["N"]], deform[:, :pp["N"]]
    return disp, deform


# --------------------------------------------------------------------------
# Trilinear warp (Bilinear, zero_boundary=True, using_scale=True).
# The source is padded by one voxel of -1.0 ((v+1)/2 == 0), so a single
# clamped base corner index per voxel suffices and no per-corner validity
# masks are needed in the blend kernel.
# --------------------------------------------------------------------------
def _warp_coords_f(phi, D, W, H):
    z = jnp.clip((phi[0:1] + 1.0) * (0.5 * (D - 1)), -1.0, jnp.float32(D))
    y = jnp.clip((phi[1:2] + 1.0) * (0.5 * (W - 1)), -1.0, jnp.float32(W))
    x = jnp.clip((phi[2:3] + 1.0) * (0.5 * (H - 1)), -1.0, jnp.float32(H))
    z0 = jnp.clip(jnp.floor(z), -1.0, jnp.float32(D - 1))
    y0 = jnp.clip(jnp.floor(y), -1.0, jnp.float32(W - 1))
    x0 = jnp.clip(jnp.floor(x), -1.0, jnp.float32(H - 1))
    return z0, y0, x0, z - z0, y - y0, x - x0


def _warp_idx_kernel(phi_ref, idx_ref, *, D, W, H):
    z0, y0, x0, _, _, _ = _warp_coords_f(phi_ref[0], D, W, H)
    wp, hp = W + 2, H + 2
    base = ((z0.astype(jnp.int32) + 1) * (wp * hp)
            + (y0.astype(jnp.int32) + 1) * hp
            + (x0.astype(jnp.int32) + 1))
    idx_ref[0] = base                                 # (1, nt) lane-dense store


def _warp_blend_kernel(phi_ref, vals_ref, out_ref, *, D, W, H):
    _, _, _, fz, fy, fx = _warp_coords_f(phi_ref[0], D, W, H)
    v = vals_ref[0].astype(jnp.float32) + 1.0         # (8, nt); zero at the pad
    wz = (1.0 - fz, fz)
    wy = (1.0 - fy, fy)
    wx = (1.0 - fx, fx)
    acc = jnp.zeros_like(fz)
    c = 0
    for dz in (0, 1):
        for dy in (0, 1):
            for dx in (0, 1):
                acc = acc + wz[dz] * wy[dy] * wx[dx] * v[c:c + 1]
                c += 1
    out_ref[0] = acc - 1.0                            # using_scale: *2-1 folded


def _warp_tile(N):
    for c in (32768, 16384, 8192, 4096, 2048, 1024, 512, 256, 128):
        if N % c == 0:
            return c
    for c in (32768, 16384, 8192, 4096, 2048, 1024, 512, 256, 128):
        if c <= N:
            return c                                  # cdiv grid, ragged tail
    return N


def warp_base_indices(phi_flat, D, W, H):
    B, _, N = phi_flat.shape
    nt = _warp_tile(N)
    return pl.pallas_call(
        functools.partial(_warp_idx_kernel, D=D, W=W, H=H),
        out_shape=jax.ShapeDtypeStruct((B, 1, N), jnp.int32),
        grid_spec=pltpu.PrefetchScalarGridSpec(
            num_scalar_prefetch=0,
            grid=(pl.cdiv(N, nt), B),                 # big axis leading
            in_specs=[pl.BlockSpec((1, 3, nt), lambda n, b: (b, 0, n))],
            out_specs=pl.BlockSpec((1, 1, nt), lambda n, b: (b, 0, n)),
        ),
        compiler_params=pltpu.CompilerParams(
            dimension_semantics=("parallel", "parallel"),
            vmem_limit_bytes=_VMEM_LIMIT),
    )(phi_flat)


def warp_blend(phi_flat, vals, D, W, H):
    B, _, N = phi_flat.shape
    nt = _warp_tile(N)
    return pl.pallas_call(
        functools.partial(_warp_blend_kernel, D=D, W=W, H=H),
        out_shape=jax.ShapeDtypeStruct((B, 1, N), jnp.float32),
        grid_spec=pltpu.PrefetchScalarGridSpec(
            num_scalar_prefetch=0,
            grid=(pl.cdiv(N, nt), B),
            in_specs=[pl.BlockSpec((1, 3, nt), lambda n, b: (b, 0, n)),
                      pl.BlockSpec((1, 8, nt), lambda n, b: (b, 0, n))],
            out_specs=pl.BlockSpec((1, 1, nt), lambda n, b: (b, 0, n)),
        ),
        compiler_params=pltpu.CompilerParams(
            dimension_semantics=("parallel", "parallel"),
            vmem_limit_bytes=_VMEM_LIMIT),
    )(phi_flat, vals)


# --------------------------------------------------------------------------
# Plain-JAX glue: identity map, nearest resize
# --------------------------------------------------------------------------
def gen_identity_map(img_sz):
    D, W, H = img_sz
    g0 = jnp.broadcast_to(jnp.linspace(-1.0, 1.0, D)[:, None, None], (D, W, H))
    g1 = jnp.broadcast_to(jnp.linspace(-1.0, 1.0, W)[None, :, None], (D, W, H))
    g2 = jnp.broadcast_to(jnp.linspace(-1.0, 1.0, H)[None, None, :], (D, W, H))
    return jnp.stack([g0, g1, g2], axis=0).astype(jnp.float32)   # (3,D,W,H)


def interpolate_nearest_2d(x, out_h, out_w):
    # F.interpolate(mode='nearest') on a 4D NCHW tensor.
    B, C, Hin, Win = x.shape
    hi = (jnp.arange(out_h) * Hin // out_h).astype(jnp.int32)
    wi = (jnp.arange(out_w) * Win // out_w).astype(jnp.int32)
    return x[:, :, hi[:, None], wi[None, :]]


# --------------------------------------------------------------------------
# The model
# --------------------------------------------------------------------------
class LiftRegDeformSubspacePallas:
    def __init__(self, img_sz, drr_feature_num, latent_dim, key):
        self.img_sz = img_sz
        D, W, H = img_sz
        enc_filters = [16, 32, 32, 32, 32, 32]

        def glorot(k, shape, fan_in):
            return (jax.random.normal(k, shape, jnp.float32)
                    / jnp.sqrt(jnp.float32(fan_in)))

        keys = jax.random.split(key, 32)
        ki = iter(range(32))

        # conv encoders -- weights stored (kd,kh,kw,Cin,Cout) -> (27*Cin,Cout).
        # NOTE: loading real PyTorch checkpoints ((Cout,Cin,kd,kh,kw)) would
        # need an explicit permute first.
        self.conv_params = []
        in_ch = drr_feature_num + 1
        for i, out_ch in enumerate(enc_filters):
            stride = 1 if i == 0 else 2
            w = glorot(keys[next(ki)], (3, 3, 3, in_ch, out_ch), 27 * in_ch)
            b = jnp.zeros((out_ch,), jnp.float32)
            self.conv_params.append(
                (prep_conv_weight(w.reshape(27 * in_ch, out_ch), b,
                                  in_ch, out_ch), stride))
            in_ch = out_ch

        # FC head (flatten dim adapts to img_sz; 32*5*5*5 corresponds to 160^3)
        f = D
        for _ in range(5):
            f = (f - 1) // 2 + 1
        flat_dim = enc_filters[-1] * f * f * f
        fc_dims = [(flat_dim, 800, "leaky_relu"),
                   (800, 256, "leaky_relu"),
                   (256, latent_dim, "none")]
        self.fc_params = []
        for din, dout, act in fc_dims:
            w = glorot(keys[next(ki)], (din, dout), din)
            b = jnp.zeros((dout,), jnp.float32)
            self.fc_params.append((prep_dense_weight(w, b), act))

        # synthetic PCA subspace (PyTorch: F.linear(x, pca_vectors, pca_mean));
        # the identity map is folded into a second bias at init so the deform
        # field comes straight out of the GEMM.
        n_out = 3 * D * W * H
        pca_V = 0.05 * glorot(keys[next(ki)], (latent_dim, n_out), latent_dim)
        pca_mean = 0.01 * jax.random.normal(keys[next(ki)], (n_out,), jnp.float32)
        self.id_transform = gen_identity_map(img_sz)          # (3,D,W,H)
        self.pca_pp = prep_pca(pca_V, pca_mean, self.id_transform.reshape(-1))

    def forward(self, inp):
        moving = inp["source"].astype(jnp.float32)             # (B,1,D,W,H)
        target = inp["target"].astype(jnp.float32)
        target_proj = inp["target_proj"].astype(jnp.float32)
        if "source_label" in inp:
            moving_cp = (moving + 1.0) * inp["source_label"] - 1.0
            target_cp = (target + 1.0) * inp["target_label"] - 1.0
        else:
            moving_cp = moving
            target_cp = target

        B, Cm, D, W, H = moving.shape
        assert Cm == 1

        # target_proj -> volume (channels-last) + concat with moving
        tr = interpolate_nearest_2d(target_proj, D, H)         # (B,Cp,D,H)
        Cp = tr.shape[1]
        tr_cl = jnp.transpose(tr, (0, 2, 3, 1))                # (B,D,H,Cp)
        tv = jnp.broadcast_to(tr_cl[:, :, None, :, :], (B, D, W, H, Cp))
        mv_cl = jnp.transpose(moving, (0, 2, 3, 4, 1))         # (B,D,W,H,1)
        x = jnp.concatenate([mv_cl, tv], axis=-1).astype(jnp.bfloat16)

        # conv encoders (channels-last im2col + Pallas GEMM, bf16 activations)
        for pw, s in self.conv_params:
            x = conv3d_block(x, pw, stride=s, act="leaky_relu")

        # flatten in PyTorch NCDWH order (tiny tensor here) + FC head
        x = jnp.transpose(x, (0, 4, 1, 2, 3)).reshape(B, -1)
        for pw, act in self.fc_params:
            x = gemm_bias_act(x, pw, act=act, out_dtype=jnp.float32)
        pca_coefs = x                                          # (B, latent_dim)

        # PCA projection -> displacement + deformation field in one wide GEMM
        disp2d, def2d = pca_project(pca_coefs, self.pca_pp)
        disp_field = disp2d.reshape(B, 3, D, W, H)
        deform_field = def2d.reshape(B, 3, D, W, H)

        # trilinear warp of moving_cp by deform_field (zero boundary via -1 pad)
        N = D * W * H
        Wp, Hp = W + 2, H + 2
        phi_flat = def2d.reshape(B, 3, N)
        idx = warp_base_indices(phi_flat, D, W, H)             # (B,1,N) int32
        src_pad = jnp.pad(
            moving_cp.reshape(B, D, W, H).astype(jnp.bfloat16),
            ((0, 0), (1, 1), (1, 1), (1, 1)),
            constant_values=-1.0).reshape(B, (D + 2) * Wp * Hp)
        offs = jnp.array([dz * (Wp * Hp) + dy * Hp + dx
                          for dz in (0, 1) for dy in (0, 1) for dx in (0, 1)],
                         jnp.int32)
        corner_idx = idx[:, 0, :][:, None, :] + offs[None, :, None]   # (B,8,N)
        # TODO(synk): the 8-neighbor gather stays in XLA (no general in-kernel
        # gather on TPU Pallas); base-index + bf16 values keep its traffic low.
        vals = jax.vmap(lambda s, i: s[i])(src_pad, corner_idx)       # bf16
        warped = warp_blend(phi_flat, vals, D, W, H).reshape(B, 1, D, W, H)

        return {"warped": warped,
                "phi": deform_field,
                "params": disp_field,
                "target": target_cp,
                "pca_coefs": pca_coefs}


# --------------------------------------------------------------------------
if __name__ == "__main__":
    B = 2
    D = W = H = 32
    drr_feature_num = 3
    latent_dim = 16

    key = jax.random.PRNGKey(0)
    k_src, k_tgt, k_proj, k_param = jax.random.split(key, 4)
    source = jax.random.uniform(k_src, (B, 1, D, W, H),
                                minval=-1.0, maxval=1.0, dtype=jnp.float32)
    target = jax.random.uniform(k_tgt, (B, 1, D, W, H),
                                minval=-1.0, maxval=1.0, dtype=jnp.float32)
    target_proj = jax.random.uniform(k_proj, (B, drr_feature_num, D, H),
                                     minval=0.0, maxval=1.0, dtype=jnp.float32)

    net = LiftRegDeformSubspacePallas((D, W, H), drr_feature_num, latent_dim,
                                      key=k_param)
    out = net.forward({"source": source, "target": target,
                       "target_proj": target_proj})
    jax.block_until_ready(out)
    assert out["warped"].shape == (B, 1, D, W, H)
    assert out["phi"].shape == (B, 3, D, W, H)
    assert out["params"].shape == (B, 3, D, W, H)
    assert out["pca_coefs"].shape == (B, latent_dim)
    assert bool(jnp.isfinite(out["warped"]).all())
    print("KERNEL_OK")
</pallas_src>

<mosaic_0001>
module attributes {stable_mosaic.version = 11 : i64} {
  func.func @_gemm_kernel(%arg0: i32, %arg1: memref<4096x112xbf16, #tpu.memory_space<vmem>>, %arg2: memref<112x16xbf16, #tpu.memory_space<vmem>>, %arg3: memref<1x16xf32, #tpu.memory_space<vmem>>, %arg4: memref<4096x16xbf16, #tpu.memory_space<vmem>>) attributes {dimension_semantics = [#tpu.dimension_semantics<parallel>], iteration_bounds = array<i64: 16>, scalar_prefetch = 0 : i64, scratch_operands = 0 : i64, tpu.core_type = #tpu.core_type<tc>, window_params = [{transform_indices = @transform_0, window_bounds = array<i64: 4096, 112>}, {pipeline_mode = #tpu.pipeline_mode<synchronous>, transform_indices = @transform_1, window_bounds = array<i64: 112, 16>}, {pipeline_mode = #tpu.pipeline_mode<synchronous>, transform_indices = @transform_2, window_bounds = array<i64: 1, 16>}, {transform_indices = @transform_3, window_bounds = array<i64: 4096, 16>}]} {
    %c0 = arith.constant 0 : index
    %c0_0 = arith.constant 0 : index
    %0 = vector.load %arg1[%c0, %c0_0] : memref<4096x112xbf16, #tpu.memory_space<vmem>>, vector<4096x112xbf16>
    %c0_1 = arith.constant 0 : index
    %c0_2 = arith.constant 0 : index
    %1 = vector.load %arg2[%c0_1, %c0_2] : memref<112x16xbf16, #tpu.memory_space<vmem>>, vector<112x16xbf16>
    %cst = arith.constant dense<0.000000e+00> : vector<4096x16xf32>
    %2 = tpu.matmul %0, %1, %cst {dimension_numbers = #tpu.dot_dimension_numbers<[1], [0], [0], [1], [0, 0, 1, 1], [], []>} : vector<4096x112xbf16>, vector<112x16xbf16>, vector<4096x16xf32> -> vector<4096x16xf32>
    %c0_3 = arith.constant 0 : index
    %c0_4 = arith.constant 0 : index
    %3 = vector.load %arg3[%c0_3, %c0_4] : memref<1x16xf32, #tpu.memory_space<vmem>>, vector<1x16xf32>
    %4 = vector.broadcast %3 : vector<1x16xf32> to vector<4096x16xf32>
    %5 = arith.addf %2, %4 : vector<4096x16xf32>
    %cst_5 = arith.constant 0.000000e+00 : f32
    %6 = vector.broadcast %cst_5 : f32 to vector<4096x16xf32>
    %7 = arith.cmpf ogt, %5, %6 : vector<4096x16xf32>
    %cst_6 = arith.constant 2.000000e-01 : f32
    %8 = vector.broadcast %cst_6 : f32 to vector<4096x16xf32>
    %9 = arith.mulf %8, %5 : vector<4096x16xf32>
    %10 = arith.select %7, %5, %9 : vector<4096x16xi1>, vector<4096x16xf32>
    %11 = arith.truncf %10 : vector<4096x16xf32> to vector<4096x16xbf16>
    %c0_7 = arith.constant 0 : index
    %c0_8 = arith.constant 0 : index
    %12 = vector.load %arg4[%c0_7, %c0_8] : memref<4096x16xbf16, #tpu.memory_space<vmem>>, vector<4096x16xbf16>
    tpu.vector_store %arg4[%c0_7, %c0_8], %11 {strides = array<i32>} : memref<4096x16xbf16, #tpu.memory_space<vmem>>, vector<4096x16xbf16>,
    return
  }
  func.func @transform_0(%arg0: i32) -> (i32, i32) {
    %c0_i32 = arith.constant 0 : i32
    %c0_i32_0 = arith.constant 0 : i32
    return %arg0, %c0_i32 : i32, i32
  }
  func.func @transform_1(%arg0: i32) -> (i32, i32) {
    %c0_i32 = arith.constant 0 : i32
    %c0_i32_0 = arith.constant 0 : i32
    %c0_i32_1 = arith.constant 0 : i32
    return %c0_i32, %c0_i32_0 : i32, i32
  }
  func.func @transform_2(%arg0: i32) -> (i32, i32) {
    %c0_i32 = arith.constant 0 : i32
    %c0_i32_0 = arith.constant 0 : i32
    %c0_i32_1 = arith.constant 0 : i32
    return %c0_i32, %c0_i32_0 : i32, i32
  }
  func.func @transform_3(%arg0: i32) -> (i32, i32) {
    %c0_i32 = arith.constant 0 : i32
    %c0_i32_0 = arith.constant 0 : i32
    return %arg0, %c0_i32 : i32, i32
  }
}

</mosaic_0001>

<bundles_post_ra>
// kernel: tpu_custom_call.1
= control target key start
LH: loop header
LB: loop body
LE: loop exit
PB: predicated region body
PF: predicated region fallthrough
CT: control target
= control target key end

     0   :  { %s8349_s12 = smov 0   ;;  %s10486_s0 = inlined_call_operand.vmem [shape: bf16[65536,112], index: 0, kind: input, shape index: {}]   ;;  %s10487_s1 = inlined_call_operand.vmem [shape: bf16[112,16], index: 1, kind: input, shape index: {}]   ;;  %s10488_s2 = inlined_call_operand.vmem [shape: f32[1,16], index: 2, kind: input, shape index: {}]   ;;  %s10489_s3 = inlined_call_operand.vmem [shape: bf16[65536,16], index: 3, kind: output, shape index: {}]  }
   0x1 LB: > { %s6702_s13 = sadd.s32 4294967295, %s8327_s12   ;;  %p6706_p0 = scmp.ge.s32.totalorder %s8327_s12, 1  ;;  %s8327_s12 = sphi %s8349_s12, %s13_s12  }
   0x2   : > { %p138_p1 = scmp.lt.s32.totalorder %s8327_s12, 17 }
   0x4   : > { %p139_p2 = pnand %p6706_p0, %p138_p1 }
   0x5   : > { %s6707_s20 = sshll.u32 (!%p139_p2), %s6702_s13, 9 }
   0x6   : > { %142 = sbr.rel (%p139_p2) target bundleno = 1197 (0x4ad), region = 32  ;;  %p163_p3 = scmp.lt.s32.totalorder (!%p139_p2), %s6707_s20, 8191 }
   0xb   : > { %v8283_v0 = vld [vmem:[%s10487_s1 + $0x30] sm:$0xff]  ;;  %v8282_v1 = vld [vmem:[%s10487_s1 + $0x28] sm:$0xff]  ;;  %v8281_v2 = vld [vmem:[%s10487_s1 + $0x20] sm:$0xff]  ;;  %s10491_s20 = smov (!%p163_p3, %s6707_s20), 8191  ;;  %vm2027_vm0 = vcmask 916480   ;;  %vm6133_vm3 = vcmask 125952  }
   0xc   : > { %2797 = vmatpush.bf16.msra.mxu0 %v8283_v0  ;;  %8284 = vmatpush.bf16.msra.mxu1 %v8283_v0  ;;  %v8280_v3 = vld [vmem:[%s10487_s1 + $0x18] sm:$0xff]  ;;  %v8279_v4 = vld [vmem:[%s10487_s1 + $0x10] sm:$0xff]  ;;  %v8278_v5 = vld [vmem:[%s10487_s1 + $0x8] sm:$0xff]  ;;  %s6708_s27 = sshll.u32 %s10491_s20, 2 }
   0xd   : > { %8285 = vmatpush.bf16.msra.mxu2 %v8283_v0  ;;  %8286 = vmatpush.bf16.msra.mxu3 %v8283_v0  ;;  %v8277_v6 = vld [vmem:[%s10487_s1] sm:$0xff]  ;;  %s8386_s5 = scalar_lea.vmem %s10486_s0, %s6708_s27  ;;  %s8472_s10 = scalar_lea.vmem %s10489_s3, %s6708_s27 }
   0xe   : > { %v8021_v7 = vld [vmem:[%s8386_s5] sm:$0xff]  ;;  %v8022_v11 = vld [vmem:[%s8386_s5 + $0x8] sm:$0xff]  ;;  %v8023_v15 = vld [vmem:[%s8386_s5 + $0x10] sm:$0xff] }
   0xf   : > { %v8085_v8 = vld [vmem:[%s8386_s5 + $0x200] sm:$0xff]  ;;  %v8086_v12 = vld [vmem:[%s8386_s5 + $0x208] sm:$0xff]  ;;  %v8087_v16 = vld [vmem:[%s8386_s5 + $0x210] sm:$0xff] }
  0x10   : > { %2798 = vmatpush.bf16.msra.mxu0 %v8282_v1  ;;  %8287 = vmatpush.bf16.msra.mxu1 %v8282_v1  ;;  %v8149_v9 = vld [vmem:[%s8386_s5 + $0x400] sm:$0xff]  ;;  %v8150_v13 = vld [vmem:[%s8386_s5 + $0x408] sm:$0xff]  ;;  %v8151_v17 = vld [vmem:[%s8386_s5 + $0x410] sm:$0xff] }
  0x11   : > { %8288 = vmatpush.bf16.msra.mxu2 %v8282_v1  ;;  %8289 = vmatpush.bf16.msra.mxu3 %v8282_v1  ;;  %v8213_v10 = vld [vmem:[%s8386_s5 + $0x600] sm:$0xff]  ;;  %v8214_v14 = vld [vmem:[%s8386_s5 + $0x608] sm:$0xff]  ;;  %v8215_v18 = vld [vmem:[%s8386_s5 + $0x610] sm:$0xff] }
  0x12   : > { %v8024_v19 = vld [vmem:[%s8386_s5 + $0x18] sm:$0xff]  ;;  %v8025_v23 = vld [vmem:[%s8386_s5 + $0x20] sm:$0xff]  ;;  %v8026_v27 = vld [vmem:[%s8386_s5 + $0x28] sm:$0xff] }
  0x13   : > { %v8088_v20 = vld [vmem:[%s8386_s5 + $0x218] sm:$0xff]  ;;  %v8089_v24 = vld [vmem:[%s8386_s5 + $0x220] sm:$0xff]  ;;  %v8090_v28 = vld [vmem:[%s8386_s5 + $0x228] sm:$0xff] }
  0x14   : > { %2799 = vmatpush.bf16.msra.mxu0 %v8281_v2  ;;  %8290 = vmatpush.bf16.msra.mxu1 %v8281_v2  ;;  %v8152_v21 = vld [vmem:[%s8386_s5 + $0x418] sm:$0xff]  ;;  %v8153_v25 = vld [vmem:[%s8386_s5 + $0x420] sm:$0xff]  ;;  %v8154_v29 = vld [vmem:[%s8386_s5 + $0x428] sm:$0xff] }
  0x15   : > { %8291 = vmatpush.bf16.msra.mxu2 %v8281_v2  ;;  %8292 = vmatpush.bf16.msra.mxu3 %v8281_v2  ;;  %v8216_v22 = vld [vmem:[%s8386_s5 + $0x618] sm:$0xff]  ;;  %v8217_v26 = vld [vmem:[%s8386_s5 + $0x620] sm:$0xff]  ;;  %v8218_v30 = vld [vmem:[%s8386_s5 + $0x628] sm:$0xff] }
  0x16   : > { %v8027_v31 = vld [vmem:[%s8386_s5 + $0x30] sm:$0xff]  ;;  %v8028_v35 = vld [vmem:[%s8386_s5 + $0x38] sm:$0xff]  ;;  %v8455_v39 = vld [vmem:[%s10488_s2] ss:$0 sm:$0xff] }
  0x17   : > { %v8091_v32 = vld [vmem:[%s8386_s5 + $0x230] sm:$0xff]  ;;  %v8092_v36 = vld [vmem:[%s8386_s5 + $0x238] sm:$0xff]  ;;  %v8029_v40 = vld [vmem:[%s8386_s5 + $0x40] sm:$0xff] }
  0x18   : > { %2800 = vmatpush.bf16.msra.mxu0 %v8280_v3  ;;  %8293 = vmatpush.bf16.msra.mxu1 %v8280_v3  ;;  %v8155_v33 = vld [vmem:[%s8386_s5 + $0x430] sm:$0xff]  ;;  %v8156_v37 = vld [vmem:[%s8386_s5 + $0x438] sm:$0xff]  ;;  %v8093_v41 = vld [vmem:[%s8386_s5 + $0x240] sm:$0xff] }
  0x19   : > { %8294 = vmatpush.bf16.msra.mxu2 %v8280_v3  ;;  %8295 = vmatpush.bf16.msra.mxu3 %v8280_v3  ;;  %v8219_v34 = vld [vmem:[%s8386_s5 + $0x630] sm:$0xff]  ;;  %v8220_v38 = vld [vmem:[%s8386_s5 + $0x638] sm:$0xff]  ;;  %v8157_v44 = vld [vmem:[%s8386_s5 + $0x440] sm:$0xff] }
  0x1a   : > { %v8221_v45 = vld [vmem:[%s8386_s5 + $0x640] sm:$0xff] }
  0x1c   : > { %2801 = vmatpush.bf16.msra.mxu0 %v8279_v4  ;;  %8296 = vmatpush.bf16.msra.mxu1 %v8279_v4 }
  0x1d   : > { %8297 = vmatpush.bf16.msra.mxu2 %v8279_v4  ;;  %8298 = vmatpush.bf16.msra.mxu3 %v8279_v4 }
  0x20   : > { %2802 = vmatpush.bf16.msra.mxu0 %v8278_v5  ;;  %8299 = vmatpush.bf16.msra.mxu1 %v8278_v5 }
  0x21   : > { %8300 = vmatpush.bf16.msra.mxu2 %v8278_v5  ;;  %8301 = vmatpush.bf16.msra.mxu3 %v8278_v5 }
  0x24   : > { %2803 = vmatpush.bf16.msra.mxu0 %v8277_v6  ;;  %8302 = vmatpush.bf16.msra.mxu1 %v8277_v6 }
  0x25   : > { %8303 = vmatpush.bf16.msra.mxu2 %v8277_v6  ;;  %8304 = vmatpush.bf16.msra.mxu3 %v8277_v6 }
  0x27   : > { %7763 = vmatmul.msk.bf16.vlgmr.msra.gmra.mxu0 %vm2027_vm0, %v8021_v7  ;;  %7827 = vmatmul.msk.bf16.vlgmr.msra.gmra.mxu1 %vm2027_vm0, %v8085_v8 }
  0x28   : > { %7891 = vmatmul.msk.bf16.vlgmr.msra.gmra.mxu2 %vm2027_vm0, %v8149_v9  ;;  %7955 = vmatmul.msk.bf16.vlgmr.msra.gmra.mxu3 %vm2027_vm0, %v8213_v10 }
  0x37   : > { %7764 = vmatmul.msk.bf16.gmra.mxu0 %vm2027_vm0, %v8022_v11  ;;  %7828 = vmatmul.msk.bf16.gmra.mxu1 %vm2027_vm0, %v8086_v12  ;;  %v8030_v12 = vld [vmem:[%s8386_s5 + $0x48] sm:$0xff] }
  0x38   : > { %7892 = vmatmul.msk.bf16.gmra.mxu2 %vm2027_vm0, %v8150_v13  ;;  %7956 = vmatmul.msk.bf16.gmra.mxu3 %vm2027_vm0, %v8214_v14  ;;  %v8094_v13 = vld [vmem:[%s8386_s5 + $0x248] sm:$0xff] }
  0x47   : > { %7765 = vmatmul.msk.bf16.gmra.mxu0 %vm2027_vm0, %v8023_v15  ;;  %7829 = vmatmul.msk.bf16.gmra.mxu1 %vm2027_vm0, %v8087_v16 }
  0x48   : > { %7893 = vmatmul.msk.bf16.gmra.mxu2 %vm2027_vm0, %v8151_v17  ;;  %7957 = vmatmul.msk.bf16.gmra.mxu3 %vm2027_vm0, %v8215_v18  ;;  %v8158_v18 = vld [vmem:[%s8386_s5 + $0x448] sm:$0xff] }
  0x57   : > { %7766 = vmatmul.msk.bf16.gmra.mxu0 %vm2027_vm0, %v8024_v19  ;;  %7830 = vmatmul.msk.bf16.gmra.mxu1 %vm2027_vm0, %v8088_v20  ;;  %v8222_v19 = vld [vmem:[%s8386_s5 + $0x648] sm:$0xff] }
  0x58   : > { %7894 = vmatmul.msk.bf16.gmra.mxu2 %vm2027_vm0, %v8152_v21  ;;  %7958 = vmatmul.msk.bf16.gmra.mxu3 %vm2027_vm0, %v8216_v22 }
  0x67   : > { %7767 = vmatmul.msk.bf16.gmra.mxu0 %vm2027_vm0, %v8025_v23  ;;  %7831 = vmatmul.msk.bf16.gmra.mxu1 %vm2027_vm0, %v8089_v24 }
  0x68   : > { %7895 = vmatmul.msk.bf16.gmra.mxu2 %vm2027_vm0, %v8153_v25  ;;  %7959 = vmatmul.msk.bf16.gmra.mxu3 %vm2027_vm0, %v8217_v26 }
  0x77   : > { %7768 = vmatmul.msk.bf16.gmra.mxu0 %vm2027_vm0, %v8026_v27  ;;  %7832 = vmatmul.msk.bf16.gmra.mxu1 %vm2027_vm0, %v8090_v28 }
  0x78   : > { %7896 = vmatmul.msk.bf16.gmra.mxu2 %vm2027_vm0, %v8154_v29  ;;  %7960 = vmatmul.msk.bf16.gmra.mxu3 %vm2027_vm0, %v8218_v30 }
  0x87   : > { %7769 = vmatmul.msk.bf16.gmra.mxu0 %vm2027_vm0, %v8027_v31  ;;  %7833 = vmatmul.msk.bf16.gmra.mxu1 %vm2027_vm0, %v8091_v32 }
  0x88   : > { %7897 = vmatmul.msk.bf16.gmra.mxu2 %vm2027_vm0, %v8155_v33  ;;  %7961 = vmatmul.msk.bf16.gmra.mxu3 %vm2027_vm0, %v8219_v34 }
  0x97   : > { %7770 = vmatmul.msk.bf16.gmra.mxu0 %vm2027_vm0, %v8028_v35  ;;  %7834 = vmatmul.msk.bf16.gmra.mxu1 %vm2027_vm0, %v8092_v36 }
  0x98   : > { %7898 = vmatmul.msk.bf16.gmra.mxu2 %vm2027_vm0, %v8156_v37  ;;  %7962 = vmatmul.msk.bf16.gmra.mxu3 %vm2027_vm0, %v8220_v38 }
  0xa4   : > { %v2805_v42 = vpop.f32.mrf.mxu0  ;;  %v3125_v43 = vpop.f32.mrf.mxu1 }
  0xa5   : > { %v2806_v46 = vadd.f32 %v8455_v39, %v2805_v42  ;;  %v3126_v47 = vadd.f32 %v8455_v39, %v3125_v43 }
  0xa7   : > { %vm4085_vm1 = vcmp.gt.f32.partialorder %v2806_v46, 0.0  ;;  %v4597_v48 = vmul.f32 0.2, %v2806_v46  ;;  %vm4213_vm2 = vcmp.gt.f32.partialorder %v3126_v47, 0.0  ;;  %v4725_v49 = vmul.f32 0.2, %v3126_v47  ;;  %7771 = vmatmul.msk.bf16.gmra.mxu0 %vm2027_vm0, %v8029_v40  ;;  %7835 = vmatmul.msk.bf16.gmra.mxu1 %vm2027_vm0, %v8093_v41 }
  0xa8   : > { %7899 = vmatmul.msk.bf16.gmra.mxu2 %vm2027_vm0, %v8157_v44  ;;  %7963 = vmatmul.msk.bf16.gmra.mxu3 %vm2027_vm0, %v8221_v45 }
  0xa9   : > { %v5109_v50 = vsel %vm4085_vm1, %v2806_v46, %v4597_v48  ;;  %v5237_v51 = vsel %vm4213_vm2, %v3126_v47, %v4725_v49 }
  0xaa   : > { %v5621_v52 = vpack.c.bf16 %v5109_v50, %v5109_v50  ;;  %v5749_v53 = vpack.c.bf16 %v5237_v51, %v5237_v51 }
  0xab   : > { %v3445_v54 = vpop.f32.mrf.mxu2  ;;  %v3765_v55 = vpop.f32.mrf.mxu3 }
  0xac   : > { %6134 = vst.msk [vmem:[%s8472_s10] sm:$0xf] %vm6133_vm3, %v5621_v52  ;;  %v3446_v56 = vadd.f32 %v8455_v39, %v3445_v54  ;;  %v3766_v57 = vadd.f32 %v8455_v39, %v3765_v55  ;;  %v2807_v58 = vpop.f32.mrf.mxu0  ;;  %v3127_v59 = vpop.f32.mrf.mxu1 }
  0xad   : > { %6262 = vst.msk [vmem:[%s8472_s10 + $0x200] sm:$0xf] %vm6133_vm3, %v5749_v53  ;;  %v2808_v60 = vadd.f32 %v8455_v39, %v2807_v58  ;;  %v3128_v61 = vadd.f32 %v8455_v39, %v3127_v59  ;;  %v8095_v58 = vld [vmem:[%s8386_s5 + $0x250] sm:$0xff] }
  0xae   : > { %vm4341_vm4 = vcmp.gt.f32.partialorder %v3446_v56, 0.0  ;;  %v4853_v62 = vmul.f32 0.2, %v3446_v56  ;;  %vm4469_vm5 = vcmp.gt.f32.partialorder %v3766_v57, 0.0  ;;  %v4981_v63 = vmul.f32 0.2, %v3766_v57 }
  0xaf   : > { %vm4086_vm6 = vcmp.gt.f32.partialorder %v2808_v60, 0.0  ;;  %v4598_v0 = vmul.f32 0.2, %v2808_v60  ;;  %vm4214_vm7 = vcmp.gt.f32.partialorder %v3128_v61, 0.0  ;;  %v4726_v1 = vmul.f32 0.2, %v3128_v61 }
  0xb0   : > { %v5365_v2 = vsel %vm4341_vm4, %v3446_v56, %v4853_v62  ;;  %v5493_v3 = vsel %vm4469_vm5, %v3766_v57, %v4981_v63  ;;  %v8031_v57 = vld [vmem:[%s8386_s5 + $0x50] sm:$0xff] }
  0xb1   : > { %v5877_v4 = vpack.c.bf16 %v5365_v2, %v5365_v2  ;;  %v6005_v5 = vpack.c.bf16 %v5493_v3, %v5493_v3  ;;  %v5110_v6 = vsel %vm4086_vm6, %v2808_v60, %v4598_v0  ;;  %v5238_v7 = vsel %vm4214_vm7, %v3128_v61, %v4726_v1  ;;  %v8159_v63 = vld [vmem:[%s8386_s5 + $0x450] sm:$0xff] }
  0xb2   : > { %v5622_v8 = vpack.c.bf16 %v5110_v6, %v5110_v6  ;;  %v5750_v9 = vpack.c.bf16 %v5238_v7, %v5238_v7  ;;  %v8223_v0 = vld [vmem:[%s8386_s5 + $0x650] sm:$0xff] }
  0xb3   : > { %6390 = vst.msk [vmem:[%s8472_s10 + $0x400] sm:$0xf] %vm6133_vm3, %v5877_v4  ;;  %v3447_v10 = vpop.f32.mrf.mxu2  ;;  %v3767_v11 = vpop.f32.mrf.mxu3 }
  0xb4   : > { %6518 = vst.msk [vmem:[%s8472_s10 + $0x600] sm:$0xf] %vm6133_vm3, %v6005_v5  ;;  %v3448_v14 = vadd.f32 %v8455_v39, %v3447_v10  ;;  %v3768_v15 = vadd.f32 %v8455_v39, %v3767_v11  ;;  %v2810_v16 = vpop.f32.mrf.mxu0  ;;  %v3130_v17 = vpop.f32.mrf.mxu1 }
  0xb5   : > { %6135 = vst.msk [vmem:[%s8472_s10 + $0x4] sm:$0xf] %vm6133_vm3, %v5622_v8  ;;  %v2811_v20 = vadd.f32 %v8455_v39, %v2810_v16  ;;  %v3131_v21 = vadd.f32 %v8455_v39, %v3130_v17 }
  0xb6   : > { %6263 = vst.msk [vmem:[%s8472_s10 + $0x204] sm:$0xf] %vm6133_vm3, %v5750_v9  ;;  %vm4342_vm8 = vcmp.gt.f32.partialorder %v3448_v14, 0.0  ;;  %v4854_v22 = vmul.f32 0.2, %v3448_v14  ;;  %vm4470_vm9 = vcmp.gt.f32.partialorder %v3768_v15, 0.0 }
  0xb7   : > { %v4982_v23 = vmul.f32 0.2, %v3768_v15  ;;  %vm4087_vm10 = vcmp.gt.f32.partialorder %v2811_v20, 0.0  ;;  %v4599_v24 = vmul.f32 0.2, %v2811_v20  ;;  %vm4215_vm11 = vcmp.gt.f32.partialorder %v3131_v21, 0.0  ;;  %7772 = vmatmul.msk.bf16.gmra.mxu0 %vm2027_vm0, %v8030_v12  ;;  %7836 = vmatmul.msk.bf16.gmra.mxu1 %vm2027_vm0, %v8094_v13 }
  0xb8   : > { %v5366_v25 = vsel %vm4342_vm8, %v3448_v14, %v4854_v22  ;;  %v4727_v26 = vmul.f32 0.2, %v3131_v21  ;;  %7900 = vmatmul.msk.bf16.gmra.mxu2 %vm2027_vm0, %v8158_v18  ;;  %7964 = vmatmul.msk.bf16.gmra.mxu3 %vm2027_vm0, %v8222_v19 }
  0xb9   : > { %v5878_v27 = vpack.c.bf16 %v5366_v25, %v5366_v25  ;;  %v5494_v28 = vsel %vm4470_vm9, %v3768_v15, %v4982_v23  ;;  %v5111_v29 = vsel %vm4087_vm10, %v2811_v20, %v4599_v24 }
  0xba   : > { %v6006_v30 = vpack.c.bf16 %v5494_v28, %v5494_v28  ;;  %v5623_v31 = vpack.c.bf16 %v5111_v29, %v5111_v29  ;;  %v5239_v32 = vsel %vm4215_vm11, %v3131_v21, %v4727_v26 }
  0xbb   : > { %6391 = vst.msk [vmem:[%s8472_s10 + $0x404] sm:$0xf] %vm6133_vm3, %v5878_v27  ;;  %v5751_v33 = vpack.c.bf16 %v5239_v32, %v5239_v32  ;;  %v3450_v34 = vpop.f32.mrf.mxu2  ;;  %v3770_v35 = vpop.f32.mrf.mxu3 }
  0xbc   : > { %6519 = vst.msk [vmem:[%s8472_s10 + $0x604] sm:$0xf] %vm6133_vm3, %v6006_v30  ;;  %v3451_v36 = vadd.f32 %v8455_v39, %v3450_v34  ;;  %v3771_v37 = vadd.f32 %v8455_v39, %v3770_v35  ;;  %v2812_v38 = vpop.f32.mrf.mxu0  ;;  %v3132_v40 = vpop.f32.mrf.mxu1 }
  0xbd   : > { %6136 = vst.msk [vmem:[%s8472_s10 + $0x8] sm:$0xf] %vm6133_vm3, %v5623_v31  ;;  %v2813_v41 = vadd.f32 %v8455_v39, %v2812_v38  ;;  %v3133_v42 = vadd.f32 %v8455_v39, %v3132_v40  ;;  %v8096_v38 = vld [vmem:[%s8386_s5 + $0x258] sm:$0xff] }
  0xbe   : > { %6264 = vst.msk [vmem:[%s8472_s10 + $0x208] sm:$0xf] %vm6133_vm3, %v5751_v33  ;;  %vm4343_vm12 = vcmp.gt.f32.partialorder %v3451_v36, 0.0  ;;  %v4855_v43 = vmul.f32 0.2, %v3451_v36  ;;  %vm4471_vm13 = vcmp.gt.f32.partialorder %v3771_v37, 0.0 }
  0xbf   : > { %v4983_v44 = vmul.f32 0.2, %v3771_v37  ;;  %vm4088_vm14 = vcmp.gt.f32.partialorder %v2813_v41, 0.0  ;;  %v4600_v45 = vmul.f32 0.2, %v2813_v41  ;;  %vm4216_vm15 = vcmp.gt.f32.partialorder %v3133_v42, 0.0 }
  0xc0   : > { %v5367_v46 = vsel %vm4343_vm12, %v3451_v36, %v4855_v43  ;;  %v4728_v47 = vmul.f32 0.2, %v3133_v42 }
  0xc1   : > { %v5879_v48 = vpack.c.bf16 %v5367_v46, %v5367_v46  ;;  %v5495_v49 = vsel %vm4471_vm13, %v3771_v37, %v4983_v44  ;;  %v5112_v50 = vsel %vm4088_vm14, %v2813_v41, %v4600_v45  ;;  %v8032_v37 = vld [vmem:[%s8386_s5 + $0x58] sm:$0xff] }
  0xc2   : > { %v6007_v51 = vpack.c.bf16 %v5495_v49, %v5495_v49  ;;  %v5624_v52 = vpack.c.bf16 %v5112_v50, %v5112_v50  ;;  %v5240_v53 = vsel %vm4216_vm15, %v3133_v42, %v4728_v47  ;;  %v8160_v44 = vld [vmem:[%s8386_s5 + $0x458] sm:$0xff] }
  0xc3   : > { %6392 = vst.msk [vmem:[%s8472_s10 + $0x408] sm:$0xf] %vm6133_vm3, %v5879_v48  ;;  %v5752_v54 = vpack.c.bf16 %v5240_v53, %v5240_v53  ;;  %v3452_v55 = vpop.f32.mrf.mxu2  ;;  %v3772_v56 = vpop.f32.mrf.mxu3  ;;  %v8224_v45 = vld [vmem:[%s8386_s5 + $0x658] sm:$0xff] }
  0xc4   : > { %6520 = vst.msk [vmem:[%s8472_s10 + $0x608] sm:$0xf] %vm6133_vm3, %v6007_v51  ;;  %v3453_v59 = vadd.f32 %v8455_v39, %v3452_v55  ;;  %v3773_v60 = vadd.f32 %v8455_v39, %v3772_v56  ;;  %v2815_v61 = vpop.f32.mrf.mxu0  ;;  %v3135_v62 = vpop.f32.mrf.mxu1 }
  0xc5   : > { %6137 = vst.msk [vmem:[%s8472_s10 + $0xc] sm:$0xf] %vm6133_vm3, %v5624_v52  ;;  %v2816_v1 = vadd.f32 %v8455_v39, %v2815_v61  ;;  %v3136_v2 = vadd.f32 %v8455_v39, %v3135_v62 }
  0xc6   : > { %6265 = vst.msk [vmem:[%s8472_s10 + $0x20c] sm:$0xf] %vm6133_vm3, %v5752_v54  ;;  %vm4344_vm1 = vcmp.gt.f32.partialorder %v3453_v59, 0.0  ;;  %v4856_v3 = vmul.f32 0.2, %v3453_v59  ;;  %vm4472_vm2 = vcmp.gt.f32.partialorder %v3773_v60, 0.0 }
  0xc7   : > { %v4984_v4 = vmul.f32 0.2, %v3773_v60  ;;  %vm4089_vm4 = vcmp.gt.f32.partialorder %v2816_v1, 0.0  ;;  %v4601_v5 = vmul.f32 0.2, %v2816_v1  ;;  %vm4217_vm5 = vcmp.gt.f32.partialorder %v3136_v2, 0.0  ;;  %7773 = vmatmul.msk.bf16.gmra.mxu0 %vm2027_vm0, %v8031_v57  ;;  %7837 = vmatmul.msk.bf16.gmra.mxu1 %vm2027_vm0, %v8095_v58 }
  0xc8   : > { %v5368_v6 = vsel %vm4344_vm1, %v3453_v59, %v4856_v3  ;;  %v4729_v7 = vmul.f32 0.2, %v3136_v2  ;;  %7901 = vmatmul.msk.bf16.gmra.mxu2 %vm2027_vm0, %v8159_v63  ;;  %7965 = vmatmul.msk.bf16.gmra.mxu3 %vm2027_vm0, %v8223_v0 }
  0xc9   : > { %v5880_v8 = vpack.c.bf16 %v5368_v6, %v5368_v6  ;;  %v5496_v9 = vsel %vm4472_vm2, %v3773_v60, %v4984_v4  ;;  %v5113_v10 = vsel %vm4089_vm4, %v2816_v1, %v4601_v5 }
  0xca   : > { %v6008_v11 = vpack.c.bf16 %v5496_v9, %v5496_v9  ;;  %v5625_v12 = vpack.c.bf16 %v5113_v10, %v5113_v10  ;;  %v5241_v13 = vsel %vm4217_vm5, %v3136_v2, %v4729_v7 }
  0xcb   : > { %6393 = vst.msk [vmem:[%s8472_s10 + $0x40c] sm:$0xf] %vm6133_vm3, %v5880_v8  ;;  %v5753_v14 = vpack.c.bf16 %v5241_v13, %v5241_v13  ;;  %v3455_v15 = vpop.f32.mrf.mxu2  ;;  %v3775_v16 = vpop.f32.mrf.mxu3 }
  0xcc   : > { %6521 = vst.msk [vmem:[%s8472_s10 + $0x60c] sm:$0xf] %vm6133_vm3, %v6008_v11  ;;  %v3456_v17 = vadd.f32 %v8455_v39, %v3455_v15  ;;  %v3776_v18 = vadd.f32 %v8455_v39, %v3775_v16  ;;  %v2817_v19 = vpop.f32.mrf.mxu0  ;;  %v3137_v20 = vpop.f32.mrf.mxu1 }
  0xcd   : > { %6138 = vst.msk [vmem:[%s8472_s10 + $0x10] sm:$0xf] %vm6133_vm3, %v5625_v12  ;;  %v2818_v21 = vadd.f32 %v8455_v39, %v2817_v19  ;;  %v3138_v22 = vadd.f32 %v8455_v39, %v3137_v20  ;;  %v8097_v19 = vld [vmem:[%s8386_s5 + $0x260] sm:$0xff] }
  0xce   : > { %6266 = vst.msk [vmem:[%s8472_s10 + $0x210] sm:$0xf] %vm6133_vm3, %v5753_v14  ;;  %vm4345_vm6 = vcmp.gt.f32.partialorder %v3456_v17, 0.0  ;;  %v4857_v23 = vmul.f32 0.2, %v3456_v17  ;;  %vm4473_vm7 = vcmp.gt.f32.partialorder %v3776_v18, 0.0 }
  0xcf   : > { %v4985_v24 = vmul.f32 0.2, %v3776_v18  ;;  %vm4090_vm8 = vcmp.gt.f32.partialorder %v2818_v21, 0.0  ;;  %v4602_v25 = vmul.f32 0.2, %v2818_v21  ;;  %vm4218_vm9 = vcmp.gt.f32.partialorder %v3138_v22, 0.0 }
  0xd0   : > { %v5369_v26 = vsel %vm4345_vm6, %v3456_v17, %v4857_v23  ;;  %v4730_v27 = vmul.f32 0.2, %v3138_v22 }
  0xd1   : > { %v5881_v28 = vpack.c.bf16 %v5369_v26, %v5369_v26  ;;  %v5497_v29 = vsel %vm4473_vm7, %v3776_v18, %v4985_v24  ;;  %v5114_v30 = vsel %vm4090_vm8, %v2818_v21, %v4602_v25  ;;  %v8033_v18 = vld [vmem:[%s8386_s5 + $0x60] sm:$0xff] }
  0xd2   : > { %v6009_v31 = vpack.c.bf16 %v5497_v29, %v5497_v29  ;;  %v5626_v32 = vpack.c.bf16 %v5114_v30, %v5114_v30  ;;  %v5242_v33 = vsel %vm4218_vm9, %v3138_v22, %v4730_v27  ;;  %v8161_v24 = vld [vmem:[%s8386_s5 + $0x460] sm:$0xff] }
  0xd3   : > { %6394 = vst.msk [vmem:[%s8472_s10 + $0x410] sm:$0xf] %vm6133_vm3, %v5881_v28  ;;  %v5754_v34 = vpack.c.bf16 %v5242_v33, %v5242_v33  ;;  %v3457_v35 = vpop.f32.mrf.mxu2  ;;  %v3777_v36 = vpop.f32.mrf.mxu3  ;;  %v8225_v25 = vld [vmem:[%s8386_s5 + $0x660] sm:$0xff] }
  0xd4   : > { %6522 = vst.msk [vmem:[%s8472_s10 + $0x610] sm:$0xf] %vm6133_vm3, %v6009_v31  ;;  %v3458_v40 = vadd.f32 %v8455_v39, %v3457_v35  ;;  %v3778_v41 = vadd.f32 %v8455_v39, %v3777_v36  ;;  %v2820_v42 = vpop.f32.mrf.mxu0  ;;  %v3140_v43 = vpop.f32.mrf.mxu1 }
  0xd5   : > { %6139 = vst.msk [vmem:[%s8472_s10 + $0x14] sm:$0xf] %vm6133_vm3, %v5626_v32  ;;  %v2821_v46 = vadd.f32 %v8455_v39, %v2820_v42  ;;  %v3141_v47 = vadd.f32 %v8455_v39, %v3140_v43 }
  0xd6   : > { %6267 = vst.msk [vmem:[%s8472_s10 + $0x214] sm:$0xf] %vm6133_vm3, %v5754_v34  ;;  %vm4346_vm10 = vcmp.gt.f32.partialorder %v3458_v40, 0.0  ;;  %v4858_v48 = vmul.f32 0.2, %v3458_v40  ;;  %vm4474_vm11 = vcmp.gt.f32.partialorder %v3778_v41, 0.0 }
  0xd7   : > { %v4986_v49 = vmul.f32 0.2, %v3778_v41  ;;  %vm4091_vm12 = vcmp.gt.f32.partialorder %v2821_v46, 0.0  ;;  %v4603_v50 = vmul.f32 0.2, %v2821_v46  ;;  %vm4219_vm13 = vcmp.gt.f32.partialorder %v3141_v47, 0.0  ;;  %7774 = vmatmul.msk.bf16.gmra.mxu0 %vm2027_vm0, %v8032_v37  ;;  %7838 = vmatmul.msk.bf16.gmra.mxu1 %vm2027_vm0, %v8096_v38 }
  0xd8   : > { %v5370_v51 = vsel %vm4346_vm10, %v3458_v40, %v4858_v48  ;;  %v4731_v52 = vmul.f32 0.2, %v3141_v47  ;;  %7902 = vmatmul.msk.bf16.gmra.mxu2 %vm2027_vm0, %v8160_v44  ;;  %7966 = vmatmul.msk.bf16.gmra.mxu3 %vm2027_vm0, %v8224_v45 }
  0xd9   : > { %v5882_v53 = vpack.c.bf16 %v5370_v51, %v5370_v51  ;;  %v5498_v54 = vsel %vm4474_vm11, %v3778_v41, %v4986_v49  ;;  %v5115_v55 = vsel %vm4091_vm12, %v2821_v46, %v4603_v50 }
  0xda   : > { %v6010_v56 = vpack.c.bf16 %v5498_v54, %v5498_v54  ;;  %v5627_v57 = vpack.c.bf16 %v5115_v55, %v5115_v55  ;;  %v5243_v58 = vsel %vm4219_vm13, %v3141_v47, %v4731_v52 }
  0xdb   : > { %6395 = vst.msk [vmem:[%s8472_s10 + $0x414] sm:$0xf] %vm6133_vm3, %v5882_v53  ;;  %v5755_v59 = vpack.c.bf16 %v5243_v58, %v5243_v58  ;;  %v3460_v60 = vpop.f32.mrf.mxu2  ;;  %v3780_v61 = vpop.f32.mrf.mxu3 }
  0xdc   : > { %6523 = vst.msk [vmem:[%s8472_s10 + $0x614] sm:$0xf] %vm6133_vm3, %v6010_v56  ;;  %v3461_v62 = vadd.f32 %v8455_v39, %v3460_v60  ;;  %v3781_v63 = vadd.f32 %v8455_v39, %v3780_v61  ;;  %v2822_v0 = vpop.f32.mrf.mxu0  ;;  %v3142_v1 = vpop.f32.mrf.mxu1 }
  0xdd   : > { %6140 = vst.msk [vmem:[%s8472_s10 + $0x18] sm:$0xf] %vm6133_vm3, %v5627_v57  ;;  %v2823_v2 = vadd.f32 %v8455_v39, %v2822_v0  ;;  %v3143_v3 = vadd.f32 %v8455_v39, %v3142_v1  ;;  %v8098_v0 = vld [vmem:[%s8386_s5 + $0x268] sm:$0xff] }
  0xde   : > { %6268 = vst.msk [vmem:[%s8472_s10 + $0x218] sm:$0xf] %vm6133_vm3, %v5755_v59  ;;  %vm4347_vm14 = vcmp.gt.f32.partialorder %v3461_v62, 0.0  ;;  %v4859_v4 = vmul.f32 0.2, %v3461_v62  ;;  %vm4475_vm15 = vcmp.gt.f32.partialorder %v3781_v63, 0.0 }
  0xdf   : > { %v4987_v5 = vmul.f32 0.2, %v3781_v63  ;;  %vm4092_vm1 = vcmp.gt.f32.partialorder %v2823_v2, 0.0  ;;  %v4604_v6 = vmul.f32 0.2, %v2823_v2  ;;  %vm4220_vm2 = vcmp.gt.f32.partialorder %v3143_v3, 0.0 }
  0xe0   : > { %v5371_v7 = vsel %vm4347_vm14, %v3461_v62, %v4859_v4  ;;  %v4732_v8 = vmul.f32 0.2, %v3143_v3 }
  0xe1   : > { %v5883_v9 = vpack.c.bf16 %v5371_v7, %v5371_v7  ;;  %v5499_v10 = vsel %vm4475_vm15, %v3781_v63, %v4987_v5  ;;  %v5116_v11 = vsel %vm4092_vm1, %v2823_v2, %v4604_v6  ;;  %v8034_v63 = vld [vmem:[%s8386_s5 + $0x68] sm:$0xff] }
  0xe2   : > { %v6011_v12 = vpack.c.bf16 %v5499_v10, %v5499_v10  ;;  %v5628_v13 = vpack.c.bf16 %v5116_v11, %v5116_v11  ;;  %v5244_v14 = vsel %vm4220_vm2, %v3143_v3, %v4732_v8  ;;  %v8162_v5 = vld [vmem:[%s8386_s5 + $0x468] sm:$0xff] }
  0xe3   : > { %6396 = vst.msk [vmem:[%s8472_s10 + $0x418] sm:$0xf] %vm6133_vm3, %v5883_v9  ;;  %v5756_v15 = vpack.c.bf16 %v5244_v14, %v5244_v14  ;;  %v3462_v16 = vpop.f32.mrf.mxu2  ;;  %v3782_v17 = vpop.f32.mrf.mxu3  ;;  %v8226_v6 = vld [vmem:[%s8386_s5 + $0x668] sm:$0xff] }
  0xe4   : > { %6524 = vst.msk [vmem:[%s8472_s10 + $0x618] sm:$0xf] %vm6133_vm3, %v6011_v12  ;;  %v3463_v20 = vadd.f32 %v8455_v39, %v3462_v16  ;;  %v3783_v21 = vadd.f32 %v8455_v39, %v3782_v17  ;;  %v2825_v22 = vpop.f32.mrf.mxu0  ;;  %v3145_v23 = vpop.f32.mrf.mxu1 }
  0xe5   : > { %6141 = vst.msk [vmem:[%s8472_s10 + $0x1c] sm:$0xf] %vm6133_vm3, %v5628_v13  ;;  %v2826_v26 = vadd.f32 %v8455_v39, %v2825_v22  ;;  %v3146_v27 = vadd.f32 %v8455_v39, %v3145_v23 }
  0xe6   : > { %6269 = vst.msk [vmem:[%s8472_s10 + $0x21c] sm:$0xf] %vm6133_vm3, %v5756_v15  ;;  %vm4348_vm4 = vcmp.gt.f32.partialorder %v3463_v20, 0.0  ;;  %v4860_v28 = vmul.f32 0.2, %v3463_v20  ;;  %vm4476_vm5 = vcmp.gt.f32.partialorder %v3783_v21, 0.0 }
  0xe7   : > { %v4988_v29 = vmul.f32 0.2, %v3783_v21  ;;  %vm4093_vm6 = vcmp.gt.f32.partialorder %v2826_v26, 0.0  ;;  %v4605_v30 = vmul.f32 0.2, %v2826_v26  ;;  %vm4221_vm7 = vcmp.gt.f32.partialorder %v3146_v27, 0.0  ;;  %7775 = vmatmul.msk.bf16.gmra.mxu0 %vm2027_vm0, %v8033_v18  ;;  %7839 = vmatmul.msk.bf16.gmra.mxu1 %vm2027_vm0, %v8097_v19 }
  0xe8   : > { %v5372_v31 = vsel %vm4348_vm4, %v3463_v20, %v4860_v28  ;;  %v4733_v32 = vmul.f32 0.2, %v3146_v27  ;;  %7903 = vmatmul.msk.bf16.gmra.mxu2 %vm2027_vm0, %v8161_v24  ;;  %7967 = vmatmul.msk.bf16.gmra.mxu3 %vm2027_vm0, %v8225_v25 }
  0xe9   : > { %v5884_v33 = vpack.c.bf16 %v5372_v31, %v5372_v31  ;;  %v5500_v34 = vsel %vm4476_vm5, %v3783_v21, %v4988_v29  ;;  %v5117_v35 = vsel %vm4093_vm6, %v2826_v26, %v4605_v30 }
  0xea   : > { %v6012_v36 = vpack.c.bf16 %v5500_v34, %v5500_v34  ;;  %v5629_v37 = vpack.c.bf16 %v5117_v35, %v5117_v35  ;;  %v5245_v38 = vsel %vm4221_vm7, %v3146_v27, %v4733_v32 }
  0xeb   : > { %6397 = vst.msk [vmem:[%s8472_s10 + $0x41c] sm:$0xf] %vm6133_vm3, %v5884_v33  ;;  %v5757_v40 = vpack.c.bf16 %v5245_v38, %v5245_v38  ;;  %v3465_v41 = vpop.f32.mrf.mxu2  ;;  %v3785_v42 = vpop.f32.mrf.mxu3 }
  0xec   : > { %6525 = vst.msk [vmem:[%s8472_s10 + $0x61c] sm:$0xf] %vm6133_vm3, %v6012_v36  ;;  %v3466_v43 = vadd.f32 %v8455_v39, %v3465_v41  ;;  %v3786_v44 = vadd.f32 %v8455_v39, %v3785_v42  ;;  %v2827_v45 = vpop.f32.mrf.mxu0  ;;  %v3147_v46 = vpop.f32.mrf.mxu1 }
  0xed   : > { %6142 = vst.msk [vmem:[%s8472_s10 + $0x20] sm:$0xf] %vm6133_vm3, %v5629_v37  ;;  %v2828_v47 = vadd.f32 %v8455_v39, %v2827_v45  ;;  %v3148_v48 = vadd.f32 %v8455_v39, %v3147_v46  ;;  %v8099_v45 = vld [vmem:[%s8386_s5 + $0x270] sm:$0xff] }
  0xee   : > { %6270 = vst.msk [vmem:[%s8472_s10 + $0x220] sm:$0xf] %vm6133_vm3, %v5757_v40  ;;  %vm4349_vm8 = vcmp.gt.f32.partialorder %v3466_v43, 0.0  ;;  %v4861_v49 = vmul.f32 0.2, %v3466_v43  ;;  %vm4477_vm9 = vcmp.gt.f32.partialorder %v3786_v44, 0.0 }
  0xef   : > { %v4989_v50 = vmul.f32 0.2, %v3786_v44  ;;  %vm4094_vm10 = vcmp.gt.f32.partialorder %v2828_v47, 0.0  ;;  %v4606_v51 = vmul.f32 0.2, %v2828_v47  ;;  %vm4222_vm11 = vcmp.gt.f32.partialorder %v3148_v48, 0.0 }
  0xf0   : > { %v5373_v52 = vsel %vm4349_vm8, %v3466_v43, %v4861_v49  ;;  %v4734_v53 = vmul.f32 0.2, %v3148_v48 }
  0xf1   : > { %v5885_v54 = vpack.c.bf16 %v5373_v52, %v5373_v52  ;;  %v5501_v55 = vsel %vm4477_vm9, %v3786_v44, %v4989_v50  ;;  %v5118_v56 = vsel %vm4094_vm10, %v2828_v47, %v4606_v51  ;;  %v8035_v44 = vld [vmem:[%s8386_s5 + $0x70] sm:$0xff] }
  0xf2   : > { %v6013_v57 = vpack.c.bf16 %v5501_v55, %v5501_v55  ;;  %v5630_v58 = vpack.c.bf16 %v5118_v56, %v5118_v56  ;;  %v5246_v59 = vsel %vm4222_vm11, %v3148_v48, %v4734_v53  ;;  %v8163_v50 = vld [vmem:[%s8386_s5 + $0x470] sm:$0xff] }
  0xf3   : > { %6398 = vst.msk [vmem:[%s8472_s10 + $0x420] sm:$0xf] %vm6133_vm3, %v5885_v54  ;;  %v5758_v60 = vpack.c.bf16 %v5246_v59, %v5246_v59  ;;  %v3467_v61 = vpop.f32.mrf.mxu2  ;;  %v3787_v62 = vpop.f32.mrf.mxu3  ;;  %v8227_v51 = vld [vmem:[%s8386_s5 + $0x670] sm:$0xff] }
  0xf4   : > { %6526 = vst.msk [vmem:[%s8472_s10 + $0x620] sm:$0xf] %vm6133_vm3, %v6013_v57  ;;  %v3468_v1 = vadd.f32 %v8455_v39, %v3467_v61  ;;  %v3788_v2 = vadd.f32 %v8455_v39, %v3787_v62  ;;  %v2830_v3 = vpop.f32.mrf.mxu0  ;;  %v3150_v4 = vpop.f32.mrf.mxu1 }
  0xf5   : > { %6143 = vst.msk [vmem:[%s8472_s10 + $0x24] sm:$0xf] %vm6133_vm3, %v5630_v58  ;;  %v2831_v7 = vadd.f32 %v8455_v39, %v2830_v3  ;;  %v3151_v8 = vadd.f32 %v8455_v39, %v3150_v4 }
  0xf6   : > { %6271 = vst.msk [vmem:[%s8472_s10 + $0x224] sm:$0xf] %vm6133_vm3, %v5758_v60  ;;  %vm4350_vm12 = vcmp.gt.f32.partialorder %v3468_v1, 0.0  ;;  %v4862_v9 = vmul.f32 0.2, %v3468_v1  ;;  %vm4478_vm13 = vcmp.gt.f32.partialorder %v3788_v2, 0.0 }
  0xf7   : > { %v4990_v10 = vmul.f32 0.2, %v3788_v2  ;;  %vm4095_vm14 = vcmp.gt.f32.partialorder %v2831_v7, 0.0  ;;  %v4607_v11 = vmul.f32 0.2, %v2831_v7  ;;  %vm4223_vm15 = vcmp.gt.f32.partialorder %v3151_v8, 0.0  ;;  %7776 = vmatmul.msk.bf16.gmra.mxu0 %vm2027_vm0, %v8034_v63  ;;  %7840 = vmatmul.msk.bf16.gmra.mxu1 %vm2027_vm0, %v8098_v0 }
  0xf8   : > { %v5374_v12 = vsel %vm4350_vm12, %v3468_v1, %v4862_v9  ;;  %v4735_v13 = vmul.f32 0.2, %v3151_v8  ;;  %7904 = vmatmul.msk.bf16.gmra.mxu2 %vm2027_vm0, %v8162_v5  ;;  %7968 = vmatmul.msk.bf16.gmra.mxu3 %vm2027_vm0, %v8226_v6 }
  0xf9   : > { %v5886_v14 = vpack.c.bf16 %v5374_v12, %v5374_v12  ;;  %v5502_v15 = vsel %vm4478_vm13, %v3788_v2, %v4990_v10  ;;  %v5119_v16 = vsel %vm4095_vm14, %v2831_v7, %v4607_v11 }
  0xfa   : > { %v6014_v17 = vpack.c.bf16 %v5502_v15, %v5502_v15  ;;  %v5631_v18 = vpack.c.bf16 %v5119_v16, %v5119_v16  ;;  %v5247_v19 = vsel %vm4223_vm15, %v3151_v8, %v4735_v13 }
  0xfb   : > { %6399 = vst.msk [vmem:[%s8472_s10 + $0x424] sm:$0xf] %vm6133_vm3, %v5886_v14  ;;  %v5759_v20 = vpack.c.bf16 %v5247_v19, %v5247_v19  ;;  %v3470_v21 = vpop.f32.mrf.mxu2  ;;  %v3790_v22 = vpop.f32.mrf.mxu3 }
  0xfc   : > { %6527 = vst.msk [vmem:[%s8472_s10 + $0x624] sm:$0xf] %vm6133_vm3, %v6014_v17  ;;  %v3471_v23 = vadd.f32 %v8455_v39, %v3470_v21  ;;  %v3791_v24 = vadd.f32 %v8455_v39, %v3790_v22  ;;  %v2832_v25 = vpop.f32.mrf.mxu0  ;;  %v3152_v26 = vpop.f32.mrf.mxu1 }
  0xfd   : > { %6144 = vst.msk [vmem:[%s8472_s10 + $0x28] sm:$0xf] %vm6133_vm3, %v5631_v18  ;;  %v2833_v27 = vadd.f32 %v8455_v39, %v2832_v25  ;;  %v3153_v28 = vadd.f32 %v8455_v39, %v3152_v26  ;;  %v8100_v25 = vld [vmem:[%s8386_s5 + $0x278] sm:$0xff] }
  0xfe   : > { %6272 = vst.msk [vmem:[%s8472_s10 + $0x228] sm:$0xf] %vm6133_vm3, %v5759_v20  ;;  %vm4351_vm1 = vcmp.gt.f32.partialorder %v3471_v23, 0.0  ;;  %v4863_v29 = vmul.f32 0.2, %v3471_v23  ;;  %vm4479_vm2 = vcmp.gt.f32.partialorder %v3791_v24, 0.0 }
  0xff   : > { %v4991_v30 = vmul.f32 0.2, %v3791_v24  ;;  %vm4096_vm4 = vcmp.gt.f32.partialorder %v2833_v27, 0.0  ;;  %v4608_v31 = vmul.f32 0.2, %v2833_v27  ;;  %vm4224_vm5 = vcmp.gt.f32.partialorder %v3153_v28, 0.0 }
 0x100   : > { %v5375_v32 = vsel %vm4351_vm1, %v3471_v23, %v4863_v29  ;;  %v4736_v33 = vmul.f32 0.2, %v3153_v28 }
 0x101   : > { %v5887_v34 = vpack.c.bf16 %v5375_v32, %v5375_v32  ;;  %v5503_v35 = vsel %vm4479_vm2, %v3791_v24, %v4991_v30  ;;  %v5120_v36 = vsel %vm4096_vm4, %v2833_v27, %v4608_v31  ;;  %v8036_v24 = vld [vmem:[%s8386_s5 + $0x78] sm:$0xff] }
 0x102   : > { %v6015_v37 = vpack.c.bf16 %v5503_v35, %v5503_v35  ;;  %v5632_v38 = vpack.c.bf16 %v5120_v36, %v5120_v36  ;;  %v5248_v40 = vsel %vm4224_vm5, %v3153_v28, %v4736_v33  ;;  %v8164_v30 = vld [vmem:[%s8386_s5 + $0x478] sm:$0xff] }
 0x103   : > { %6400 = vst.msk [vmem:[%s8472_s10 + $0x428] sm:$0xf] %vm6133_vm3, %v5887_v34  ;;  %v5760_v41 = vpack.c.bf16 %v5248_v40, %v5248_v40  ;;  %v3472_v42 = vpop.f32.mrf.mxu2  ;;  %v3792_v43 = vpop.f32.mrf.mxu3  ;;  %v8228_v31 = vld [vmem:[%s8386_s5 + $0x678] sm:$0xff] }
 0x104   : > { %6528 = vst.msk [vmem:[%s8472_s10 + $0x628] sm:$0xf] %vm6133_vm3, %v6015_v37  ;;  %v3473_v46 = vadd.f32 %v8455_v39, %v3472_v42  ;;  %v3793_v47 = vadd.f32 %v8455_v39, %v3792_v43  ;;  %v2835_v48 = vpop.f32.mrf.mxu0  ;;  %v3155_v49 = vpop.f32.mrf.mxu1 }
 0x105   : > { %6145 = vst.msk [vmem:[%s8472_s10 + $0x2c] sm:$0xf] %vm6133_vm3, %v5632_v38  ;;  %v2836_v52 = vadd.f32 %v8455_v39, %v2835_v48  ;;  %v3156_v53 = vadd.f32 %v8455_v39, %v3155_v49 }
 0x106   : > { %6273 = vst.msk [vmem:[%s8472_s10 + $0x22c] sm:$0xf] %vm6133_vm3, %v5760_v41  ;;  %vm4352_vm6 = vcmp.gt.f32.partialorder %v3473_v46, 0.0  ;;  %v4864_v54 = vmul.f32 0.2, %v3473_v46  ;;  %vm4480_vm7 = vcmp.gt.f32.partialorder %v3793_v47, 0.0 }
 0x107   : > { %v4992_v55 = vmul.f32 0.2, %v3793_v47  ;;  %vm4097_vm8 = vcmp.gt.f32.partialorder %v2836_v52, 0.0  ;;  %v4609_v56 = vmul.f32 0.2, %v2836_v52  ;;  %vm4225_vm9 = vcmp.gt.f32.partialorder %v3156_v53, 0.0  ;;  %7777 = vmatmul.msk.bf16.gmra.mxu0 %vm2027_vm0, %v8035_v44  ;;  %7841 = vmatmul.msk.bf16.gmra.mxu1 %vm2027_vm0, %v8099_v45 }
 0x108   : > { %v5376_v57 = vsel %vm4352_vm6, %v3473_v46, %v4864_v54  ;;  %v4737_v58 = vmul.f32 0.2, %v3156_v53  ;;  %7905 = vmatmul.msk.bf16.gmra.mxu2 %vm2027_vm0, %v8163_v50  ;;  %7969 = vmatmul.msk.bf16.gmra.mxu3 %vm2027_vm0, %v8227_v51 }
 0x109   : > { %v5888_v59 = vpack.c.bf16 %v5376_v57, %v5376_v57  ;;  %v5504_v60 = vsel %vm4480_vm7, %v3793_v47, %v4992_v55  ;;  %v5121_v61 = vsel %vm4097_vm8, %v2836_v52, %v4609_v56 }
 0x10a   : > { %v6016_v62 = vpack.c.bf16 %v5504_v60, %v5504_v60  ;;  %v5633_v63 = vpack.c.bf16 %v5121_v61, %v5121_v61  ;;  %v5249_v0 = vsel %vm4225_vm9, %v3156_v53, %v4737_v58 }
 0x10b   : > { %6401 = vst.msk [vmem:[%s8472_s10 + $0x42c] sm:$0xf] %vm6133_vm3, %v5888_v59  ;;  %v5761_v1 = vpack.c.bf16 %v5249_v0, %v5249_v0  ;;  %v3475_v2 = vpop.f32.mrf.mxu2  ;;  %v3795_v3 = vpop.f32.mrf.mxu3 }
 0x10c   : > { %6529 = vst.msk [vmem:[%s8472_s10 + $0x62c] sm:$0xf] %vm6133_vm3, %v6016_v62  ;;  %v3476_v4 = vadd.f32 %v8455_v39, %v3475_v2  ;;  %v3796_v5 = vadd.f32 %v8455_v39, %v3795_v3  ;;  %v2837_v6 = vpop.f32.mrf.mxu0  ;;  %v3157_v7 = vpop.f32.mrf.mxu1 }
 0x10d   : > { %6146 = vst.msk [vmem:[%s8472_s10 + $0x30] sm:$0xf] %vm6133_vm3, %v5633_v63  ;;  %v2838_v8 = vadd.f32 %v8455_v39, %v2837_v6  ;;  %v3158_v9 = vadd.f32 %v8455_v39, %v3157_v7  ;;  %v8101_v6 = vld [vmem:[%s8386_s5 + $0x280] sm:$0xff] }
 0x10e   : > { %6274 = vst.msk [vmem:[%s8472_s10 + $0x230] sm:$0xf] %vm6133_vm3, %v5761_v1  ;;  %vm4353_vm10 = vcmp.gt.f32.partialorder %v3476_v4, 0.0  ;;  %v4865_v10 = vmul.f32 0.2, %v3476_v4  ;;  %vm4481_vm11 = vcmp.gt.f32.partialorder %v3796_v5, 0.0 }
 0x10f   : > { %v4993_v11 = vmul.f32 0.2, %v3796_v5  ;;  %vm4098_vm12 = vcmp.gt.f32.partialorder %v2838_v8, 0.0  ;;  %v4610_v12 = vmul.f32 0.2, %v2838_v8  ;;  %vm4226_vm13 = vcmp.gt.f32.partialorder %v3158_v9, 0.0 }
 0x110   : > { %v5377_v13 = vsel %vm4353_vm10, %v3476_v4, %v4865_v10  ;;  %v4738_v14 = vmul.f32 0.2, %v3158_v9 }
 0x111   : > { %v5889_v15 = vpack.c.bf16 %v5377_v13, %v5377_v13  ;;  %v5505_v16 = vsel %vm4481_vm11, %v3796_v5, %v4993_v11  ;;  %v5122_v17 = vsel %vm4098_vm12, %v2838_v8, %v4610_v12  ;;  %v8037_v5 = vld [vmem:[%s8386_s5 + $0x80] sm:$0xff] }
 0x112   : > { %v6017_v18 = vpack.c.bf16 %v5505_v16, %v5505_v16  ;;  %v5634_v19 = vpack.c.bf16 %v5122_v17, %v5122_v17  ;;  %v5250_v20 = vsel %vm4226_vm13, %v3158_v9, %v4738_v14  ;;  %v8165_v11 = vld [vmem:[%s8386_s5 + $0x480] sm:$0xff] }
 0x113   : > { %6402 = vst.msk [vmem:[%s8472_s10 + $0x430] sm:$0xf] %vm6133_vm3, %v5889_v15  ;;  %v5762_v21 = vpack.c.bf16 %v5250_v20, %v5250_v20  ;;  %v3477_v22 = vpop.f32.mrf.mxu2  ;;  %v3797_v23 = vpop.f32.mrf.mxu3  ;;  %v8229_v12 = vld [vmem:[%s8386_s5 + $0x680] sm:$0xff] }
 0x114   : > { %6530 = vst.msk [vmem:[%s8472_s10 + $0x630] sm:$0xf] %vm6133_vm3, %v6017_v18  ;;  %v3478_v26 = vadd.f32 %v8455_v39, %v3477_v22  ;;  %v3798_v27 = vadd.f32 %v8455_v39, %v3797_v23  ;;  %v2840_v28 = vpop.f32.mrf.mxu0  ;;  %v3160_v29 = vpop.f32.mrf.mxu1 }
 0x115   : > { %6147 = vst.msk [vmem:[%s8472_s10 + $0x34] sm:$0xf] %vm6133_vm3, %v5634_v19  ;;  %v2841_v32 = vadd.f32 %v8455_v39, %v2840_v28  ;;  %v3161_v33 = vadd.f32 %v8455_v39, %v3160_v29  ;;  %v8733_v28 = vld [vmem:[%s10488_s2] ss:$0 sm:$0xff] }
 0x116   : > { %6275 = vst.msk [vmem:[%s8472_s10 + $0x234] sm:$0xf] %vm6133_vm3, %v5762_v21  ;;  %vm4354_vm14 = vcmp.gt.f32.partialorder %v3478_v26, 0.0  ;;  %v4866_v34 = vmul.f32 0.2, %v3478_v26  ;;  %vm4482_vm15 = vcmp.gt.f32.partialorder %v3798_v27, 0.0 }
 0x117   : > { %v4994_v35 = vmul.f32 0.2, %v3798_v27  ;;  %vm4099_vm1 = vcmp.gt.f32.partialorder %v2841_v32, 0.0  ;;  %v4611_v36 = vmul.f32 0.2, %v2841_v32  ;;  %vm4227_vm2 = vcmp.gt.f32.partialorder %v3161_v33, 0.0  ;;  %7778 = vmatmul.msk.bf16.gmra.mxu0 %vm2027_vm0, %v8036_v24  ;;  %7842 = vmatmul.msk.bf16.gmra.mxu1 %vm2027_vm0, %v8100_v25 }
 0x118   : > { %v5378_v37 = vsel %vm4354_vm14, %v3478_v26, %v4866_v34  ;;  %v4739_v38 = vmul.f32 0.2, %v3161_v33  ;;  %7906 = vmatmul.msk.bf16.gmra.mxu2 %vm2027_vm0, %v8164_v30  ;;  %7970 = vmatmul.msk.bf16.gmra.mxu3 %vm2027_vm0, %v8228_v31 }
 0x119   : > { %v5890_v40 = vpack.c.bf16 %v5378_v37, %v5378_v37  ;;  %v5506_v41 = vsel %vm4482_vm15, %v3798_v27, %v4994_v35  ;;  %v5123_v42 = vsel %vm4099_vm1, %v2841_v32, %v4611_v36 }
 0x11a   : > { %v6018_v43 = vpack.c.bf16 %v5506_v41, %v5506_v41  ;;  %v5635_v44 = vpack.c.bf16 %v5123_v42, %v5123_v42  ;;  %v5251_v45 = vsel %vm4227_vm2, %v3161_v33, %v4739_v38 }
 0x11b   : > { %6403 = vst.msk [vmem:[%s8472_s10 + $0x434] sm:$0xf] %vm6133_vm3, %v5890_v40  ;;  %v5763_v46 = vpack.c.bf16 %v5251_v45, %v5251_v45  ;;  %v3480_v47 = vpop.f32.mrf.mxu2  ;;  %v3800_v48 = vpop.f32.mrf.mxu3 }
 0x11c   : > { %6531 = vst.msk [vmem:[%s8472_s10 + $0x634] sm:$0xf] %vm6133_vm3, %v6018_v43  ;;  %v3481_v49 = vadd.f32 %v8455_v39, %v3480_v47  ;;  %v3801_v50 = vadd.f32 %v8455_v39, %v3800_v48  ;;  %v2842_v51 = vpop.f32.mrf.mxu0  ;;  %v3162_v52 = vpop.f32.mrf.mxu1 }
 0x11d   : > { %6148 = vst.msk [vmem:[%s8472_s10 + $0x38] sm:$0xf] %vm6133_vm3, %v5635_v44  ;;  %v2843_v53 = vadd.f32 %v8455_v39, %v2842_v51  ;;  %v3163_v54 = vadd.f32 %v8455_v39, %v3162_v52  ;;  %v8102_v51 = vld [vmem:[%s8386_s5 + $0x288] sm:$0xff] }
 0x11e   : > { %6276 = vst.msk [vmem:[%s8472_s10 + $0x238] sm:$0xf] %vm6133_vm3, %v5763_v46  ;;  %vm4355_vm4 = vcmp.gt.f32.partialorder %v3481_v49, 0.0  ;;  %v4867_v55 = vmul.f32 0.2, %v3481_v49  ;;  %vm4483_vm5 = vcmp.gt.f32.partialorder %v3801_v50, 0.0 }
 0x11f   : > { %v4995_v56 = vmul.f32 0.2, %v3801_v50  ;;  %vm4100_vm6 = vcmp.gt.f32.partialorder %v2843_v53, 0.0  ;;  %v4612_v57 = vmul.f32 0.2, %v2843_v53  ;;  %vm4228_vm7 = vcmp.gt.f32.partialorder %v3163_v54, 0.0 }
 0x120   : > { %v5379_v58 = vsel %vm4355_vm4, %v3481_v49, %v4867_v55  ;;  %v4740_v59 = vmul.f32 0.2, %v3163_v54 }
 0x121   : > { %v5891_v60 = vpack.c.bf16 %v5379_v58, %v5379_v58  ;;  %v5507_v61 = vsel %vm4483_vm5, %v3801_v50, %v4995_v56  ;;  %v5124_v62 = vsel %vm4100_vm6, %v2843_v53, %v4612_v57  ;;  %v8038_v50 = vld [vmem:[%s8386_s5 + $0x88] sm:$0xff] }
 0x122   : > { %v6019_v63 = vpack.c.bf16 %v5507_v61, %v5507_v61  ;;  %v5636_v0 = vpack.c.bf16 %v5124_v62, %v5124_v62  ;;  %v5252_v1 = vsel %vm4228_vm7, %v3163_v54, %v4740_v59  ;;  %v8166_v56 = vld [vmem:[%s8386_s5 + $0x488] sm:$0xff] }
 0x123   : > { %6404 = vst.msk [vmem:[%s8472_s10 + $0x438] sm:$0xf] %vm6133_vm3, %v5891_v60  ;;  %v5764_v2 = vpack.c.bf16 %v5252_v1, %v5252_v1  ;;  %v3482_v3 = vpop.f32.mrf.mxu2  ;;  %v3802_v4 = vpop.f32.mrf.mxu3  ;;  %v8230_v57 = vld [vmem:[%s8386_s5 + $0x688] sm:$0xff] }
 0x124   : > { %6532 = vst.msk [vmem:[%s8472_s10 + $0x638] sm:$0xf] %vm6133_vm3, %v6019_v63  ;;  %v3483_v7 = vadd.f32 %v8455_v39, %v3482_v3  ;;  %v3803_v8 = vadd.f32 %v8455_v39, %v3802_v4  ;;  %v2845_v9 = vpop.f32.mrf.mxu0  ;;  %v3165_v10 = vpop.f32.mrf.mxu1 }
 0x125   : > { %6149 = vst.msk [vmem:[%s8472_s10 + $0x3c] sm:$0xf] %vm6133_vm3, %v5636_v0  ;;  %v2846_v13 = vadd.f32 %v8455_v39, %v2845_v9  ;;  %v3166_v14 = vadd.f32 %v8455_v39, %v3165_v10 }
 0x126   : > { %6277 = vst.msk [vmem:[%s8472_s10 + $0x23c] sm:$0xf] %vm6133_vm3, %v5764_v2  ;;  %vm4356_vm8 = vcmp.gt.f32.partialorder %v3483_v7, 0.0  ;;  %v4868_v15 = vmul.f32 0.2, %v3483_v7  ;;  %vm4484_vm9 = vcmp.gt.f32.partialorder %v3803_v8, 0.0 }
 0x127   : > { %v4996_v16 = vmul.f32 0.2, %v3803_v8  ;;  %vm4101_vm10 = vcmp.gt.f32.partialorder %v2846_v13, 0.0  ;;  %v4613_v17 = vmul.f32 0.2, %v2846_v13  ;;  %vm4229_vm11 = vcmp.gt.f32.partialorder %v3166_v14, 0.0  ;;  %7779 = vmatmul.msk.bf16.gmra.mxu0 %vm2027_vm0, %v8037_v5  ;;  %7843 = vmatmul.msk.bf16.gmra.mxu1 %vm2027_vm0, %v8101_v6 }
 0x128   : > { %v5380_v18 = vsel %vm4356_vm8, %v3483_v7, %v4868_v15  ;;  %v4741_v19 = vmul.f32 0.2, %v3166_v14  ;;  %7907 = vmatmul.msk.bf16.gmra.mxu2 %vm2027_vm0, %v8165_v11  ;;  %7971 = vmatmul.msk.bf16.gmra.mxu3 %vm2027_vm0, %v8229_v12 }
 0x129   : > { %v5892_v39 = vpack.c.bf16 %v5380_v18, %v5380_v18  ;;  %v5508_v20 = vsel %vm4484_vm9, %v3803_v8, %v4996_v16  ;;  %v5125_v21 = vsel %vm4101_vm10, %v2846_v13, %v4613_v17 }
 0x12a   : > { %v6020_v22 = vpack.c.bf16 %v5508_v20, %v5508_v20  ;;  %v5637_v23 = vpack.c.bf16 %v5125_v21, %v5125_v21  ;;  %v5253_v24 = vsel %vm4229_vm11, %v3166_v14, %v4741_v19 }
 0x12b   : > { %6405 = vst.msk [vmem:[%s8472_s10 + $0x43c] sm:$0xf] %vm6133_vm3, %v5892_v39  ;;  %v5765_v25 = vpack.c.bf16 %v5253_v24, %v5253_v24  ;;  %v3485_v26 = vpop.f32.mrf.mxu2  ;;  %v3805_v27 = vpop.f32.mrf.mxu3 }
 0x12c   : > { %6533 = vst.msk [vmem:[%s8472_s10 + $0x63c] sm:$0xf] %vm6133_vm3, %v6020_v22  ;;  %v3486_v29 = vadd.f32 %v8733_v28, %v3485_v26  ;;  %v3806_v30 = vadd.f32 %v8733_v28, %v3805_v27  ;;  %v2847_v31 = vpop.f32.mrf.mxu0  ;;  %v3167_v32 = vpop.f32.mrf.mxu1 }
 0x12d   : > { %6150 = vst.msk [vmem:[%s8472_s10 + $0x40] sm:$0xf] %vm6133_vm3, %v5637_v23  ;;  %v2848_v33 = vadd.f32 %v8733_v28, %v2847_v31  ;;  %v3168_v34 = vadd.f32 %v8733_v28, %v3167_v32  ;;  %v8103_v31 = vld [vmem:[%s8386_s5 + $0x290] sm:$0xff] }
 0x12e   : > { %6278 = vst.msk [vmem:[%s8472_s10 + $0x240] sm:$0xf] %vm6133_vm3, %v5765_v25  ;;  %vm4357_vm12 = vcmp.gt.f32.partialorder %v3486_v29, 0.0  ;;  %v4869_v35 = vmul.f32 0.2, %v3486_v29  ;;  %vm4485_vm13 = vcmp.gt.f32.partialorder %v3806_v30, 0.0 }
 0x12f   : > { %v4997_v36 = vmul.f32 0.2, %v3806_v30  ;;  %vm4102_vm14 = vcmp.gt.f32.partialorder %v2848_v33, 0.0  ;;  %v4614_v37 = vmul.f32 0.2, %v2848_v33  ;;  %vm4230_vm15 = vcmp.gt.f32.partialorder %v3168_v34, 0.0 }
 0x130   : > { %v5381_v38 = vsel %vm4357_vm12, %v3486_v29, %v4869_v35  ;;  %v4742_v40 = vmul.f32 0.2, %v3168_v34 }
 0x131   : > { %v5893_v41 = vpack.c.bf16 %v5381_v38, %v5381_v38  ;;  %v5509_v42 = vsel %vm4485_vm13, %v3806_v30, %v4997_v36  ;;  %v5126_v43 = vsel %vm4102_vm14, %v2848_v33, %v4614_v37  ;;  %v8039_v30 = vld [vmem:[%s8386_s5 + $0x90] sm:$0xff] }
 0x132   : > { %v6021_v44 = vpack.c.bf16 %v5509_v42, %v5509_v42  ;;  %v5638_v45 = vpack.c.bf16 %v5126_v43, %v5126_v43  ;;  %v5254_v46 = vsel %vm4230_vm15, %v3168_v34, %v4742_v40  ;;  %v8167_v36 = vld [vmem:[%s8386_s5 + $0x490] sm:$0xff] }
 0x133   : > { %6406 = vst.msk [vmem:[%s8472_s10 + $0x440] sm:$0xf] %vm6133_vm3, %v5893_v41  ;;  %v5766_v47 = vpack.c.bf16 %v5254_v46, %v5254_v46  ;;  %v3487_v48 = vpop.f32.mrf.mxu2  ;;  %v3807_v49 = vpop.f32.mrf.mxu3  ;;  %v8231_v37 = vld [vmem:[%s8386_s5 + $0x690] sm:$0xff] }
 0x134   : > { %6534 = vst.msk [vmem:[%s8472_s10 + $0x640] sm:$0xf] %vm6133_vm3, %v6021_v44  ;;  %v3488_v52 = vadd.f32 %v8733_v28, %v3487_v48  ;;  %v3808_v53 = vadd.f32 %v8733_v28, %v3807_v49  ;;  %v2850_v54 = vpop.f32.mrf.mxu0  ;;  %v3170_v55 = vpop.f32.mrf.mxu1 }
 0x135   : > { %6151 = vst.msk [vmem:[%s8472_s10 + $0x44] sm:$0xf] %vm6133_vm3, %v5638_v45  ;;  %v2851_v58 = vadd.f32 %v8733_v28, %v2850_v54  ;;  %v3171_v59 = vadd.f32 %v8733_v28, %v3170_v55 }
 0x136   : > { %6279 = vst.msk [vmem:[%s8472_s10 + $0x244] sm:$0xf] %vm6133_vm3, %v5766_v47  ;;  %vm4358_vm1 = vcmp.gt.f32.partialorder %v3488_v52, 0.0  ;;  %v4870_v60 = vmul.f32 0.2, %v3488_v52  ;;  %vm4486_vm2 = vcmp.gt.f32.partialorder %v3808_v53, 0.0 }
 0x137   : > { %v4998_v61 = vmul.f32 0.2, %v3808_v53  ;;  %vm4103_vm4 = vcmp.gt.f32.partialorder %v2851_v58, 0.0  ;;  %v4615_v62 = vmul.f32 0.2, %v2851_v58  ;;  %vm4231_vm5 = vcmp.gt.f32.partialorder %v3171_v59, 0.0  ;;  %7780 = vmatmul.msk.bf16.gmra.mxu0 %vm2027_vm0, %v8038_v50  ;;  %7844 = vmatmul.msk.bf16.gmra.mxu1 %vm2027_vm0, %v8102_v51 }
 0x138   : > { %v5382_v63 = vsel %vm4358_vm1, %v3488_v52, %v4870_v60  ;;  %v4743_v0 = vmul.f32 0.2, %v3171_v59  ;;  %7908 = vmatmul.msk.bf16.gmra.mxu2 %vm2027_vm0, %v8166_v56  ;;  %7972 = vmatmul.msk.bf16.gmra.mxu3 %vm2027_vm0, %v8230_v57 }
 0x139   : > { %v5894_v1 = vpack.c.bf16 %v5382_v63, %v5382_v63  ;;  %v5510_v2 = vsel %vm4486_vm2, %v3808_v53, %v4998_v61  ;;  %v5127_v3 = vsel %vm4103_vm4, %v2851_v58, %v4615_v62 }
 0x13a   : > { %v6022_v4 = vpack.c.bf16 %v5510_v2, %v5510_v2  ;;  %v5639_v5 = vpack.c.bf16 %v5127_v3, %v5127_v3  ;;  %v5255_v6 = vsel %vm4231_vm5, %v3171_v59, %v4743_v0 }
 0x13b   : > { %6407 = vst.msk [vmem:[%s8472_s10 + $0x444] sm:$0xf] %vm6133_vm3, %v5894_v1  ;;  %v5767_v7 = vpack.c.bf16 %v5255_v6, %v5255_v6  ;;  %v3490_v8 = vpop.f32.mrf.mxu2  ;;  %v3810_v9 = vpop.f32.mrf.mxu3 }
 0x13c   : > { %6535 = vst.msk [vmem:[%s8472_s10 + $0x644] sm:$0xf] %vm6133_vm3, %v6022_v4  ;;  %v3491_v10 = vadd.f32 %v8733_v28, %v3490_v8  ;;  %v3811_v11 = vadd.f32 %v8733_v28, %v3810_v9  ;;  %v2852_v12 = vpop.f32.mrf.mxu0  ;;  %v3172_v13 = vpop.f32.mrf.mxu1 }
 0x13d   : > { %6152 = vst.msk [vmem:[%s8472_s10 + $0x48] sm:$0xf] %vm6133_vm3, %v5639_v5  ;;  %v2853_v14 = vadd.f32 %v8733_v28, %v2852_v12  ;;  %v3173_v15 = vadd.f32 %v8733_v28, %v3172_v13  ;;  %v8104_v12 = vld [vmem:[%s8386_s5 + $0x298] sm:$0xff] }
 0x13e   : > { %6280 = vst.msk [vmem:[%s8472_s10 + $0x248] sm:$0xf] %vm6133_vm3, %v5767_v7  ;;  %vm4359_vm6 = vcmp.gt.f32.partialorder %v3491_v10, 0.0  ;;  %v4871_v16 = vmul.f32 0.2, %v3491_v10  ;;  %vm4487_vm7 = vcmp.gt.f32.partialorder %v3811_v11, 0.0 }
 0x13f   : > { %v4999_v17 = vmul.f32 0.2, %v3811_v11  ;;  %vm4104_vm8 = vcmp.gt.f32.partialorder %v2853_v14, 0.0  ;;  %v4616_v18 = vmul.f32 0.2, %v2853_v14  ;;  %vm4232_vm9 = vcmp.gt.f32.partialorder %v3173_v15, 0.0 }
 0x140   : > { %v5383_v19 = vsel %vm4359_vm6, %v3491_v10, %v4871_v16  ;;  %v4744_v39 = vmul.f32 0.2, %v3173_v15 }
 0x141   : > { %v5895_v20 = vpack.c.bf16 %v5383_v19, %v5383_v19  ;;  %v5511_v21 = vsel %vm4487_vm7, %v3811_v11, %v4999_v17  ;;  %v5128_v22 = vsel %vm4104_vm8, %v2853_v14, %v4616_v18  ;;  %v8040_v11 = vld [vmem:[%s8386_s5 + $0x98] sm:$0xff] }
 0x142   : > { %v6023_v23 = vpack.c.bf16 %v5511_v21, %v5511_v21  ;;  %v5640_v24 = vpack.c.bf16 %v5128_v22, %v5128_v22  ;;  %v5256_v25 = vsel %vm4232_vm9, %v3173_v15, %v4744_v39  ;;  %v8168_v17 = vld [vmem:[%s8386_s5 + $0x498] sm:$0xff] }
 0x143   : > { %6408 = vst.msk [vmem:[%s8472_s10 + $0x448] sm:$0xf] %vm6133_vm3, %v5895_v20  ;;  %v5768_v26 = vpack.c.bf16 %v5256_v25, %v5256_v25  ;;  %v3492_v27 = vpop.f32.mrf.mxu2  ;;  %v3812_v29 = vpop.f32.mrf.mxu3  ;;  %v8232_v18 = vld [vmem:[%s8386_s5 + $0x698] sm:$0xff] }
 0x144   : > { %6536 = vst.msk [vmem:[%s8472_s10 + $0x648] sm:$0xf] %vm6133_vm3, %v6023_v23  ;;  %v3493_v32 = vadd.f32 %v8733_v28, %v3492_v27  ;;  %v3813_v33 = vadd.f32 %v8733_v28, %v3812_v29  ;;  %v2855_v34 = vpop.f32.mrf.mxu0  ;;  %v3175_v35 = vpop.f32.mrf.mxu1 }
 0x145   : > { %6153 = vst.msk [vmem:[%s8472_s10 + $0x4c] sm:$0xf] %vm6133_vm3, %v5640_v24  ;;  %v2856_v38 = vadd.f32 %v8733_v28, %v2855_v34  ;;  %v3176_v40 = vadd.f32 %v8733_v28, %v3175_v35 }
 0x146   : > { %6281 = vst.msk [vmem:[%s8472_s10 + $0x24c] sm:$0xf] %vm6133_vm3, %v5768_v26  ;;  %vm4360_vm10 = vcmp.gt.f32.partialorder %v3493_v32, 0.0  ;;  %v4872_v41 = vmul.f32 0.2, %v3493_v32  ;;  %vm4488_vm11 = vcmp.gt.f32.partialorder %v3813_v33, 0.0 }
 0x147   : > { %v5000_v42 = vmul.f32 0.2, %v3813_v33  ;;  %vm4105_vm12 = vcmp.gt.f32.partialorder %v2856_v38, 0.0  ;;  %v4617_v43 = vmul.f32 0.2, %v2856_v38  ;;  %vm4233_vm13 = vcmp.gt.f32.partialorder %v3176_v40, 0.0  ;;  %7781 = vmatmul.msk.bf16.gmra.mxu0 %vm2027_vm0, %v8039_v30  ;;  %7845 = vmatmul.msk.bf16.gmra.mxu1 %vm2027_vm0, %v8103_v31 }
 0x148   : > { %v5384_v44 = vsel %vm4360_vm10, %v3493_v32, %v4872_v41  ;;  %v4745_v45 = vmul.f32 0.2, %v3176_v40  ;;  %7909 = vmatmul.msk.bf16.gmra.mxu2 %vm2027_vm0, %v8167_v36  ;;  %7973 = vmatmul.msk.bf16.gmra.mxu3 %vm2027_vm0, %v8231_v37 }
 0x149   : > { %v5896_v46 = vpack.c.bf16 %v5384_v44, %v5384_v44  ;;  %v5512_v47 = vsel %vm4488_vm11, %v3813_v33, %v5000_v42  ;;  %v5129_v48 = vsel %vm4105_vm12, %v2856_v38, %v4617_v43 }
 0x14a   : > { %v6024_v49 = vpack.c.bf16 %v5512_v47, %v5512_v47  ;;  %v5641_v50 = vpack.c.bf16 %v5129_v48, %v5129_v48  ;;  %v5257_v51 = vsel %vm4233_vm13, %v3176_v40, %v4745_v45 }
 0x14b   : > { %6409 = vst.msk [vmem:[%s8472_s10 + $0x44c] sm:$0xf] %vm6133_vm3, %v5896_v46  ;;  %v5769_v52 = vpack.c.bf16 %v5257_v51, %v5257_v51  ;;  %v3495_v53 = vpop.f32.mrf.mxu2  ;;  %v3815_v54 = vpop.f32.mrf.mxu3 }
 0x14c   : > { %6537 = vst.msk [vmem:[%s8472_s10 + $0x64c] sm:$0xf] %vm6133_vm3, %v6024_v49  ;;  %v3496_v55 = vadd.f32 %v8733_v28, %v3495_v53  ;;  %v3816_v56 = vadd.f32 %v8733_v28, %v3815_v54  ;;  %v2857_v57 = vpop.f32.mrf.mxu0  ;;  %v3177_v58 = vpop.f32.mrf.mxu1 }
 0x14d   : > { %6154 = vst.msk [vmem:[%s8472_s10 + $0x50] sm:$0xf] %vm6133_vm3, %v5641_v50  ;;  %v2858_v59 = vadd.f32 %v8733_v28, %v2857_v57  ;;  %v3178_v60 = vadd.f32 %v8733_v28, %v3177_v58  ;;  %v8105_v57 = vld [vmem:[%s8386_s5 + $0x2a0] sm:$0xff] }
 0x14e   : > { %6282 = vst.msk [vmem:[%s8472_s10 + $0x250] sm:$0xf] %vm6133_vm3, %v5769_v52  ;;  %vm4361_vm14 = vcmp.gt.f32.partialorder %v3496_v55, 0.0  ;;  %v4873_v61 = vmul.f32 0.2, %v3496_v55  ;;  %vm4489_vm15 = vcmp.gt.f32.partialorder %v3816_v56, 0.0 }
 0x14f   : > { %v5001_v62 = vmul.f32 0.2, %v3816_v56  ;;  %vm4106_vm1 = vcmp.gt.f32.partialorder %v2858_v59, 0.0  ;;  %v4618_v63 = vmul.f32 0.2, %v2858_v59  ;;  %vm4234_vm2 = vcmp.gt.f32.partialorder %v3178_v60, 0.0 }
 0x150   : > { %v5385_v0 = vsel %vm4361_vm14, %v3496_v55, %v4873_v61  ;;  %v4746_v1 = vmul.f32 0.2, %v3178_v60 }
 0x151   : > { %v5897_v2 = vpack.c.bf16 %v5385_v0, %v5385_v0  ;;  %v5513_v3 = vsel %vm4489_vm15, %v3816_v56, %v5001_v62  ;;  %v5130_v4 = vsel %vm4106_vm1, %v2858_v59, %v4618_v63  ;;  %v8041_v56 = vld [vmem:[%s8386_s5 + $0xa0] sm:$0xff] }
 0x152   : > { %v6025_v5 = vpack.c.bf16 %v5513_v3, %v5513_v3  ;;  %v5642_v6 = vpack.c.bf16 %v5130_v4, %v5130_v4  ;;  %v5258_v7 = vsel %vm4234_vm2, %v3178_v60, %v4746_v1  ;;  %v8169_v62 = vld [vmem:[%s8386_s5 + $0x4a0] sm:$0xff] }
 0x153   : > { %6410 = vst.msk [vmem:[%s8472_s10 + $0x450] sm:$0xf] %vm6133_vm3, %v5897_v2  ;;  %v5770_v8 = vpack.c.bf16 %v5258_v7, %v5258_v7  ;;  %v3497_v9 = vpop.f32.mrf.mxu2  ;;  %v3817_v10 = vpop.f32.mrf.mxu3  ;;  %v8233_v63 = vld [vmem:[%s8386_s5 + $0x6a0] sm:$0xff] }
 0x154   : > { %6538 = vst.msk [vmem:[%s8472_s10 + $0x650] sm:$0xf] %vm6133_vm3, %v6025_v5  ;;  %v3498_v13 = vadd.f32 %v8733_v28, %v3497_v9  ;;  %v3818_v14 = vadd.f32 %v8733_v28, %v3817_v10  ;;  %v2860_v15 = vpop.f32.mrf.mxu0  ;;  %v3180_v16 = vpop.f32.mrf.mxu1 }
 0x155   : > { %6155 = vst.msk [vmem:[%s8472_s10 + $0x54] sm:$0xf] %vm6133_vm3, %v5642_v6  ;;  %v2861_v19 = vadd.f32 %v8733_v28, %v2860_v15  ;;  %v3181_v39 = vadd.f32 %v8733_v28, %v3180_v16 }
 0x156   : > { %6283 = vst.msk [vmem:[%s8472_s10 + $0x254] sm:$0xf] %vm6133_vm3, %v5770_v8  ;;  %vm4362_vm4 = vcmp.gt.f32.partialorder %v3498_v13, 0.0  ;;  %v4874_v20 = vmul.f32 0.2, %v3498_v13  ;;  %vm4490_vm5 = vcmp.gt.f32.partialorder %v3818_v14, 0.0 }
 0x157   : > { %v5002_v21 = vmul.f32 0.2, %v3818_v14  ;;  %vm4107_vm6 = vcmp.gt.f32.partialorder %v2861_v19, 0.0  ;;  %v4619_v22 = vmul.f32 0.2, %v2861_v19  ;;  %vm4235_vm7 = vcmp.gt.f32.partialorder %v3181_v39, 0.0  ;;  %7782 = vmatmul.msk.bf16.gmra.mxu0 %vm2027_vm0, %v8040_v11  ;;  %7846 = vmatmul.msk.bf16.gmra.mxu1 %vm2027_vm0, %v8104_v12 }
 0x158   : > { %v5386_v23 = vsel %vm4362_vm4, %v3498_v13, %v4874_v20  ;;  %v4747_v24 = vmul.f32 0.2, %v3181_v39  ;;  %7910 = vmatmul.msk.bf16.gmra.mxu2 %vm2027_vm0, %v8168_v17  ;;  %7974 = vmatmul.msk.bf16.gmra.mxu3 %vm2027_vm0, %v8232_v18 }
 0x159   : > { %v5898_v25 = vpack.c.bf16 %v5386_v23, %v5386_v23  ;;  %v5514_v26 = vsel %vm4490_vm5, %v3818_v14, %v5002_v21  ;;  %v5131_v27 = vsel %vm4107_vm6, %v2861_v19, %v4619_v22 }
 0x15a   : > { %v6026_v29 = vpack.c.bf16 %v5514_v26, %v5514_v26  ;;  %v5643_v30 = vpack.c.bf16 %v5131_v27, %v5131_v27  ;;  %v5259_v31 = vsel %vm4235_vm7, %v3181_v39, %v4747_v24 }
 0x15b   : > { %6411 = vst.msk [vmem:[%s8472_s10 + $0x454] sm:$0xf] %vm6133_vm3, %v5898_v25  ;;  %v5771_v32 = vpack.c.bf16 %v5259_v31, %v5259_v31  ;;  %v3500_v33 = vpop.f32.mrf.mxu2  ;;  %v3820_v34 = vpop.f32.mrf.mxu3 }
 0x15c   : > { %6539 = vst.msk [vmem:[%s8472_s10 + $0x654] sm:$0xf] %vm6133_vm3, %v6026_v29  ;;  %v3501_v35 = vadd.f32 %v8733_v28, %v3500_v33  ;;  %v3821_v36 = vadd.f32 %v8733_v28, %v3820_v34  ;;  %v2862_v37 = vpop.f32.mrf.mxu0  ;;  %v3182_v38 = vpop.f32.mrf.mxu1 }
 0x15d   : > { %6156 = vst.msk [vmem:[%s8472_s10 + $0x58] sm:$0xf] %vm6133_vm3, %v5643_v30  ;;  %v2863_v40 = vadd.f32 %v8733_v28, %v2862_v37  ;;  %v3183_v41 = vadd.f32 %v8733_v28, %v3182_v38  ;;  %v8106_v37 = vld [vmem:[%s8386_s5 + $0x2a8] sm:$0xff] }
 0x15e   : > { %6284 = vst.msk [vmem:[%s8472_s10 + $0x258] sm:$0xf] %vm6133_vm3, %v5771_v32  ;;  %vm4363_vm8 = vcmp.gt.f32.partialorder %v3501_v35, 0.0  ;;  %v4875_v42 = vmul.f32 0.2, %v3501_v35  ;;  %vm4491_vm9 = vcmp.gt.f32.partialorder %v3821_v36, 0.0 }
 0x15f   : > { %v5003_v43 = vmul.f32 0.2, %v3821_v36  ;;  %vm4108_vm10 = vcmp.gt.f32.partialorder %v2863_v40, 0.0  ;;  %v4620_v44 = vmul.f32 0.2, %v2863_v40  ;;  %vm4236_vm11 = vcmp.gt.f32.partialorder %v3183_v41, 0.0 }
 0x160   : > { %v5387_v45 = vsel %vm4363_vm8, %v3501_v35, %v4875_v42  ;;  %v4748_v46 = vmul.f32 0.2, %v3183_v41 }
 0x161   : > { %v5899_v47 = vpack.c.bf16 %v5387_v45, %v5387_v45  ;;  %v5515_v48 = vsel %vm4491_vm9, %v3821_v36, %v5003_v43  ;;  %v5132_v49 = vsel %vm4108_vm10, %v2863_v40, %v4620_v44  ;;  %v8042_v36 = vld [vmem:[%s8386_s5 + $0xa8] sm:$0xff] }
 0x162   : > { %v6027_v50 = vpack.c.bf16 %v5515_v48, %v5515_v48  ;;  %v5644_v51 = vpack.c.bf16 %v5132_v49, %v5132_v49  ;;  %v5260_v52 = vsel %vm4236_vm11, %v3183_v41, %v4748_v46  ;;  %v8170_v43 = vld [vmem:[%s8386_s5 + $0x4a8] sm:$0xff] }
 0x163   : > { %6412 = vst.msk [vmem:[%s8472_s10 + $0x458] sm:$0xf] %vm6133_vm3, %v5899_v47  ;;  %v5772_v53 = vpack.c.bf16 %v5260_v52, %v5260_v52  ;;  %v3502_v54 = vpop.f32.mrf.mxu2  ;;  %v3822_v55 = vpop.f32.mrf.mxu3  ;;  %v8234_v44 = vld [vmem:[%s8386_s5 + $0x6a8] sm:$0xff] }
 0x164   : > { %6540 = vst.msk [vmem:[%s8472_s10 + $0x658] sm:$0xf] %vm6133_vm3, %v6027_v50  ;;  %v3503_v58 = vadd.f32 %v8733_v28, %v3502_v54  ;;  %v3823_v59 = vadd.f32 %v8733_v28, %v3822_v55  ;;  %v2865_v60 = vpop.f32.mrf.mxu0  ;;  %v3185_v61 = vpop.f32.mrf.mxu1 }
 0x165   : > { %6157 = vst.msk [vmem:[%s8472_s10 + $0x5c] sm:$0xf] %vm6133_vm3, %v5644_v51  ;;  %v2866_v0 = vadd.f32 %v8733_v28, %v2865_v60  ;;  %v3186_v1 = vadd.f32 %v8733_v28, %v3185_v61 }
 0x166   : > { %6285 = vst.msk [vmem:[%s8472_s10 + $0x25c] sm:$0xf] %vm6133_vm3, %v5772_v53  ;;  %vm4364_vm12 = vcmp.gt.f32.partialorder %v3503_v58, 0.0  ;;  %v4876_v2 = vmul.f32 0.2, %v3503_v58  ;;  %vm4492_vm13 = vcmp.gt.f32.partialorder %v3823_v59, 0.0 }
 0x167   : > { %v5004_v3 = vmul.f32 0.2, %v3823_v59  ;;  %vm4109_vm14 = vcmp.gt.f32.partialorder %v2866_v0, 0.0  ;;  %v4621_v4 = vmul.f32 0.2, %v2866_v0  ;;  %vm4237_vm15 = vcmp.gt.f32.partialorder %v3186_v1, 0.0  ;;  %7783 = vmatmul.msk.bf16.gmra.mxu0 %vm2027_vm0, %v8041_v56  ;;  %7847 = vmatmul.msk.bf16.gmra.mxu1 %vm2027_vm0, %v8105_v57 }
 0x168   : > { %v5388_v5 = vsel %vm4364_vm12, %v3503_v58, %v4876_v2  ;;  %v4749_v6 = vmul.f32 0.2, %v3186_v1  ;;  %7911 = vmatmul.msk.bf16.gmra.mxu2 %vm2027_vm0, %v8169_v62  ;;  %7975 = vmatmul.msk.bf16.gmra.mxu3 %vm2027_vm0, %v8233_v63 }
 0x169   : > { %v5900_v7 = vpack.c.bf16 %v5388_v5, %v5388_v5  ;;  %v5516_v8 = vsel %vm4492_vm13, %v3823_v59, %v5004_v3  ;;  %v5133_v9 = vsel %vm4109_vm14, %v2866_v0, %v4621_v4 }
 0x16a   : > { %v6028_v10 = vpack.c.bf16 %v5516_v8, %v5516_v8  ;;  %v5645_v11 = vpack.c.bf16 %v5133_v9, %v5133_v9  ;;  %v5261_v12 = vsel %vm4237_vm15, %v3186_v1, %v4749_v6 }
 0x16b   : > { %6413 = vst.msk [vmem:[%s8472_s10 + $0x45c] sm:$0xf] %vm6133_vm3, %v5900_v7  ;;  %v5773_v13 = vpack.c.bf16 %v5261_v12, %v5261_v12  ;;  %v3505_v14 = vpop.f32.mrf.mxu2  ;;  %v3825_v15 = vpop.f32.mrf.mxu3 }
 0x16c   : > { %6541 = vst.msk [vmem:[%s8472_s10 + $0x65c] sm:$0xf] %vm6133_vm3, %v6028_v10  ;;  %v3506_v16 = vadd.f32 %v8733_v28, %v3505_v14  ;;  %v3826_v17 = vadd.f32 %v8733_v28, %v3825_v15  ;;  %v2867_v18 = vpop.f32.mrf.mxu0  ;;  %v3187_v19 = vpop.f32.mrf.mxu1 }
 0x16d   : > { %6158 = vst.msk [vmem:[%s8472_s10 + $0x60] sm:$0xf] %vm6133_vm3, %v5645_v11  ;;  %v2868_v39 = vadd.f32 %v8733_v28, %v2867_v18  ;;  %v3188_v20 = vadd.f32 %v8733_v28, %v3187_v19  ;;  %v8107_v18 = vld [vmem:[%s8386_s5 + $0x2b0] sm:$0xff] }
 0x16e   : > { %6286 = vst.msk [vmem:[%s8472_s10 + $0x260] sm:$0xf] %vm6133_vm3, %v5773_v13  ;;  %vm4365_vm1 = vcmp.gt.f32.partialorder %v3506_v16, 0.0  ;;  %v4877_v21 = vmul.f32 0.2, %v3506_v16  ;;  %vm4493_vm2 = vcmp.gt.f32.partialorder %v3826_v17, 0.0 }
 0x16f   : > { %v5005_v22 = vmul.f32 0.2, %v3826_v17  ;;  %vm4110_vm4 = vcmp.gt.f32.partialorder %v2868_v39, 0.0  ;;  %v4622_v23 = vmul.f32 0.2, %v2868_v39  ;;  %vm4238_vm5 = vcmp.gt.f32.partialorder %v3188_v20, 0.0 }
 0x170   : > { %v5389_v24 = vsel %vm4365_vm1, %v3506_v16, %v4877_v21  ;;  %v4750_v25 = vmul.f32 0.2, %v3188_v20 }
 0x171   : > { %v5901_v26 = vpack.c.bf16 %v5389_v24, %v5389_v24  ;;  %v5517_v27 = vsel %vm4493_vm2, %v3826_v17, %v5005_v22  ;;  %v5134_v29 = vsel %vm4110_vm4, %v2868_v39, %v4622_v23  ;;  %v8043_v17 = vld [vmem:[%s8386_s5 + $0xb0] sm:$0xff] }
 0x172   : > { %v6029_v30 = vpack.c.bf16 %v5517_v27, %v5517_v27  ;;  %v5646_v31 = vpack.c.bf16 %v5134_v29, %v5134_v29  ;;  %v5262_v32 = vsel %vm4238_vm5, %v3188_v20, %v4750_v25  ;;  %v8171_v22 = vld [vmem:[%s8386_s5 + $0x4b0] sm:$0xff] }
 0x173   : > { %6414 = vst.msk [vmem:[%s8472_s10 + $0x460] sm:$0xf] %vm6133_vm3, %v5901_v26  ;;  %v5774_v33 = vpack.c.bf16 %v5262_v32, %v5262_v32  ;;  %v3507_v34 = vpop.f32.mrf.mxu2  ;;  %v3827_v35 = vpop.f32.mrf.mxu3  ;;  %v8235_v23 = vld [vmem:[%s8386_s5 + $0x6b0] sm:$0xff] }
 0x174   : > { %6542 = vst.msk [vmem:[%s8472_s10 + $0x660] sm:$0xf] %vm6133_vm3, %v6029_v30  ;;  %v3508_v38 = vadd.f32 %v8733_v28, %v3507_v34  ;;  %v3828_v40 = vadd.f32 %v8733_v28, %v3827_v35  ;;  %v2870_v41 = vpop.f32.mrf.mxu0  ;;  %v3190_v42 = vpop.f32.mrf.mxu1 }
 0x175   : > { %6159 = vst.msk [vmem:[%s8472_s10 + $0x64] sm:$0xf] %vm6133_vm3, %v5646_v31  ;;  %v2871_v45 = vadd.f32 %v8733_v28, %v2870_v41  ;;  %v3191_v46 = vadd.f32 %v8733_v28, %v3190_v42 }
 0x176   : > { %6287 = vst.msk [vmem:[%s8472_s10 + $0x264] sm:$0xf] %vm6133_vm3, %v5774_v33  ;;  %vm4366_vm6 = vcmp.gt.f32.partialorder %v3508_v38, 0.0  ;;  %v4878_v47 = vmul.f32 0.2, %v3508_v38  ;;  %vm4494_vm7 = vcmp.gt.f32.partialorder %v3828_v40, 0.0 }
 0x177   : > { %v5006_v48 = vmul.f32 0.2, %v3828_v40  ;;  %vm4111_vm8 = vcmp.gt.f32.partialorder %v2871_v45, 0.0  ;;  %v4623_v49 = vmul.f32 0.2, %v2871_v45  ;;  %vm4239_vm9 = vcmp.gt.f32.partialorder %v3191_v46, 0.0  ;;  %7784 = vmatmul.msk.bf16.gmra.mxu0 %vm2027_vm0, %v8042_v36  ;;  %7848 = vmatmul.msk.bf16.gmra.mxu1 %vm2027_vm0, %v8106_v37 }
 0x178   : > { %v5390_v50 = vsel %vm4366_vm6, %v3508_v38, %v4878_v47  ;;  %v4751_v51 = vmul.f32 0.2, %v3191_v46  ;;  %7912 = vmatmul.msk.bf16.gmra.mxu2 %vm2027_vm0, %v8170_v43  ;;  %7976 = vmatmul.msk.bf16.gmra.mxu3 %vm2027_vm0, %v8234_v44 }
 0x179   : > { %v5902_v52 = vpack.c.bf16 %v5390_v50, %v5390_v50  ;;  %v5518_v53 = vsel %vm4494_vm7, %v3828_v40, %v5006_v48  ;;  %v5135_v54 = vsel %vm4111_vm8, %v2871_v45, %v4623_v49 }
 0x17a   : > { %v6030_v55 = vpack.c.bf16 %v5518_v53, %v5518_v53  ;;  %v5647_v56 = vpack.c.bf16 %v5135_v54, %v5135_v54  ;;  %v5263_v57 = vsel %vm4239_vm9, %v3191_v46, %v4751_v51 }
 0x17b   : > { %6415 = vst.msk [vmem:[%s8472_s10 + $0x464] sm:$0xf] %vm6133_vm3, %v5902_v52  ;;  %v5775_v58 = vpack.c.bf16 %v5263_v57, %v5263_v57  ;;  %v3510_v59 = vpop.f32.mrf.mxu2  ;;  %v3830_v60 = vpop.f32.mrf.mxu3 }
 0x17c   : > { %6543 = vst.msk [vmem:[%s8472_s10 + $0x664] sm:$0xf] %vm6133_vm3, %v6030_v55  ;;  %v3511_v61 = vadd.f32 %v8733_v28, %v3510_v59  ;;  %v3831_v62 = vadd.f32 %v8733_v28, %v3830_v60  ;;  %v2872_v63 = vpop.f32.mrf.mxu0  ;;  %v3192_v0 = vpop.f32.mrf.mxu1 }
 0x17d   : > { %6160 = vst.msk [vmem:[%s8472_s10 + $0x68] sm:$0xf] %vm6133_vm3, %v5647_v56  ;;  %v2873_v1 = vadd.f32 %v8733_v28, %v2872_v63  ;;  %v3193_v2 = vadd.f32 %v8733_v28, %v3192_v0  ;;  %v8108_v63 = vld [vmem:[%s8386_s5 + $0x2b8] sm:$0xff] }
 0x17e   : > { %6288 = vst.msk [vmem:[%s8472_s10 + $0x268] sm:$0xf] %vm6133_vm3, %v5775_v58  ;;  %vm4367_vm10 = vcmp.gt.f32.partialorder %v3511_v61, 0.0  ;;  %v4879_v3 = vmul.f32 0.2, %v3511_v61  ;;  %vm4495_vm11 = vcmp.gt.f32.partialorder %v3831_v62, 0.0 }
 0x17f   : > { %v5007_v4 = vmul.f32 0.2, %v3831_v62  ;;  %vm4112_vm12 = vcmp.gt.f32.partialorder %v2873_v1, 0.0  ;;  %v4624_v5 = vmul.f32 0.2, %v2873_v1  ;;  %vm4240_vm13 = vcmp.gt.f32.partialorder %v3193_v2, 0.0 }
 0x180   : > { %v5391_v6 = vsel %vm4367_vm10, %v3511_v61, %v4879_v3  ;;  %v4752_v7 = vmul.f32 0.2, %v3193_v2 }
 0x181   : > { %v5903_v8 = vpack.c.bf16 %v5391_v6, %v5391_v6  ;;  %v5519_v9 = vsel %vm4495_vm11, %v3831_v62, %v5007_v4  ;;  %v5136_v10 = vsel %vm4112_vm12, %v2873_v1, %v4624_v5  ;;  %v8044_v62 = vld [vmem:[%s8386_s5 + $0xb8] sm:$0xff] }
 0x182   : > { %v6031_v11 = vpack.c.bf16 %v5519_v9, %v5519_v9  ;;  %v5648_v12 = vpack.c.bf16 %v5136_v10, %v5136_v10  ;;  %v5264_v13 = vsel %vm4240_vm13, %v3193_v2, %v4752_v7  ;;  %v8172_v4 = vld [vmem:[%s8386_s5 + $0x4b8] sm:$0xff] }
 0x183   : > { %6416 = vst.msk [vmem:[%s8472_s10 + $0x468] sm:$0xf] %vm6133_vm3, %v5903_v8  ;;  %v5776_v14 = vpack.c.bf16 %v5264_v13, %v5264_v13  ;;  %v3512_v15 = vpop.f32.mrf.mxu2  ;;  %v3832_v16 = vpop.f32.mrf.mxu3  ;;  %v8236_v5 = vld [vmem:[%s8386_s5 + $0x6b8] sm:$0xff] }
 0x184   : > { %6544 = vst.msk [vmem:[%s8472_s10 + $0x668] sm:$0xf] %vm6133_vm3, %v6031_v11  ;;  %v3513_v19 = vadd.f32 %v8733_v28, %v3512_v15  ;;  %v3833_v39 = vadd.f32 %v8733_v28, %v3832_v16  ;;  %v2875_v20 = vpop.f32.mrf.mxu0  ;;  %v3195_v21 = vpop.f32.mrf.mxu1 }
 0x185   : > { %6161 = vst.msk [vmem:[%s8472_s10 + $0x6c] sm:$0xf] %vm6133_vm3, %v5648_v12  ;;  %v2876_v24 = vadd.f32 %v8733_v28, %v2875_v20  ;;  %v3196_v25 = vadd.f32 %v8733_v28, %v3195_v21 }
 0x186   : > { %6289 = vst.msk [vmem:[%s8472_s10 + $0x26c] sm:$0xf] %vm6133_vm3, %v5776_v14  ;;  %vm4368_vm14 = vcmp.gt.f32.partialorder %v3513_v19, 0.0  ;;  %v4880_v26 = vmul.f32 0.2, %v3513_v19  ;;  %vm4496_vm15 = vcmp.gt.f32.partialorder %v3833_v39, 0.0 }
 0x187   : > { %v5008_v27 = vmul.f32 0.2, %v3833_v39  ;;  %vm4113_vm1 = vcmp.gt.f32.partialorder %v2876_v24, 0.0  ;;  %v4625_v29 = vmul.f32 0.2, %v2876_v24  ;;  %vm4241_vm2 = vcmp.gt.f32.partialorder %v3196_v25, 0.0  ;;  %7785 = vmatmul.msk.bf16.gmra.mxu0 %vm2027_vm0, %v8043_v17  ;;  %7849 = vmatmul.msk.bf16.gmra.mxu1 %vm2027_vm0, %v8107_v18 }
 0x188   : > { %v5392_v30 = vsel %vm4368_vm14, %v3513_v19, %v4880_v26  ;;  %v4753_v31 = vmul.f32 0.2, %v3196_v25  ;;  %7913 = vmatmul.msk.bf16.gmra.mxu2 %vm2027_vm0, %v8171_v22  ;;  %7977 = vmatmul.msk.bf16.gmra.mxu3 %vm2027_vm0, %v8235_v23 }
 0x189   : > { %v5904_v32 = vpack.c.bf16 %v5392_v30, %v5392_v30  ;;  %v5520_v33 = vsel %vm4496_vm15, %v3833_v39, %v5008_v27  ;;  %v5137_v34 = vsel %vm4113_vm1, %v2876_v24, %v4625_v29 }
 0x18a   : > { %v6032_v35 = vpack.c.bf16 %v5520_v33, %v5520_v33  ;;  %v5649_v36 = vpack.c.bf16 %v5137_v34, %v5137_v34  ;;  %v5265_v37 = vsel %vm4241_vm2, %v3196_v25, %v4753_v31 }
 0x18b   : > { %6417 = vst.msk [vmem:[%s8472_s10 + $0x46c] sm:$0xf] %vm6133_vm3, %v5904_v32  ;;  %v5777_v38 = vpack.c.bf16 %v5265_v37, %v5265_v37  ;;  %v3515_v40 = vpop.f32.mrf.mxu2  ;;  %v3835_v41 = vpop.f32.mrf.mxu3 }
 0x18c   : > { %6545 = vst.msk [vmem:[%s8472_s10 + $0x66c] sm:$0xf] %vm6133_vm3, %v6032_v35  ;;  %v3516_v42 = vadd.f32 %v8733_v28, %v3515_v40  ;;  %v3836_v43 = vadd.f32 %v8733_v28, %v3835_v41  ;;  %v2877_v44 = vpop.f32.mrf.mxu0  ;;  %v3197_v45 = vpop.f32.mrf.mxu1 }
 0x18d   : > { %6162 = vst.msk [vmem:[%s8472_s10 + $0x70] sm:$0xf] %vm6133_vm3, %v5649_v36  ;;  %v2878_v46 = vadd.f32 %v8733_v28, %v2877_v44  ;;  %v3198_v47 = vadd.f32 %v8733_v28, %v3197_v45  ;;  %v8109_v44 = vld [vmem:[%s8386_s5 + $0x2c0] sm:$0xff] }
 0x18e   : > { %6290 = vst.msk [vmem:[%s8472_s10 + $0x270] sm:$0xf] %vm6133_vm3, %v5777_v38  ;;  %vm4369_vm4 = vcmp.gt.f32.partialorder %v3516_v42, 0.0  ;;  %v4881_v48 = vmul.f32 0.2, %v3516_v42  ;;  %vm4497_vm5 = vcmp.gt.f32.partialorder %v3836_v43, 0.0 }
 0x18f   : > { %v5009_v49 = vmul.f32 0.2, %v3836_v43  ;;  %vm4114_vm6 = vcmp.gt.f32.partialorder %v2878_v46, 0.0  ;;  %v4626_v50 = vmul.f32 0.2, %v2878_v46  ;;  %vm4242_vm7 = vcmp.gt.f32.partialorder %v3198_v47, 0.0 }
 0x190   : > { %v5393_v51 = vsel %vm4369_vm4, %v3516_v42, %v4881_v48  ;;  %v4754_v52 = vmul.f32 0.2, %v3198_v47 }
 0x191   : > { %v5905_v53 = vpack.c.bf16 %v5393_v51, %v5393_v51  ;;  %v5521_v54 = vsel %vm4497_vm5, %v3836_v43, %v5009_v49  ;;  %v5138_v55 = vsel %vm4114_vm6, %v2878_v46, %v4626_v50  ;;  %v8045_v43 = vld [vmem:[%s8386_s5 + $0xc0] sm:$0xff] }
 0x192   : > { %v6033_v56 = vpack.c.bf16 %v5521_v54, %v5521_v54  ;;  %v5650_v57 = vpack.c.bf16 %v5138_v55, %v5138_v55  ;;  %v5266_v58 = vsel %vm4242_vm7, %v3198_v47, %v4754_v52  ;;  %v8173_v49 = vld [vmem:[%s8386_s5 + $0x4c0] sm:$0xff] }
 0x193   : > { %6418 = vst.msk [vmem:[%s8472_s10 + $0x470] sm:$0xf] %vm6133_vm3, %v5905_v53  ;;  %v5778_v59 = vpack.c.bf16 %v5266_v58, %v5266_v58  ;;  %v3517_v60 = vpop.f32.mrf.mxu2  ;;  %v3837_v61 = vpop.f32.mrf.mxu3  ;;  %v8237_v50 = vld [vmem:[%s8386_s5 + $0x6c0] sm:$0xff] }
 0x194   : > { %6546 = vst.msk [vmem:[%s8472_s10 + $0x670] sm:$0xf] %vm6133_vm3, %v6033_v56  ;;  %v3518_v0 = vadd.f32 %v8733_v28, %v3517_v60  ;;  %v3838_v1 = vadd.f32 %v8733_v28, %v3837_v61  ;;  %v2880_v2 = vpop.f32.mrf.mxu0  ;;  %v3200_v3 = vpop.f32.mrf.mxu1 }
 0x195   : > { %6163 = vst.msk [vmem:[%s8472_s10 + $0x74] sm:$0xf] %vm6133_vm3, %v5650_v57  ;;  %v2881_v6 = vadd.f32 %v8733_v28, %v2880_v2  ;;  %v3201_v7 = vadd.f32 %v8733_v28, %v3200_v3  ;;  %v8994_v2 = vld [vmem:[%s10488_s2] ss:$0 sm:$0xff] }
 0x196   : > { %6291 = vst.msk [vmem:[%s8472_s10 + $0x274] sm:$0xf] %vm6133_vm3, %v5778_v59  ;;  %vm4370_vm8 = vcmp.gt.f32.partialorder %v3518_v0, 0.0  ;;  %v4882_v8 = vmul.f32 0.2, %v3518_v0  ;;  %vm4498_vm9 = vcmp.gt.f32.partialorder %v3838_v1, 0.0 }
 0x197   : > { %v5010_v9 = vmul.f32 0.2, %v3838_v1  ;;  %vm4115_vm10 = vcmp.gt.f32.partialorder %v2881_v6, 0.0  ;;  %v4627_v10 = vmul.f32 0.2, %v2881_v6  ;;  %vm4243_vm11 = vcmp.gt.f32.partialorder %v3201_v7, 0.0  ;;  %7786 = vmatmul.msk.bf16.gmra.mxu0 %vm2027_vm0, %v8044_v62  ;;  %7850 = vmatmul.msk.bf16.gmra.mxu1 %vm2027_vm0, %v8108_v63 }
 0x198   : > { %v5394_v11 = vsel %vm4370_vm8, %v3518_v0, %v4882_v8  ;;  %v4755_v12 = vmul.f32 0.2, %v3201_v7  ;;  %7914 = vmatmul.msk.bf16.gmra.mxu2 %vm2027_vm0, %v8172_v4  ;;  %7978 = vmatmul.msk.bf16.gmra.mxu3 %vm2027_vm0, %v8236_v5 }
 0x199   : > { %v5906_v13 = vpack.c.bf16 %v5394_v11, %v5394_v11  ;;  %v5522_v14 = vsel %vm4498_vm9, %v3838_v1, %v5010_v9  ;;  %v5139_v15 = vsel %vm4115_vm10, %v2881_v6, %v4627_v10 }
 0x19a   : > { %v6034_v16 = vpack.c.bf16 %v5522_v14, %v5522_v14  ;;  %v5651_v17 = vpack.c.bf16 %v5139_v15, %v5139_v15  ;;  %v5267_v18 = vsel %vm4243_vm11, %v3201_v7, %v4755_v12 }
 0x19b   : > { %6419 = vst.msk [vmem:[%s8472_s10 + $0x474] sm:$0xf] %vm6133_vm3, %v5906_v13  ;;  %v5779_v19 = vpack.c.bf16 %v5267_v18, %v5267_v18  ;;  %v3520_v39 = vpop.f32.mrf.mxu2  ;;  %v3840_v20 = vpop.f32.mrf.mxu3 }
 0x19c   : > { %6547 = vst.msk [vmem:[%s8472_s10 + $0x674] sm:$0xf] %vm6133_vm3, %v6034_v16  ;;  %v3521_v21 = vadd.f32 %v8733_v28, %v3520_v39  ;;  %v3841_v22 = vadd.f32 %v8733_v28, %v3840_v20  ;;  %v2882_v23 = vpop.f32.mrf.mxu0  ;;  %v3202_v24 = vpop.f32.mrf.mxu1 }
 0x19d   : > { %6164 = vst.msk [vmem:[%s8472_s10 + $0x78] sm:$0xf] %vm6133_vm3, %v5651_v17  ;;  %v2883_v25 = vadd.f32 %v8733_v28, %v2882_v23  ;;  %v3203_v26 = vadd.f32 %v8733_v28, %v3202_v24  ;;  %v8110_v23 = vld [vmem:[%s8386_s5 + $0x2c8] sm:$0xff] }
 0x19e   : > { %6292 = vst.msk [vmem:[%s8472_s10 + $0x278] sm:$0xf] %vm6133_vm3, %v5779_v19  ;;  %vm4371_vm12 = vcmp.gt.f32.partialorder %v3521_v21, 0.0  ;;  %v4883_v27 = vmul.f32 0.2, %v3521_v21  ;;  %vm4499_vm13 = vcmp.gt.f32.partialorder %v3841_v22, 0.0 }
 0x19f   : > { %v5011_v29 = vmul.f32 0.2, %v3841_v22  ;;  %vm4116_vm14 = vcmp.gt.f32.partialorder %v2883_v25, 0.0  ;;  %v4628_v30 = vmul.f32 0.2, %v2883_v25  ;;  %vm4244_vm15 = vcmp.gt.f32.partialorder %v3203_v26, 0.0 }
 0x1a0   : > { %v5395_v31 = vsel %vm4371_vm12, %v3521_v21, %v4883_v27  ;;  %v4756_v32 = vmul.f32 0.2, %v3203_v26 }
 0x1a1   : > { %v5907_v33 = vpack.c.bf16 %v5395_v31, %v5395_v31  ;;  %v5523_v34 = vsel %vm4499_vm13, %v3841_v22, %v5011_v29  ;;  %v5140_v35 = vsel %vm4116_vm14, %v2883_v25, %v4628_v30  ;;  %v8046_v22 = vld [vmem:[%s8386_s5 + $0xc8] sm:$0xff] }
 0x1a2   : > { %v6035_v36 = vpack.c.bf16 %v5523_v34, %v5523_v34  ;;  %v5652_v37 = vpack.c.bf16 %v5140_v35, %v5140_v35  ;;  %v5268_v38 = vsel %vm4244_vm15, %v3203_v26, %v4756_v32  ;;  %v8174_v29 = vld [vmem:[%s8386_s5 + $0x4c8] sm:$0xff] }
 0x1a3   : > { %6420 = vst.msk [vmem:[%s8472_s10 + $0x478] sm:$0xf] %vm6133_vm3, %v5907_v33  ;;  %v5780_v40 = vpack.c.bf16 %v5268_v38, %v5268_v38  ;;  %v3522_v41 = vpop.f32.mrf.mxu2  ;;  %v3842_v42 = vpop.f32.mrf.mxu3  ;;  %v8238_v30 = vld [vmem:[%s8386_s5 + $0x6c8] sm:$0xff] }
 0x1a4   : > { %6548 = vst.msk [vmem:[%s8472_s10 + $0x678] sm:$0xf] %vm6133_vm3, %v6035_v36  ;;  %v3523_v45 = vadd.f32 %v8733_v28, %v3522_v41  ;;  %v3843_v46 = vadd.f32 %v8733_v28, %v3842_v42  ;;  %v2885_v47 = vpop.f32.mrf.mxu0  ;;  %v3205_v48 = vpop.f32.mrf.mxu1 }
 0x1a5   : > { %6165 = vst.msk [vmem:[%s8472_s10 + $0x7c] sm:$0xf] %vm6133_vm3, %v5652_v37  ;;  %v2886_v51 = vadd.f32 %v8733_v28, %v2885_v47  ;;  %v3206_v52 = vadd.f32 %v8733_v28, %v3205_v48 }
 0x1a6   : > { %6293 = vst.msk [vmem:[%s8472_s10 + $0x27c] sm:$0xf] %vm6133_vm3, %v5780_v40  ;;  %vm4372_vm1 = vcmp.gt.f32.partialorder %v3523_v45, 0.0  ;;  %v4884_v53 = vmul.f32 0.2, %v3523_v45  ;;  %vm4500_vm2 = vcmp.gt.f32.partialorder %v3843_v46, 0.0 }
 0x1a7   : > { %v5012_v54 = vmul.f32 0.2, %v3843_v46  ;;  %vm4117_vm4 = vcmp.gt.f32.partialorder %v2886_v51, 0.0  ;;  %v4629_v55 = vmul.f32 0.2, %v2886_v51  ;;  %vm4245_vm5 = vcmp.gt.f32.partialorder %v3206_v52, 0.0  ;;  %7787 = vmatmul.msk.bf16.gmra.mxu0 %vm2027_vm0, %v8045_v43  ;;  %7851 = vmatmul.msk.bf16.gmra.mxu1 %vm2027_vm0, %v8109_v44 }
 0x1a8   : > { %v5396_v56 = vsel %vm4372_vm1, %v3523_v45, %v4884_v53  ;;  %v4757_v57 = vmul.f32 0.2, %v3206_v52  ;;  %7915 = vmatmul.msk.bf16.gmra.mxu2 %vm2027_vm0, %v8173_v49  ;;  %7979 = vmatmul.msk.bf16.gmra.mxu3 %vm2027_vm0, %v8237_v50 }
 0x1a9   : > { %v5908_v28 = vpack.c.bf16 %v5396_v56, %v5396_v56  ;;  %v5524_v58 = vsel %vm4500_vm2, %v3843_v46, %v5012_v54  ;;  %v5141_v59 = vsel %vm4117_vm4, %v2886_v51, %v4629_v55 }
 0x1aa   : > { %v6036_v60 = vpack.c.bf16 %v5524_v58, %v5524_v58  ;;  %v5653_v61 = vpack.c.bf16 %v5141_v59, %v5141_v59  ;;  %v5269_v62 = vsel %vm4245_vm5, %v3206_v52, %v4757_v57 }
 0x1ab   : > { %6421 = vst.msk [vmem:[%s8472_s10 + $0x47c] sm:$0xf] %vm6133_vm3, %v5908_v28  ;;  %v5781_v63 = vpack.c.bf16 %v5269_v62, %v5269_v62  ;;  %v3525_v0 = vpop.f32.mrf.mxu2  ;;  %v3845_v1 = vpop.f32.mrf.mxu3 }
 0x1ac   : > { %6549 = vst.msk [vmem:[%s8472_s10 + $0x67c] sm:$0xf] %vm6133_vm3, %v6036_v60  ;;  %v3526_v3 = vadd.f32 %v8994_v2, %v3525_v0  ;;  %v3846_v4 = vadd.f32 %v8994_v2, %v3845_v1  ;;  %v2887_v5 = vpop.f32.mrf.mxu0  ;;  %v3207_v6 = vpop.f32.mrf.mxu1 }
 0x1ad   : > { %6166 = vst.msk [vmem:[%s8472_s10 + $0x80] sm:$0xf] %vm6133_vm3, %v5653_v61  ;;  %v2888_v7 = vadd.f32 %v8994_v2, %v2887_v5  ;;  %v3208_v8 = vadd.f32 %v8994_v2, %v3207_v6  ;;  %v8111_v5 = vld [vmem:[%s8386_s5 + $0x2d0] sm:$0xff] }
 0x1ae   : > { %6294 = vst.msk [vmem:[%s8472_s10 + $0x280] sm:$0xf] %vm6133_vm3, %v5781_v63  ;;  %vm4373_vm6 = vcmp.gt.f32.partialorder %v3526_v3, 0.0  ;;  %v4885_v9 = vmul.f32 0.2, %v3526_v3  ;;  %vm4501_vm7 = vcmp.gt.f32.partialorder %v3846_v4, 0.0 }
 0x1af   : > { %v5013_v10 = vmul.f32 0.2, %v3846_v4  ;;  %vm4118_vm8 = vcmp.gt.f32.partialorder %v2888_v7, 0.0  ;;  %v4630_v11 = vmul.f32 0.2, %v2888_v7  ;;  %vm4246_vm9 = vcmp.gt.f32.partialorder %v3208_v8, 0.0 }
 0x1b0   : > { %v5397_v12 = vsel %vm4373_vm6, %v3526_v3, %v4885_v9  ;;  %v4758_v13 = vmul.f32 0.2, %v3208_v8 }
 0x1b1   : > { %v5909_v14 = vpack.c.bf16 %v5397_v12, %v5397_v12  ;;  %v5525_v15 = vsel %vm4501_vm7, %v3846_v4, %v5013_v10  ;;  %v5142_v16 = vsel %vm4118_vm8, %v2888_v7, %v4630_v11  ;;  %v8047_v4 = vld [vmem:[%s8386_s5 + $0xd0] sm:$0xff] }
 0x1b2   : > { %v6037_v17 = vpack.c.bf16 %v5525_v15, %v5525_v15  ;;  %v5654_v18 = vpack.c.bf16 %v5142_v16, %v5142_v16  ;;  %v5270_v19 = vsel %vm4246_vm9, %v3208_v8, %v4758_v13  ;;  %v8175_v10 = vld [vmem:[%s8386_s5 + $0x4d0] sm:$0xff] }
 0x1b3   : > { %6422 = vst.msk [vmem:[%s8472_s10 + $0x480] sm:$0xf] %vm6133_vm3, %v5909_v14  ;;  %v5782_v39 = vpack.c.bf16 %v5270_v19, %v5270_v19  ;;  %v3527_v20 = vpop.f32.mrf.mxu2  ;;  %v3847_v21 = vpop.f32.mrf.mxu3  ;;  %v8239_v11 = vld [vmem:[%s8386_s5 + $0x6d0] sm:$0xff] }
 0x1b4   : > { %6550 = vst.msk [vmem:[%s8472_s10 + $0x680] sm:$0xf] %vm6133_vm3, %v6037_v17  ;;  %v3528_v24 = vadd.f32 %v8994_v2, %v3527_v20  ;;  %v3848_v25 = vadd.f32 %v8994_v2, %v3847_v21  ;;  %v2890_v26 = vpop.f32.mrf.mxu0  ;;  %v3210_v27 = vpop.f32.mrf.mxu1 }
 0x1b5   : > { %6167 = vst.msk [vmem:[%s8472_s10 + $0x84] sm:$0xf] %vm6133_vm3, %v5654_v18  ;;  %v2891_v31 = vadd.f32 %v8994_v2, %v2890_v26  ;;  %v3211_v32 = vadd.f32 %v8994_v2, %v3210_v27 }
 0x1b6   : > { %6295 = vst.msk [vmem:[%s8472_s10 + $0x284] sm:$0xf] %vm6133_vm3, %v5782_v39  ;;  %vm4374_vm10 = vcmp.gt.f32.partialorder %v3528_v24, 0.0  ;;  %v4886_v33 = vmul.f32 0.2, %v3528_v24  ;;  %vm4502_vm11 = vcmp.gt.f32.partialorder %v3848_v25, 0.0 }
 0x1b7   : > { %v5014_v34 = vmul.f32 0.2, %v3848_v25  ;;  %vm4119_vm12 = vcmp.gt.f32.partialorder %v2891_v31, 0.0  ;;  %v4631_v35 = vmul.f32 0.2, %v2891_v31  ;;  %vm4247_vm13 = vcmp.gt.f32.partialorder %v3211_v32, 0.0  ;;  %7788 = vmatmul.msk.bf16.gmra.mxu0 %vm2027_vm0, %v8046_v22  ;;  %7852 = vmatmul.msk.bf16.gmra.mxu1 %vm2027_vm0, %v8110_v23 }
 0x1b8   : > { %v5398_v36 = vsel %vm4374_vm10, %v3528_v24, %v4886_v33  ;;  %v4759_v37 = vmul.f32 0.2, %v3211_v32  ;;  %7916 = vmatmul.msk.bf16.gmra.mxu2 %vm2027_vm0, %v8174_v29  ;;  %7980 = vmatmul.msk.bf16.gmra.mxu3 %vm2027_vm0, %v8238_v30 }
 0x1b9   : > { %v5910_v38 = vpack.c.bf16 %v5398_v36, %v5398_v36  ;;  %v5526_v40 = vsel %vm4502_vm11, %v3848_v25, %v5014_v34  ;;  %v5143_v41 = vsel %vm4119_vm12, %v2891_v31, %v4631_v35 }
 0x1ba   : > { %v6038_v42 = vpack.c.bf16 %v5526_v40, %v5526_v40  ;;  %v5655_v43 = vpack.c.bf16 %v5143_v41, %v5143_v41  ;;  %v5271_v44 = vsel %vm4247_vm13, %v3211_v32, %v4759_v37 }
 0x1bb   : > { %6423 = vst.msk [vmem:[%s8472_s10 + $0x484] sm:$0xf] %vm6133_vm3, %v5910_v38  ;;  %v5783_v45 = vpack.c.bf16 %v5271_v44, %v5271_v44  ;;  %v3530_v46 = vpop.f32.mrf.mxu2  ;;  %v3850_v47 = vpop.f32.mrf.mxu3 }
 0x1bc   : > { %6551 = vst.msk [vmem:[%s8472_s10 + $0x684] sm:$0xf] %vm6133_vm3, %v6038_v42  ;;  %v3531_v48 = vadd.f32 %v8994_v2, %v3530_v46  ;;  %v3851_v49 = vadd.f32 %v8994_v2, %v3850_v47  ;;  %v2892_v50 = vpop.f32.mrf.mxu0  ;;  %v3212_v51 = vpop.f32.mrf.mxu1 }
 0x1bd   : > { %6168 = vst.msk [vmem:[%s8472_s10 + $0x88] sm:$0xf] %vm6133_vm3, %v5655_v43  ;;  %v2893_v52 = vadd.f32 %v8994_v2, %v2892_v50  ;;  %v3213_v53 = vadd.f32 %v8994_v2, %v3212_v51  ;;  %v8112_v50 = vld [vmem:[%s8386_s5 + $0x2d8] sm:$0xff] }
 0x1be   : > { %6296 = vst.msk [vmem:[%s8472_s10 + $0x288] sm:$0xf] %vm6133_vm3, %v5783_v45  ;;  %vm4375_vm14 = vcmp.gt.f32.partialorder %v3531_v48, 0.0  ;;  %v4887_v54 = vmul.f32 0.2, %v3531_v48  ;;  %vm4503_vm15 = vcmp.gt.f32.partialorder %v3851_v49, 0.0 }
 0x1bf   : > { %v5015_v55 = vmul.f32 0.2, %v3851_v49  ;;  %vm4120_vm1 = vcmp.gt.f32.partialorder %v2893_v52, 0.0  ;;  %v4632_v56 = vmul.f32 0.2, %v2893_v52  ;;  %vm4248_vm2 = vcmp.gt.f32.partialorder %v3213_v53, 0.0 }
 0x1c0   : > { %v5399_v57 = vsel %vm4375_vm14, %v3531_v48, %v4887_v54  ;;  %v4760_v28 = vmul.f32 0.2, %v3213_v53 }
 0x1c1   : > { %v5911_v58 = vpack.c.bf16 %v5399_v57, %v5399_v57  ;;  %v5527_v59 = vsel %vm4503_vm15, %v3851_v49, %v5015_v55  ;;  %v5144_v60 = vsel %vm4120_vm1, %v2893_v52, %v4632_v56  ;;  %v8048_v49 = vld [vmem:[%s8386_s5 + $0xd8] sm:$0xff] }
 0x1c2   : > { %v6039_v61 = vpack.c.bf16 %v5527_v59, %v5527_v59  ;;  %v5656_v62 = vpack.c.bf16 %v5144_v60, %v5144_v60  ;;  %v5272_v63 = vsel %vm4248_vm2, %v3213_v53, %v4760_v28  ;;  %v8176_v55 = vld [vmem:[%s8386_s5 + $0x4d8] sm:$0xff] }
 0x1c3   : > { %6424 = vst.msk [vmem:[%s8472_s10 + $0x488] sm:$0xf] %vm6133_vm3, %v5911_v58  ;;  %v5784_v0 = vpack.c.bf16 %v5272_v63, %v5272_v63  ;;  %v3532_v1 = vpop.f32.mrf.mxu2  ;;  %v3852_v3 = vpop.f32.mrf.mxu3  ;;  %v8240_v56 = vld [vmem:[%s8386_s5 + $0x6d8] sm:$0xff] }
 0x1c4   : > { %6552 = vst.msk [vmem:[%s8472_s10 + $0x688] sm:$0xf] %vm6133_vm3, %v6039_v61  ;;  %v3533_v6 = vadd.f32 %v8994_v2, %v3532_v1  ;;  %v3853_v7 = vadd.f32 %v8994_v2, %v3852_v3  ;;  %v2895_v8 = vpop.f32.mrf.mxu0  ;;  %v3215_v9 = vpop.f32.mrf.mxu1 }
 0x1c5   : > { %6169 = vst.msk [vmem:[%s8472_s10 + $0x8c] sm:$0xf] %vm6133_vm3, %v5656_v62  ;;  %v2896_v12 = vadd.f32 %v8994_v2, %v2895_v8  ;;  %v3216_v13 = vadd.f32 %v8994_v2, %v3215_v9 }
 0x1c6   : > { %6297 = vst.msk [vmem:[%s8472_s10 + $0x28c] sm:$0xf] %vm6133_vm3, %v5784_v0  ;;  %vm4376_vm4 = vcmp.gt.f32.partialorder %v3533_v6, 0.0  ;;  %v4888_v14 = vmul.f32 0.2, %v3533_v6  ;;  %vm4504_vm5 = vcmp.gt.f32.partialorder %v3853_v7, 0.0 }
 0x1c7   : > { %v5016_v15 = vmul.f32 0.2, %v3853_v7  ;;  %vm4121_vm6 = vcmp.gt.f32.partialorder %v2896_v12, 0.0  ;;  %v4633_v16 = vmul.f32 0.2, %v2896_v12  ;;  %vm4249_vm7 = vcmp.gt.f32.partialorder %v3216_v13, 0.0  ;;  %7789 = vmatmul.msk.bf16.gmra.mxu0 %vm2027_vm0, %v8047_v4  ;;  %7853 = vmatmul.msk.bf16.gmra.mxu1 %vm2027_vm0, %v8111_v5 }
 0x1c8   : > { %v5400_v17 = vsel %vm4376_vm4, %v3533_v6, %v4888_v14  ;;  %v4761_v18 = vmul.f32 0.2, %v3216_v13  ;;  %7917 = vmatmul.msk.bf16.gmra.mxu2 %vm2027_vm0, %v8175_v10  ;;  %7981 = vmatmul.msk.bf16.gmra.mxu3 %vm2027_vm0, %v8239_v11 }
 0x1c9   : > { %v5912_v19 = vpack.c.bf16 %v5400_v17, %v5400_v17  ;;  %v5528_v39 = vsel %vm4504_vm5, %v3853_v7, %v5016_v15  ;;  %v5145_v20 = vsel %vm4121_vm6, %v2896_v12, %v4633_v16 }
 0x1ca   : > { %v6040_v21 = vpack.c.bf16 %v5528_v39, %v5528_v39  ;;  %v5657_v22 = vpack.c.bf16 %v5145_v20, %v5145_v20  ;;  %v5273_v23 = vsel %vm4249_vm7, %v3216_v13, %v4761_v18 }
 0x1cb   : > { %6425 = vst.msk [vmem:[%s8472_s10 + $0x48c] sm:$0xf] %vm6133_vm3, %v5912_v19  ;;  %v5785_v24 = vpack.c.bf16 %v5273_v23, %v5273_v23  ;;  %v3535_v25 = vpop.f32.mrf.mxu2  ;;  %v3855_v26 = vpop.f32.mrf.mxu3 }
 0x1cc   : > { %6553 = vst.msk [vmem:[%s8472_s10 + $0x68c] sm:$0xf] %vm6133_vm3, %v6040_v21  ;;  %v3536_v27 = vadd.f32 %v8994_v2, %v3535_v25  ;;  %v3856_v29 = vadd.f32 %v8994_v2, %v3855_v26  ;;  %v2897_v30 = vpop.f32.mrf.mxu0  ;;  %v3217_v31 = vpop.f32.mrf.mxu1 }
 0x1cd   : > { %6170 = vst.msk [vmem:[%s8472_s10 + $0x90] sm:$0xf] %vm6133_vm3, %v5657_v22  ;;  %v2898_v32 = vadd.f32 %v8994_v2, %v2897_v30  ;;  %v3218_v33 = vadd.f32 %v8994_v2, %v3217_v31  ;;  %v8113_v30 = vld [vmem:[%s8386_s5 + $0x2e0] sm:$0xff] }
 0x1ce   : > { %6298 = vst.msk [vmem:[%s8472_s10 + $0x290] sm:$0xf] %vm6133_vm3, %v5785_v24  ;;  %vm4377_vm8 = vcmp.gt.f32.partialorder %v3536_v27, 0.0  ;;  %v4889_v34 = vmul.f32 0.2, %v3536_v27  ;;  %vm4505_vm9 = vcmp.gt.f32.partialorder %v3856_v29, 0.0 }
 0x1cf   : > { %v5017_v35 = vmul.f32 0.2, %v3856_v29  ;;  %vm4122_vm10 = vcmp.gt.f32.partialorder %v2898_v32, 0.0  ;;  %v4634_v36 = vmul.f32 0.2, %v2898_v32  ;;  %vm4250_vm11 = vcmp.gt.f32.partialorder %v3218_v33, 0.0 }
 0x1d0   : > { %v5401_v37 = vsel %vm4377_vm8, %v3536_v27, %v4889_v34  ;;  %v4762_v38 = vmul.f32 0.2, %v3218_v33 }
 0x1d1   : > { %v5913_v40 = vpack.c.bf16 %v5401_v37, %v5401_v37  ;;  %v5529_v41 = vsel %vm4505_vm9, %v3856_v29, %v5017_v35  ;;  %v5146_v42 = vsel %vm4122_vm10, %v2898_v32, %v4634_v36  ;;  %v8049_v29 = vld [vmem:[%s8386_s5 + $0xe0] sm:$0xff] }
 0x1d2   : > { %v6041_v43 = vpack.c.bf16 %v5529_v41, %v5529_v41  ;;  %v5658_v44 = vpack.c.bf16 %v5146_v42, %v5146_v42  ;;  %v5274_v45 = vsel %vm4250_vm11, %v3218_v33, %v4762_v38  ;;  %v8177_v35 = vld [vmem:[%s8386_s5 + $0x4e0] sm:$0xff] }
 0x1d3   : > { %6426 = vst.msk [vmem:[%s8472_s10 + $0x490] sm:$0xf] %vm6133_vm3, %v5913_v40  ;;  %v5786_v46 = vpack.c.bf16 %v5274_v45, %v5274_v45  ;;  %v3537_v47 = vpop.f32.mrf.mxu2  ;;  %v3857_v48 = vpop.f32.mrf.mxu3  ;;  %v8241_v36 = vld [vmem:[%s8386_s5 + $0x6e0] sm:$0xff] }
 0x1d4   : > { %6554 = vst.msk [vmem:[%s8472_s10 + $0x690] sm:$0xf] %vm6133_vm3, %v6041_v43  ;;  %v3538_v51 = vadd.f32 %v8994_v2, %v3537_v47  ;;  %v3858_v52 = vadd.f32 %v8994_v2, %v3857_v48  ;;  %v2900_v53 = vpop.f32.mrf.mxu0  ;;  %v3220_v54 = vpop.f32.mrf.mxu1 }
 0x1d5   : > { %6171 = vst.msk [vmem:[%s8472_s10 + $0x94] sm:$0xf] %vm6133_vm3, %v5658_v44  ;;  %v2901_v57 = vadd.f32 %v8994_v2, %v2900_v53  ;;  %v3221_v28 = vadd.f32 %v8994_v2, %v3220_v54 }
 0x1d6   : > { %6299 = vst.msk [vmem:[%s8472_s10 + $0x294] sm:$0xf] %vm6133_vm3, %v5786_v46  ;;  %vm4378_vm12 = vcmp.gt.f32.partialorder %v3538_v51, 0.0  ;;  %v4890_v58 = vmul.f32 0.2, %v3538_v51  ;;  %vm4506_vm13 = vcmp.gt.f32.partialorder %v3858_v52, 0.0 }
 0x1d7   : > { %v5018_v59 = vmul.f32 0.2, %v3858_v52  ;;  %vm4123_vm14 = vcmp.gt.f32.partialorder %v2901_v57, 0.0  ;;  %v4635_v60 = vmul.f32 0.2, %v2901_v57  ;;  %vm4251_vm15 = vcmp.gt.f32.partialorder %v3221_v28, 0.0  ;;  %7790 = vmatmul.msk.bf16.gmra.mxu0 %vm2027_vm0, %v8048_v49  ;;  %7854 = vmatmul.msk.bf16.gmra.mxu1 %vm2027_vm0, %v8112_v50 }
 0x1d8   : > { %v5402_v61 = vsel %vm4378_vm12, %v3538_v51, %v4890_v58  ;;  %v4763_v62 = vmul.f32 0.2, %v3221_v28  ;;  %7918 = vmatmul.msk.bf16.gmra.mxu2 %vm2027_vm0, %v8176_v55  ;;  %7982 = vmatmul.msk.bf16.gmra.mxu3 %vm2027_vm0, %v8240_v56 }
 0x1d9   : > { %v5914_v63 = vpack.c.bf16 %v5402_v61, %v5402_v61  ;;  %v5530_v0 = vsel %vm4506_vm13, %v3858_v52, %v5018_v59  ;;  %v5147_v1 = vsel %vm4123_vm14, %v2901_v57, %v4635_v60 }
 0x1da   : > { %v6042_v3 = vpack.c.bf16 %v5530_v0, %v5530_v0  ;;  %v5659_v4 = vpack.c.bf16 %v5147_v1, %v5147_v1  ;;  %v5275_v5 = vsel %vm4251_vm15, %v3221_v28, %v4763_v62 }
 0x1db   : > { %6427 = vst.msk [vmem:[%s8472_s10 + $0x494] sm:$0xf] %vm6133_vm3, %v5914_v63  ;;  %v5787_v6 = vpack.c.bf16 %v5275_v5, %v5275_v5  ;;  %v3540_v7 = vpop.f32.mrf.mxu2  ;;  %v3860_v8 = vpop.f32.mrf.mxu3 }
 0x1dc   : > { %6555 = vst.msk [vmem:[%s8472_s10 + $0x694] sm:$0xf] %vm6133_vm3, %v6042_v3  ;;  %v3541_v9 = vadd.f32 %v8994_v2, %v3540_v7  ;;  %v3861_v10 = vadd.f32 %v8994_v2, %v3860_v8  ;;  %v2902_v11 = vpop.f32.mrf.mxu0  ;;  %v3222_v12 = vpop.f32.mrf.mxu1 }
 0x1dd   : > { %6172 = vst.msk [vmem:[%s8472_s10 + $0x98] sm:$0xf] %vm6133_vm3, %v5659_v4  ;;  %v2903_v13 = vadd.f32 %v8994_v2, %v2902_v11  ;;  %v3223_v14 = vadd.f32 %v8994_v2, %v3222_v12  ;;  %v8114_v11 = vld [vmem:[%s8386_s5 + $0x2e8] sm:$0xff] }
 0x1de   : > { %6300 = vst.msk [vmem:[%s8472_s10 + $0x298] sm:$0xf] %vm6133_vm3, %v5787_v6  ;;  %vm4379_vm1 = vcmp.gt.f32.partialorder %v3541_v9, 0.0  ;;  %v4891_v15 = vmul.f32 0.2, %v3541_v9  ;;  %vm4507_vm2 = vcmp.gt.f32.partialorder %v3861_v10, 0.0 }
 0x1df   : > { %v5019_v16 = vmul.f32 0.2, %v3861_v10  ;;  %vm4124_vm4 = vcmp.gt.f32.partialorder %v2903_v13, 0.0  ;;  %v4636_v17 = vmul.f32 0.2, %v2903_v13  ;;  %vm4252_vm5 = vcmp.gt.f32.partialorder %v3223_v14, 0.0 }
 0x1e0   : > { %v5403_v18 = vsel %vm4379_vm1, %v3541_v9, %v4891_v15  ;;  %v4764_v19 = vmul.f32 0.2, %v3223_v14 }
 0x1e1   : > { %v5915_v39 = vpack.c.bf16 %v5403_v18, %v5403_v18  ;;  %v5531_v20 = vsel %vm4507_vm2, %v3861_v10, %v5019_v16  ;;  %v5148_v21 = vsel %vm4124_vm4, %v2903_v13, %v4636_v17  ;;  %v8050_v10 = vld [vmem:[%s8386_s5 + $0xe8] sm:$0xff] }
 0x1e2   : > { %v6043_v22 = vpack.c.bf16 %v5531_v20, %v5531_v20  ;;  %v5660_v23 = vpack.c.bf16 %v5148_v21, %v5148_v21  ;;  %v5276_v24 = vsel %vm4252_vm5, %v3223_v14, %v4764_v19  ;;  %v8178_v16 = vld [vmem:[%s8386_s5 + $0x4e8] sm:$0xff] }
 0x1e3   : > { %6428 = vst.msk [vmem:[%s8472_s10 + $0x498] sm:$0xf] %vm6133_vm3, %v5915_v39  ;;  %v5788_v25 = vpack.c.bf16 %v5276_v24, %v5276_v24  ;;  %v3542_v26 = vpop.f32.mrf.mxu2  ;;  %v3862_v27 = vpop.f32.mrf.mxu3  ;;  %v8242_v17 = vld [vmem:[%s8386_s5 + $0x6e8] sm:$0xff] }
 0x1e4   : > { %6556 = vst.msk [vmem:[%s8472_s10 + $0x698] sm:$0xf] %vm6133_vm3, %v6043_v22  ;;  %v3543_v31 = vadd.f32 %v8994_v2, %v3542_v26  ;;  %v3863_v32 = vadd.f32 %v8994_v2, %v3862_v27  ;;  %v2905_v33 = vpop.f32.mrf.mxu0  ;;  %v3225_v34 = vpop.f32.mrf.mxu1 }
 0x1e5   : > { %6173 = vst.msk [vmem:[%s8472_s10 + $0x9c] sm:$0xf] %vm6133_vm3, %v5660_v23  ;;  %v2906_v37 = vadd.f32 %v8994_v2, %v2905_v33  ;;  %v3226_v38 = vadd.f32 %v8994_v2, %v3225_v34 }
 0x1e6   : > { %6301 = vst.msk [vmem:[%s8472_s10 + $0x29c] sm:$0xf] %vm6133_vm3, %v5788_v25  ;;  %vm4380_vm6 = vcmp.gt.f32.partialorder %v3543_v31, 0.0  ;;  %v4892_v40 = vmul.f32 0.2, %v3543_v31  ;;  %vm4508_vm7 = vcmp.gt.f32.partialorder %v3863_v32, 0.0 }
 0x1e7   : > { %v5020_v41 = vmul.f32 0.2, %v3863_v32  ;;  %vm4125_vm8 = vcmp.gt.f32.partialorder %v2906_v37, 0.0  ;;  %v4637_v42 = vmul.f32 0.2, %v2906_v37  ;;  %vm4253_vm9 = vcmp.gt.f32.partialorder %v3226_v38, 0.0  ;;  %7791 = vmatmul.msk.bf16.gmra.mxu0 %vm2027_vm0, %v8049_v29  ;;  %7855 = vmatmul.msk.bf16.gmra.mxu1 %vm2027_vm0, %v8113_v30 }
 0x1e8   : > { %v5404_v43 = vsel %vm4380_vm6, %v3543_v31, %v4892_v40  ;;  %v4765_v44 = vmul.f32 0.2, %v3226_v38  ;;  %7919 = vmatmul.msk.bf16.gmra.mxu2 %vm2027_vm0, %v8177_v35  ;;  %7983 = vmatmul.msk.bf16.gmra.mxu3 %vm2027_vm0, %v8241_v36 }
 0x1e9   : > { %v5916_v45 = vpack.c.bf16 %v5404_v43, %v5404_v43  ;;  %v5532_v46 = vsel %vm4508_vm7, %v3863_v32, %v5020_v41  ;;  %v5149_v47 = vsel %vm4125_vm8, %v2906_v37, %v4637_v42 }
 0x1ea   : > { %v6044_v48 = vpack.c.bf16 %v5532_v46, %v5532_v46  ;;  %v5661_v49 = vpack.c.bf16 %v5149_v47, %v5149_v47  ;;  %v5277_v50 = vsel %vm4253_vm9, %v3226_v38, %v4765_v44 }
 0x1eb   : > { %6429 = vst.msk [vmem:[%s8472_s10 + $0x49c] sm:$0xf] %vm6133_vm3, %v5916_v45  ;;  %v5789_v51 = vpack.c.bf16 %v5277_v50, %v5277_v50  ;;  %v3545_v52 = vpop.f32.mrf.mxu2  ;;  %v3865_v53 = vpop.f32.mrf.mxu3 }
 0x1ec   : > { %6557 = vst.msk [vmem:[%s8472_s10 + $0x69c] sm:$0xf] %vm6133_vm3, %v6044_v48  ;;  %v3546_v54 = vadd.f32 %v8994_v2, %v3545_v52  ;;  %v3866_v55 = vadd.f32 %v8994_v2, %v3865_v53  ;;  %v2907_v56 = vpop.f32.mrf.mxu0  ;;  %v3227_v57 = vpop.f32.mrf.mxu1 }
 0x1ed   : > { %6174 = vst.msk [vmem:[%s8472_s10 + $0xa0] sm:$0xf] %vm6133_vm3, %v5661_v49  ;;  %v2908_v28 = vadd.f32 %v8994_v2, %v2907_v56  ;;  %v3228_v58 = vadd.f32 %v8994_v2, %v3227_v57  ;;  %v8115_v56 = vld [vmem:[%s8386_s5 + $0x2f0] sm:$0xff] }
 0x1ee   : > { %6302 = vst.msk [vmem:[%s8472_s10 + $0x2a0] sm:$0xf] %vm6133_vm3, %v5789_v51  ;;  %vm4381_vm10 = vcmp.gt.f32.partialorder %v3546_v54, 0.0  ;;  %v4893_v59 = vmul.f32 0.2, %v3546_v54  ;;  %vm4509_vm11 = vcmp.gt.f32.partialorder %v3866_v55, 0.0 }
 0x1ef   : > { %v5021_v60 = vmul.f32 0.2, %v3866_v55  ;;  %vm4126_vm12 = vcmp.gt.f32.partialorder %v2908_v28, 0.0  ;;  %v4638_v61 = vmul.f32 0.2, %v2908_v28  ;;  %vm4254_vm13 = vcmp.gt.f32.partialorder %v3228_v58, 0.0 }
 0x1f0   : > { %v5405_v62 = vsel %vm4381_vm10, %v3546_v54, %v4893_v59  ;;  %v4766_v63 = vmul.f32 0.2, %v3228_v58 }
 0x1f1   : > { %v5917_v0 = vpack.c.bf16 %v5405_v62, %v5405_v62  ;;  %v5533_v1 = vsel %vm4509_vm11, %v3866_v55, %v5021_v60  ;;  %v5150_v3 = vsel %vm4126_vm12, %v2908_v28, %v4638_v61  ;;  %v8051_v55 = vld [vmem:[%s8386_s5 + $0xf0] sm:$0xff] }
 0x1f2   : > { %v6045_v4 = vpack.c.bf16 %v5533_v1, %v5533_v1  ;;  %v5662_v5 = vpack.c.bf16 %v5150_v3, %v5150_v3  ;;  %v5278_v6 = vsel %vm4254_vm13, %v3228_v58, %v4766_v63  ;;  %v8179_v60 = vld [vmem:[%s8386_s5 + $0x4f0] sm:$0xff] }
 0x1f3   : > { %6430 = vst.msk [vmem:[%s8472_s10 + $0x4a0] sm:$0xf] %vm6133_vm3, %v5917_v0  ;;  %v5790_v7 = vpack.c.bf16 %v5278_v6, %v5278_v6  ;;  %v3547_v8 = vpop.f32.mrf.mxu2  ;;  %v3867_v9 = vpop.f32.mrf.mxu3  ;;  %v8243_v61 = vld [vmem:[%s8386_s5 + $0x6f0] sm:$0xff] }
 0x1f4   : > { %6558 = vst.msk [vmem:[%s8472_s10 + $0x6a0] sm:$0xf] %vm6133_vm3, %v6045_v4  ;;  %v3548_v12 = vadd.f32 %v8994_v2, %v3547_v8  ;;  %v3868_v13 = vadd.f32 %v8994_v2, %v3867_v9  ;;  %v2910_v14 = vpop.f32.mrf.mxu0  ;;  %v3230_v15 = vpop.f32.mrf.mxu1 }
 0x1f5   : > { %6175 = vst.msk [vmem:[%s8472_s10 + $0xa4] sm:$0xf] %vm6133_vm3, %v5662_v5  ;;  %v2911_v18 = vadd.f32 %v8994_v2, %v2910_v14  ;;  %v3231_v19 = vadd.f32 %v8994_v2, %v3230_v15 }
 0x1f6   : > { %6303 = vst.msk [vmem:[%s8472_s10 + $0x2a4] sm:$0xf] %vm6133_vm3, %v5790_v7  ;;  %vm4382_vm14 = vcmp.gt.f32.partialorder %v3548_v12, 0.0  ;;  %v4894_v39 = vmul.f32 0.2, %v3548_v12  ;;  %vm4510_vm15 = vcmp.gt.f32.partialorder %v3868_v13, 0.0 }
 0x1f7   : > { %v5022_v20 = vmul.f32 0.2, %v3868_v13  ;;  %vm4127_vm1 = vcmp.gt.f32.partialorder %v2911_v18, 0.0  ;;  %v4639_v21 = vmul.f32 0.2, %v2911_v18  ;;  %vm4255_vm2 = vcmp.gt.f32.partialorder %v3231_v19, 0.0  ;;  %7792 = vmatmul.msk.bf16.gmra.mxu0 %vm2027_vm0, %v8050_v10  ;;  %7856 = vmatmul.msk.bf16.gmra.mxu1 %vm2027_vm0, %v8114_v11 }
 0x1f8   : > { %v5406_v22 = vsel %vm4382_vm14, %v3548_v12, %v4894_v39  ;;  %v4767_v23 = vmul.f32 0.2, %v3231_v19  ;;  %7920 = vmatmul.msk.bf16.gmra.mxu2 %vm2027_vm0, %v8178_v16  ;;  %7984 = vmatmul.msk.bf16.gmra.mxu3 %vm2027_vm0, %v8242_v17 }
 0x1f9   : > { %v5918_v24 = vpack.c.bf16 %v5406_v22, %v5406_v22  ;;  %v5534_v25 = vsel %vm4510_vm15, %v3868_v13, %v5022_v20  ;;  %v5151_v26 = vsel %vm4127_vm1, %v2911_v18, %v4639_v21 }
 0x1fa   : > { %v6046_v27 = vpack.c.bf16 %v5534_v25, %v5534_v25  ;;  %v5663_v29 = vpack.c.bf16 %v5151_v26, %v5151_v26  ;;  %v5279_v30 = vsel %vm4255_vm2, %v3231_v19, %v4767_v23 }
 0x1fb   : > { %6431 = vst.msk [vmem:[%s8472_s10 + $0x4a4] sm:$0xf] %vm6133_vm3, %v5918_v24  ;;  %v5791_v31 = vpack.c.bf16 %v5279_v30, %v5279_v30  ;;  %v3550_v32 = vpop.f32.mrf.mxu2  ;;  %v3870_v33 = vpop.f32.mrf.mxu3 }
 0x1fc   : > { %6559 = vst.msk [vmem:[%s8472_s10 + $0x6a4] sm:$0xf] %vm6133_vm3, %v6046_v27  ;;  %v3551_v34 = vadd.f32 %v8994_v2, %v3550_v32  ;;  %v3871_v35 = vadd.f32 %v8994_v2, %v3870_v33  ;;  %v2912_v36 = vpop.f32.mrf.mxu0  ;;  %v3232_v37 = vpop.f32.mrf.mxu1 }
 0x1fd   : > { %6176 = vst.msk [vmem:[%s8472_s10 + $0xa8] sm:$0xf] %vm6133_vm3, %v5663_v29  ;;  %v2913_v38 = vadd.f32 %v8994_v2, %v2912_v36  ;;  %v3233_v40 = vadd.f32 %v8994_v2, %v3232_v37  ;;  %v8116_v36 = vld [vmem:[%s8386_s5 + $0x2f8] sm:$0xff] }
 0x1fe   : > { %6304 = vst.msk [vmem:[%s8472_s10 + $0x2a8] sm:$0xf] %vm6133_vm3, %v5791_v31  ;;  %vm4383_vm4 = vcmp.gt.f32.partialorder %v3551_v34, 0.0  ;;  %v4895_v41 = vmul.f32 0.2, %v3551_v34  ;;  %vm4511_vm5 = vcmp.gt.f32.partialorder %v3871_v35, 0.0 }
 0x1ff   : > { %v5023_v42 = vmul.f32 0.2, %v3871_v35  ;;  %vm4128_vm6 = vcmp.gt.f32.partialorder %v2913_v38, 0.0  ;;  %v4640_v43 = vmul.f32 0.2, %v2913_v38  ;;  %vm4256_vm7 = vcmp.gt.f32.partialorder %v3233_v40, 0.0 }
 0x200   : > { %v5407_v44 = vsel %vm4383_vm4, %v3551_v34, %v4895_v41  ;;  %v4768_v45 = vmul.f32 0.2, %v3233_v40 }
 0x201   : > { %v5919_v46 = vpack.c.bf16 %v5407_v44, %v5407_v44  ;;  %v5535_v47 = vsel %vm4511_vm5, %v3871_v35, %v5023_v42  ;;  %v5152_v48 = vsel %vm4128_vm6, %v2913_v38, %v4640_v43  ;;  %v8052_v35 = vld [vmem:[%s8386_s5 + $0xf8] sm:$0xff] }
 0x202   : > { %v6047_v49 = vpack.c.bf16 %v5535_v47, %v5535_v47  ;;  %v5664_v50 = vpack.c.bf16 %v5152_v48, %v5152_v48  ;;  %v5280_v51 = vsel %vm4256_vm7, %v3233_v40, %v4768_v45  ;;  %v8180_v42 = vld [vmem:[%s8386_s5 + $0x4f8] sm:$0xff] }
 0x203   : > { %6432 = vst.msk [vmem:[%s8472_s10 + $0x4a8] sm:$0xf] %vm6133_vm3, %v5919_v46  ;;  %v5792_v52 = vpack.c.bf16 %v5280_v51, %v5280_v51  ;;  %v3552_v53 = vpop.f32.mrf.mxu2  ;;  %v3872_v54 = vpop.f32.mrf.mxu3  ;;  %v8244_v43 = vld [vmem:[%s8386_s5 + $0x6f8] sm:$0xff] }
 0x204   : > { %6560 = vst.msk [vmem:[%s8472_s10 + $0x6a8] sm:$0xf] %vm6133_vm3, %v6047_v49  ;;  %v3553_v57 = vadd.f32 %v8994_v2, %v3552_v53  ;;  %v3873_v28 = vadd.f32 %v8994_v2, %v3872_v54  ;;  %v2915_v58 = vpop.f32.mrf.mxu0  ;;  %v3235_v59 = vpop.f32.mrf.mxu1 }
 0x205   : > { %6177 = vst.msk [vmem:[%s8472_s10 + $0xac] sm:$0xf] %vm6133_vm3, %v5664_v50  ;;  %v2916_v62 = vadd.f32 %v8994_v2, %v2915_v58  ;;  %v3236_v63 = vadd.f32 %v8994_v2, %v3235_v59 }
 0x206   : > { %6305 = vst.msk [vmem:[%s8472_s10 + $0x2ac] sm:$0xf] %vm6133_vm3, %v5792_v52  ;;  %vm4384_vm8 = vcmp.gt.f32.partialorder %v3553_v57, 0.0  ;;  %v4896_v0 = vmul.f32 0.2, %v3553_v57  ;;  %vm4512_vm9 = vcmp.gt.f32.partialorder %v3873_v28, 0.0 }
 0x207   : > { %v5024_v1 = vmul.f32 0.2, %v3873_v28  ;;  %vm4129_vm10 = vcmp.gt.f32.partialorder %v2916_v62, 0.0  ;;  %v4641_v3 = vmul.f32 0.2, %v2916_v62  ;;  %vm4257_vm11 = vcmp.gt.f32.partialorder %v3236_v63, 0.0  ;;  %7793 = vmatmul.msk.bf16.gmra.mxu0 %vm2027_vm0, %v8051_v55  ;;  %7857 = vmatmul.msk.bf16.gmra.mxu1 %vm2027_vm0, %v8115_v56 }
 0x208   : > { %v5408_v4 = vsel %vm4384_vm8, %v3553_v57, %v4896_v0  ;;  %v4769_v5 = vmul.f32 0.2, %v3236_v63  ;;  %7921 = vmatmul.msk.bf16.gmra.mxu2 %vm2027_vm0, %v8179_v60  ;;  %7985 = vmatmul.msk.bf16.gmra.mxu3 %vm2027_vm0, %v8243_v61 }
 0x209   : > { %v5920_v6 = vpack.c.bf16 %v5408_v4, %v5408_v4  ;;  %v5536_v7 = vsel %vm4512_vm9, %v3873_v28, %v5024_v1  ;;  %v5153_v8 = vsel %vm4129_vm10, %v2916_v62, %v4641_v3 }
 0x20a   : > { %v6048_v9 = vpack.c.bf16 %v5536_v7, %v5536_v7  ;;  %v5665_v10 = vpack.c.bf16 %v5153_v8, %v5153_v8  ;;  %v5281_v11 = vsel %vm4257_vm11, %v3236_v63, %v4769_v5 }
 0x20b   : > { %6433 = vst.msk [vmem:[%s8472_s10 + $0x4ac] sm:$0xf] %vm6133_vm3, %v5920_v6  ;;  %v5793_v12 = vpack.c.bf16 %v5281_v11, %v5281_v11  ;;  %v3555_v13 = vpop.f32.mrf.mxu2  ;;  %v3875_v14 = vpop.f32.mrf.mxu3 }
 0x20c   : > { %6561 = vst.msk [vmem:[%s8472_s10 + $0x6ac] sm:$0xf] %vm6133_vm3, %v6048_v9  ;;  %v3556_v15 = vadd.f32 %v8994_v2, %v3555_v13  ;;  %v3876_v16 = vadd.f32 %v8994_v2, %v3875_v14  ;;  %v2917_v17 = vpop.f32.mrf.mxu0  ;;  %v3237_v18 = vpop.f32.mrf.mxu1 }
 0x20d   : > { %6178 = vst.msk [vmem:[%s8472_s10 + $0xb0] sm:$0xf] %vm6133_vm3, %v5665_v10  ;;  %v2918_v19 = vadd.f32 %v8994_v2, %v2917_v17  ;;  %v3238_v39 = vadd.f32 %v8994_v2, %v3237_v18  ;;  %v8117_v17 = vld [vmem:[%s8386_s5 + $0x300] sm:$0xff] }
 0x20e   : > { %6306 = vst.msk [vmem:[%s8472_s10 + $0x2b0] sm:$0xf] %vm6133_vm3, %v5793_v12  ;;  %vm4385_vm12 = vcmp.gt.f32.partialorder %v3556_v15, 0.0  ;;  %v4897_v20 = vmul.f32 0.2, %v3556_v15  ;;  %vm4513_vm13 = vcmp.gt.f32.partialorder %v3876_v16, 0.0 }
 0x20f   : > { %v5025_v21 = vmul.f32 0.2, %v3876_v16  ;;  %vm4130_vm14 = vcmp.gt.f32.partialorder %v2918_v19, 0.0  ;;  %v4642_v22 = vmul.f32 0.2, %v2918_v19  ;;  %vm4258_vm15 = vcmp.gt.f32.partialorder %v3238_v39, 0.0 }
 0x210   : > { %v5409_v23 = vsel %vm4385_vm12, %v3556_v15, %v4897_v20  ;;  %v4770_v24 = vmul.f32 0.2, %v3238_v39 }
 0x211   : > { %v5921_v25 = vpack.c.bf16 %v5409_v23, %v5409_v23  ;;  %v5537_v26 = vsel %vm4513_vm13, %v3876_v16, %v5025_v21  ;;  %v5154_v27 = vsel %vm4130_vm14, %v2918_v19, %v4642_v22  ;;  %v8053_v16 = vld [vmem:[%s8386_s5 + $0x100] sm:$0xff] }
 0x212   : > { %v6049_v29 = vpack.c.bf16 %v5537_v26, %v5537_v26  ;;  %v5666_v30 = vpack.c.bf16 %v5154_v27, %v5154_v27  ;;  %v5282_v31 = vsel %vm4258_vm15, %v3238_v39, %v4770_v24  ;;  %v8181_v21 = vld [vmem:[%s8386_s5 + $0x500] sm:$0xff] }
 0x213   : > { %6434 = vst.msk [vmem:[%s8472_s10 + $0x4b0] sm:$0xf] %vm6133_vm3, %v5921_v25  ;;  %v5794_v32 = vpack.c.bf16 %v5282_v31, %v5282_v31  ;;  %v3557_v33 = vpop.f32.mrf.mxu2  ;;  %v3877_v34 = vpop.f32.mrf.mxu3  ;;  %v8245_v22 = vld [vmem:[%s8386_s5 + $0x700] sm:$0xff] }
 0x214   : > { %6562 = vst.msk [vmem:[%s8472_s10 + $0x6b0] sm:$0xf] %vm6133_vm3, %v6049_v29  ;;  %v3558_v37 = vadd.f32 %v8994_v2, %v3557_v33  ;;  %v3878_v38 = vadd.f32 %v8994_v2, %v3877_v34  ;;  %v2920_v40 = vpop.f32.mrf.mxu0  ;;  %v3240_v41 = vpop.f32.mrf.mxu1 }
 0x215   : > { %6179 = vst.msk [vmem:[%s8472_s10 + $0xb4] sm:$0xf] %vm6133_vm3, %v5666_v30  ;;  %v2921_v44 = vadd.f32 %v8994_v2, %v2920_v40  ;;  %v3241_v45 = vadd.f32 %v8994_v2, %v3240_v41  ;;  %v9255_v40 = vld [vmem:[%s10488_s2] ss:$0 sm:$0xff] }
 0x216   : > { %6307 = vst.msk [vmem:[%s8472_s10 + $0x2b4] sm:$0xf] %vm6133_vm3, %v5794_v32  ;;  %vm4386_vm1 = vcmp.gt.f32.partialorder %v3558_v37, 0.0  ;;  %v4898_v46 = vmul.f32 0.2, %v3558_v37  ;;  %vm4514_vm2 = vcmp.gt.f32.partialorder %v3878_v38, 0.0 }
 0x217   : > { %v5026_v47 = vmul.f32 0.2, %v3878_v38  ;;  %vm4131_vm4 = vcmp.gt.f32.partialorder %v2921_v44, 0.0  ;;  %v4643_v48 = vmul.f32 0.2, %v2921_v44  ;;  %vm4259_vm5 = vcmp.gt.f32.partialorder %v3241_v45, 0.0  ;;  %7794 = vmatmul.msk.bf16.gmra.mxu0 %vm2027_vm0, %v8052_v35  ;;  %7858 = vmatmul.msk.bf16.gmra.mxu1 %vm2027_vm0, %v8116_v36 }
 0x218   : > { %v5410_v49 = vsel %vm4386_vm1, %v3558_v37, %v4898_v46  ;;  %v4771_v50 = vmul.f32 0.2, %v3241_v45  ;;  %7922 = vmatmul.msk.bf16.gmra.mxu2 %vm2027_vm0, %v8180_v42  ;;  %7986 = vmatmul.msk.bf16.gmra.mxu3 %vm2027_vm0, %v8244_v43 }
 0x219   : > { %v5922_v51 = vpack.c.bf16 %v5410_v49, %v5410_v49  ;;  %v5538_v52 = vsel %vm4514_vm2, %v3878_v38, %v5026_v47  ;;  %v5155_v53 = vsel %vm4131_vm4, %v2921_v44, %v4643_v48 }
 0x21a   : > { %v6050_v54 = vpack.c.bf16 %v5538_v52, %v5538_v52  ;;  %v5667_v55 = vpack.c.bf16 %v5155_v53, %v5155_v53  ;;  %v5283_v56 = vsel %vm4259_vm5, %v3241_v45, %v4771_v50 }
 0x21b   : > { %6435 = vst.msk [vmem:[%s8472_s10 + $0x4b4] sm:$0xf] %vm6133_vm3, %v5922_v51  ;;  %v5795_v57 = vpack.c.bf16 %v5283_v56, %v5283_v56  ;;  %v3560_v28 = vpop.f32.mrf.mxu2  ;;  %v3880_v58 = vpop.f32.mrf.mxu3 }
 0x21c   : > { %6563 = vst.msk [vmem:[%s8472_s10 + $0x6b4] sm:$0xf] %vm6133_vm3, %v6050_v54  ;;  %v3561_v59 = vadd.f32 %v8994_v2, %v3560_v28  ;;  %v3881_v60 = vadd.f32 %v8994_v2, %v3880_v58  ;;  %v2922_v61 = vpop.f32.mrf.mxu0  ;;  %v3242_v62 = vpop.f32.mrf.mxu1 }
 0x21d   : > { %6180 = vst.msk [vmem:[%s8472_s10 + $0xb8] sm:$0xf] %vm6133_vm3, %v5667_v55  ;;  %v2923_v63 = vadd.f32 %v8994_v2, %v2922_v61  ;;  %v3243_v0 = vadd.f32 %v8994_v2, %v3242_v62  ;;  %v8118_v61 = vld [vmem:[%s8386_s5 + $0x308] sm:$0xff] }
 0x21e   : > { %6308 = vst.msk [vmem:[%s8472_s10 + $0x2b8] sm:$0xf] %vm6133_vm3, %v5795_v57  ;;  %vm4387_vm6 = vcmp.gt.f32.partialorder %v3561_v59, 0.0  ;;  %v4899_v1 = vmul.f32 0.2, %v3561_v59  ;;  %vm4515_vm7 = vcmp.gt.f32.partialorder %v3881_v60, 0.0 }
 0x21f   : > { %v5027_v3 = vmul.f32 0.2, %v3881_v60  ;;  %vm4132_vm8 = vcmp.gt.f32.partialorder %v2923_v63, 0.0  ;;  %v4644_v4 = vmul.f32 0.2, %v2923_v63  ;;  %vm4260_vm9 = vcmp.gt.f32.partialorder %v3243_v0, 0.0 }
 0x220   : > { %v5411_v5 = vsel %vm4387_vm6, %v3561_v59, %v4899_v1  ;;  %v4772_v6 = vmul.f32 0.2, %v3243_v0 }
 0x221   : > { %v5923_v7 = vpack.c.bf16 %v5411_v5, %v5411_v5  ;;  %v5539_v8 = vsel %vm4515_vm7, %v3881_v60, %v5027_v3  ;;  %v5156_v9 = vsel %vm4132_vm8, %v2923_v63, %v4644_v4  ;;  %v8054_v60 = vld [vmem:[%s8386_s5 + $0x108] sm:$0xff] }
 0x222   : > { %v6051_v10 = vpack.c.bf16 %v5539_v8, %v5539_v8  ;;  %v5668_v11 = vpack.c.bf16 %v5156_v9, %v5156_v9  ;;  %v5284_v12 = vsel %vm4260_vm9, %v3243_v0, %v4772_v6  ;;  %v8182_v3 = vld [vmem:[%s8386_s5 + $0x508] sm:$0xff] }
 0x223   : > { %6436 = vst.msk [vmem:[%s8472_s10 + $0x4b8] sm:$0xf] %vm6133_vm3, %v5923_v7  ;;  %v5796_v13 = vpack.c.bf16 %v5284_v12, %v5284_v12  ;;  %v3562_v14 = vpop.f32.mrf.mxu2  ;;  %v3882_v15 = vpop.f32.mrf.mxu3  ;;  %v8246_v4 = vld [vmem:[%s8386_s5 + $0x708] sm:$0xff] }
 0x224   : > { %6564 = vst.msk [vmem:[%s8472_s10 + $0x6b8] sm:$0xf] %vm6133_vm3, %v6051_v10  ;;  %v3563_v18 = vadd.f32 %v8994_v2, %v3562_v14  ;;  %v3883_v19 = vadd.f32 %v8994_v2, %v3882_v15  ;;  %v2925_v39 = vpop.f32.mrf.mxu0  ;;  %v3245_v20 = vpop.f32.mrf.mxu1 }
 0x225   : > { %6181 = vst.msk [vmem:[%s8472_s10 + $0xbc] sm:$0xf] %vm6133_vm3, %v5668_v11  ;;  %v2926_v23 = vadd.f32 %v8994_v2, %v2925_v39  ;;  %v3246_v24 = vadd.f32 %v8994_v2, %v3245_v20 }
 0x226   : > { %6309 = vst.msk [vmem:[%s8472_s10 + $0x2bc] sm:$0xf] %vm6133_vm3, %v5796_v13  ;;  %vm4388_vm10 = vcmp.gt.f32.partialorder %v3563_v18, 0.0  ;;  %v4900_v25 = vmul.f32 0.2, %v3563_v18  ;;  %vm4516_vm11 = vcmp.gt.f32.partialorder %v3883_v19, 0.0 }
 0x227   : > { %v5028_v26 = vmul.f32 0.2, %v3883_v19  ;;  %vm4133_vm12 = vcmp.gt.f32.partialorder %v2926_v23, 0.0  ;;  %v4645_v27 = vmul.f32 0.2, %v2926_v23  ;;  %vm4261_vm13 = vcmp.gt.f32.partialorder %v3246_v24, 0.0  ;;  %7795 = vmatmul.msk.bf16.gmra.mxu0 %vm2027_vm0, %v8053_v16  ;;  %7859 = vmatmul.msk.bf16.gmra.mxu1 %vm2027_vm0, %v8117_v17 }
 0x228   : > { %v5412_v29 = vsel %vm4388_vm10, %v3563_v18, %v4900_v25  ;;  %v4773_v30 = vmul.f32 0.2, %v3246_v24  ;;  %7923 = vmatmul.msk.bf16.gmra.mxu2 %vm2027_vm0, %v8181_v21  ;;  %7987 = vmatmul.msk.bf16.gmra.mxu3 %vm2027_vm0, %v8245_v22 }
 0x229   : > { %v5924_v2 = vpack.c.bf16 %v5412_v29, %v5412_v29  ;;  %v5540_v31 = vsel %vm4516_vm11, %v3883_v19, %v5028_v26  ;;  %v5157_v32 = vsel %vm4133_vm12, %v2926_v23, %v4645_v27 }
 0x22a   : > { %v6052_v33 = vpack.c.bf16 %v5540_v31, %v5540_v31  ;;  %v5669_v34 = vpack.c.bf16 %v5157_v32, %v5157_v32  ;;  %v5285_v35 = vsel %vm4261_vm13, %v3246_v24, %v4773_v30 }
 0x22b   : > { %6437 = vst.msk [vmem:[%s8472_s10 + $0x4bc] sm:$0xf] %vm6133_vm3, %v5924_v2  ;;  %v5797_v36 = vpack.c.bf16 %v5285_v35, %v5285_v35  ;;  %v3565_v37 = vpop.f32.mrf.mxu2  ;;  %v3885_v38 = vpop.f32.mrf.mxu3 }
 0x22c   : > { %6565 = vst.msk [vmem:[%s8472_s10 + $0x6bc] sm:$0xf] %vm6133_vm3, %v6052_v33  ;;  %v3566_v41 = vadd.f32 %v9255_v40, %v3565_v37  ;;  %v3886_v42 = vadd.f32 %v9255_v40, %v3885_v38  ;;  %v2927_v43 = vpop.f32.mrf.mxu0  ;;  %v3247_v44 = vpop.f32.mrf.mxu1 }
 0x22d   : > { %6182 = vst.msk [vmem:[%s8472_s10 + $0xc0] sm:$0xf] %vm6133_vm3, %v5669_v34  ;;  %v2928_v45 = vadd.f32 %v9255_v40, %v2927_v43  ;;  %v3248_v46 = vadd.f32 %v9255_v40, %v3247_v44  ;;  %v8119_v43 = vld [vmem:[%s8386_s5 + $0x310] sm:$0xff] }
 0x22e   : > { %6310 = vst.msk [vmem:[%s8472_s10 + $0x2c0] sm:$0xf] %vm6133_vm3, %v5797_v36  ;;  %vm4389_vm14 = vcmp.gt.f32.partialorder %v3566_v41, 0.0  ;;  %v4901_v47 = vmul.f32 0.2, %v3566_v41  ;;  %vm4517_vm15 = vcmp.gt.f32.partialorder %v3886_v42, 0.0 }
 0x22f   : > { %v5029_v48 = vmul.f32 0.2, %v3886_v42  ;;  %vm4134_vm1 = vcmp.gt.f32.partialorder %v2928_v45, 0.0  ;;  %v4646_v49 = vmul.f32 0.2, %v2928_v45  ;;  %vm4262_vm2 = vcmp.gt.f32.partialorder %v3248_v46, 0.0 }
 0x230   : > { %v5413_v50 = vsel %vm4389_vm14, %v3566_v41, %v4901_v47  ;;  %v4774_v51 = vmul.f32 0.2, %v3248_v46 }
 0x231   : > { %v5925_v52 = vpack.c.bf16 %v5413_v50, %v5413_v50  ;;  %v5541_v53 = vsel %vm4517_vm15, %v3886_v42, %v5029_v48  ;;  %v5158_v54 = vsel %vm4134_vm1, %v2928_v45, %v4646_v49  ;;  %v8055_v42 = vld [vmem:[%s8386_s5 + $0x110] sm:$0xff] }
 0x232   : > { %v6053_v55 = vpack.c.bf16 %v5541_v53, %v5541_v53  ;;  %v5670_v56 = vpack.c.bf16 %v5158_v54, %v5158_v54  ;;  %v5286_v57 = vsel %vm4262_vm2, %v3248_v46, %v4774_v51  ;;  %v8183_v48 = vld [vmem:[%s8386_s5 + $0x510] sm:$0xff] }
 0x233   : > { %6438 = vst.msk [vmem:[%s8472_s10 + $0x4c0] sm:$0xf] %vm6133_vm3, %v5925_v52  ;;  %v5798_v28 = vpack.c.bf16 %v5286_v57, %v5286_v57  ;;  %v3567_v58 = vpop.f32.mrf.mxu2  ;;  %v3887_v59 = vpop.f32.mrf.mxu3  ;;  %v8247_v49 = vld [vmem:[%s8386_s5 + $0x710] sm:$0xff] }
 0x234   : > { %6566 = vst.msk [vmem:[%s8472_s10 + $0x6c0] sm:$0xf] %vm6133_vm3, %v6053_v55  ;;  %v3568_v62 = vadd.f32 %v9255_v40, %v3567_v58  ;;  %v3888_v63 = vadd.f32 %v9255_v40, %v3887_v59  ;;  %v2930_v0 = vpop.f32.mrf.mxu0  ;;  %v3250_v1 = vpop.f32.mrf.mxu1 }
 0x235   : > { %6183 = vst.msk [vmem:[%s8472_s10 + $0xc4] sm:$0xf] %vm6133_vm3, %v5670_v56  ;;  %v2931_v5 = vadd.f32 %v9255_v40, %v2930_v0  ;;  %v3251_v6 = vadd.f32 %v9255_v40, %v3250_v1 }
 0x236   : > { %6311 = vst.msk [vmem:[%s8472_s10 + $0x2c4] sm:$0xf] %vm6133_vm3, %v5798_v28  ;;  %vm4390_vm4 = vcmp.gt.f32.partialorder %v3568_v62, 0.0  ;;  %v4902_v7 = vmul.f32 0.2, %v3568_v62  ;;  %vm4518_vm5 = vcmp.gt.f32.partialorder %v3888_v63, 0.0 }
 0x237   : > { %v5030_v8 = vmul.f32 0.2, %v3888_v63  ;;  %vm4135_vm6 = vcmp.gt.f32.partialorder %v2931_v5, 0.0  ;;  %v4647_v9 = vmul.f32 0.2, %v2931_v5  ;;  %vm4263_vm7 = vcmp.gt.f32.partialorder %v3251_v6, 0.0  ;;  %7796 = vmatmul.msk.bf16.gmra.mxu0 %vm2027_vm0, %v8054_v60  ;;  %7860 = vmatmul.msk.bf16.gmra.mxu1 %vm2027_vm0, %v8118_v61 }
 0x238   : > { %v5414_v10 = vsel %vm4390_vm4, %v3568_v62, %v4902_v7  ;;  %v4775_v11 = vmul.f32 0.2, %v3251_v6  ;;  %7924 = vmatmul.msk.bf16.gmra.mxu2 %vm2027_vm0, %v8182_v3  ;;  %7988 = vmatmul.msk.bf16.gmra.mxu3 %vm2027_vm0, %v8246_v4 }
 0x239   : > { %v5926_v12 = vpack.c.bf16 %v5414_v10, %v5414_v10  ;;  %v5542_v13 = vsel %vm4518_vm5, %v3888_v63, %v5030_v8  ;;  %v5159_v14 = vsel %vm4135_vm6, %v2931_v5, %v4647_v9 }
 0x23a   : > { %v6054_v15 = vpack.c.bf16 %v5542_v13, %v5542_v13  ;;  %v5671_v16 = vpack.c.bf16 %v5159_v14, %v5159_v14  ;;  %v5287_v17 = vsel %vm4263_vm7, %v3251_v6, %v4775_v11 }
 0x23b   : > { %6439 = vst.msk [vmem:[%s8472_s10 + $0x4c4] sm:$0xf] %vm6133_vm3, %v5926_v12  ;;  %v5799_v18 = vpack.c.bf16 %v5287_v17, %v5287_v17  ;;  %v3570_v19 = vpop.f32.mrf.mxu2  ;;  %v3890_v39 = vpop.f32.mrf.mxu3 }
 0x23c   : > { %6567 = vst.msk [vmem:[%s8472_s10 + $0x6c4] sm:$0xf] %vm6133_vm3, %v6054_v15  ;;  %v3571_v20 = vadd.f32 %v9255_v40, %v3570_v19  ;;  %v3891_v21 = vadd.f32 %v9255_v40, %v3890_v39  ;;  %v2932_v22 = vpop.f32.mrf.mxu0  ;;  %v3252_v23 = vpop.f32.mrf.mxu1 }
 0x23d   : > { %6184 = vst.msk [vmem:[%s8472_s10 + $0xc8] sm:$0xf] %vm6133_vm3, %v5671_v16  ;;  %v2933_v24 = vadd.f32 %v9255_v40, %v2932_v22  ;;  %v3253_v25 = vadd.f32 %v9255_v40, %v3252_v23  ;;  %v8120_v22 = vld [vmem:[%s8386_s5 + $0x318] sm:$0xff] }
 0x23e   : > { %6312 = vst.msk [vmem:[%s8472_s10 + $0x2c8] sm:$0xf] %vm6133_vm3, %v5799_v18  ;;  %vm4391_vm8 = vcmp.gt.f32.partialorder %v3571_v20, 0.0  ;;  %v4903_v26 = vmul.f32 0.2, %v3571_v20  ;;  %vm4519_vm9 = vcmp.gt.f32.partialorder %v3891_v21, 0.0 }
 0x23f   : > { %v5031_v27 = vmul.f32 0.2, %v3891_v21  ;;  %vm4136_vm10 = vcmp.gt.f32.partialorder %v2933_v24, 0.0  ;;  %v4648_v29 = vmul.f32 0.2, %v2933_v24  ;;  %vm4264_vm11 = vcmp.gt.f32.partialorder %v3253_v25, 0.0 }
 0x240   : > { %v5415_v30 = vsel %vm4391_vm8, %v3571_v20, %v4903_v26  ;;  %v4776_v2 = vmul.f32 0.2, %v3253_v25 }
 0x241   : > { %v5927_v31 = vpack.c.bf16 %v5415_v30, %v5415_v30  ;;  %v5543_v32 = vsel %vm4519_vm9, %v3891_v21, %v5031_v27  ;;  %v5160_v33 = vsel %vm4136_vm10, %v2933_v24, %v4648_v29  ;;  %v8056_v21 = vld [vmem:[%s8386_s5 + $0x118] sm:$0xff] }
 0x242   : > { %v6055_v34 = vpack.c.bf16 %v5543_v32, %v5543_v32  ;;  %v5672_v35 = vpack.c.bf16 %v5160_v33, %v5160_v33  ;;  %v5288_v36 = vsel %vm4264_vm11, %v3253_v25, %v4776_v2  ;;  %v8184_v27 = vld [vmem:[%s8386_s5 + $0x518] sm:$0xff] }
 0x243   : > { %6440 = vst.msk [vmem:[%s8472_s10 + $0x4c8] sm:$0xf] %vm6133_vm3, %v5927_v31  ;;  %v5800_v37 = vpack.c.bf16 %v5288_v36, %v5288_v36  ;;  %v3572_v38 = vpop.f32.mrf.mxu2  ;;  %v3892_v41 = vpop.f32.mrf.mxu3  ;;  %v8248_v29 = vld [vmem:[%s8386_s5 + $0x718] sm:$0xff] }
 0x244   : > { %6568 = vst.msk [vmem:[%s8472_s10 + $0x6c8] sm:$0xf] %vm6133_vm3, %v6055_v34  ;;  %v3573_v44 = vadd.f32 %v9255_v40, %v3572_v38  ;;  %v3893_v45 = vadd.f32 %v9255_v40, %v3892_v41  ;;  %v2935_v46 = vpop.f32.mrf.mxu0  ;;  %v3255_v47 = vpop.f32.mrf.mxu1 }
 0x245   : > { %6185 = vst.msk [vmem:[%s8472_s10 + $0xcc] sm:$0xf] %vm6133_vm3, %v5672_v35  ;;  %v2936_v50 = vadd.f32 %v9255_v40, %v2935_v46  ;;  %v3256_v51 = vadd.f32 %v9255_v40, %v3255_v47 }
 0x246   : > { %6313 = vst.msk [vmem:[%s8472_s10 + $0x2cc] sm:$0xf] %vm6133_vm3, %v5800_v37  ;;  %vm4392_vm12 = vcmp.gt.f32.partialorder %v3573_v44, 0.0  ;;  %v4904_v52 = vmul.f32 0.2, %v3573_v44  ;;  %vm4520_vm13 = vcmp.gt.f32.partialorder %v3893_v45, 0.0 }
 0x247   : > { %v5032_v53 = vmul.f32 0.2, %v3893_v45  ;;  %vm4137_vm14 = vcmp.gt.f32.partialorder %v2936_v50, 0.0  ;;  %v4649_v54 = vmul.f32 0.2, %v2936_v50  ;;  %vm4265_vm15 = vcmp.gt.f32.partialorder %v3256_v51, 0.0  ;;  %7797 = vmatmul.msk.bf16.gmra.mxu0 %vm2027_vm0, %v8055_v42  ;;  %7861 = vmatmul.msk.bf16.gmra.mxu1 %vm2027_vm0, %v8119_v43 }
 0x248   : > { %v5416_v55 = vsel %vm4392_vm12, %v3573_v44, %v4904_v52  ;;  %v4777_v56 = vmul.f32 0.2, %v3256_v51  ;;  %7925 = vmatmul.msk.bf16.gmra.mxu2 %vm2027_vm0, %v8183_v48  ;;  %7989 = vmatmul.msk.bf16.gmra.mxu3 %vm2027_vm0, %v8247_v49 }
 0x249   : > { %v5928_v57 = vpack.c.bf16 %v5416_v55, %v5416_v55  ;;  %v5544_v28 = vsel %vm4520_vm13, %v3893_v45, %v5032_v53  ;;  %v5161_v58 = vsel %vm4137_vm14, %v2936_v50, %v4649_v54 }
 0x24a   : > { %v6056_v59 = vpack.c.bf16 %v5544_v28, %v5544_v28  ;;  %v5673_v60 = vpack.c.bf16 %v5161_v58, %v5161_v58  ;;  %v5289_v61 = vsel %vm4265_vm15, %v3256_v51, %v4777_v56 }
 0x24b   : > { %6441 = vst.msk [vmem:[%s8472_s10 + $0x4cc] sm:$0xf] %vm6133_vm3, %v5928_v57  ;;  %v5801_v62 = vpack.c.bf16 %v5289_v61, %v5289_v61  ;;  %v3575_v63 = vpop.f32.mrf.mxu2  ;;  %v3895_v0 = vpop.f32.mrf.mxu3 }
 0x24c   : > { %6569 = vst.msk [vmem:[%s8472_s10 + $0x6cc] sm:$0xf] %vm6133_vm3, %v6056_v59  ;;  %v3576_v1 = vadd.f32 %v9255_v40, %v3575_v63  ;;  %v3896_v3 = vadd.f32 %v9255_v40, %v3895_v0  ;;  %v2937_v4 = vpop.f32.mrf.mxu0  ;;  %v3257_v5 = vpop.f32.mrf.mxu1 }
 0x24d   : > { %6186 = vst.msk [vmem:[%s8472_s10 + $0xd0] sm:$0xf] %vm6133_vm3, %v5673_v60  ;;  %v2938_v6 = vadd.f32 %v9255_v40, %v2937_v4  ;;  %v3258_v7 = vadd.f32 %v9255_v40, %v3257_v5  ;;  %v8121_v4 = vld [vmem:[%s8386_s5 + $0x320] sm:$0xff] }
 0x24e   : > { %6314 = vst.msk [vmem:[%s8472_s10 + $0x2d0] sm:$0xf] %vm6133_vm3, %v5801_v62  ;;  %vm4393_vm1 = vcmp.gt.f32.partialorder %v3576_v1, 0.0  ;;  %v4905_v8 = vmul.f32 0.2, %v3576_v1  ;;  %vm4521_vm2 = vcmp.gt.f32.partialorder %v3896_v3, 0.0 }
 0x24f   : > { %v5033_v9 = vmul.f32 0.2, %v3896_v3  ;;  %vm4138_vm4 = vcmp.gt.f32.partialorder %v2938_v6, 0.0  ;;  %v4650_v10 = vmul.f32 0.2, %v2938_v6  ;;  %vm4266_vm5 = vcmp.gt.f32.partialorder %v3258_v7, 0.0 }
 0x250   : > { %v5417_v11 = vsel %vm4393_vm1, %v3576_v1, %v4905_v8  ;;  %v4778_v12 = vmul.f32 0.2, %v3258_v7 }
 0x251   : > { %v5929_v13 = vpack.c.bf16 %v5417_v11, %v5417_v11  ;;  %v5545_v14 = vsel %vm4521_vm2, %v3896_v3, %v5033_v9  ;;  %v5162_v15 = vsel %vm4138_vm4, %v2938_v6, %v4650_v10  ;;  %v8057_v3 = vld [vmem:[%s8386_s5 + $0x120] sm:$0xff] }
 0x252   : > { %v6057_v16 = vpack.c.bf16 %v5545_v14, %v5545_v14  ;;  %v5674_v17 = vpack.c.bf16 %v5162_v15, %v5162_v15  ;;  %v5290_v18 = vsel %vm4266_vm5, %v3258_v7, %v4778_v12  ;;  %v8185_v9 = vld [vmem:[%s8386_s5 + $0x520] sm:$0xff] }
 0x253   : > { %6442 = vst.msk [vmem:[%s8472_s10 + $0x4d0] sm:$0xf] %vm6133_vm3, %v5929_v13  ;;  %v5802_v19 = vpack.c.bf16 %v5290_v18, %v5290_v18  ;;  %v3577_v39 = vpop.f32.mrf.mxu2  ;;  %v3897_v20 = vpop.f32.mrf.mxu3  ;;  %v8249_v10 = vld [vmem:[%s8386_s5 + $0x720] sm:$0xff] }
 0x254   : > { %6570 = vst.msk [vmem:[%s8472_s10 + $0x6d0] sm:$0xf] %vm6133_vm3, %v6057_v16  ;;  %v3578_v23 = vadd.f32 %v9255_v40, %v3577_v39  ;;  %v3898_v24 = vadd.f32 %v9255_v40, %v3897_v20  ;;  %v2940_v25 = vpop.f32.mrf.mxu0  ;;  %v3260_v26 = vpop.f32.mrf.mxu1 }
 0x255   : > { %6187 = vst.msk [vmem:[%s8472_s10 + $0xd4] sm:$0xf] %vm6133_vm3, %v5674_v17  ;;  %v2941_v30 = vadd.f32 %v9255_v40, %v2940_v25  ;;  %v3261_v2 = vadd.f32 %v9255_v40, %v3260_v26 }
 0x256   : > { %6315 = vst.msk [vmem:[%s8472_s10 + $0x2d4] sm:$0xf] %vm6133_vm3, %v5802_v19  ;;  %vm4394_vm6 = vcmp.gt.f32.partialorder %v3578_v23, 0.0  ;;  %v4906_v31 = vmul.f32 0.2, %v3578_v23  ;;  %vm4522_vm7 = vcmp.gt.f32.partialorder %v3898_v24, 0.0 }
 0x257   : > { %v5034_v32 = vmul.f32 0.2, %v3898_v24  ;;  %vm4139_vm8 = vcmp.gt.f32.partialorder %v2941_v30, 0.0  ;;  %v4651_v33 = vmul.f32 0.2, %v2941_v30  ;;  %vm4267_vm9 = vcmp.gt.f32.partialorder %v3261_v2, 0.0  ;;  %7798 = vmatmul.msk.bf16.gmra.mxu0 %vm2027_vm0, %v8056_v21  ;;  %7862 = vmatmul.msk.bf16.gmra.mxu1 %vm2027_vm0, %v8120_v22 }
 0x258   : > { %v5418_v34 = vsel %vm4394_vm6, %v3578_v23, %v4906_v31  ;;  %v4779_v35 = vmul.f32 0.2, %v3261_v2  ;;  %7926 = vmatmul.msk.bf16.gmra.mxu2 %vm2027_vm0, %v8184_v27  ;;  %7990 = vmatmul.msk.bf16.gmra.mxu3 %vm2027_vm0, %v8248_v29 }
 0x259   : > { %v5930_v36 = vpack.c.bf16 %v5418_v34, %v5418_v34  ;;  %v5546_v37 = vsel %vm4522_vm7, %v3898_v24, %v5034_v32  ;;  %v5163_v38 = vsel %vm4139_vm8, %v2941_v30, %v4651_v33 }
 0x25a   : > { %v6058_v41 = vpack.c.bf16 %v5546_v37, %v5546_v37  ;;  %v5675_v42 = vpack.c.bf16 %v5163_v38, %v5163_v38  ;;  %v5291_v43 = vsel %vm4267_vm9, %v3261_v2, %v4779_v35 }
 0x25b   : > { %6443 = vst.msk [vmem:[%s8472_s10 + $0x4d4] sm:$0xf] %vm6133_vm3, %v5930_v36  ;;  %v5803_v44 = vpack.c.bf16 %v5291_v43, %v5291_v43  ;;  %v3580_v45 = vpop.f32.mrf.mxu2  ;;  %v3900_v46 = vpop.f32.mrf.mxu3 }
 0x25c   : > { %6571 = vst.msk [vmem:[%s8472_s10 + $0x6d4] sm:$0xf] %vm6133_vm3, %v6058_v41  ;;  %v3581_v47 = vadd.f32 %v9255_v40, %v3580_v45  ;;  %v3901_v48 = vadd.f32 %v9255_v40, %v3900_v46  ;;  %v2942_v49 = vpop.f32.mrf.mxu0  ;;  %v3262_v50 = vpop.f32.mrf.mxu1 }
 0x25d   : > { %6188 = vst.msk [vmem:[%s8472_s10 + $0xd8] sm:$0xf] %vm6133_vm3, %v5675_v42  ;;  %v2943_v51 = vadd.f32 %v9255_v40, %v2942_v49  ;;  %v3263_v52 = vadd.f32 %v9255_v40, %v3262_v50  ;;  %v8122_v49 = vld [vmem:[%s8386_s5 + $0x328] sm:$0xff] }
 0x25e   : > { %6316 = vst.msk [vmem:[%s8472_s10 + $0x2d8] sm:$0xf] %vm6133_vm3, %v5803_v44  ;;  %vm4395_vm10 = vcmp.gt.f32.partialorder %v3581_v47, 0.0  ;;  %v4907_v53 = vmul.f32 0.2, %v3581_v47  ;;  %vm4523_vm11 = vcmp.gt.f32.partialorder %v3901_v48, 0.0 }
 0x25f   : > { %v5035_v54 = vmul.f32 0.2, %v3901_v48  ;;  %vm4140_vm12 = vcmp.gt.f32.partialorder %v2943_v51, 0.0  ;;  %v4652_v55 = vmul.f32 0.2, %v2943_v51  ;;  %vm4268_vm13 = vcmp.gt.f32.partialorder %v3263_v52, 0.0 }
 0x260   : > { %v5419_v56 = vsel %vm4395_vm10, %v3581_v47, %v4907_v53  ;;  %v4780_v57 = vmul.f32 0.2, %v3263_v52 }
 0x261   : > { %v5931_v28 = vpack.c.bf16 %v5419_v56, %v5419_v56  ;;  %v5547_v58 = vsel %vm4523_vm11, %v3901_v48, %v5035_v54  ;;  %v5164_v59 = vsel %vm4140_vm12, %v2943_v51, %v4652_v55  ;;  %v8058_v48 = vld [vmem:[%s8386_s5 + $0x128] sm:$0xff] }
 0x262   : > { %v6059_v60 = vpack.c.bf16 %v5547_v58, %v5547_v58  ;;  %v5676_v61 = vpack.c.bf16 %v5164_v59, %v5164_v59  ;;  %v5292_v62 = vsel %vm4268_vm13, %v3263_v52, %v4780_v57  ;;  %v8186_v54 = vld [vmem:[%s8386_s5 + $0x528] sm:$0xff] }
 0x263   : > { %6444 = vst.msk [vmem:[%s8472_s10 + $0x4d8] sm:$0xf] %vm6133_vm3, %v5931_v28  ;;  %v5804_v63 = vpack.c.bf16 %v5292_v62, %v5292_v62  ;;  %v3582_v0 = vpop.f32.mrf.mxu2  ;;  %v3902_v1 = vpop.f32.mrf.mxu3  ;;  %v8250_v55 = vld [vmem:[%s8386_s5 + $0x728] sm:$0xff] }
 0x264   : > { %6572 = vst.msk [vmem:[%s8472_s10 + $0x6d8] sm:$0xf] %vm6133_vm3, %v6059_v60  ;;  %v3583_v5 = vadd.f32 %v9255_v40, %v3582_v0  ;;  %v3903_v6 = vadd.f32 %v9255_v40, %v3902_v1  ;;  %v2945_v7 = vpop.f32.mrf.mxu0  ;;  %v3265_v8 = vpop.f32.mrf.mxu1 }
 0x265   : > { %6189 = vst.msk [vmem:[%s8472_s10 + $0xdc] sm:$0xf] %vm6133_vm3, %v5676_v61  ;;  %v2946_v11 = vadd.f32 %v9255_v40, %v2945_v7  ;;  %v3266_v12 = vadd.f32 %v9255_v40, %v3265_v8 }
 0x266   : > { %6317 = vst.msk [vmem:[%s8472_s10 + $0x2dc] sm:$0xf] %vm6133_vm3, %v5804_v63  ;;  %vm4396_vm14 = vcmp.gt.f32.partialorder %v3583_v5, 0.0  ;;  %v4908_v13 = vmul.f32 0.2, %v3583_v5  ;;  %vm4524_vm15 = vcmp.gt.f32.partialorder %v3903_v6, 0.0 }
 0x267   : > { %v5036_v14 = vmul.f32 0.2, %v3903_v6  ;;  %vm4141_vm1 = vcmp.gt.f32.partialorder %v2946_v11, 0.0  ;;  %v4653_v15 = vmul.f32 0.2, %v2946_v11  ;;  %vm4269_vm2 = vcmp.gt.f32.partialorder %v3266_v12, 0.0  ;;  %7799 = vmatmul.msk.bf16.gmra.mxu0 %vm2027_vm0, %v8057_v3  ;;  %7863 = vmatmul.msk.bf16.gmra.mxu1 %vm2027_vm0, %v8121_v4 }
 0x268   : > { %v5420_v16 = vsel %vm4396_vm14, %v3583_v5, %v4908_v13  ;;  %v4781_v17 = vmul.f32 0.2, %v3266_v12  ;;  %7927 = vmatmul.msk.bf16.gmra.mxu2 %vm2027_vm0, %v8185_v9  ;;  %7991 = vmatmul.msk.bf16.gmra.mxu3 %vm2027_vm0, %v8249_v10 }
 0x269   : > { %v5932_v18 = vpack.c.bf16 %v5420_v16, %v5420_v16  ;;  %v5548_v19 = vsel %vm4524_vm15, %v3903_v6, %v5036_v14  ;;  %v5165_v39 = vsel %vm4141_vm1, %v2946_v11, %v4653_v15 }
 0x26a   : > { %v6060_v20 = vpack.c.bf16 %v5548_v19, %v5548_v19  ;;  %v5677_v21 = vpack.c.bf16 %v5165_v39, %v5165_v39  ;;  %v5293_v22 = vsel %vm4269_vm2, %v3266_v12, %v4781_v17 }
 0x26b   : > { %6445 = vst.msk [vmem:[%s8472_s10 + $0x4dc] sm:$0xf] %vm6133_vm3, %v5932_v18  ;;  %v5805_v23 = vpack.c.bf16 %v5293_v22, %v5293_v22  ;;  %v3585_v24 = vpop.f32.mrf.mxu2  ;;  %v3905_v25 = vpop.f32.mrf.mxu3 }
 0x26c   : > { %6573 = vst.msk [vmem:[%s8472_s10 + $0x6dc] sm:$0xf] %vm6133_vm3, %v6060_v20  ;;  %v3586_v26 = vadd.f32 %v9255_v40, %v3585_v24  ;;  %v3906_v27 = vadd.f32 %v9255_v40, %v3905_v25  ;;  %v2947_v29 = vpop.f32.mrf.mxu0  ;;  %v3267_v30 = vpop.f32.mrf.mxu1 }
 0x26d   : > { %6190 = vst.msk [vmem:[%s8472_s10 + $0xe0] sm:$0xf] %vm6133_vm3, %v5677_v21  ;;  %v2948_v2 = vadd.f32 %v9255_v40, %v2947_v29  ;;  %v3268_v31 = vadd.f32 %v9255_v40, %v3267_v30  ;;  %v8123_v29 = vld [vmem:[%s8386_s5 + $0x330] sm:$0xff] }
 0x26e   : > { %6318 = vst.msk [vmem:[%s8472_s10 + $0x2e0] sm:$0xf] %vm6133_vm3, %v5805_v23  ;;  %vm4397_vm4 = vcmp.gt.f32.partialorder %v3586_v26, 0.0  ;;  %v4909_v32 = vmul.f32 0.2, %v3586_v26  ;;  %vm4525_vm5 = vcmp.gt.f32.partialorder %v3906_v27, 0.0 }
 0x26f   : > { %v5037_v33 = vmul.f32 0.2, %v3906_v27  ;;  %vm4142_vm6 = vcmp.gt.f32.partialorder %v2948_v2, 0.0  ;;  %v4654_v34 = vmul.f32 0.2, %v2948_v2  ;;  %vm4270_vm7 = vcmp.gt.f32.partialorder %v3268_v31, 0.0 }
 0x270   : > { %v5421_v35 = vsel %vm4397_vm4, %v3586_v26, %v4909_v32  ;;  %v4782_v36 = vmul.f32 0.2, %v3268_v31 }
 0x271   : > { %v5933_v37 = vpack.c.bf16 %v5421_v35, %v5421_v35  ;;  %v5549_v38 = vsel %vm4525_vm5, %v3906_v27, %v5037_v33  ;;  %v5166_v41 = vsel %vm4142_vm6, %v2948_v2, %v4654_v34  ;;  %v8059_v27 = vld [vmem:[%s8386_s5 + $0x130] sm:$0xff] }
 0x272   : > { %v6061_v42 = vpack.c.bf16 %v5549_v38, %v5549_v38  ;;  %v5678_v43 = vpack.c.bf16 %v5166_v41, %v5166_v41  ;;  %v5294_v44 = vsel %vm4270_vm7, %v3268_v31, %v4782_v36  ;;  %v8187_v33 = vld [vmem:[%s8386_s5 + $0x530] sm:$0xff] }
 0x273   : > { %6446 = vst.msk [vmem:[%s8472_s10 + $0x4e0] sm:$0xf] %vm6133_vm3, %v5933_v37  ;;  %v5806_v45 = vpack.c.bf16 %v5294_v44, %v5294_v44  ;;  %v3587_v46 = vpop.f32.mrf.mxu2  ;;  %v3907_v47 = vpop.f32.mrf.mxu3  ;;  %v8251_v34 = vld [vmem:[%s8386_s5 + $0x730] sm:$0xff] }
 0x274   : > { %6574 = vst.msk [vmem:[%s8472_s10 + $0x6e0] sm:$0xf] %vm6133_vm3, %v6061_v42  ;;  %v3588_v50 = vadd.f32 %v9255_v40, %v3587_v46  ;;  %v3908_v51 = vadd.f32 %v9255_v40, %v3907_v47  ;;  %v2950_v52 = vpop.f32.mrf.mxu0  ;;  %v3270_v53 = vpop.f32.mrf.mxu1 }
 0x275   : > { %6191 = vst.msk [vmem:[%s8472_s10 + $0xe4] sm:$0xf] %vm6133_vm3, %v5678_v43  ;;  %v2951_v56 = vadd.f32 %v9255_v40, %v2950_v52  ;;  %v3271_v57 = vadd.f32 %v9255_v40, %v3270_v53 }
 0x276   : > { %6319 = vst.msk [vmem:[%s8472_s10 + $0x2e4] sm:$0xf] %vm6133_vm3, %v5806_v45  ;;  %vm4398_vm8 = vcmp.gt.f32.partialorder %v3588_v50, 0.0  ;;  %v4910_v28 = vmul.f32 0.2, %v3588_v50  ;;  %vm4526_vm9 = vcmp.gt.f32.partialorder %v3908_v51, 0.0 }
 0x277   : > { %v5038_v58 = vmul.f32 0.2, %v3908_v51  ;;  %vm4143_vm10 = vcmp.gt.f32.partialorder %v2951_v56, 0.0  ;;  %v4655_v59 = vmul.f32 0.2, %v2951_v56  ;;  %vm4271_vm11 = vcmp.gt.f32.partialorder %v3271_v57, 0.0  ;;  %7800 = vmatmul.msk.bf16.gmra.mxu0 %vm2027_vm0, %v8058_v48  ;;  %7864 = vmatmul.msk.bf16.gmra.mxu1 %vm2027_vm0, %v8122_v49 }
 0x278   : > { %v5422_v60 = vsel %vm4398_vm8, %v3588_v50, %v4910_v28  ;;  %v4783_v61 = vmul.f32 0.2, %v3271_v57  ;;  %7928 = vmatmul.msk.bf16.gmra.mxu2 %vm2027_vm0, %v8186_v54  ;;  %7992 = vmatmul.msk.bf16.gmra.mxu3 %vm2027_vm0, %v8250_v55 }
 0x279   : > { %v5934_v62 = vpack.c.bf16 %v5422_v60, %v5422_v60  ;;  %v5550_v63 = vsel %vm4526_vm9, %v3908_v51, %v5038_v58  ;;  %v5167_v0 = vsel %vm4143_vm10, %v2951_v56, %v4655_v59 }
 0x27a   : > { %v6062_v1 = vpack.c.bf16 %v5550_v63, %v5550_v63  ;;  %v5679_v3 = vpack.c.bf16 %v5167_v0, %v5167_v0  ;;  %v5295_v4 = vsel %vm4271_vm11, %v3271_v57, %v4783_v61 }
 0x27b   : > { %6447 = vst.msk [vmem:[%s8472_s10 + $0x4e4] sm:$0xf] %vm6133_vm3, %v5934_v62  ;;  %v5807_v5 = vpack.c.bf16 %v5295_v4, %v5295_v4  ;;  %v3590_v6 = vpop.f32.mrf.mxu2  ;;  %v3910_v7 = vpop.f32.mrf.mxu3 }
 0x27c   : > { %6575 = vst.msk [vmem:[%s8472_s10 + $0x6e4] sm:$0xf] %vm6133_vm3, %v6062_v1  ;;  %v3591_v8 = vadd.f32 %v9255_v40, %v3590_v6  ;;  %v3911_v9 = vadd.f32 %v9255_v40, %v3910_v7  ;;  %v2952_v10 = vpop.f32.mrf.mxu0  ;;  %v3272_v11 = vpop.f32.mrf.mxu1 }
 0x27d   : > { %6192 = vst.msk [vmem:[%s8472_s10 + $0xe8] sm:$0xf] %vm6133_vm3, %v5679_v3  ;;  %v2953_v12 = vadd.f32 %v9255_v40, %v2952_v10  ;;  %v3273_v13 = vadd.f32 %v9255_v40, %v3272_v11  ;;  %v8124_v10 = vld [vmem:[%s8386_s5 + $0x338] sm:$0xff] }
 0x27e   : > { %6320 = vst.msk [vmem:[%s8472_s10 + $0x2e8] sm:$0xf] %vm6133_vm3, %v5807_v5  ;;  %vm4399_vm12 = vcmp.gt.f32.partialorder %v3591_v8, 0.0  ;;  %v4911_v14 = vmul.f32 0.2, %v3591_v8  ;;  %vm4527_vm13 = vcmp.gt.f32.partialorder %v3911_v9, 0.0 }
 0x27f   : > { %v5039_v15 = vmul.f32 0.2, %v3911_v9  ;;  %vm4144_vm14 = vcmp.gt.f32.partialorder %v2953_v12, 0.0  ;;  %v4656_v16 = vmul.f32 0.2, %v2953_v12  ;;  %vm4272_vm15 = vcmp.gt.f32.partialorder %v3273_v13, 0.0 }
 0x280   : > { %v5423_v17 = vsel %vm4399_vm12, %v3591_v8, %v4911_v14  ;;  %v4784_v18 = vmul.f32 0.2, %v3273_v13 }
 0x281   : > { %v5935_v19 = vpack.c.bf16 %v5423_v17, %v5423_v17  ;;  %v5551_v39 = vsel %vm4527_vm13, %v3911_v9, %v5039_v15  ;;  %v5168_v20 = vsel %vm4144_vm14, %v2953_v12, %v4656_v16  ;;  %v8060_v9 = vld [vmem:[%s8386_s5 + $0x138] sm:$0xff] }
 0x282   : > { %v6063_v21 = vpack.c.bf16 %v5551_v39, %v5551_v39  ;;  %v5680_v22 = vpack.c.bf16 %v5168_v20, %v5168_v20  ;;  %v5296_v23 = vsel %vm4272_vm15, %v3273_v13, %v4784_v18  ;;  %v8188_v15 = vld [vmem:[%s8386_s5 + $0x538] sm:$0xff] }
 0x283   : > { %6448 = vst.msk [vmem:[%s8472_s10 + $0x4e8] sm:$0xf] %vm6133_vm3, %v5935_v19  ;;  %v5808_v24 = vpack.c.bf16 %v5296_v23, %v5296_v23  ;;  %v3592_v25 = vpop.f32.mrf.mxu2  ;;  %v3912_v26 = vpop.f32.mrf.mxu3  ;;  %v8252_v16 = vld [vmem:[%s8386_s5 + $0x738] sm:$0xff] }
 0x284   : > { %6576 = vst.msk [vmem:[%s8472_s10 + $0x6e8] sm:$0xf] %vm6133_vm3, %v6063_v21  ;;  %v3593_v30 = vadd.f32 %v9255_v40, %v3592_v25  ;;  %v3913_v2 = vadd.f32 %v9255_v40, %v3912_v26  ;;  %v2955_v31 = vpop.f32.mrf.mxu0  ;;  %v3275_v32 = vpop.f32.mrf.mxu1 }
 0x285   : > { %6193 = vst.msk [vmem:[%s8472_s10 + $0xec] sm:$0xf] %vm6133_vm3, %v5680_v22  ;;  %v2956_v35 = vadd.f32 %v9255_v40, %v2955_v31  ;;  %v3276_v36 = vadd.f32 %v9255_v40, %v3275_v32 }
 0x286   : > { %6321 = vst.msk [vmem:[%s8472_s10 + $0x2ec] sm:$0xf] %vm6133_vm3, %v5808_v24  ;;  %vm4400_vm1 = vcmp.gt.f32.partialorder %v3593_v30, 0.0  ;;  %v4912_v37 = vmul.f32 0.2, %v3593_v30  ;;  %vm4528_vm2 = vcmp.gt.f32.partialorder %v3913_v2, 0.0 }
 0x287   : > { %v5040_v38 = vmul.f32 0.2, %v3913_v2  ;;  %vm4145_vm4 = vcmp.gt.f32.partialorder %v2956_v35, 0.0  ;;  %v4657_v41 = vmul.f32 0.2, %v2956_v35  ;;  %vm4273_vm5 = vcmp.gt.f32.partialorder %v3276_v36, 0.0  ;;  %7801 = vmatmul.msk.bf16.gmra.mxu0 %vm2027_vm0, %v8059_v27  ;;  %7865 = vmatmul.msk.bf16.gmra.mxu1 %vm2027_vm0, %v8123_v29 }
 0x288   : > { %v5424_v42 = vsel %vm4400_vm1, %v3593_v30, %v4912_v37  ;;  %v4785_v43 = vmul.f32 0.2, %v3276_v36  ;;  %7929 = vmatmul.msk.bf16.gmra.mxu2 %vm2027_vm0, %v8187_v33  ;;  %7993 = vmatmul.msk.bf16.gmra.mxu3 %vm2027_vm0, %v8251_v34 }
 0x289   : > { %v5936_v44 = vpack.c.bf16 %v5424_v42, %v5424_v42  ;;  %v5552_v45 = vsel %vm4528_vm2, %v3913_v2, %v5040_v38  ;;  %v5169_v46 = vsel %vm4145_vm4, %v2956_v35, %v4657_v41 }
 0x28a   : > { %v6064_v47 = vpack.c.bf16 %v5552_v45, %v5552_v45  ;;  %v5681_v48 = vpack.c.bf16 %v5169_v46, %v5169_v46  ;;  %v5297_v49 = vsel %vm4273_vm5, %v3276_v36, %v4785_v43 }
 0x28b   : > { %6449 = vst.msk [vmem:[%s8472_s10 + $0x4ec] sm:$0xf] %vm6133_vm3, %v5936_v44  ;;  %v5809_v50 = vpack.c.bf16 %v5297_v49, %v5297_v49  ;;  %v3595_v51 = vpop.f32.mrf.mxu2  ;;  %v3915_v52 = vpop.f32.mrf.mxu3 }
 0x28c   : > { %6577 = vst.msk [vmem:[%s8472_s10 + $0x6ec] sm:$0xf] %vm6133_vm3, %v6064_v47  ;;  %v3596_v53 = vadd.f32 %v9255_v40, %v3595_v51  ;;  %v3916_v54 = vadd.f32 %v9255_v40, %v3915_v52  ;;  %v2957_v55 = vpop.f32.mrf.mxu0  ;;  %v3277_v56 = vpop.f32.mrf.mxu1 }
 0x28d   : > { %6194 = vst.msk [vmem:[%s8472_s10 + $0xf0] sm:$0xf] %vm6133_vm3, %v5681_v48  ;;  %v2958_v57 = vadd.f32 %v9255_v40, %v2957_v55  ;;  %v3278_v28 = vadd.f32 %v9255_v40, %v3277_v56  ;;  %v8125_v55 = vld [vmem:[%s8386_s5 + $0x340] sm:$0xff] }
 0x28e   : > { %6322 = vst.msk [vmem:[%s8472_s10 + $0x2f0] sm:$0xf] %vm6133_vm3, %v5809_v50  ;;  %vm4401_vm6 = vcmp.gt.f32.partialorder %v3596_v53, 0.0  ;;  %v4913_v58 = vmul.f32 0.2, %v3596_v53  ;;  %vm4529_vm7 = vcmp.gt.f32.partialorder %v3916_v54, 0.0 }
 0x28f   : > { %v5041_v59 = vmul.f32 0.2, %v3916_v54  ;;  %vm4146_vm8 = vcmp.gt.f32.partialorder %v2958_v57, 0.0  ;;  %v4658_v60 = vmul.f32 0.2, %v2958_v57  ;;  %vm4274_vm9 = vcmp.gt.f32.partialorder %v3278_v28, 0.0 }
 0x290   : > { %v5425_v61 = vsel %vm4401_vm6, %v3596_v53, %v4913_v58  ;;  %v4786_v62 = vmul.f32 0.2, %v3278_v28 }
 0x291   : > { %v5937_v63 = vpack.c.bf16 %v5425_v61, %v5425_v61  ;;  %v5553_v0 = vsel %vm4529_vm7, %v3916_v54, %v5041_v59  ;;  %v5170_v1 = vsel %vm4146_vm8, %v2958_v57, %v4658_v60  ;;  %v8061_v54 = vld [vmem:[%s8386_s5 + $0x140] sm:$0xff] }
 0x292   : > { %v6065_v3 = vpack.c.bf16 %v5553_v0, %v5553_v0  ;;  %v5682_v4 = vpack.c.bf16 %v5170_v1, %v5170_v1  ;;  %v5298_v5 = vsel %vm4274_vm9, %v3278_v28, %v4786_v62  ;;  %v8189_v59 = vld [vmem:[%s8386_s5 + $0x540] sm:$0xff] }
 0x293   : > { %6450 = vst.msk [vmem:[%s8472_s10 + $0x4f0] sm:$0xf] %vm6133_vm3, %v5937_v63  ;;  %v5810_v6 = vpack.c.bf16 %v5298_v5, %v5298_v5  ;;  %v3597_v7 = vpop.f32.mrf.mxu2  ;;  %v3917_v8 = vpop.f32.mrf.mxu3  ;;  %v8253_v60 = vld [vmem:[%s8386_s5 + $0x740] sm:$0xff] }
 0x294   : > { %6578 = vst.msk [vmem:[%s8472_s10 + $0x6f0] sm:$0xf] %vm6133_vm3, %v6065_v3  ;;  %v3598_v11 = vadd.f32 %v9255_v40, %v3597_v7  ;;  %v3918_v12 = vadd.f32 %v9255_v40, %v3917_v8  ;;  %v2960_v13 = vpop.f32.mrf.mxu0  ;;  %v3280_v14 = vpop.f32.mrf.mxu1 }
 0x295   : > { %6195 = vst.msk [vmem:[%s8472_s10 + $0xf4] sm:$0xf] %vm6133_vm3, %v5682_v4  ;;  %v2961_v17 = vadd.f32 %v9255_v40, %v2960_v13  ;;  %v3281_v18 = vadd.f32 %v9255_v40, %v3280_v14  ;;  %v9516_v13 = vld [vmem:[%s10488_s2] ss:$0 sm:$0xff] }
 0x296   : > { %6323 = vst.msk [vmem:[%s8472_s10 + $0x2f4] sm:$0xf] %vm6133_vm3, %v5810_v6  ;;  %vm4402_vm10 = vcmp.gt.f32.partialorder %v3598_v11, 0.0  ;;  %v4914_v19 = vmul.f32 0.2, %v3598_v11  ;;  %vm4530_vm11 = vcmp.gt.f32.partialorder %v3918_v12, 0.0 }
 0x297   : > { %v5042_v39 = vmul.f32 0.2, %v3918_v12  ;;  %vm4147_vm12 = vcmp.gt.f32.partialorder %v2961_v17, 0.0  ;;  %v4659_v20 = vmul.f32 0.2, %v2961_v17  ;;  %vm4275_vm13 = vcmp.gt.f32.partialorder %v3281_v18, 0.0  ;;  %7802 = vmatmul.msk.bf16.gmra.mxu0 %vm2027_vm0, %v8060_v9  ;;  %7866 = vmatmul.msk.bf16.gmra.mxu1 %vm2027_vm0, %v8124_v10 }
 0x298   : > { %v5426_v21 = vsel %vm4402_vm10, %v3598_v11, %v4914_v19  ;;  %v4787_v22 = vmul.f32 0.2, %v3281_v18  ;;  %7930 = vmatmul.msk.bf16.gmra.mxu2 %vm2027_vm0, %v8188_v15  ;;  %7994 = vmatmul.msk.bf16.gmra.mxu3 %vm2027_vm0, %v8252_v16 }
 0x299   : > { %v5938_v23 = vpack.c.bf16 %v5426_v21, %v5426_v21  ;;  %v5554_v24 = vsel %vm4530_vm11, %v3918_v12, %v5042_v39  ;;  %v5171_v25 = vsel %vm4147_vm12, %v2961_v17, %v4659_v20 }
 0x29a   : > { %v6066_v26 = vpack.c.bf16 %v5554_v24, %v5554_v24  ;;  %v5683_v27 = vpack.c.bf16 %v5171_v25, %v5171_v25  ;;  %v5299_v29 = vsel %vm4275_vm13, %v3281_v18, %v4787_v22 }
 0x29b   : > { %6451 = vst.msk [vmem:[%s8472_s10 + $0x4f4] sm:$0xf] %vm6133_vm3, %v5938_v23  ;;  %v5811_v30 = vpack.c.bf16 %v5299_v29, %v5299_v29  ;;  %v3600_v2 = vpop.f32.mrf.mxu2  ;;  %v3920_v31 = vpop.f32.mrf.mxu3 }
 0x29c   : > { %6579 = vst.msk [vmem:[%s8472_s10 + $0x6f4] sm:$0xf] %vm6133_vm3, %v6066_v26  ;;  %v3601_v32 = vadd.f32 %v9255_v40, %v3600_v2  ;;  %v3921_v33 = vadd.f32 %v9255_v40, %v3920_v31  ;;  %v2962_v34 = vpop.f32.mrf.mxu0  ;;  %v3282_v35 = vpop.f32.mrf.mxu1 }
 0x29d   : > { %6196 = vst.msk [vmem:[%s8472_s10 + $0xf8] sm:$0xf] %vm6133_vm3, %v5683_v27  ;;  %v2963_v36 = vadd.f32 %v9255_v40, %v2962_v34  ;;  %v3283_v37 = vadd.f32 %v9255_v40, %v3282_v35  ;;  %v8126_v34 = vld [vmem:[%s8386_s5 + $0x348] sm:$0xff] }
 0x29e   : > { %6324 = vst.msk [vmem:[%s8472_s10 + $0x2f8] sm:$0xf] %vm6133_vm3, %v5811_v30  ;;  %vm4403_vm14 = vcmp.gt.f32.partialorder %v3601_v32, 0.0  ;;  %v4915_v38 = vmul.f32 0.2, %v3601_v32  ;;  %vm4531_vm15 = vcmp.gt.f32.partialorder %v3921_v33, 0.0 }
 0x29f   : > { %v5043_v41 = vmul.f32 0.2, %v3921_v33  ;;  %vm4148_vm1 = vcmp.gt.f32.partialorder %v2963_v36, 0.0  ;;  %v4660_v42 = vmul.f32 0.2, %v2963_v36  ;;  %vm4276_vm2 = vcmp.gt.f32.partialorder %v3283_v37, 0.0 }
 0x2a0   : > { %v5427_v43 = vsel %vm4403_vm14, %v3601_v32, %v4915_v38  ;;  %v4788_v44 = vmul.f32 0.2, %v3283_v37 }
 0x2a1   : > { %v5939_v45 = vpack.c.bf16 %v5427_v43, %v5427_v43  ;;  %v5555_v46 = vsel %vm4531_vm15, %v3921_v33, %v5043_v41  ;;  %v5172_v47 = vsel %vm4148_vm1, %v2963_v36, %v4660_v42  ;;  %v8062_v33 = vld [vmem:[%s8386_s5 + $0x148] sm:$0xff] }
 0x2a2   : > { %v6067_v48 = vpack.c.bf16 %v5555_v46, %v5555_v46  ;;  %v5684_v49 = vpack.c.bf16 %v5172_v47, %v5172_v47  ;;  %v5300_v50 = vsel %vm4276_vm2, %v3283_v37, %v4788_v44  ;;  %v8190_v41 = vld [vmem:[%s8386_s5 + $0x548] sm:$0xff] }
 0x2a3   : > { %6452 = vst.msk [vmem:[%s8472_s10 + $0x4f8] sm:$0xf] %vm6133_vm3, %v5939_v45  ;;  %v5812_v51 = vpack.c.bf16 %v5300_v50, %v5300_v50  ;;  %v3602_v52 = vpop.f32.mrf.mxu2  ;;  %v3922_v53 = vpop.f32.mrf.mxu3  ;;  %v8254_v42 = vld [vmem:[%s8386_s5 + $0x748] sm:$0xff] }
 0x2a4   : > { %6580 = vst.msk [vmem:[%s8472_s10 + $0x6f8] sm:$0xf] %vm6133_vm3, %v6067_v48  ;;  %v3603_v56 = vadd.f32 %v9255_v40, %v3602_v52  ;;  %v3923_v57 = vadd.f32 %v9255_v40, %v3922_v53  ;;  %v2965_v28 = vpop.f32.mrf.mxu0  ;;  %v3285_v58 = vpop.f32.mrf.mxu1 }
 0x2a5   : > { %6197 = vst.msk [vmem:[%s8472_s10 + $0xfc] sm:$0xf] %vm6133_vm3, %v5684_v49  ;;  %v2966_v61 = vadd.f32 %v9255_v40, %v2965_v28  ;;  %v3286_v62 = vadd.f32 %v9255_v40, %v3285_v58 }
 0x2a6   : > { %6325 = vst.msk [vmem:[%s8472_s10 + $0x2fc] sm:$0xf] %vm6133_vm3, %v5812_v51  ;;  %vm4404_vm4 = vcmp.gt.f32.partialorder %v3603_v56, 0.0  ;;  %v4916_v63 = vmul.f32 0.2, %v3603_v56  ;;  %vm4532_vm5 = vcmp.gt.f32.partialorder %v3923_v57, 0.0 }
 0x2a7   : > { %v5044_v0 = vmul.f32 0.2, %v3923_v57  ;;  %vm4149_vm6 = vcmp.gt.f32.partialorder %v2966_v61, 0.0  ;;  %v4661_v1 = vmul.f32 0.2, %v2966_v61  ;;  %vm4277_vm7 = vcmp.gt.f32.partialorder %v3286_v62, 0.0  ;;  %7803 = vmatmul.msk.bf16.gmra.mxu0 %vm2027_vm0, %v8061_v54  ;;  %7867 = vmatmul.msk.bf16.gmra.mxu1 %vm2027_vm0, %v8125_v55 }
 0x2a8   : > { %v5428_v3 = vsel %vm4404_vm4, %v3603_v56, %v4916_v63  ;;  %v4789_v4 = vmul.f32 0.2, %v3286_v62  ;;  %7931 = vmatmul.msk.bf16.gmra.mxu2 %vm2027_vm0, %v8189_v59  ;;  %7995 = vmatmul.msk.bf16.gmra.mxu3 %vm2027_vm0, %v8253_v60 }
 0x2a9   : > { %v5940_v40 = vpack.c.bf16 %v5428_v3, %v5428_v3  ;;  %v5556_v5 = vsel %vm4532_vm5, %v3923_v57, %v5044_v0  ;;  %v5173_v6 = vsel %vm4149_vm6, %v2966_v61, %v4661_v1 }
 0x2aa   : > { %v6068_v7 = vpack.c.bf16 %v5556_v5, %v5556_v5  ;;  %v5685_v8 = vpack.c.bf16 %v5173_v6, %v5173_v6  ;;  %v5301_v9 = vsel %vm4277_vm7, %v3286_v62, %v4789_v4 }
 0x2ab   : > { %6453 = vst.msk [vmem:[%s8472_s10 + $0x4fc] sm:$0xf] %vm6133_vm3, %v5940_v40  ;;  %v5813_v10 = vpack.c.bf16 %v5301_v9, %v5301_v9  ;;  %v3605_v11 = vpop.f32.mrf.mxu2  ;;  %v3925_v12 = vpop.f32.mrf.mxu3 }
 0x2ac   : > { %6581 = vst.msk [vmem:[%s8472_s10 + $0x6fc] sm:$0xf] %vm6133_vm3, %v6068_v7  ;;  %v3606_v14 = vadd.f32 %v9516_v13, %v3605_v11  ;;  %v3926_v15 = vadd.f32 %v9516_v13, %v3925_v12  ;;  %v2967_v16 = vpop.f32.mrf.mxu0  ;;  %v3287_v17 = vpop.f32.mrf.mxu1 }
 0x2ad   : > { %6198 = vst.msk [vmem:[%s8472_s10 + $0x100] sm:$0xf] %vm6133_vm3, %v5685_v8  ;;  %v2968_v18 = vadd.f32 %v9516_v13, %v2967_v16  ;;  %v3288_v19 = vadd.f32 %v9516_v13, %v3287_v17  ;;  %v8127_v16 = vld [vmem:[%s8386_s5 + $0x350] sm:$0xff] }
 0x2ae   : > { %6326 = vst.msk [vmem:[%s8472_s10 + $0x300] sm:$0xf] %vm6133_vm3, %v5813_v10  ;;  %vm4405_vm8 = vcmp.gt.f32.partialorder %v3606_v14, 0.0  ;;  %v4917_v39 = vmul.f32 0.2, %v3606_v14  ;;  %vm4533_vm9 = vcmp.gt.f32.partialorder %v3926_v15, 0.0 }
 0x2af   : > { %v5045_v20 = vmul.f32 0.2, %v3926_v15  ;;  %vm4150_vm10 = vcmp.gt.f32.partialorder %v2968_v18, 0.0  ;;  %v4662_v21 = vmul.f32 0.2, %v2968_v18  ;;  %vm4278_vm11 = vcmp.gt.f32.partialorder %v3288_v19, 0.0 }
 0x2b0   : > { %v5429_v22 = vsel %vm4405_vm8, %v3606_v14, %v4917_v39  ;;  %v4790_v23 = vmul.f32 0.2, %v3288_v19 }
 0x2b1   : > { %v5941_v24 = vpack.c.bf16 %v5429_v22, %v5429_v22  ;;  %v5557_v25 = vsel %vm4533_vm9, %v3926_v15, %v5045_v20  ;;  %v5174_v26 = vsel %vm4150_vm10, %v2968_v18, %v4662_v21  ;;  %v8063_v15 = vld [vmem:[%s8386_s5 + $0x150] sm:$0xff] }
 0x2b2   : > { %v6069_v27 = vpack.c.bf16 %v5557_v25, %v5557_v25  ;;  %v5686_v29 = vpack.c.bf16 %v5174_v26, %v5174_v26  ;;  %v5302_v30 = vsel %vm4278_vm11, %v3288_v19, %v4790_v23  ;;  %v8191_v20 = vld [vmem:[%s8386_s5 + $0x550] sm:$0xff] }
 0x2b3   : > { %6454 = vst.msk [vmem:[%s8472_s10 + $0x500] sm:$0xf] %vm6133_vm3, %v5941_v24  ;;  %v5814_v2 = vpack.c.bf16 %v5302_v30, %v5302_v30  ;;  %v3607_v31 = vpop.f32.mrf.mxu2  ;;  %v3927_v32 = vpop.f32.mrf.mxu3  ;;  %v8255_v21 = vld [vmem:[%s8386_s5 + $0x750] sm:$0xff] }
 0x2b4   : > { %6582 = vst.msk [vmem:[%s8472_s10 + $0x700] sm:$0xf] %vm6133_vm3, %v6069_v27  ;;  %v3608_v35 = vadd.f32 %v9516_v13, %v3607_v31  ;;  %v3928_v36 = vadd.f32 %v9516_v13, %v3927_v32  ;;  %v2970_v37 = vpop.f32.mrf.mxu0  ;;  %v3290_v38 = vpop.f32.mrf.mxu1 }
 0x2b5   : > { %6199 = vst.msk [vmem:[%s8472_s10 + $0x104] sm:$0xf] %vm6133_vm3, %v5686_v29  ;;  %v2971_v43 = vadd.f32 %v9516_v13, %v2970_v37  ;;  %v3291_v44 = vadd.f32 %v9516_v13, %v3290_v38 }
 0x2b6   : > { %6327 = vst.msk [vmem:[%s8472_s10 + $0x304] sm:$0xf] %vm6133_vm3, %v5814_v2  ;;  %vm4406_vm12 = vcmp.gt.f32.partialorder %v3608_v35, 0.0  ;;  %v4918_v45 = vmul.f32 0.2, %v3608_v35  ;;  %vm4534_vm13 = vcmp.gt.f32.partialorder %v3928_v36, 0.0 }
 0x2b7   : > { %v5046_v46 = vmul.f32 0.2, %v3928_v36  ;;  %vm4151_vm14 = vcmp.gt.f32.partialorder %v2971_v43, 0.0  ;;  %v4663_v47 = vmul.f32 0.2, %v2971_v43  ;;  %vm4279_vm15 = vcmp.gt.f32.partialorder %v3291_v44, 0.0  ;;  %7804 = vmatmul.msk.bf16.gmra.mxu0 %vm2027_vm0, %v8062_v33  ;;  %7868 = vmatmul.msk.bf16.gmra.mxu1 %vm2027_vm0, %v8126_v34 }
 0x2b8   : > { %v5430_v48 = vsel %vm4406_vm12, %v3608_v35, %v4918_v45  ;;  %v4791_v49 = vmul.f32 0.2, %v3291_v44  ;;  %7932 = vmatmul.msk.bf16.gmra.mxu2 %vm2027_vm0, %v8190_v41  ;;  %7996 = vmatmul.msk.bf16.gmra.mxu3 %vm2027_vm0, %v8254_v42 }
 0x2b9   : > { %v5942_v50 = vpack.c.bf16 %v5430_v48, %v5430_v48  ;;  %v5558_v51 = vsel %vm4534_vm13, %v3928_v36, %v5046_v46  ;;  %v5175_v52 = vsel %vm4151_vm14, %v2971_v43, %v4663_v47 }
 0x2ba   : > { %v6070_v53 = vpack.c.bf16 %v5558_v51, %v5558_v51  ;;  %v5687_v54 = vpack.c.bf16 %v5175_v52, %v5175_v52  ;;  %v5303_v55 = vsel %vm4279_vm15, %v3291_v44, %v4791_v49 }
 0x2bb   : > { %6455 = vst.msk [vmem:[%s8472_s10 + $0x504] sm:$0xf] %vm6133_vm3, %v5942_v50  ;;  %v5815_v56 = vpack.c.bf16 %v5303_v55, %v5303_v55  ;;  %v3610_v57 = vpop.f32.mrf.mxu2  ;;  %v3930_v28 = vpop.f32.mrf.mxu3 }
 0x2bc   : > { %6583 = vst.msk [vmem:[%s8472_s10 + $0x704] sm:$0xf] %vm6133_vm3, %v6070_v53  ;;  %v3611_v58 = vadd.f32 %v9516_v13, %v3610_v57  ;;  %v3931_v59 = vadd.f32 %v9516_v13, %v3930_v28  ;;  %v2972_v60 = vpop.f32.mrf.mxu0  ;;  %v3292_v61 = vpop.f32.mrf.mxu1 }
 0x2bd   : > { %6200 = vst.msk [vmem:[%s8472_s10 + $0x108] sm:$0xf] %vm6133_vm3, %v5687_v54  ;;  %v2973_v62 = vadd.f32 %v9516_v13, %v2972_v60  ;;  %v3293_v63 = vadd.f32 %v9516_v13, %v3292_v61  ;;  %v8128_v60 = vld [vmem:[%s8386_s5 + $0x358] sm:$0xff] }
 0x2be   : > { %6328 = vst.msk [vmem:[%s8472_s10 + $0x308] sm:$0xf] %vm6133_vm3, %v5815_v56  ;;  %vm4407_vm1 = vcmp.gt.f32.partialorder %v3611_v58, 0.0  ;;  %v4919_v0 = vmul.f32 0.2, %v3611_v58  ;;  %vm4535_vm2 = vcmp.gt.f32.partialorder %v3931_v59, 0.0 }
 0x2bf   : > { %v5047_v1 = vmul.f32 0.2, %v3931_v59  ;;  %vm4152_vm4 = vcmp.gt.f32.partialorder %v2973_v62, 0.0  ;;  %v4664_v3 = vmul.f32 0.2, %v2973_v62  ;;  %vm4280_vm5 = vcmp.gt.f32.partialorder %v3293_v63, 0.0 }
 0x2c0   : > { %v5431_v4 = vsel %vm4407_vm1, %v3611_v58, %v4919_v0  ;;  %v4792_v40 = vmul.f32 0.2, %v3293_v63 }
 0x2c1   : > { %v5943_v5 = vpack.c.bf16 %v5431_v4, %v5431_v4  ;;  %v5559_v6 = vsel %vm4535_vm2, %v3931_v59, %v5047_v1  ;;  %v5176_v7 = vsel %vm4152_vm4, %v2973_v62, %v4664_v3  ;;  %v8064_v59 = vld [vmem:[%s8386_s5 + $0x158] sm:$0xff] }
 0x2c2   : > { %v6071_v8 = vpack.c.bf16 %v5559_v6, %v5559_v6  ;;  %v5688_v9 = vpack.c.bf16 %v5176_v7, %v5176_v7  ;;  %v5304_v10 = vsel %vm4280_vm5, %v3293_v63, %v4792_v40  ;;  %v8192_v1 = vld [vmem:[%s8386_s5 + $0x558] sm:$0xff] }
 0x2c3   : > { %6456 = vst.msk [vmem:[%s8472_s10 + $0x508] sm:$0xf] %vm6133_vm3, %v5943_v5  ;;  %v5816_v11 = vpack.c.bf16 %v5304_v10, %v5304_v10  ;;  %v3612_v12 = vpop.f32.mrf.mxu2  ;;  %v3932_v14 = vpop.f32.mrf.mxu3  ;;  %v8256_v3 = vld [vmem:[%s8386_s5 + $0x758] sm:$0xff] }
 0x2c4   : > { %6584 = vst.msk [vmem:[%s8472_s10 + $0x708] sm:$0xf] %vm6133_vm3, %v6071_v8  ;;  %v3613_v17 = vadd.f32 %v9516_v13, %v3612_v12  ;;  %v3933_v18 = vadd.f32 %v9516_v13, %v3932_v14  ;;  %v2975_v19 = vpop.f32.mrf.mxu0  ;;  %v3295_v39 = vpop.f32.mrf.mxu1 }
 0x2c5   : > { %6201 = vst.msk [vmem:[%s8472_s10 + $0x10c] sm:$0xf] %vm6133_vm3, %v5688_v9  ;;  %v2976_v22 = vadd.f32 %v9516_v13, %v2975_v19  ;;  %v3296_v23 = vadd.f32 %v9516_v13, %v3295_v39 }
 0x2c6   : > { %6329 = vst.msk [vmem:[%s8472_s10 + $0x30c] sm:$0xf] %vm6133_vm3, %v5816_v11  ;;  %vm4408_vm6 = vcmp.gt.f32.partialorder %v3613_v17, 0.0  ;;  %v4920_v24 = vmul.f32 0.2, %v3613_v17  ;;  %vm4536_vm7 = vcmp.gt.f32.partialorder %v3933_v18, 0.0 }
 0x2c7   : > { %v5048_v25 = vmul.f32 0.2, %v3933_v18  ;;  %vm4153_vm8 = vcmp.gt.f32.partialorder %v2976_v22, 0.0  ;;  %v4665_v26 = vmul.f32 0.2, %v2976_v22  ;;  %vm4281_vm9 = vcmp.gt.f32.partialorder %v3296_v23, 0.0  ;;  %7805 = vmatmul.msk.bf16.gmra.mxu0 %vm2027_vm0, %v8063_v15  ;;  %7869 = vmatmul.msk.bf16.gmra.mxu1 %vm2027_vm0, %v8127_v16 }
 0x2c8   : > { %v5432_v27 = vsel %vm4408_vm6, %v3613_v17, %v4920_v24  ;;  %v4793_v29 = vmul.f32 0.2, %v3296_v23  ;;  %7933 = vmatmul.msk.bf16.gmra.mxu2 %vm2027_vm0, %v8191_v20  ;;  %7997 = vmatmul.msk.bf16.gmra.mxu3 %vm2027_vm0, %v8255_v21 }
 0x2c9   : > { %v5944_v30 = vpack.c.bf16 %v5432_v27, %v5432_v27  ;;  %v5560_v2 = vsel %vm4536_vm7, %v3933_v18, %v5048_v25  ;;  %v5177_v31 = vsel %vm4153_vm8, %v2976_v22, %v4665_v26 }
 0x2ca   : > { %v6072_v32 = vpack.c.bf16 %v5560_v2, %v5560_v2  ;;  %v5689_v33 = vpack.c.bf16 %v5177_v31, %v5177_v31  ;;  %v5305_v34 = vsel %vm4281_vm9, %v3296_v23, %v4793_v29 }
 0x2cb   : > { %6457 = vst.msk [vmem:[%s8472_s10 + $0x50c] sm:$0xf] %vm6133_vm3, %v5944_v30  ;;  %v5817_v35 = vpack.c.bf16 %v5305_v34, %v5305_v34  ;;  %v3615_v36 = vpop.f32.mrf.mxu2  ;;  %v3935_v37 = vpop.f32.mrf.mxu3 }
 0x2cc   : > { %6585 = vst.msk [vmem:[%s8472_s10 + $0x70c] sm:$0xf] %vm6133_vm3, %v6072_v32  ;;  %v3616_v38 = vadd.f32 %v9516_v13, %v3615_v36  ;;  %v3936_v41 = vadd.f32 %v9516_v13, %v3935_v37  ;;  %v2977_v42 = vpop.f32.mrf.mxu0  ;;  %v3297_v43 = vpop.f32.mrf.mxu1 }
 0x2cd   : > { %6202 = vst.msk [vmem:[%s8472_s10 + $0x110] sm:$0xf] %vm6133_vm3, %v5689_v33  ;;  %v2978_v44 = vadd.f32 %v9516_v13, %v2977_v42  ;;  %v3298_v45 = vadd.f32 %v9516_v13, %v3297_v43  ;;  %v8129_v42 = vld [vmem:[%s8386_s5 + $0x360] sm:$0xff] }
 0x2ce   : > { %6330 = vst.msk [vmem:[%s8472_s10 + $0x310] sm:$0xf] %vm6133_vm3, %v5817_v35  ;;  %vm4409_vm10 = vcmp.gt.f32.partialorder %v3616_v38, 0.0  ;;  %v4921_v46 = vmul.f32 0.2, %v3616_v38  ;;  %vm4537_vm11 = vcmp.gt.f32.partialorder %v3936_v41, 0.0 }
 0x2cf   : > { %v5049_v47 = vmul.f32 0.2, %v3936_v41  ;;  %vm4154_vm12 = vcmp.gt.f32.partialorder %v2978_v44, 0.0  ;;  %v4666_v48 = vmul.f32 0.2, %v2978_v44  ;;  %vm4282_vm13 = vcmp.gt.f32.partialorder %v3298_v45, 0.0 }
 0x2d0   : > { %v5433_v49 = vsel %vm4409_vm10, %v3616_v38, %v4921_v46  ;;  %v4794_v50 = vmul.f32 0.2, %v3298_v45 }
 0x2d1   : > { %v5945_v51 = vpack.c.bf16 %v5433_v49, %v5433_v49  ;;  %v5561_v52 = vsel %vm4537_vm11, %v3936_v41, %v5049_v47  ;;  %v5178_v53 = vsel %vm4154_vm12, %v2978_v44, %v4666_v48  ;;  %v8065_v41 = vld [vmem:[%s8386_s5 + $0x160] sm:$0xff] }
 0x2d2   : > { %v6073_v54 = vpack.c.bf16 %v5561_v52, %v5561_v52  ;;  %v5690_v55 = vpack.c.bf16 %v5178_v53, %v5178_v53  ;;  %v5306_v56 = vsel %vm4282_vm13, %v3298_v45, %v4794_v50  ;;  %v8193_v47 = vld [vmem:[%s8386_s5 + $0x560] sm:$0xff] }
 0x2d3   : > { %6458 = vst.msk [vmem:[%s8472_s10 + $0x510] sm:$0xf] %vm6133_vm3, %v5945_v51  ;;  %v5818_v57 = vpack.c.bf16 %v5306_v56, %v5306_v56  ;;  %v3617_v28 = vpop.f32.mrf.mxu2  ;;  %v3937_v58 = vpop.f32.mrf.mxu3  ;;  %v8257_v48 = vld [vmem:[%s8386_s5 + $0x760] sm:$0xff] }
 0x2d4   : > { %6586 = vst.msk [vmem:[%s8472_s10 + $0x710] sm:$0xf] %vm6133_vm3, %v6073_v54  ;;  %v3618_v61 = vadd.f32 %v9516_v13, %v3617_v28  ;;  %v3938_v62 = vadd.f32 %v9516_v13, %v3937_v58  ;;  %v2980_v63 = vpop.f32.mrf.mxu0  ;;  %v3300_v0 = vpop.f32.mrf.mxu1 }
 0x2d5   : > { %6203 = vst.msk [vmem:[%s8472_s10 + $0x114] sm:$0xf] %vm6133_vm3, %v5690_v55  ;;  %v2981_v4 = vadd.f32 %v9516_v13, %v2980_v63  ;;  %v3301_v40 = vadd.f32 %v9516_v13, %v3300_v0 }
 0x2d6   : > { %6331 = vst.msk [vmem:[%s8472_s10 + $0x314] sm:$0xf] %vm6133_vm3, %v5818_v57  ;;  %vm4410_vm14 = vcmp.gt.f32.partialorder %v3618_v61, 0.0  ;;  %v4922_v5 = vmul.f32 0.2, %v3618_v61  ;;  %vm4538_vm15 = vcmp.gt.f32.partialorder %v3938_v62, 0.0 }
 0x2d7   : > { %v5050_v6 = vmul.f32 0.2, %v3938_v62  ;;  %vm4155_vm1 = vcmp.gt.f32.partialorder %v2981_v4, 0.0  ;;  %v4667_v7 = vmul.f32 0.2, %v2981_v4  ;;  %vm4283_vm2 = vcmp.gt.f32.partialorder %v3301_v40, 0.0  ;;  %7806 = vmatmul.msk.bf16.gmra.mxu0 %vm2027_vm0, %v8064_v59  ;;  %7870 = vmatmul.msk.bf16.gmra.mxu1 %vm2027_vm0, %v8128_v60 }
 0x2d8   : > { %v5434_v8 = vsel %vm4410_vm14, %v3618_v61, %v4922_v5  ;;  %v4795_v9 = vmul.f32 0.2, %v3301_v40  ;;  %7934 = vmatmul.msk.bf16.gmra.mxu2 %vm2027_vm0, %v8192_v1  ;;  %7998 = vmatmul.msk.bf16.gmra.mxu3 %vm2027_vm0, %v8256_v3 }
 0x2d9   : > { %v5946_v10 = vpack.c.bf16 %v5434_v8, %v5434_v8  ;;  %v5562_v11 = vsel %vm4538_vm15, %v3938_v62, %v5050_v6  ;;  %v5179_v12 = vsel %vm4155_vm1, %v2981_v4, %v4667_v7 }
 0x2da   : > { %v6074_v14 = vpack.c.bf16 %v5562_v11, %v5562_v11  ;;  %v5691_v15 = vpack.c.bf16 %v5179_v12, %v5179_v12  ;;  %v5307_v16 = vsel %vm4283_vm2, %v3301_v40, %v4795_v9 }
 0x2db   : > { %6459 = vst.msk [vmem:[%s8472_s10 + $0x514] sm:$0xf] %vm6133_vm3, %v5946_v10  ;;  %v5819_v17 = vpack.c.bf16 %v5307_v16, %v5307_v16  ;;  %v3620_v18 = vpop.f32.mrf.mxu2  ;;  %v3940_v19 = vpop.f32.mrf.mxu3 }
 0x2dc   : > { %6587 = vst.msk [vmem:[%s8472_s10 + $0x714] sm:$0xf] %vm6133_vm3, %v6074_v14  ;;  %v3621_v39 = vadd.f32 %v9516_v13, %v3620_v18  ;;  %v3941_v20 = vadd.f32 %v9516_v13, %v3940_v19  ;;  %v2982_v21 = vpop.f32.mrf.mxu0  ;;  %v3302_v22 = vpop.f32.mrf.mxu1 }
 0x2dd   : > { %6204 = vst.msk [vmem:[%s8472_s10 + $0x118] sm:$0xf] %vm6133_vm3, %v5691_v15  ;;  %v2983_v23 = vadd.f32 %v9516_v13, %v2982_v21  ;;  %v3303_v24 = vadd.f32 %v9516_v13, %v3302_v22  ;;  %v8130_v21 = vld [vmem:[%s8386_s5 + $0x368] sm:$0xff] }
 0x2de   : > { %6332 = vst.msk [vmem:[%s8472_s10 + $0x318] sm:$0xf] %vm6133_vm3, %v5819_v17  ;;  %vm4411_vm4 = vcmp.gt.f32.partialorder %v3621_v39, 0.0  ;;  %v4923_v25 = vmul.f32 0.2, %v3621_v39  ;;  %vm4539_vm5 = vcmp.gt.f32.partialorder %v3941_v20, 0.0 }
 0x2df   : > { %v5051_v26 = vmul.f32 0.2, %v3941_v20  ;;  %vm4156_vm6 = vcmp.gt.f32.partialorder %v2983_v23, 0.0  ;;  %v4668_v27 = vmul.f32 0.2, %v2983_v23  ;;  %vm4284_vm7 = vcmp.gt.f32.partialorder %v3303_v24, 0.0 }
 0x2e0   : > { %v5435_v29 = vsel %vm4411_vm4, %v3621_v39, %v4923_v25  ;;  %v4796_v30 = vmul.f32 0.2, %v3303_v24 }
 0x2e1   : > { %v5947_v2 = vpack.c.bf16 %v5435_v29, %v5435_v29  ;;  %v5563_v31 = vsel %vm4539_vm5, %v3941_v20, %v5051_v26  ;;  %v5180_v32 = vsel %vm4156_vm6, %v2983_v23, %v4668_v27  ;;  %v8066_v20 = vld [vmem:[%s8386_s5 + $0x168] sm:$0xff] }
 0x2e2   : > { %v6075_v33 = vpack.c.bf16 %v5563_v31, %v5563_v31  ;;  %v5692_v34 = vpack.c.bf16 %v5180_v32, %v5180_v32  ;;  %v5308_v35 = vsel %vm4284_vm7, %v3303_v24, %v4796_v30  ;;  %v8194_v26 = vld [vmem:[%s8386_s5 + $0x568] sm:$0xff] }
 0x2e3   : > { %6460 = vst.msk [vmem:[%s8472_s10 + $0x518] sm:$0xf] %vm6133_vm3, %v5947_v2  ;;  %v5820_v36 = vpack.c.bf16 %v5308_v35, %v5308_v35  ;;  %v3622_v37 = vpop.f32.mrf.mxu2  ;;  %v3942_v38 = vpop.f32.mrf.mxu3  ;;  %v8258_v27 = vld [vmem:[%s8386_s5 + $0x768] sm:$0xff] }
 0x2e4   : > { %6588 = vst.msk [vmem:[%s8472_s10 + $0x718] sm:$0xf] %vm6133_vm3, %v6075_v33  ;;  %v3623_v43 = vadd.f32 %v9516_v13, %v3622_v37  ;;  %v3943_v44 = vadd.f32 %v9516_v13, %v3942_v38  ;;  %v2985_v45 = vpop.f32.mrf.mxu0  ;;  %v3305_v46 = vpop.f32.mrf.mxu1 }
 0x2e5   : > { %6205 = vst.msk [vmem:[%s8472_s10 + $0x11c] sm:$0xf] %vm6133_vm3, %v5692_v34  ;;  %v2986_v49 = vadd.f32 %v9516_v13, %v2985_v45  ;;  %v3306_v50 = vadd.f32 %v9516_v13, %v3305_v46 }
 0x2e6   : > { %6333 = vst.msk [vmem:[%s8472_s10 + $0x31c] sm:$0xf] %vm6133_vm3, %v5820_v36  ;;  %vm4412_vm8 = vcmp.gt.f32.partialorder %v3623_v43, 0.0  ;;  %v4924_v51 = vmul.f32 0.2, %v3623_v43  ;;  %vm4540_vm9 = vcmp.gt.f32.partialorder %v3943_v44, 0.0 }
 0x2e7   : > { %v5052_v52 = vmul.f32 0.2, %v3943_v44  ;;  %vm4157_vm10 = vcmp.gt.f32.partialorder %v2986_v49, 0.0  ;;  %v4669_v53 = vmul.f32 0.2, %v2986_v49  ;;  %vm4285_vm11 = vcmp.gt.f32.partialorder %v3306_v50, 0.0  ;;  %7807 = vmatmul.msk.bf16.gmra.mxu0 %vm2027_vm0, %v8065_v41  ;;  %7871 = vmatmul.msk.bf16.gmra.mxu1 %vm2027_vm0, %v8129_v42 }
 0x2e8   : > { %v5436_v54 = vsel %vm4412_vm8, %v3623_v43, %v4924_v51  ;;  %v4797_v55 = vmul.f32 0.2, %v3306_v50  ;;  %7935 = vmatmul.msk.bf16.gmra.mxu2 %vm2027_vm0, %v8193_v47  ;;  %7999 = vmatmul.msk.bf16.gmra.mxu3 %vm2027_vm0, %v8257_v48 }
 0x2e9   : > { %v5948_v56 = vpack.c.bf16 %v5436_v54, %v5436_v54  ;;  %v5564_v57 = vsel %vm4540_vm9, %v3943_v44, %v5052_v52  ;;  %v5181_v28 = vsel %vm4157_vm10, %v2986_v49, %v4669_v53 }
 0x2ea   : > { %v6076_v58 = vpack.c.bf16 %v5564_v57, %v5564_v57  ;;  %v5693_v59 = vpack.c.bf16 %v5181_v28, %v5181_v28  ;;  %v5309_v60 = vsel %vm4285_vm11, %v3306_v50, %v4797_v55 }
 0x2eb   : > { %6461 = vst.msk [vmem:[%s8472_s10 + $0x51c] sm:$0xf] %vm6133_vm3, %v5948_v56  ;;  %v5821_v61 = vpack.c.bf16 %v5309_v60, %v5309_v60  ;;  %v3625_v62 = vpop.f32.mrf.mxu2  ;;  %v3945_v63 = vpop.f32.mrf.mxu3 }
 0x2ec   : > { %6589 = vst.msk [vmem:[%s8472_s10 + $0x71c] sm:$0xf] %vm6133_vm3, %v6076_v58  ;;  %v3626_v0 = vadd.f32 %v9516_v13, %v3625_v62  ;;  %v3946_v1 = vadd.f32 %v9516_v13, %v3945_v63  ;;  %v2987_v3 = vpop.f32.mrf.mxu0  ;;  %v3307_v4 = vpop.f32.mrf.mxu1 }
 0x2ed   : > { %6206 = vst.msk [vmem:[%s8472_s10 + $0x120] sm:$0xf] %vm6133_vm3, %v5693_v59  ;;  %v2988_v40 = vadd.f32 %v9516_v13, %v2987_v3  ;;  %v3308_v5 = vadd.f32 %v9516_v13, %v3307_v4  ;;  %v8131_v3 = vld [vmem:[%s8386_s5 + $0x370] sm:$0xff] }
 0x2ee   : > { %6334 = vst.msk [vmem:[%s8472_s10 + $0x320] sm:$0xf] %vm6133_vm3, %v5821_v61  ;;  %vm4413_vm12 = vcmp.gt.f32.partialorder %v3626_v0, 0.0  ;;  %v4925_v6 = vmul.f32 0.2, %v3626_v0  ;;  %vm4541_vm13 = vcmp.gt.f32.partialorder %v3946_v1, 0.0 }
 0x2ef   : > { %v5053_v7 = vmul.f32 0.2, %v3946_v1  ;;  %vm4158_vm14 = vcmp.gt.f32.partialorder %v2988_v40, 0.0  ;;  %v4670_v8 = vmul.f32 0.2, %v2988_v40  ;;  %vm4286_vm15 = vcmp.gt.f32.partialorder %v3308_v5, 0.0 }
 0x2f0   : > { %v5437_v9 = vsel %vm4413_vm12, %v3626_v0, %v4925_v6  ;;  %v4798_v10 = vmul.f32 0.2, %v3308_v5 }
 0x2f1   : > { %v5949_v11 = vpack.c.bf16 %v5437_v9, %v5437_v9  ;;  %v5565_v12 = vsel %vm4541_vm13, %v3946_v1, %v5053_v7  ;;  %v5182_v14 = vsel %vm4158_vm14, %v2988_v40, %v4670_v8  ;;  %v8067_v1 = vld [vmem:[%s8386_s5 + $0x170] sm:$0xff] }
 0x2f2   : > { %v6077_v15 = vpack.c.bf16 %v5565_v12, %v5565_v12  ;;  %v5694_v16 = vpack.c.bf16 %v5182_v14, %v5182_v14  ;;  %v5310_v17 = vsel %vm4286_vm15, %v3308_v5, %v4798_v10  ;;  %v8195_v7 = vld [vmem:[%s8386_s5 + $0x570] sm:$0xff] }
 0x2f3   : > { %6462 = vst.msk [vmem:[%s8472_s10 + $0x520] sm:$0xf] %vm6133_vm3, %v5949_v11  ;;  %v5822_v18 = vpack.c.bf16 %v5310_v17, %v5310_v17  ;;  %v3627_v19 = vpop.f32.mrf.mxu2  ;;  %v3947_v39 = vpop.f32.mrf.mxu3  ;;  %v8259_v8 = vld [vmem:[%s8386_s5 + $0x770] sm:$0xff] }
 0x2f4   : > { %6590 = vst.msk [vmem:[%s8472_s10 + $0x720] sm:$0xf] %vm6133_vm3, %v6077_v15  ;;  %v3628_v22 = vadd.f32 %v9516_v13, %v3627_v19  ;;  %v3948_v23 = vadd.f32 %v9516_v13, %v3947_v39  ;;  %v2990_v24 = vpop.f32.mrf.mxu0  ;;  %v3310_v25 = vpop.f32.mrf.mxu1 }
 0x2f5   : > { %6207 = vst.msk [vmem:[%s8472_s10 + $0x124] sm:$0xf] %vm6133_vm3, %v5694_v16  ;;  %v2991_v29 = vadd.f32 %v9516_v13, %v2990_v24  ;;  %v3311_v30 = vadd.f32 %v9516_v13, %v3310_v25 }
 0x2f6   : > { %6335 = vst.msk [vmem:[%s8472_s10 + $0x324] sm:$0xf] %vm6133_vm3, %v5822_v18  ;;  %vm4414_vm1 = vcmp.gt.f32.partialorder %v3628_v22, 0.0  ;;  %v4926_v2 = vmul.f32 0.2, %v3628_v22  ;;  %vm4542_vm2 = vcmp.gt.f32.partialorder %v3948_v23, 0.0 }
 0x2f7   : > { %v5054_v31 = vmul.f32 0.2, %v3948_v23  ;;  %vm4159_vm4 = vcmp.gt.f32.partialorder %v2991_v29, 0.0  ;;  %v4671_v32 = vmul.f32 0.2, %v2991_v29  ;;  %vm4287_vm5 = vcmp.gt.f32.partialorder %v3311_v30, 0.0  ;;  %7808 = vmatmul.msk.bf16.gmra.mxu0 %vm2027_vm0, %v8066_v20  ;;  %7872 = vmatmul.msk.bf16.gmra.mxu1 %vm2027_vm0, %v8130_v21 }
 0x2f8   : > { %v5438_v33 = vsel %vm4414_vm1, %v3628_v22, %v4926_v2  ;;  %v4799_v34 = vmul.f32 0.2, %v3311_v30  ;;  %7936 = vmatmul.msk.bf16.gmra.mxu2 %vm2027_vm0, %v8194_v26  ;;  %8000 = vmatmul.msk.bf16.gmra.mxu3 %vm2027_vm0, %v8258_v27 }
 0x2f9   : > { %v5950_v35 = vpack.c.bf16 %v5438_v33, %v5438_v33  ;;  %v5566_v36 = vsel %vm4542_vm2, %v3948_v23, %v5054_v31  ;;  %v5183_v37 = vsel %vm4159_vm4, %v2991_v29, %v4671_v32 }
 0x2fa   : > { %v6078_v38 = vpack.c.bf16 %v5566_v36, %v5566_v36  ;;  %v5695_v41 = vpack.c.bf16 %v5183_v37, %v5183_v37  ;;  %v5311_v42 = vsel %vm4287_vm5, %v3311_v30, %v4799_v34 }
 0x2fb   : > { %6463 = vst.msk [vmem:[%s8472_s10 + $0x524] sm:$0xf] %vm6133_vm3, %v5950_v35  ;;  %v5823_v43 = vpack.c.bf16 %v5311_v42, %v5311_v42  ;;  %v3630_v44 = vpop.f32.mrf.mxu2  ;;  %v3950_v45 = vpop.f32.mrf.mxu3 }
 0x2fc   : > { %6591 = vst.msk [vmem:[%s8472_s10 + $0x724] sm:$0xf] %vm6133_vm3, %v6078_v38  ;;  %v3631_v46 = vadd.f32 %v9516_v13, %v3630_v44  ;;  %v3951_v47 = vadd.f32 %v9516_v13, %v3950_v45  ;;  %v2992_v48 = vpop.f32.mrf.mxu0  ;;  %v3312_v49 = vpop.f32.mrf.mxu1 }
 0x2fd   : > { %6208 = vst.msk [vmem:[%s8472_s10 + $0x128] sm:$0xf] %vm6133_vm3, %v5695_v41  ;;  %v2993_v50 = vadd.f32 %v9516_v13, %v2992_v48  ;;  %v3313_v51 = vadd.f32 %v9516_v13, %v3312_v49  ;;  %v8132_v48 = vld [vmem:[%s8386_s5 + $0x378] sm:$0xff] }
 0x2fe   : > { %6336 = vst.msk [vmem:[%s8472_s10 + $0x328] sm:$0xf] %vm6133_vm3, %v5823_v43  ;;  %vm4415_vm6 = vcmp.gt.f32.partialorder %v3631_v46, 0.0  ;;  %v4927_v52 = vmul.f32 0.2, %v3631_v46  ;;  %vm4543_vm7 = vcmp.gt.f32.partialorder %v3951_v47, 0.0 }
 0x2ff   : > { %v5055_v53 = vmul.f32 0.2, %v3951_v47  ;;  %vm4160_vm8 = vcmp.gt.f32.partialorder %v2993_v50, 0.0  ;;  %v4672_v54 = vmul.f32 0.2, %v2993_v50  ;;  %vm4288_vm9 = vcmp.gt.f32.partialorder %v3313_v51, 0.0 }
 0x300   : > { %v5439_v55 = vsel %vm4415_vm6, %v3631_v46, %v4927_v52  ;;  %v4800_v56 = vmul.f32 0.2, %v3313_v51 }
 0x301   : > { %v5951_v57 = vpack.c.bf16 %v5439_v55, %v5439_v55  ;;  %v5567_v28 = vsel %vm4543_vm7, %v3951_v47, %v5055_v53  ;;  %v5184_v58 = vsel %vm4160_vm8, %v2993_v50, %v4672_v54  ;;  %v8068_v47 = vld [vmem:[%s8386_s5 + $0x178] sm:$0xff] }
 0x302   : > { %v6079_v59 = vpack.c.bf16 %v5567_v28, %v5567_v28  ;;  %v5696_v60 = vpack.c.bf16 %v5184_v58, %v5184_v58  ;;  %v5312_v61 = vsel %vm4288_vm9, %v3313_v51, %v4800_v56  ;;  %v8196_v53 = vld [vmem:[%s8386_s5 + $0x578] sm:$0xff] }
 0x303   : > { %6464 = vst.msk [vmem:[%s8472_s10 + $0x528] sm:$0xf] %vm6133_vm3, %v5951_v57  ;;  %v5824_v62 = vpack.c.bf16 %v5312_v61, %v5312_v61  ;;  %v3632_v63 = vpop.f32.mrf.mxu2  ;;  %v3952_v0 = vpop.f32.mrf.mxu3  ;;  %v8260_v54 = vld [vmem:[%s8386_s5 + $0x778] sm:$0xff] }
 0x304   : > { %6592 = vst.msk [vmem:[%s8472_s10 + $0x728] sm:$0xf] %vm6133_vm3, %v6079_v59  ;;  %v3633_v4 = vadd.f32 %v9516_v13, %v3632_v63  ;;  %v3953_v40 = vadd.f32 %v9516_v13, %v3952_v0  ;;  %v2995_v5 = vpop.f32.mrf.mxu0  ;;  %v3315_v6 = vpop.f32.mrf.mxu1 }
 0x305   : > { %6209 = vst.msk [vmem:[%s8472_s10 + $0x12c] sm:$0xf] %vm6133_vm3, %v5696_v60  ;;  %v2996_v9 = vadd.f32 %v9516_v13, %v2995_v5  ;;  %v3316_v10 = vadd.f32 %v9516_v13, %v3315_v6 }
 0x306   : > { %6337 = vst.msk [vmem:[%s8472_s10 + $0x32c] sm:$0xf] %vm6133_vm3, %v5824_v62  ;;  %vm4416_vm10 = vcmp.gt.f32.partialorder %v3633_v4, 0.0  ;;  %v4928_v11 = vmul.f32 0.2, %v3633_v4  ;;  %vm4544_vm11 = vcmp.gt.f32.partialorder %v3953_v40, 0.0 }
 0x307   : > { %v5056_v12 = vmul.f32 0.2, %v3953_v40  ;;  %vm4161_vm12 = vcmp.gt.f32.partialorder %v2996_v9, 0.0  ;;  %v4673_v14 = vmul.f32 0.2, %v2996_v9  ;;  %vm4289_vm13 = vcmp.gt.f32.partialorder %v3316_v10, 0.0  ;;  %7809 = vmatmul.msk.bf16.gmra.mxu0 %vm2027_vm0, %v8067_v1  ;;  %7873 = vmatmul.msk.bf16.gmra.mxu1 %vm2027_vm0, %v8131_v3 }
 0x308   : > { %v5440_v15 = vsel %vm4416_vm10, %v3633_v4, %v4928_v11  ;;  %v4801_v16 = vmul.f32 0.2, %v3316_v10  ;;  %7937 = vmatmul.msk.bf16.gmra.mxu2 %vm2027_vm0, %v8195_v7  ;;  %8001 = vmatmul.msk.bf16.gmra.mxu3 %vm2027_vm0, %v8259_v8 }
 0x309   : > { %v5952_v17 = vpack.c.bf16 %v5440_v15, %v5440_v15  ;;  %v5568_v18 = vsel %vm4544_vm11, %v3953_v40, %v5056_v12  ;;  %v5185_v19 = vsel %vm4161_vm12, %v2996_v9, %v4673_v14 }
 0x30a   : > { %v6080_v39 = vpack.c.bf16 %v5568_v18, %v5568_v18  ;;  %v5697_v20 = vpack.c.bf16 %v5185_v19, %v5185_v19  ;;  %v5313_v21 = vsel %vm4289_vm13, %v3316_v10, %v4801_v16 }
 0x30b   : > { %6465 = vst.msk [vmem:[%s8472_s10 + $0x52c] sm:$0xf] %vm6133_vm3, %v5952_v17  ;;  %v5825_v22 = vpack.c.bf16 %v5313_v21, %v5313_v21  ;;  %v3635_v23 = vpop.f32.mrf.mxu2  ;;  %v3955_v24 = vpop.f32.mrf.mxu3 }
 0x30c   : > { %6593 = vst.msk [vmem:[%s8472_s10 + $0x72c] sm:$0xf] %vm6133_vm3, %v6080_v39  ;;  %v3636_v25 = vadd.f32 %v9516_v13, %v3635_v23  ;;  %v3956_v26 = vadd.f32 %v9516_v13, %v3955_v24  ;;  %v2997_v27 = vpop.f32.mrf.mxu0  ;;  %v3317_v29 = vpop.f32.mrf.mxu1 }
 0x30d   : > { %6210 = vst.msk [vmem:[%s8472_s10 + $0x130] sm:$0xf] %vm6133_vm3, %v5697_v20  ;;  %v2998_v30 = vadd.f32 %v9516_v13, %v2997_v27  ;;  %v3318_v2 = vadd.f32 %v9516_v13, %v3317_v29  ;;  %v8133_v27 = vld [vmem:[%s8386_s5 + $0x380] sm:$0xff] }
 0x30e   : > { %6338 = vst.msk [vmem:[%s8472_s10 + $0x330] sm:$0xf] %vm6133_vm3, %v5825_v22  ;;  %vm4417_vm14 = vcmp.gt.f32.partialorder %v3636_v25, 0.0  ;;  %v4929_v31 = vmul.f32 0.2, %v3636_v25  ;;  %vm4545_vm15 = vcmp.gt.f32.partialorder %v3956_v26, 0.0 }
 0x30f   : > { %v5057_v32 = vmul.f32 0.2, %v3956_v26  ;;  %vm4162_vm1 = vcmp.gt.f32.partialorder %v2998_v30, 0.0  ;;  %v4674_v33 = vmul.f32 0.2, %v2998_v30  ;;  %vm4290_vm2 = vcmp.gt.f32.partialorder %v3318_v2, 0.0 }
 0x310   : > { %v5441_v34 = vsel %vm4417_vm14, %v3636_v25, %v4929_v31  ;;  %v4802_v35 = vmul.f32 0.2, %v3318_v2 }
 0x311   : > { %v5953_v36 = vpack.c.bf16 %v5441_v34, %v5441_v34  ;;  %v5569_v37 = vsel %vm4545_vm15, %v3956_v26, %v5057_v32  ;;  %v5186_v38 = vsel %vm4162_vm1, %v2998_v30, %v4674_v33  ;;  %v8069_v26 = vld [vmem:[%s8386_s5 + $0x180] sm:$0xff] }
 0x312   : > { %v6081_v41 = vpack.c.bf16 %v5569_v37, %v5569_v37  ;;  %v5698_v42 = vpack.c.bf16 %v5186_v38, %v5186_v38  ;;  %v5314_v43 = vsel %vm4290_vm2, %v3318_v2, %v4802_v35  ;;  %v8197_v32 = vld [vmem:[%s8386_s5 + $0x580] sm:$0xff] }
 0x313   : > { %6466 = vst.msk [vmem:[%s8472_s10 + $0x530] sm:$0xf] %vm6133_vm3, %v5953_v36  ;;  %v5826_v44 = vpack.c.bf16 %v5314_v43, %v5314_v43  ;;  %v3637_v45 = vpop.f32.mrf.mxu2  ;;  %v3957_v46 = vpop.f32.mrf.mxu3  ;;  %v8261_v33 = vld [vmem:[%s8386_s5 + $0x780] sm:$0xff] }
 0x314   : > { %6594 = vst.msk [vmem:[%s8472_s10 + $0x730] sm:$0xf] %vm6133_vm3, %v6081_v41  ;;  %v3638_v49 = vadd.f32 %v9516_v13, %v3637_v45  ;;  %v3958_v50 = vadd.f32 %v9516_v13, %v3957_v46  ;;  %v3000_v51 = vpop.f32.mrf.mxu0  ;;  %v3320_v52 = vpop.f32.mrf.mxu1 }
 0x315   : > { %6211 = vst.msk [vmem:[%s8472_s10 + $0x134] sm:$0xf] %vm6133_vm3, %v5698_v42  ;;  %v3001_v55 = vadd.f32 %v9516_v13, %v3000_v51  ;;  %v3321_v56 = vadd.f32 %v9516_v13, %v3320_v52  ;;  %v9777_v51 = vld [vmem:[%s10488_s2] ss:$0 sm:$0xff] }
 0x316   : > { %6339 = vst.msk [vmem:[%s8472_s10 + $0x334] sm:$0xf] %vm6133_vm3, %v5826_v44  ;;  %vm4418_vm4 = vcmp.gt.f32.partialorder %v3638_v49, 0.0  ;;  %v4930_v57 = vmul.f32 0.2, %v3638_v49  ;;  %vm4546_vm5 = vcmp.gt.f32.partialorder %v3958_v50, 0.0 }
 0x317   : > { %v5058_v28 = vmul.f32 0.2, %v3958_v50  ;;  %vm4163_vm6 = vcmp.gt.f32.partialorder %v3001_v55, 0.0  ;;  %v4675_v58 = vmul.f32 0.2, %v3001_v55  ;;  %vm4291_vm7 = vcmp.gt.f32.partialorder %v3321_v56, 0.0  ;;  %7810 = vmatmul.msk.bf16.gmra.mxu0 %vm2027_vm0, %v8068_v47  ;;  %7874 = vmatmul.msk.bf16.gmra.mxu1 %vm2027_vm0, %v8132_v48 }
 0x318   : > { %v5442_v59 = vsel %vm4418_vm4, %v3638_v49, %v4930_v57  ;;  %v4803_v60 = vmul.f32 0.2, %v3321_v56  ;;  %7938 = vmatmul.msk.bf16.gmra.mxu2 %vm2027_vm0, %v8196_v53  ;;  %8002 = vmatmul.msk.bf16.gmra.mxu3 %vm2027_vm0, %v8260_v54 }
 0x319   : > { %v5954_v61 = vpack.c.bf16 %v5442_v59, %v5442_v59  ;;  %v5570_v62 = vsel %vm4546_vm5, %v3958_v50, %v5058_v28  ;;  %v5187_v63 = vsel %vm4163_vm6, %v3001_v55, %v4675_v58 }
 0x31a   : > { %v6082_v0 = vpack.c.bf16 %v5570_v62, %v5570_v62  ;;  %v5699_v1 = vpack.c.bf16 %v5187_v63, %v5187_v63  ;;  %v5315_v3 = vsel %vm4291_vm7, %v3321_v56, %v4803_v60 }
 0x31b   : > { %6467 = vst.msk [vmem:[%s8472_s10 + $0x534] sm:$0xf] %vm6133_vm3, %v5954_v61  ;;  %v5827_v4 = vpack.c.bf16 %v5315_v3, %v5315_v3  ;;  %v3640_v40 = vpop.f32.mrf.mxu2  ;;  %v3960_v5 = vpop.f32.mrf.mxu3 }
 0x31c   : > { %6595 = vst.msk [vmem:[%s8472_s10 + $0x734] sm:$0xf] %vm6133_vm3, %v6082_v0  ;;  %v3641_v6 = vadd.f32 %v9516_v13, %v3640_v40  ;;  %v3961_v7 = vadd.f32 %v9516_v13, %v3960_v5  ;;  %v3002_v8 = vpop.f32.mrf.mxu0  ;;  %v3322_v9 = vpop.f32.mrf.mxu1 }
 0x31d   : > { %6212 = vst.msk [vmem:[%s8472_s10 + $0x138] sm:$0xf] %vm6133_vm3, %v5699_v1  ;;  %v3003_v10 = vadd.f32 %v9516_v13, %v3002_v8  ;;  %v3323_v11 = vadd.f32 %v9516_v13, %v3322_v9  ;;  %v8134_v8 = vld [vmem:[%s8386_s5 + $0x388] sm:$0xff] }
 0x31e   : > { %6340 = vst.msk [vmem:[%s8472_s10 + $0x338] sm:$0xf] %vm6133_vm3, %v5827_v4  ;;  %vm4419_vm8 = vcmp.gt.f32.partialorder %v3641_v6, 0.0  ;;  %v4931_v12 = vmul.f32 0.2, %v3641_v6  ;;  %vm4547_vm9 = vcmp.gt.f32.partialorder %v3961_v7, 0.0 }
 0x31f   : > { %v5059_v14 = vmul.f32 0.2, %v3961_v7  ;;  %vm4164_vm10 = vcmp.gt.f32.partialorder %v3003_v10, 0.0  ;;  %v4676_v15 = vmul.f32 0.2, %v3003_v10  ;;  %vm4292_vm11 = vcmp.gt.f32.partialorder %v3323_v11, 0.0 }
 0x320   : > { %v5443_v16 = vsel %vm4419_vm8, %v3641_v6, %v4931_v12  ;;  %v4804_v17 = vmul.f32 0.2, %v3323_v11 }
 0x321   : > { %v5955_v18 = vpack.c.bf16 %v5443_v16, %v5443_v16  ;;  %v5571_v19 = vsel %vm4547_vm9, %v3961_v7, %v5059_v14  ;;  %v5188_v39 = vsel %vm4164_vm10, %v3003_v10, %v4676_v15  ;;  %v8070_v7 = vld [vmem:[%s8386_s5 + $0x188] sm:$0xff] }
 0x322   : > { %v6083_v20 = vpack.c.bf16 %v5571_v19, %v5571_v19  ;;  %v5700_v21 = vpack.c.bf16 %v5188_v39, %v5188_v39  ;;  %v5316_v22 = vsel %vm4292_vm11, %v3323_v11, %v4804_v17  ;;  %v8198_v14 = vld [vmem:[%s8386_s5 + $0x588] sm:$0xff] }
 0x323   : > { %6468 = vst.msk [vmem:[%s8472_s10 + $0x538] sm:$0xf] %vm6133_vm3, %v5955_v18  ;;  %v5828_v23 = vpack.c.bf16 %v5316_v22, %v5316_v22  ;;  %v3642_v24 = vpop.f32.mrf.mxu2  ;;  %v3962_v25 = vpop.f32.mrf.mxu3  ;;  %v8262_v15 = vld [vmem:[%s8386_s5 + $0x788] sm:$0xff] }
 0x324   : > { %6596 = vst.msk [vmem:[%s8472_s10 + $0x738] sm:$0xf] %vm6133_vm3, %v6083_v20  ;;  %v3643_v29 = vadd.f32 %v9516_v13, %v3642_v24  ;;  %v3963_v30 = vadd.f32 %v9516_v13, %v3962_v25  ;;  %v3005_v2 = vpop.f32.mrf.mxu0  ;;  %v3325_v31 = vpop.f32.mrf.mxu1 }
 0x325   : > { %6213 = vst.msk [vmem:[%s8472_s10 + $0x13c] sm:$0xf] %vm6133_vm3, %v5700_v21  ;;  %v3006_v34 = vadd.f32 %v9516_v13, %v3005_v2  ;;  %v3326_v35 = vadd.f32 %v9516_v13, %v3325_v31 }
 0x326   : > { %6341 = vst.msk [vmem:[%s8472_s10 + $0x33c] sm:$0xf] %vm6133_vm3, %v5828_v23  ;;  %vm4420_vm12 = vcmp.gt.f32.partialorder %v3643_v29, 0.0  ;;  %v4932_v36 = vmul.f32 0.2, %v3643_v29  ;;  %vm4548_vm13 = vcmp.gt.f32.partialorder %v3963_v30, 0.0 }
 0x327   : > { %v5060_v37 = vmul.f32 0.2, %v3963_v30  ;;  %vm4165_vm14 = vcmp.gt.f32.partialorder %v3006_v34, 0.0  ;;  %v4677_v38 = vmul.f32 0.2, %v3006_v34  ;;  %vm4293_vm15 = vcmp.gt.f32.partialorder %v3326_v35, 0.0  ;;  %7811 = vmatmul.msk.bf16.gmra.mxu0 %vm2027_vm0, %v8069_v26  ;;  %7875 = vmatmul.msk.bf16.gmra.mxu1 %vm2027_vm0, %v8133_v27 }
 0x328   : > { %v5444_v41 = vsel %vm4420_vm12, %v3643_v29, %v4932_v36  ;;  %v4805_v42 = vmul.f32 0.2, %v3326_v35  ;;  %7939 = vmatmul.msk.bf16.gmra.mxu2 %vm2027_vm0, %v8197_v32  ;;  %8003 = vmatmul.msk.bf16.gmra.mxu3 %vm2027_vm0, %v8261_v33 }
 0x329   : > { %v5956_v13 = vpack.c.bf16 %v5444_v41, %v5444_v41  ;;  %v5572_v43 = vsel %vm4548_vm13, %v3963_v30, %v5060_v37  ;;  %v5189_v44 = vsel %vm4165_vm14, %v3006_v34, %v4677_v38 }
 0x32a   : > { %v6084_v45 = vpack.c.bf16 %v5572_v43, %v5572_v43  ;;  %v5701_v46 = vpack.c.bf16 %v5189_v44, %v5189_v44  ;;  %v5317_v47 = vsel %vm4293_vm15, %v3326_v35, %v4805_v42 }
 0x32b   : > { %6469 = vst.msk [vmem:[%s8472_s10 + $0x53c] sm:$0xf] %vm6133_vm3, %v5956_v13  ;;  %v5829_v48 = vpack.c.bf16 %v5317_v47, %v5317_v47  ;;  %v3645_v49 = vpop.f32.mrf.mxu2  ;;  %v3965_v50 = vpop.f32.mrf.mxu3 }
 0x32c   : > { %6597 = vst.msk [vmem:[%s8472_s10 + $0x73c] sm:$0xf] %vm6133_vm3, %v6084_v45  ;;  %v3646_v52 = vadd.f32 %v9777_v51, %v3645_v49  ;;  %v3966_v53 = vadd.f32 %v9777_v51, %v3965_v50  ;;  %v3007_v54 = vpop.f32.mrf.mxu0  ;;  %v3327_v55 = vpop.f32.mrf.mxu1 }
 0x32d   : > { %6214 = vst.msk [vmem:[%s8472_s10 + $0x140] sm:$0xf] %vm6133_vm3, %v5701_v46  ;;  %v3008_v56 = vadd.f32 %v9777_v51, %v3007_v54  ;;  %v3328_v57 = vadd.f32 %v9777_v51, %v3327_v55  ;;  %v8135_v54 = vld [vmem:[%s8386_s5 + $0x390] sm:$0xff] }
 0x32e   : > { %6342 = vst.msk [vmem:[%s8472_s10 + $0x340] sm:$0xf] %vm6133_vm3, %v5829_v48  ;;  %vm4421_vm1 = vcmp.gt.f32.partialorder %v3646_v52, 0.0  ;;  %v4933_v28 = vmul.f32 0.2, %v3646_v52  ;;  %vm4549_vm2 = vcmp.gt.f32.partialorder %v3966_v53, 0.0 }
 0x32f   : > { %v5061_v58 = vmul.f32 0.2, %v3966_v53  ;;  %vm4166_vm4 = vcmp.gt.f32.partialorder %v3008_v56, 0.0  ;;  %v4678_v59 = vmul.f32 0.2, %v3008_v56  ;;  %vm4294_vm5 = vcmp.gt.f32.partialorder %v3328_v57, 0.0 }
 0x330   : > { %v5445_v60 = vsel %vm4421_vm1, %v3646_v52, %v4933_v28  ;;  %v4806_v61 = vmul.f32 0.2, %v3328_v57 }
 0x331   : > { %v5957_v62 = vpack.c.bf16 %v5445_v60, %v5445_v60  ;;  %v5573_v63 = vsel %vm4549_vm2, %v3966_v53, %v5061_v58  ;;  %v5190_v0 = vsel %vm4166_vm4, %v3008_v56, %v4678_v59  ;;  %v8071_v53 = vld [vmem:[%s8386_s5 + $0x190] sm:$0xff] }
 0x332   : > { %v6085_v1 = vpack.c.bf16 %v5573_v63, %v5573_v63  ;;  %v5702_v3 = vpack.c.bf16 %v5190_v0, %v5190_v0  ;;  %v5318_v4 = vsel %vm4294_vm5, %v3328_v57, %v4806_v61  ;;  %v8199_v58 = vld [vmem:[%s8386_s5 + $0x590] sm:$0xff] }
 0x333   : > { %6470 = vst.msk [vmem:[%s8472_s10 + $0x540] sm:$0xf] %vm6133_vm3, %v5957_v62  ;;  %v5830_v40 = vpack.c.bf16 %v5318_v4, %v5318_v4  ;;  %v3647_v5 = vpop.f32.mrf.mxu2  ;;  %v3967_v6 = vpop.f32.mrf.mxu3  ;;  %v8263_v59 = vld [vmem:[%s8386_s5 + $0x790] sm:$0xff] }
 0x334   : > { %6598 = vst.msk [vmem:[%s8472_s10 + $0x740] sm:$0xf] %vm6133_vm3, %v6085_v1  ;;  %v3648_v9 = vadd.f32 %v9777_v51, %v3647_v5  ;;  %v3968_v10 = vadd.f32 %v9777_v51, %v3967_v6  ;;  %v3010_v11 = vpop.f32.mrf.mxu0  ;;  %v3330_v12 = vpop.f32.mrf.mxu1 }
 0x335   : > { %6215 = vst.msk [vmem:[%s8472_s10 + $0x144] sm:$0xf] %vm6133_vm3, %v5702_v3  ;;  %v3011_v16 = vadd.f32 %v9777_v51, %v3010_v11  ;;  %v3331_v17 = vadd.f32 %v9777_v51, %v3330_v12 }
 0x336   : > { %6343 = vst.msk [vmem:[%s8472_s10 + $0x344] sm:$0xf] %vm6133_vm3, %v5830_v40  ;;  %vm4422_vm6 = vcmp.gt.f32.partialorder %v3648_v9, 0.0  ;;  %v4934_v18 = vmul.f32 0.2, %v3648_v9  ;;  %vm4550_vm7 = vcmp.gt.f32.partialorder %v3968_v10, 0.0 }
 0x337   : > { %v5062_v19 = vmul.f32 0.2, %v3968_v10  ;;  %vm4167_vm8 = vcmp.gt.f32.partialorder %v3011_v16, 0.0  ;;  %v4679_v39 = vmul.f32 0.2, %v3011_v16  ;;  %vm4295_vm9 = vcmp.gt.f32.partialorder %v3331_v17, 0.0  ;;  %7812 = vmatmul.msk.bf16.gmra.mxu0 %vm2027_vm0, %v8070_v7  ;;  %7876 = vmatmul.msk.bf16.gmra.mxu1 %vm2027_vm0, %v8134_v8 }
 0x338   : > { %v5446_v20 = vsel %vm4422_vm6, %v3648_v9, %v4934_v18  ;;  %v4807_v21 = vmul.f32 0.2, %v3331_v17  ;;  %7940 = vmatmul.msk.bf16.gmra.mxu2 %vm2027_vm0, %v8198_v14  ;;  %8004 = vmatmul.msk.bf16.gmra.mxu3 %vm2027_vm0, %v8262_v15 }
 0x339   : > { %v5958_v22 = vpack.c.bf16 %v5446_v20, %v5446_v20  ;;  %v5574_v23 = vsel %vm4550_vm7, %v3968_v10, %v5062_v19  ;;  %v5191_v24 = vsel %vm4167_vm8, %v3011_v16, %v4679_v39 }
 0x33a   : > { %v6086_v25 = vpack.c.bf16 %v5574_v23, %v5574_v23  ;;  %v5703_v26 = vpack.c.bf16 %v5191_v24, %v5191_v24  ;;  %v5319_v27 = vsel %vm4295_vm9, %v3331_v17, %v4807_v21 }
 0x33b   : > { %6471 = vst.msk [vmem:[%s8472_s10 + $0x544] sm:$0xf] %vm6133_vm3, %v5958_v22  ;;  %v5831_v29 = vpack.c.bf16 %v5319_v27, %v5319_v27  ;;  %v3650_v30 = vpop.f32.mrf.mxu2  ;;  %v3970_v2 = vpop.f32.mrf.mxu3 }
 0x33c   : > { %6599 = vst.msk [vmem:[%s8472_s10 + $0x744] sm:$0xf] %vm6133_vm3, %v6086_v25  ;;  %v3651_v31 = vadd.f32 %v9777_v51, %v3650_v30  ;;  %v3971_v32 = vadd.f32 %v9777_v51, %v3970_v2  ;;  %v3012_v33 = vpop.f32.mrf.mxu0  ;;  %v3332_v34 = vpop.f32.mrf.mxu1 }
 0x33d   : > { %6216 = vst.msk [vmem:[%s8472_s10 + $0x148] sm:$0xf] %vm6133_vm3, %v5703_v26  ;;  %v3013_v35 = vadd.f32 %v9777_v51, %v3012_v33  ;;  %v3333_v36 = vadd.f32 %v9777_v51, %v3332_v34  ;;  %v8136_v33 = vld [vmem:[%s8386_s5 + $0x398] sm:$0xff] }
 0x33e   : > { %6344 = vst.msk [vmem:[%s8472_s10 + $0x348] sm:$0xf] %vm6133_vm3, %v5831_v29  ;;  %vm4423_vm10 = vcmp.gt.f32.partialorder %v3651_v31, 0.0  ;;  %v4935_v37 = vmul.f32 0.2, %v3651_v31  ;;  %vm4551_vm11 = vcmp.gt.f32.partialorder %v3971_v32, 0.0 }
 0x33f   : > { %v5063_v38 = vmul.f32 0.2, %v3971_v32  ;;  %vm4168_vm12 = vcmp.gt.f32.partialorder %v3013_v35, 0.0  ;;  %v4680_v41 = vmul.f32 0.2, %v3013_v35  ;;  %vm4296_vm13 = vcmp.gt.f32.partialorder %v3333_v36, 0.0 }
 0x340   : > { %v5447_v42 = vsel %vm4423_vm10, %v3651_v31, %v4935_v37  ;;  %v4808_v13 = vmul.f32 0.2, %v3333_v36 }
 0x341   : > { %v5959_v43 = vpack.c.bf16 %v5447_v42, %v5447_v42  ;;  %v5575_v44 = vsel %vm4551_vm11, %v3971_v32, %v5063_v38  ;;  %v5192_v45 = vsel %vm4168_vm12, %v3013_v35, %v4680_v41  ;;  %v8072_v32 = vld [vmem:[%s8386_s5 + $0x198] sm:$0xff] }
 0x342   : > { %v6087_v46 = vpack.c.bf16 %v5575_v44, %v5575_v44  ;;  %v5704_v47 = vpack.c.bf16 %v5192_v45, %v5192_v45  ;;  %v5320_v48 = vsel %vm4296_vm13, %v3333_v36, %v4808_v13  ;;  %v8200_v38 = vld [vmem:[%s8386_s5 + $0x598] sm:$0xff] }
 0x343   : > { %6472 = vst.msk [vmem:[%s8472_s10 + $0x548] sm:$0xf] %vm6133_vm3, %v5959_v43  ;;  %v5832_v49 = vpack.c.bf16 %v5320_v48, %v5320_v48  ;;  %v3652_v50 = vpop.f32.mrf.mxu2  ;;  %v3972_v52 = vpop.f32.mrf.mxu3  ;;  %v8264_v41 = vld [vmem:[%s8386_s5 + $0x798] sm:$0xff] }
 0x344   : > { %6600 = vst.msk [vmem:[%s8472_s10 + $0x748] sm:$0xf] %vm6133_vm3, %v6087_v46  ;;  %v3653_v55 = vadd.f32 %v9777_v51, %v3652_v50  ;;  %v3973_v56 = vadd.f32 %v9777_v51, %v3972_v52  ;;  %v3015_v57 = vpop.f32.mrf.mxu0  ;;  %v3335_v28 = vpop.f32.mrf.mxu1 }
 0x345   : > { %6217 = vst.msk [vmem:[%s8472_s10 + $0x14c] sm:$0xf] %vm6133_vm3, %v5704_v47  ;;  %v3016_v60 = vadd.f32 %v9777_v51, %v3015_v57  ;;  %v3336_v61 = vadd.f32 %v9777_v51, %v3335_v28 }
 0x346   : > { %6345 = vst.msk [vmem:[%s8472_s10 + $0x34c] sm:$0xf] %vm6133_vm3, %v5832_v49  ;;  %vm4424_vm14 = vcmp.gt.f32.partialorder %v3653_v55, 0.0  ;;  %v4936_v62 = vmul.f32 0.2, %v3653_v55  ;;  %vm4552_vm15 = vcmp.gt.f32.partialorder %v3973_v56, 0.0 }
 0x347   : > { %v5064_v63 = vmul.f32 0.2, %v3973_v56  ;;  %vm4169_vm1 = vcmp.gt.f32.partialorder %v3016_v60, 0.0  ;;  %v4681_v0 = vmul.f32 0.2, %v3016_v60  ;;  %vm4297_vm2 = vcmp.gt.f32.partialorder %v3336_v61, 0.0  ;;  %7813 = vmatmul.msk.bf16.gmra.mxu0 %vm2027_vm0, %v8071_v53  ;;  %7877 = vmatmul.msk.bf16.gmra.mxu1 %vm2027_vm0, %v8135_v54 }
 0x348   : > { %v5448_v1 = vsel %vm4424_vm14, %v3653_v55, %v4936_v62  ;;  %v4809_v3 = vmul.f32 0.2, %v3336_v61  ;;  %7941 = vmatmul.msk.bf16.gmra.mxu2 %vm2027_vm0, %v8199_v58  ;;  %8005 = vmatmul.msk.bf16.gmra.mxu3 %vm2027_vm0, %v8263_v59 }
 0x349   : > { %v5960_v4 = vpack.c.bf16 %v5448_v1, %v5448_v1  ;;  %v5576_v40 = vsel %vm4552_vm15, %v3973_v56, %v5064_v63  ;;  %v5193_v5 = vsel %vm4169_vm1, %v3016_v60, %v4681_v0 }
 0x34a   : > { %v6088_v6 = vpack.c.bf16 %v5576_v40, %v5576_v40  ;;  %v5705_v7 = vpack.c.bf16 %v5193_v5, %v5193_v5  ;;  %v5321_v8 = vsel %vm4297_vm2, %v3336_v61, %v4809_v3 }
 0x34b   : > { %6473 = vst.msk [vmem:[%s8472_s10 + $0x54c] sm:$0xf] %vm6133_vm3, %v5960_v4  ;;  %v5833_v9 = vpack.c.bf16 %v5321_v8, %v5321_v8  ;;  %v3655_v10 = vpop.f32.mrf.mxu2  ;;  %v3975_v11 = vpop.f32.mrf.mxu3 }
 0x34c   : > { %6601 = vst.msk [vmem:[%s8472_s10 + $0x74c] sm:$0xf] %vm6133_vm3, %v6088_v6  ;;  %v3656_v12 = vadd.f32 %v9777_v51, %v3655_v10  ;;  %v3976_v14 = vadd.f32 %v9777_v51, %v3975_v11  ;;  %v3017_v15 = vpop.f32.mrf.mxu0  ;;  %v3337_v16 = vpop.f32.mrf.mxu1 }
 0x34d   : > { %6218 = vst.msk [vmem:[%s8472_s10 + $0x150] sm:$0xf] %vm6133_vm3, %v5705_v7  ;;  %v3018_v17 = vadd.f32 %v9777_v51, %v3017_v15  ;;  %v3338_v18 = vadd.f32 %v9777_v51, %v3337_v16  ;;  %v8137_v15 = vld [vmem:[%s8386_s5 + $0x3a0] sm:$0xff] }
 0x34e   : > { %6346 = vst.msk [vmem:[%s8472_s10 + $0x350] sm:$0xf] %vm6133_vm3, %v5833_v9  ;;  %vm4425_vm4 = vcmp.gt.f32.partialorder %v3656_v12, 0.0  ;;  %v4937_v19 = vmul.f32 0.2, %v3656_v12  ;;  %vm4553_vm5 = vcmp.gt.f32.partialorder %v3976_v14, 0.0 }
 0x34f   : > { %v5065_v39 = vmul.f32 0.2, %v3976_v14  ;;  %vm4170_vm6 = vcmp.gt.f32.partialorder %v3018_v17, 0.0  ;;  %v4682_v20 = vmul.f32 0.2, %v3018_v17  ;;  %vm4298_vm7 = vcmp.gt.f32.partialorder %v3338_v18, 0.0 }
 0x350   : > { %v5449_v21 = vsel %vm4425_vm4, %v3656_v12, %v4937_v19  ;;  %v4810_v22 = vmul.f32 0.2, %v3338_v18 }
 0x351   : > { %v5961_v23 = vpack.c.bf16 %v5449_v21, %v5449_v21  ;;  %v5577_v24 = vsel %vm4553_vm5, %v3976_v14, %v5065_v39  ;;  %v5194_v25 = vsel %vm4170_vm6, %v3018_v17, %v4682_v20  ;;  %v8073_v14 = vld [vmem:[%s8386_s5 + $0x1a0] sm:$0xff] }
 0x352   : > { %v6089_v26 = vpack.c.bf16 %v5577_v24, %v5577_v24  ;;  %v5706_v27 = vpack.c.bf16 %v5194_v25, %v5194_v25  ;;  %v5322_v29 = vsel %vm4298_vm7, %v3338_v18, %v4810_v22  ;;  %v8201_v39 = vld [vmem:[%s8386_s5 + $0x5a0] sm:$0xff] }
 0x353   : > { %6474 = vst.msk [vmem:[%s8472_s10 + $0x550] sm:$0xf] %vm6133_vm3, %v5961_v23  ;;  %v5834_v30 = vpack.c.bf16 %v5322_v29, %v5322_v29  ;;  %v3657_v2 = vpop.f32.mrf.mxu2  ;;  %v3977_v31 = vpop.f32.mrf.mxu3  ;;  %v8265_v20 = vld [vmem:[%s8386_s5 + $0x7a0] sm:$0xff] }
 0x354   : > { %6602 = vst.msk [vmem:[%s8472_s10 + $0x750] sm:$0xf] %vm6133_vm3, %v6089_v26  ;;  %v3658_v34 = vadd.f32 %v9777_v51, %v3657_v2  ;;  %v3978_v35 = vadd.f32 %v9777_v51, %v3977_v31  ;;  %v3020_v36 = vpop.f32.mrf.mxu0  ;;  %v3340_v37 = vpop.f32.mrf.mxu1 }
 0x355   : > { %6219 = vst.msk [vmem:[%s8472_s10 + $0x154] sm:$0xf] %vm6133_vm3, %v5706_v27  ;;  %v3021_v42 = vadd.f32 %v9777_v51, %v3020_v36  ;;  %v3341_v13 = vadd.f32 %v9777_v51, %v3340_v37 }
 0x356   : > { %6347 = vst.msk [vmem:[%s8472_s10 + $0x354] sm:$0xf] %vm6133_vm3, %v5834_v30  ;;  %vm4426_vm8 = vcmp.gt.f32.partialorder %v3658_v34, 0.0  ;;  %v4938_v43 = vmul.f32 0.2, %v3658_v34  ;;  %vm4554_vm9 = vcmp.gt.f32.partialorder %v3978_v35, 0.0 }
 0x357   : > { %v5066_v44 = vmul.f32 0.2, %v3978_v35  ;;  %vm4171_vm10 = vcmp.gt.f32.partialorder %v3021_v42, 0.0  ;;  %v4683_v45 = vmul.f32 0.2, %v3021_v42  ;;  %vm4299_vm11 = vcmp.gt.f32.partialorder %v3341_v13, 0.0  ;;  %7814 = vmatmul.msk.bf16.gmra.mxu0 %vm2027_vm0, %v8072_v32  ;;  %7878 = vmatmul.msk.bf16.gmra.mxu1 %vm2027_vm0, %v8136_v33 }
 0x358   : > { %v5450_v46 = vsel %vm4426_vm8, %v3658_v34, %v4938_v43  ;;  %v4811_v47 = vmul.f32 0.2, %v3341_v13  ;;  %7942 = vmatmul.msk.bf16.gmra.mxu2 %vm2027_vm0, %v8200_v38  ;;  %8006 = vmatmul.msk.bf16.gmra.mxu3 %vm2027_vm0, %v8264_v41 }
 0x359   : > { %v5962_v48 = vpack.c.bf16 %v5450_v46, %v5450_v46  ;;  %v5578_v49 = vsel %vm4554_vm9, %v3978_v35, %v5066_v44  ;;  %v5195_v50 = vsel %vm4171_vm10, %v3021_v42, %v4683_v45 }
 0x35a   : > { %v6090_v52 = vpack.c.bf16 %v5578_v49, %v5578_v49  ;;  %v5707_v53 = vpack.c.bf16 %v5195_v50, %v5195_v50  ;;  %v5323_v54 = vsel %vm4299_vm11, %v3341_v13, %v4811_v47 }
 0x35b   : > { %6475 = vst.msk [vmem:[%s8472_s10 + $0x554] sm:$0xf] %vm6133_vm3, %v5962_v48  ;;  %v5835_v55 = vpack.c.bf16 %v5323_v54, %v5323_v54  ;;  %v3660_v56 = vpop.f32.mrf.mxu2  ;;  %v3980_v57 = vpop.f32.mrf.mxu3 }
 0x35c   : > { %6603 = vst.msk [vmem:[%s8472_s10 + $0x754] sm:$0xf] %vm6133_vm3, %v6090_v52  ;;  %v3661_v28 = vadd.f32 %v9777_v51, %v3660_v56  ;;  %v3981_v58 = vadd.f32 %v9777_v51, %v3980_v57  ;;  %v3022_v59 = vpop.f32.mrf.mxu0  ;;  %v3342_v60 = vpop.f32.mrf.mxu1 }
 0x35d   : > { %6220 = vst.msk [vmem:[%s8472_s10 + $0x158] sm:$0xf] %vm6133_vm3, %v5707_v53  ;;  %v3023_v61 = vadd.f32 %v9777_v51, %v3022_v59  ;;  %v3343_v62 = vadd.f32 %v9777_v51, %v3342_v60  ;;  %v8138_v59 = vld [vmem:[%s8386_s5 + $0x3a8] sm:$0xff] }
 0x35e   : > { %6348 = vst.msk [vmem:[%s8472_s10 + $0x358] sm:$0xf] %vm6133_vm3, %v5835_v55  ;;  %vm4427_vm12 = vcmp.gt.f32.partialorder %v3661_v28, 0.0  ;;  %v4939_v63 = vmul.f32 0.2, %v3661_v28  ;;  %vm4555_vm13 = vcmp.gt.f32.partialorder %v3981_v58, 0.0 }
 0x35f   : > { %v5067_v0 = vmul.f32 0.2, %v3981_v58  ;;  %vm4172_vm14 = vcmp.gt.f32.partialorder %v3023_v61, 0.0  ;;  %v4684_v1 = vmul.f32 0.2, %v3023_v61  ;;  %vm4300_vm15 = vcmp.gt.f32.partialorder %v3343_v62, 0.0 }
 0x360   : > { %v5451_v3 = vsel %vm4427_vm12, %v3661_v28, %v4939_v63  ;;  %v4812_v4 = vmul.f32 0.2, %v3343_v62 }
 0x361   : > { %v5963_v40 = vpack.c.bf16 %v5451_v3, %v5451_v3  ;;  %v5579_v5 = vsel %vm4555_vm13, %v3981_v58, %v5067_v0  ;;  %v5196_v6 = vsel %vm4172_vm14, %v3023_v61, %v4684_v1  ;;  %v8074_v58 = vld [vmem:[%s8386_s5 + $0x1a8] sm:$0xff] }
 0x362   : > { %v6091_v7 = vpack.c.bf16 %v5579_v5, %v5579_v5  ;;  %v5708_v8 = vpack.c.bf16 %v5196_v6, %v5196_v6  ;;  %v5324_v9 = vsel %vm4300_vm15, %v3343_v62, %v4812_v4  ;;  %v8202_v0 = vld [vmem:[%s8386_s5 + $0x5a8] sm:$0xff] }
 0x363   : > { %6476 = vst.msk [vmem:[%s8472_s10 + $0x558] sm:$0xf] %vm6133_vm3, %v5963_v40  ;;  %v5836_v10 = vpack.c.bf16 %v5324_v9, %v5324_v9  ;;  %v3662_v11 = vpop.f32.mrf.mxu2  ;;  %v3982_v12 = vpop.f32.mrf.mxu3  ;;  %v8266_v1 = vld [vmem:[%s8386_s5 + $0x7a8] sm:$0xff] }
 0x364   : > { %6604 = vst.msk [vmem:[%s8472_s10 + $0x758] sm:$0xf] %vm6133_vm3, %v6091_v7  ;;  %v3663_v16 = vadd.f32 %v9777_v51, %v3662_v11  ;;  %v3983_v17 = vadd.f32 %v9777_v51, %v3982_v12  ;;  %v3025_v18 = vpop.f32.mrf.mxu0  ;;  %v3345_v19 = vpop.f32.mrf.mxu1 }
 0x365   : > { %6221 = vst.msk [vmem:[%s8472_s10 + $0x15c] sm:$0xf] %vm6133_vm3, %v5708_v8  ;;  %v3026_v21 = vadd.f32 %v9777_v51, %v3025_v18  ;;  %v3346_v22 = vadd.f32 %v9777_v51, %v3345_v19 }
 0x366   : > { %6349 = vst.msk [vmem:[%s8472_s10 + $0x35c] sm:$0xf] %vm6133_vm3, %v5836_v10  ;;  %vm4428_vm1 = vcmp.gt.f32.partialorder %v3663_v16, 0.0  ;;  %v4940_v23 = vmul.f32 0.2, %v3663_v16  ;;  %vm4556_vm2 = vcmp.gt.f32.partialorder %v3983_v17, 0.0 }
 0x367   : > { %v5068_v24 = vmul.f32 0.2, %v3983_v17  ;;  %vm4173_vm4 = vcmp.gt.f32.partialorder %v3026_v21, 0.0  ;;  %v4685_v25 = vmul.f32 0.2, %v3026_v21  ;;  %vm4301_vm5 = vcmp.gt.f32.partialorder %v3346_v22, 0.0  ;;  %7815 = vmatmul.msk.bf16.gmra.mxu0 %vm2027_vm0, %v8073_v14  ;;  %7879 = vmatmul.msk.bf16.gmra.mxu1 %vm2027_vm0, %v8137_v15 }
 0x368   : > { %v5452_v26 = vsel %vm4428_vm1, %v3663_v16, %v4940_v23  ;;  %v4813_v27 = vmul.f32 0.2, %v3346_v22  ;;  %7943 = vmatmul.msk.bf16.gmra.mxu2 %vm2027_vm0, %v8201_v39  ;;  %8007 = vmatmul.msk.bf16.gmra.mxu3 %vm2027_vm0, %v8265_v20 }
 0x369   : > { %v5964_v29 = vpack.c.bf16 %v5452_v26, %v5452_v26  ;;  %v5580_v30 = vsel %vm4556_vm2, %v3983_v17, %v5068_v24  ;;  %v5197_v2 = vsel %vm4173_vm4, %v3026_v21, %v4685_v25 }
 0x36a   : > { %v6092_v31 = vpack.c.bf16 %v5580_v30, %v5580_v30  ;;  %v5709_v32 = vpack.c.bf16 %v5197_v2, %v5197_v2  ;;  %v5325_v33 = vsel %vm4301_vm5, %v3346_v22, %v4813_v27 }
 0x36b   : > { %6477 = vst.msk [vmem:[%s8472_s10 + $0x55c] sm:$0xf] %vm6133_vm3, %v5964_v29  ;;  %v5837_v34 = vpack.c.bf16 %v5325_v33, %v5325_v33  ;;  %v3665_v35 = vpop.f32.mrf.mxu2  ;;  %v3985_v36 = vpop.f32.mrf.mxu3 }
 0x36c   : > { %6605 = vst.msk [vmem:[%s8472_s10 + $0x75c] sm:$0xf] %vm6133_vm3, %v6092_v31  ;;  %v3666_v37 = vadd.f32 %v9777_v51, %v3665_v35  ;;  %v3986_v38 = vadd.f32 %v9777_v51, %v3985_v36  ;;  %v3027_v41 = vpop.f32.mrf.mxu0  ;;  %v3347_v42 = vpop.f32.mrf.mxu1 }
 0x36d   : > { %6222 = vst.msk [vmem:[%s8472_s10 + $0x160] sm:$0xf] %vm6133_vm3, %v5709_v32  ;;  %v3028_v13 = vadd.f32 %v9777_v51, %v3027_v41  ;;  %v3348_v43 = vadd.f32 %v9777_v51, %v3347_v42  ;;  %v8139_v41 = vld [vmem:[%s8386_s5 + $0x3b0] sm:$0xff] }
 0x36e   : > { %6350 = vst.msk [vmem:[%s8472_s10 + $0x360] sm:$0xf] %vm6133_vm3, %v5837_v34  ;;  %vm4429_vm6 = vcmp.gt.f32.partialorder %v3666_v37, 0.0  ;;  %v4941_v44 = vmul.f32 0.2, %v3666_v37  ;;  %vm4557_vm7 = vcmp.gt.f32.partialorder %v3986_v38, 0.0 }
 0x36f   : > { %v5069_v45 = vmul.f32 0.2, %v3986_v38  ;;  %vm4174_vm8 = vcmp.gt.f32.partialorder %v3028_v13, 0.0  ;;  %v4686_v46 = vmul.f32 0.2, %v3028_v13  ;;  %vm4302_vm9 = vcmp.gt.f32.partialorder %v3348_v43, 0.0 }
 0x370   : > { %v5453_v47 = vsel %vm4429_vm6, %v3666_v37, %v4941_v44  ;;  %v4814_v48 = vmul.f32 0.2, %v3348_v43 }
 0x371   : > { %v5965_v49 = vpack.c.bf16 %v5453_v47, %v5453_v47  ;;  %v5581_v50 = vsel %vm4557_vm7, %v3986_v38, %v5069_v45  ;;  %v5198_v52 = vsel %vm4174_vm8, %v3028_v13, %v4686_v46  ;;  %v8075_v38 = vld [vmem:[%s8386_s5 + $0x1b0] sm:$0xff] }
 0x372   : > { %v6093_v53 = vpack.c.bf16 %v5581_v50, %v5581_v50  ;;  %v5710_v54 = vpack.c.bf16 %v5198_v52, %v5198_v52  ;;  %v5326_v55 = vsel %vm4302_vm9, %v3348_v43, %v4814_v48  ;;  %v8203_v45 = vld [vmem:[%s8386_s5 + $0x5b0] sm:$0xff] }
 0x373   : > { %6478 = vst.msk [vmem:[%s8472_s10 + $0x560] sm:$0xf] %vm6133_vm3, %v5965_v49  ;;  %v5838_v56 = vpack.c.bf16 %v5326_v55, %v5326_v55  ;;  %v3667_v57 = vpop.f32.mrf.mxu2  ;;  %v3987_v28 = vpop.f32.mrf.mxu3  ;;  %v8267_v46 = vld [vmem:[%s8386_s5 + $0x7b0] sm:$0xff] }
 0x374   : > { %6606 = vst.msk [vmem:[%s8472_s10 + $0x760] sm:$0xf] %vm6133_vm3, %v6093_v53  ;;  %v3668_v60 = vadd.f32 %v9777_v51, %v3667_v57  ;;  %v3988_v61 = vadd.f32 %v9777_v51, %v3987_v28  ;;  %v3030_v62 = vpop.f32.mrf.mxu0  ;;  %v3350_v63 = vpop.f32.mrf.mxu1 }
 0x375   : > { %6223 = vst.msk [vmem:[%s8472_s10 + $0x164] sm:$0xf] %vm6133_vm3, %v5710_v54  ;;  %v3031_v3 = vadd.f32 %v9777_v51, %v3030_v62  ;;  %v3351_v4 = vadd.f32 %v9777_v51, %v3350_v63 }
 0x376   : > { %6351 = vst.msk [vmem:[%s8472_s10 + $0x364] sm:$0xf] %vm6133_vm3, %v5838_v56  ;;  %vm4430_vm10 = vcmp.gt.f32.partialorder %v3668_v60, 0.0  ;;  %v4942_v40 = vmul.f32 0.2, %v3668_v60  ;;  %vm4558_vm11 = vcmp.gt.f32.partialorder %v3988_v61, 0.0 }
 0x377   : > { %v5070_v5 = vmul.f32 0.2, %v3988_v61  ;;  %vm4175_vm12 = vcmp.gt.f32.partialorder %v3031_v3, 0.0  ;;  %v4687_v6 = vmul.f32 0.2, %v3031_v3  ;;  %vm4303_vm13 = vcmp.gt.f32.partialorder %v3351_v4, 0.0  ;;  %7816 = vmatmul.msk.bf16.gmra.mxu0 %vm2027_vm0, %v8074_v58  ;;  %7880 = vmatmul.msk.bf16.gmra.mxu1 %vm2027_vm0, %v8138_v59 }
 0x378   : > { %v5454_v7 = vsel %vm4430_vm10, %v3668_v60, %v4942_v40  ;;  %v4815_v8 = vmul.f32 0.2, %v3351_v4  ;;  %7944 = vmatmul.msk.bf16.gmra.mxu2 %vm2027_vm0, %v8202_v0  ;;  %8008 = vmatmul.msk.bf16.gmra.mxu3 %vm2027_vm0, %v8266_v1 }
 0x379   : > { %v5966_v9 = vpack.c.bf16 %v5454_v7, %v5454_v7  ;;  %v5582_v10 = vsel %vm4558_vm11, %v3988_v61, %v5070_v5  ;;  %v5199_v11 = vsel %vm4175_vm12, %v3031_v3, %v4687_v6 }
 0x37a   : > { %v6094_v12 = vpack.c.bf16 %v5582_v10, %v5582_v10  ;;  %v5711_v14 = vpack.c.bf16 %v5199_v11, %v5199_v11  ;;  %v5327_v15 = vsel %vm4303_vm13, %v3351_v4, %v4815_v8 }
 0x37b   : > { %6479 = vst.msk [vmem:[%s8472_s10 + $0x564] sm:$0xf] %vm6133_vm3, %v5966_v9  ;;  %v5839_v16 = vpack.c.bf16 %v5327_v15, %v5327_v15  ;;  %v3670_v17 = vpop.f32.mrf.mxu2  ;;  %v3990_v18 = vpop.f32.mrf.mxu3 }
 0x37c   : > { %6607 = vst.msk [vmem:[%s8472_s10 + $0x764] sm:$0xf] %vm6133_vm3, %v6094_v12  ;;  %v3671_v19 = vadd.f32 %v9777_v51, %v3670_v17  ;;  %v3991_v39 = vadd.f32 %v9777_v51, %v3990_v18  ;;  %v3032_v20 = vpop.f32.mrf.mxu0  ;;  %v3352_v21 = vpop.f32.mrf.mxu1 }
 0x37d   : > { %6224 = vst.msk [vmem:[%s8472_s10 + $0x168] sm:$0xf] %vm6133_vm3, %v5711_v14  ;;  %v3033_v22 = vadd.f32 %v9777_v51, %v3032_v20  ;;  %v3353_v23 = vadd.f32 %v9777_v51, %v3352_v21  ;;  %v8140_v20 = vld [vmem:[%s8386_s5 + $0x3b8] sm:$0xff] }
 0x37e   : > { %6352 = vst.msk [vmem:[%s8472_s10 + $0x368] sm:$0xf] %vm6133_vm3, %v5839_v16  ;;  %vm4431_vm14 = vcmp.gt.f32.partialorder %v3671_v19, 0.0  ;;  %v4943_v24 = vmul.f32 0.2, %v3671_v19  ;;  %vm4559_vm15 = vcmp.gt.f32.partialorder %v3991_v39, 0.0 }
 0x37f   : > { %v5071_v25 = vmul.f32 0.2, %v3991_v39  ;;  %vm4176_vm1 = vcmp.gt.f32.partialorder %v3033_v22, 0.0  ;;  %v4688_v26 = vmul.f32 0.2, %v3033_v22  ;;  %vm4304_vm2 = vcmp.gt.f32.partialorder %v3353_v23, 0.0 }
 0x380   : > { %v5455_v27 = vsel %vm4431_vm14, %v3671_v19, %v4943_v24  ;;  %v4816_v29 = vmul.f32 0.2, %v3353_v23 }
 0x381   : > { %v5967_v30 = vpack.c.bf16 %v5455_v27, %v5455_v27  ;;  %v5583_v2 = vsel %vm4559_vm15, %v3991_v39, %v5071_v25  ;;  %v5200_v31 = vsel %vm4176_vm1, %v3033_v22, %v4688_v26  ;;  %v8076_v39 = vld [vmem:[%s8386_s5 + $0x1b8] sm:$0xff] }
 0x382   : > { %v6095_v32 = vpack.c.bf16 %v5583_v2, %v5583_v2  ;;  %v5712_v33 = vpack.c.bf16 %v5200_v31, %v5200_v31  ;;  %v5328_v34 = vsel %vm4304_vm2, %v3353_v23, %v4816_v29  ;;  %v8204_v25 = vld [vmem:[%s8386_s5 + $0x5b8] sm:$0xff] }
 0x383   : > { %6480 = vst.msk [vmem:[%s8472_s10 + $0x568] sm:$0xf] %vm6133_vm3, %v5967_v30  ;;  %v5840_v35 = vpack.c.bf16 %v5328_v34, %v5328_v34  ;;  %v3672_v36 = vpop.f32.mrf.mxu2  ;;  %v3992_v37 = vpop.f32.mrf.mxu3  ;;  %v8268_v26 = vld [vmem:[%s8386_s5 + $0x7b8] sm:$0xff] }
 0x384   : > { %6608 = vst.msk [vmem:[%s8472_s10 + $0x768] sm:$0xf] %vm6133_vm3, %v6095_v32  ;;  %v3673_v42 = vadd.f32 %v9777_v51, %v3672_v36  ;;  %v3993_v13 = vadd.f32 %v9777_v51, %v3992_v37  ;;  %v3035_v43 = vpop.f32.mrf.mxu0  ;;  %v3355_v44 = vpop.f32.mrf.mxu1 }
 0x385   : > { %6225 = vst.msk [vmem:[%s8472_s10 + $0x16c] sm:$0xf] %vm6133_vm3, %v5712_v33  ;;  %v3036_v47 = vadd.f32 %v9777_v51, %v3035_v43  ;;  %v3356_v48 = vadd.f32 %v9777_v51, %v3355_v44 }
 0x386   : > { %6353 = vst.msk [vmem:[%s8472_s10 + $0x36c] sm:$0xf] %vm6133_vm3, %v5840_v35  ;;  %vm4432_vm4 = vcmp.gt.f32.partialorder %v3673_v42, 0.0  ;;  %v4944_v49 = vmul.f32 0.2, %v3673_v42  ;;  %vm4560_vm5 = vcmp.gt.f32.partialorder %v3993_v13, 0.0 }
 0x387   : > { %v5072_v50 = vmul.f32 0.2, %v3993_v13  ;;  %vm4177_vm6 = vcmp.gt.f32.partialorder %v3036_v47, 0.0  ;;  %v4689_v52 = vmul.f32 0.2, %v3036_v47  ;;  %vm4305_vm7 = vcmp.gt.f32.partialorder %v3356_v48, 0.0  ;;  %7817 = vmatmul.msk.bf16.gmra.mxu0 %vm2027_vm0, %v8075_v38  ;;  %7881 = vmatmul.msk.bf16.gmra.mxu1 %vm2027_vm0, %v8139_v41 }
 0x388   : > { %v5456_v53 = vsel %vm4432_vm4, %v3673_v42, %v4944_v49  ;;  %v4817_v54 = vmul.f32 0.2, %v3356_v48  ;;  %7945 = vmatmul.msk.bf16.gmra.mxu2 %vm2027_vm0, %v8203_v45  ;;  %8009 = vmatmul.msk.bf16.gmra.mxu3 %vm2027_vm0, %v8267_v46 }
 0x389   : > { %v5968_v55 = vpack.c.bf16 %v5456_v53, %v5456_v53  ;;  %v5584_v56 = vsel %vm4560_vm5, %v3993_v13, %v5072_v50  ;;  %v5201_v57 = vsel %vm4177_vm6, %v3036_v47, %v4689_v52 }
 0x38a   : > { %v6096_v28 = vpack.c.bf16 %v5584_v56, %v5584_v56  ;;  %v5713_v58 = vpack.c.bf16 %v5201_v57, %v5201_v57  ;;  %v5329_v59 = vsel %vm4305_vm7, %v3356_v48, %v4817_v54 }
 0x38b   : > { %6481 = vst.msk [vmem:[%s8472_s10 + $0x56c] sm:$0xf] %vm6133_vm3, %v5968_v55  ;;  %v5841_v60 = vpack.c.bf16 %v5329_v59, %v5329_v59  ;;  %v3675_v61 = vpop.f32.mrf.mxu2  ;;  %v3995_v62 = vpop.f32.mrf.mxu3 }
 0x38c   : > { %6609 = vst.msk [vmem:[%s8472_s10 + $0x76c] sm:$0xf] %vm6133_vm3, %v6096_v28  ;;  %v3676_v63 = vadd.f32 %v9777_v51, %v3675_v61  ;;  %v3996_v0 = vadd.f32 %v9777_v51, %v3995_v62  ;;  %v3037_v1 = vpop.f32.mrf.mxu0  ;;  %v3357_v3 = vpop.f32.mrf.mxu1 }
 0x38d   : > { %6226 = vst.msk [vmem:[%s8472_s10 + $0x170] sm:$0xf] %vm6133_vm3, %v5713_v58  ;;  %v3038_v4 = vadd.f32 %v9777_v51, %v3037_v1  ;;  %v3358_v40 = vadd.f32 %v9777_v51, %v3357_v3  ;;  %v8141_v1 = vld [vmem:[%s8386_s5 + $0x3c0] sm:$0xff] }
 0x38e   : > { %6354 = vst.msk [vmem:[%s8472_s10 + $0x370] sm:$0xf] %vm6133_vm3, %v5841_v60  ;;  %vm4433_vm8 = vcmp.gt.f32.partialorder %v3676_v63, 0.0  ;;  %v4945_v5 = vmul.f32 0.2, %v3676_v63  ;;  %vm4561_vm9 = vcmp.gt.f32.partialorder %v3996_v0, 0.0 }
 0x38f   : > { %v5073_v6 = vmul.f32 0.2, %v3996_v0  ;;  %vm4178_vm10 = vcmp.gt.f32.partialorder %v3038_v4, 0.0  ;;  %v4690_v7 = vmul.f32 0.2, %v3038_v4  ;;  %vm4306_vm11 = vcmp.gt.f32.partialorder %v3358_v40, 0.0 }
 0x390   : > { %v5457_v8 = vsel %vm4433_vm8, %v3676_v63, %v4945_v5  ;;  %v4818_v9 = vmul.f32 0.2, %v3358_v40 }
 0x391   : > { %v5969_v10 = vpack.c.bf16 %v5457_v8, %v5457_v8  ;;  %v5585_v11 = vsel %vm4561_vm9, %v3996_v0, %v5073_v6  ;;  %v5202_v12 = vsel %vm4178_vm10, %v3038_v4, %v4690_v7  ;;  %v8077_v0 = vld [vmem:[%s8386_s5 + $0x1c0] sm:$0xff] }
 0x392   : > { %v6097_v14 = vpack.c.bf16 %v5585_v11, %v5585_v11  ;;  %v5714_v15 = vpack.c.bf16 %v5202_v12, %v5202_v12  ;;  %v5330_v16 = vsel %vm4306_vm11, %v3358_v40, %v4818_v9  ;;  %v8205_v6 = vld [vmem:[%s8386_s5 + $0x5c0] sm:$0xff] }
 0x393   : > { %6482 = vst.msk [vmem:[%s8472_s10 + $0x570] sm:$0xf] %vm6133_vm3, %v5969_v10  ;;  %v5842_v17 = vpack.c.bf16 %v5330_v16, %v5330_v16  ;;  %v3677_v18 = vpop.f32.mrf.mxu2  ;;  %v3997_v19 = vpop.f32.mrf.mxu3  ;;  %v8269_v7 = vld [vmem:[%s8386_s5 + $0x7c0] sm:$0xff] }
 0x394   : > { %6610 = vst.msk [vmem:[%s8472_s10 + $0x770] sm:$0xf] %vm6133_vm3, %v6097_v14  ;;  %v3678_v21 = vadd.f32 %v9777_v51, %v3677_v18  ;;  %v3998_v22 = vadd.f32 %v9777_v51, %v3997_v19  ;;  %v3040_v23 = vpop.f32.mrf.mxu0  ;;  %v3360_v24 = vpop.f32.mrf.mxu1 }
 0x395   : > { %6227 = vst.msk [vmem:[%s8472_s10 + $0x174] sm:$0xf] %vm6133_vm3, %v5714_v15  ;;  %v3041_v27 = vadd.f32 %v9777_v51, %v3040_v23  ;;  %v3361_v29 = vadd.f32 %v9777_v51, %v3360_v24  ;;  %v10038_v23 = vld [vmem:[%s10488_s2] ss:$0 sm:$0xff] }
 0x396   : > { %6355 = vst.msk [vmem:[%s8472_s10 + $0x374] sm:$0xf] %vm6133_vm3, %v5842_v17  ;;  %vm4434_vm12 = vcmp.gt.f32.partialorder %v3678_v21, 0.0  ;;  %v4946_v30 = vmul.f32 0.2, %v3678_v21  ;;  %vm4562_vm13 = vcmp.gt.f32.partialorder %v3998_v22, 0.0 }
 0x397   : > { %v5074_v2 = vmul.f32 0.2, %v3998_v22  ;;  %vm4179_vm14 = vcmp.gt.f32.partialorder %v3041_v27, 0.0  ;;  %v4691_v31 = vmul.f32 0.2, %v3041_v27  ;;  %vm4307_vm15 = vcmp.gt.f32.partialorder %v3361_v29, 0.0  ;;  %7818 = vmatmul.msk.bf16.gmra.mxu0 %vm2027_vm0, %v8076_v39  ;;  %7882 = vmatmul.msk.bf16.gmra.mxu1 %vm2027_vm0, %v8140_v20 }
 0x398   : > { %v5458_v32 = vsel %vm4434_vm12, %v3678_v21, %v4946_v30  ;;  %v4819_v33 = vmul.f32 0.2, %v3361_v29  ;;  %7946 = vmatmul.msk.bf16.gmra.mxu2 %vm2027_vm0, %v8204_v25  ;;  %8010 = vmatmul.msk.bf16.gmra.mxu3 %vm2027_vm0, %v8268_v26 }
 0x399   : > { %v5970_v34 = vpack.c.bf16 %v5458_v32, %v5458_v32  ;;  %v5586_v35 = vsel %vm4562_vm13, %v3998_v22, %v5074_v2  ;;  %v5203_v36 = vsel %vm4179_vm14, %v3041_v27, %v4691_v31 }
 0x39a   : > { %v6098_v37 = vpack.c.bf16 %v5586_v35, %v5586_v35  ;;  %v5715_v38 = vpack.c.bf16 %v5203_v36, %v5203_v36  ;;  %v5331_v41 = vsel %vm4307_vm15, %v3361_v29, %v4819_v33 }
 0x39b   : > { %6483 = vst.msk [vmem:[%s8472_s10 + $0x574] sm:$0xf] %vm6133_vm3, %v5970_v34  ;;  %v5843_v42 = vpack.c.bf16 %v5331_v41, %v5331_v41  ;;  %v3680_v13 = vpop.f32.mrf.mxu2  ;;  %v4000_v43 = vpop.f32.mrf.mxu3 }
 0x39c   : > { %6611 = vst.msk [vmem:[%s8472_s10 + $0x774] sm:$0xf] %vm6133_vm3, %v6098_v37  ;;  %v3681_v44 = vadd.f32 %v9777_v51, %v3680_v13  ;;  %v4001_v45 = vadd.f32 %v9777_v51, %v4000_v43  ;;  %v3042_v46 = vpop.f32.mrf.mxu0  ;;  %v3362_v47 = vpop.f32.mrf.mxu1 }
 0x39d   : > { %6228 = vst.msk [vmem:[%s8472_s10 + $0x178] sm:$0xf] %vm6133_vm3, %v5715_v38  ;;  %v3043_v48 = vadd.f32 %v9777_v51, %v3042_v46  ;;  %v3363_v49 = vadd.f32 %v9777_v51, %v3362_v47  ;;  %v8142_v46 = vld [vmem:[%s8386_s5 + $0x3c8] sm:$0xff] }
 0x39e   : > { %6356 = vst.msk [vmem:[%s8472_s10 + $0x378] sm:$0xf] %vm6133_vm3, %v5843_v42  ;;  %vm4435_vm1 = vcmp.gt.f32.partialorder %v3681_v44, 0.0  ;;  %v4947_v50 = vmul.f32 0.2, %v3681_v44  ;;  %vm4563_vm2 = vcmp.gt.f32.partialorder %v4001_v45, 0.0 }
 0x39f   : > { %v5075_v52 = vmul.f32 0.2, %v4001_v45  ;;  %vm4180_vm4 = vcmp.gt.f32.partialorder %v3043_v48, 0.0  ;;  %v4692_v53 = vmul.f32 0.2, %v3043_v48  ;;  %vm4308_vm5 = vcmp.gt.f32.partialorder %v3363_v49, 0.0 }
 0x3a0   : > { %v5459_v54 = vsel %vm4435_vm1, %v3681_v44, %v4947_v50  ;;  %v4820_v55 = vmul.f32 0.2, %v3363_v49 }
 0x3a1   : > { %v5971_v56 = vpack.c.bf16 %v5459_v54, %v5459_v54  ;;  %v5587_v57 = vsel %vm4563_vm2, %v4001_v45, %v5075_v52  ;;  %v5204_v28 = vsel %vm4180_vm4, %v3043_v48, %v4692_v53  ;;  %v8078_v45 = vld [vmem:[%s8386_s5 + $0x1c8] sm:$0xff] }
 0x3a2   : > { %v6099_v58 = vpack.c.bf16 %v5587_v57, %v5587_v57  ;;  %v5716_v59 = vpack.c.bf16 %v5204_v28, %v5204_v28  ;;  %v5332_v60 = vsel %vm4308_vm5, %v3363_v49, %v4820_v55  ;;  %v8206_v52 = vld [vmem:[%s8386_s5 + $0x5c8] sm:$0xff] }
 0x3a3   : > { %6484 = vst.msk [vmem:[%s8472_s10 + $0x578] sm:$0xf] %vm6133_vm3, %v5971_v56  ;;  %v5844_v61 = vpack.c.bf16 %v5332_v60, %v5332_v60  ;;  %v3682_v62 = vpop.f32.mrf.mxu2  ;;  %v4002_v63 = vpop.f32.mrf.mxu3  ;;  %v8270_v53 = vld [vmem:[%s8386_s5 + $0x7c8] sm:$0xff] }
 0x3a4   : > { %6612 = vst.msk [vmem:[%s8472_s10 + $0x778] sm:$0xf] %vm6133_vm3, %v6099_v58  ;;  %v3683_v3 = vadd.f32 %v9777_v51, %v3682_v62  ;;  %v4003_v4 = vadd.f32 %v9777_v51, %v4002_v63  ;;  %v3045_v40 = vpop.f32.mrf.mxu0  ;;  %v3365_v5 = vpop.f32.mrf.mxu1 }
 0x3a5   : > { %6229 = vst.msk [vmem:[%s8472_s10 + $0x17c] sm:$0xf] %vm6133_vm3, %v5716_v59  ;;  %v3046_v8 = vadd.f32 %v9777_v51, %v3045_v40  ;;  %v3366_v9 = vadd.f32 %v9777_v51, %v3365_v5 }
 0x3a6   : > { %6357 = vst.msk [vmem:[%s8472_s10 + $0x37c] sm:$0xf] %vm6133_vm3, %v5844_v61  ;;  %vm4436_vm6 = vcmp.gt.f32.partialorder %v3683_v3, 0.0  ;;  %v4948_v10 = vmul.f32 0.2, %v3683_v3  ;;  %vm4564_vm7 = vcmp.gt.f32.partialorder %v4003_v4, 0.0 }
 0x3a7   : > { %v5076_v11 = vmul.f32 0.2, %v4003_v4  ;;  %vm4181_vm8 = vcmp.gt.f32.partialorder %v3046_v8, 0.0  ;;  %v4693_v12 = vmul.f32 0.2, %v3046_v8  ;;  %vm4309_vm9 = vcmp.gt.f32.partialorder %v3366_v9, 0.0  ;;  %7819 = vmatmul.msk.bf16.gmra.mxu0 %vm2027_vm0, %v8077_v0  ;;  %7883 = vmatmul.msk.bf16.gmra.mxu1 %vm2027_vm0, %v8141_v1 }
 0x3a8   : > { %v5460_v14 = vsel %vm4436_vm6, %v3683_v3, %v4948_v10  ;;  %v4821_v15 = vmul.f32 0.2, %v3366_v9  ;;  %7947 = vmatmul.msk.bf16.gmra.mxu2 %vm2027_vm0, %v8205_v6  ;;  %8011 = vmatmul.msk.bf16.gmra.mxu3 %vm2027_vm0, %v8269_v7 }
 0x3a9   : > { %v5972_v51 = vpack.c.bf16 %v5460_v14, %v5460_v14  ;;  %v5588_v16 = vsel %vm4564_vm7, %v4003_v4, %v5076_v11  ;;  %v5205_v17 = vsel %vm4181_vm8, %v3046_v8, %v4693_v12 }
 0x3aa   : > { %v6100_v18 = vpack.c.bf16 %v5588_v16, %v5588_v16  ;;  %v5717_v19 = vpack.c.bf16 %v5205_v17, %v5205_v17  ;;  %v5333_v39 = vsel %vm4309_vm9, %v3366_v9, %v4821_v15 }
 0x3ab   : > { %6485 = vst.msk [vmem:[%s8472_s10 + $0x57c] sm:$0xf] %vm6133_vm3, %v5972_v51  ;;  %v5845_v20 = vpack.c.bf16 %v5333_v39, %v5333_v39  ;;  %v3685_v21 = vpop.f32.mrf.mxu2  ;;  %v4005_v22 = vpop.f32.mrf.mxu3 }
 0x3ac   : > { %6613 = vst.msk [vmem:[%s8472_s10 + $0x77c] sm:$0xf] %vm6133_vm3, %v6100_v18  ;;  %v3686_v24 = vadd.f32 %v10038_v23, %v3685_v21  ;;  %v4006_v25 = vadd.f32 %v10038_v23, %v4005_v22  ;;  %v3047_v26 = vpop.f32.mrf.mxu0  ;;  %v3367_v27 = vpop.f32.mrf.mxu1 }
 0x3ad   : > { %6230 = vst.msk [vmem:[%s8472_s10 + $0x180] sm:$0xf] %vm6133_vm3, %v5717_v19  ;;  %v3048_v29 = vadd.f32 %v10038_v23, %v3047_v26  ;;  %v3368_v30 = vadd.f32 %v10038_v23, %v3367_v27  ;;  %v8143_v26 = vld [vmem:[%s8386_s5 + $0x3d0] sm:$0xff] }
 0x3ae   : > { %6358 = vst.msk [vmem:[%s8472_s10 + $0x380] sm:$0xf] %vm6133_vm3, %v5845_v20  ;;  %vm4437_vm10 = vcmp.gt.f32.partialorder %v3686_v24, 0.0  ;;  %v4949_v2 = vmul.f32 0.2, %v3686_v24  ;;  %vm4565_vm11 = vcmp.gt.f32.partialorder %v4006_v25, 0.0 }
 0x3af   : > { %v5077_v31 = vmul.f32 0.2, %v4006_v25  ;;  %vm4182_vm12 = vcmp.gt.f32.partialorder %v3048_v29, 0.0  ;;  %v4694_v32 = vmul.f32 0.2, %v3048_v29  ;;  %vm4310_vm13 = vcmp.gt.f32.partialorder %v3368_v30, 0.0 }
 0x3b0   : > { %v5461_v33 = vsel %vm4437_vm10, %v3686_v24, %v4949_v2  ;;  %v4822_v34 = vmul.f32 0.2, %v3368_v30 }
 0x3b1   : > { %v5973_v35 = vpack.c.bf16 %v5461_v33, %v5461_v33  ;;  %v5589_v36 = vsel %vm4565_vm11, %v4006_v25, %v5077_v31  ;;  %v5206_v37 = vsel %vm4182_vm12, %v3048_v29, %v4694_v32  ;;  %v8079_v25 = vld [vmem:[%s8386_s5 + $0x1d0] sm:$0xff] }
 0x3b2   : > { %v6101_v38 = vpack.c.bf16 %v5589_v36, %v5589_v36  ;;  %v5718_v41 = vpack.c.bf16 %v5206_v37, %v5206_v37  ;;  %v5334_v42 = vsel %vm4310_vm13, %v3368_v30, %v4822_v34  ;;  %v8207_v31 = vld [vmem:[%s8386_s5 + $0x5d0] sm:$0xff] }
 0x3b3   : > { %6486 = vst.msk [vmem:[%s8472_s10 + $0x580] sm:$0xf] %vm6133_vm3, %v5973_v35  ;;  %v5846_v13 = vpack.c.bf16 %v5334_v42, %v5334_v42  ;;  %v3687_v43 = vpop.f32.mrf.mxu2  ;;  %v4007_v44 = vpop.f32.mrf.mxu3  ;;  %v8271_v32 = vld [vmem:[%s8386_s5 + $0x7d0] sm:$0xff] }
 0x3b4   : > { %6614 = vst.msk [vmem:[%s8472_s10 + $0x780] sm:$0xf] %vm6133_vm3, %v6101_v38  ;;  %v3688_v47 = vadd.f32 %v10038_v23, %v3687_v43  ;;  %v4008_v48 = vadd.f32 %v10038_v23, %v4007_v44  ;;  %v3050_v49 = vpop.f32.mrf.mxu0  ;;  %v3370_v50 = vpop.f32.mrf.mxu1 }
 0x3b5   : > { %6231 = vst.msk [vmem:[%s8472_s10 + $0x184] sm:$0xf] %vm6133_vm3, %v5718_v41  ;;  %v3051_v54 = vadd.f32 %v10038_v23, %v3050_v49  ;;  %v3371_v55 = vadd.f32 %v10038_v23, %v3370_v50 }
 0x3b6   : > { %6359 = vst.msk [vmem:[%s8472_s10 + $0x384] sm:$0xf] %vm6133_vm3, %v5846_v13  ;;  %vm4438_vm14 = vcmp.gt.f32.partialorder %v3688_v47, 0.0  ;;  %v4950_v56 = vmul.f32 0.2, %v3688_v47  ;;  %vm4566_vm15 = vcmp.gt.f32.partialorder %v4008_v48, 0.0 }
 0x3b7   : > { %v5078_v57 = vmul.f32 0.2, %v4008_v48  ;;  %vm4183_vm1 = vcmp.gt.f32.partialorder %v3051_v54, 0.0  ;;  %v4695_v28 = vmul.f32 0.2, %v3051_v54  ;;  %vm4311_vm2 = vcmp.gt.f32.partialorder %v3371_v55, 0.0  ;;  %7820 = vmatmul.msk.bf16.gmra.mxu0 %vm2027_vm0, %v8078_v45  ;;  %7884 = vmatmul.msk.bf16.gmra.mxu1 %vm2027_vm0, %v8142_v46 }
 0x3b8   : > { %v5462_v58 = vsel %vm4438_vm14, %v3688_v47, %v4950_v56  ;;  %v4823_v59 = vmul.f32 0.2, %v3371_v55  ;;  %7948 = vmatmul.msk.bf16.gmra.mxu2 %vm2027_vm0, %v8206_v52  ;;  %8012 = vmatmul.msk.bf16.gmra.mxu3 %vm2027_vm0, %v8270_v53 }
 0x3b9   : > { %v5974_v60 = vpack.c.bf16 %v5462_v58, %v5462_v58  ;;  %v5590_v61 = vsel %vm4566_vm15, %v4008_v48, %v5078_v57  ;;  %v5207_v62 = vsel %vm4183_vm1, %v3051_v54, %v4695_v28 }
 0x3ba   : > { %v6102_v63 = vpack.c.bf16 %v5590_v61, %v5590_v61  ;;  %v5719_v0 = vpack.c.bf16 %v5207_v62, %v5207_v62  ;;  %v5335_v1 = vsel %vm4311_vm2, %v3371_v55, %v4823_v59 }
 0x3bb   : > { %6487 = vst.msk [vmem:[%s8472_s10 + $0x584] sm:$0xf] %vm6133_vm3, %v5974_v60  ;;  %v5847_v3 = vpack.c.bf16 %v5335_v1, %v5335_v1  ;;  %v3690_v4 = vpop.f32.mrf.mxu2  ;;  %v4010_v40 = vpop.f32.mrf.mxu3 }
 0x3bc   : > { %6615 = vst.msk [vmem:[%s8472_s10 + $0x784] sm:$0xf] %vm6133_vm3, %v6102_v63  ;;  %v3691_v5 = vadd.f32 %v10038_v23, %v3690_v4  ;;  %v4011_v6 = vadd.f32 %v10038_v23, %v4010_v40  ;;  %v3052_v7 = vpop.f32.mrf.mxu0  ;;  %v3372_v8 = vpop.f32.mrf.mxu1 }
 0x3bd   : > { %6232 = vst.msk [vmem:[%s8472_s10 + $0x188] sm:$0xf] %vm6133_vm3, %v5719_v0  ;;  %v3053_v9 = vadd.f32 %v10038_v23, %v3052_v7  ;;  %v3373_v10 = vadd.f32 %v10038_v23, %v3372_v8  ;;  %v8144_v7 = vld [vmem:[%s8386_s5 + $0x3d8] sm:$0xff] }
 0x3be   : > { %6360 = vst.msk [vmem:[%s8472_s10 + $0x388] sm:$0xf] %vm6133_vm3, %v5847_v3  ;;  %vm4439_vm4 = vcmp.gt.f32.partialorder %v3691_v5, 0.0  ;;  %v4951_v11 = vmul.f32 0.2, %v3691_v5  ;;  %vm4567_vm5 = vcmp.gt.f32.partialorder %v4011_v6, 0.0 }
 0x3bf   : > { %v5079_v12 = vmul.f32 0.2, %v4011_v6  ;;  %vm4184_vm6 = vcmp.gt.f32.partialorder %v3053_v9, 0.0  ;;  %v4696_v14 = vmul.f32 0.2, %v3053_v9  ;;  %vm4312_vm7 = vcmp.gt.f32.partialorder %v3373_v10, 0.0 }
 0x3c0   : > { %v5463_v15 = vsel %vm4439_vm4, %v3691_v5, %v4951_v11  ;;  %v4824_v51 = vmul.f32 0.2, %v3373_v10 }
 0x3c1   : > { %v5975_v16 = vpack.c.bf16 %v5463_v15, %v5463_v15  ;;  %v5591_v17 = vsel %vm4567_vm5, %v4011_v6, %v5079_v12  ;;  %v5208_v18 = vsel %vm4184_vm6, %v3053_v9, %v4696_v14  ;;  %v8080_v6 = vld [vmem:[%s8386_s5 + $0x1d8] sm:$0xff] }
 0x3c2   : > { %v6103_v19 = vpack.c.bf16 %v5591_v17, %v5591_v17  ;;  %v5720_v39 = vpack.c.bf16 %v5208_v18, %v5208_v18  ;;  %v5336_v20 = vsel %vm4312_vm7, %v3373_v10, %v4824_v51  ;;  %v8208_v12 = vld [vmem:[%s8386_s5 + $0x5d8] sm:$0xff] }
 0x3c3   : > { %6488 = vst.msk [vmem:[%s8472_s10 + $0x588] sm:$0xf] %vm6133_vm3, %v5975_v16  ;;  %v5848_v21 = vpack.c.bf16 %v5336_v20, %v5336_v20  ;;  %v3692_v22 = vpop.f32.mrf.mxu2  ;;  %v4012_v24 = vpop.f32.mrf.mxu3  ;;  %v8272_v14 = vld [vmem:[%s8386_s5 + $0x7d8] sm:$0xff] }
 0x3c4   : > { %6616 = vst.msk [vmem:[%s8472_s10 + $0x788] sm:$0xf] %vm6133_vm3, %v6103_v19  ;;  %v3693_v27 = vadd.f32 %v10038_v23, %v3692_v22  ;;  %v4013_v29 = vadd.f32 %v10038_v23, %v4012_v24  ;;  %v3055_v30 = vpop.f32.mrf.mxu0  ;;  %v3375_v2 = vpop.f32.mrf.mxu1 }
 0x3c5   : > { %6233 = vst.msk [vmem:[%s8472_s10 + $0x18c] sm:$0xf] %vm6133_vm3, %v5720_v39  ;;  %v3056_v33 = vadd.f32 %v10038_v23, %v3055_v30  ;;  %v3376_v34 = vadd.f32 %v10038_v23, %v3375_v2 }
 0x3c6   : > { %6361 = vst.msk [vmem:[%s8472_s10 + $0x38c] sm:$0xf] %vm6133_vm3, %v5848_v21  ;;  %vm4440_vm8 = vcmp.gt.f32.partialorder %v3693_v27, 0.0  ;;  %v4952_v35 = vmul.f32 0.2, %v3693_v27  ;;  %vm4568_vm9 = vcmp.gt.f32.partialorder %v4013_v29, 0.0 }
 0x3c7   : > { %v5080_v36 = vmul.f32 0.2, %v4013_v29  ;;  %vm4185_vm10 = vcmp.gt.f32.partialorder %v3056_v33, 0.0  ;;  %v4697_v37 = vmul.f32 0.2, %v3056_v33  ;;  %vm4313_vm11 = vcmp.gt.f32.partialorder %v3376_v34, 0.0  ;;  %7821 = vmatmul.msk.bf16.gmra.mxu0 %vm2027_vm0, %v8079_v25  ;;  %7885 = vmatmul.msk.bf16.gmra.mxu1 %vm2027_vm0, %v8143_v26 }
 0x3c8   : > { %v5464_v38 = vsel %vm4440_vm8, %v3693_v27, %v4952_v35  ;;  %v4825_v41 = vmul.f32 0.2, %v3376_v34  ;;  %7949 = vmatmul.msk.bf16.gmra.mxu2 %vm2027_vm0, %v8207_v31  ;;  %8013 = vmatmul.msk.bf16.gmra.mxu3 %vm2027_vm0, %v8271_v32 }
 0x3c9   : > { %v5976_v42 = vpack.c.bf16 %v5464_v38, %v5464_v38  ;;  %v5592_v13 = vsel %vm4568_vm9, %v4013_v29, %v5080_v36  ;;  %v5209_v43 = vsel %vm4185_vm10, %v3056_v33, %v4697_v37 }
 0x3ca   : > { %v6104_v44 = vpack.c.bf16 %v5592_v13, %v5592_v13  ;;  %v5721_v45 = vpack.c.bf16 %v5209_v43, %v5209_v43  ;;  %v5337_v46 = vsel %vm4313_vm11, %v3376_v34, %v4825_v41 }
 0x3cb   : > { %6489 = vst.msk [vmem:[%s8472_s10 + $0x58c] sm:$0xf] %vm6133_vm3, %v5976_v42  ;;  %v5849_v47 = vpack.c.bf16 %v5337_v46, %v5337_v46  ;;  %v3695_v48 = vpop.f32.mrf.mxu2  ;;  %v4015_v49 = vpop.f32.mrf.mxu3 }
 0x3cc   : > { %6617 = vst.msk [vmem:[%s8472_s10 + $0x78c] sm:$0xf] %vm6133_vm3, %v6104_v44  ;;  %v3696_v50 = vadd.f32 %v10038_v23, %v3695_v48  ;;  %v4016_v52 = vadd.f32 %v10038_v23, %v4015_v49  ;;  %v3057_v53 = vpop.f32.mrf.mxu0  ;;  %v3377_v54 = vpop.f32.mrf.mxu1 }
 0x3cd   : > { %6234 = vst.msk [vmem:[%s8472_s10 + $0x190] sm:$0xf] %vm6133_vm3, %v5721_v45  ;;  %v3058_v55 = vadd.f32 %v10038_v23, %v3057_v53  ;;  %v3378_v56 = vadd.f32 %v10038_v23, %v3377_v54  ;;  %v8145_v53 = vld [vmem:[%s8386_s5 + $0x3e0] sm:$0xff] }
 0x3ce   : > { %6362 = vst.msk [vmem:[%s8472_s10 + $0x390] sm:$0xf] %vm6133_vm3, %v5849_v47  ;;  %vm4441_vm12 = vcmp.gt.f32.partialorder %v3696_v50, 0.0  ;;  %v4953_v57 = vmul.f32 0.2, %v3696_v50  ;;  %vm4569_vm13 = vcmp.gt.f32.partialorder %v4016_v52, 0.0 }
 0x3cf   : > { %v5081_v28 = vmul.f32 0.2, %v4016_v52  ;;  %vm4186_vm14 = vcmp.gt.f32.partialorder %v3058_v55, 0.0  ;;  %v4698_v58 = vmul.f32 0.2, %v3058_v55  ;;  %vm4314_vm15 = vcmp.gt.f32.partialorder %v3378_v56, 0.0 }
 0x3d0   : > { %v5465_v59 = vsel %vm4441_vm12, %v3696_v50, %v4953_v57  ;;  %v4826_v60 = vmul.f32 0.2, %v3378_v56 }
 0x3d1   : > { %v5977_v61 = vpack.c.bf16 %v5465_v59, %v5465_v59  ;;  %v5593_v62 = vsel %vm4569_vm13, %v4016_v52, %v5081_v28  ;;  %v5210_v63 = vsel %vm4186_vm14, %v3058_v55, %v4698_v58  ;;  %v8081_v52 = vld [vmem:[%s8386_s5 + $0x1e0] sm:$0xff] }
 0x3d2   : > { %v6105_v0 = vpack.c.bf16 %v5593_v62, %v5593_v62  ;;  %v5722_v1 = vpack.c.bf16 %v5210_v63, %v5210_v63  ;;  %v5338_v3 = vsel %vm4314_vm15, %v3378_v56, %v4826_v60  ;;  %v8209_v28 = vld [vmem:[%s8386_s5 + $0x5e0] sm:$0xff] }
 0x3d3   : > { %6490 = vst.msk [vmem:[%s8472_s10 + $0x590] sm:$0xf] %vm6133_vm3, %v5977_v61  ;;  %v5850_v4 = vpack.c.bf16 %v5338_v3, %v5338_v3  ;;  %v3697_v40 = vpop.f32.mrf.mxu2  ;;  %v4017_v5 = vpop.f32.mrf.mxu3  ;;  %v8273_v58 = vld [vmem:[%s8386_s5 + $0x7e0] sm:$0xff] }
 0x3d4   : > { %6618 = vst.msk [vmem:[%s8472_s10 + $0x790] sm:$0xf] %vm6133_vm3, %v6105_v0  ;;  %v3698_v8 = vadd.f32 %v10038_v23, %v3697_v40  ;;  %v4018_v9 = vadd.f32 %v10038_v23, %v4017_v5  ;;  %v3060_v10 = vpop.f32.mrf.mxu0  ;;  %v3380_v11 = vpop.f32.mrf.mxu1 }
 0x3d5   : > { %6235 = vst.msk [vmem:[%s8472_s10 + $0x194] sm:$0xf] %vm6133_vm3, %v5722_v1  ;;  %v3061_v15 = vadd.f32 %v10038_v23, %v3060_v10  ;;  %v3381_v51 = vadd.f32 %v10038_v23, %v3380_v11 }
 0x3d6   : > { %6363 = vst.msk [vmem:[%s8472_s10 + $0x394] sm:$0xf] %vm6133_vm3, %v5850_v4  ;;  %vm4442_vm1 = vcmp.gt.f32.partialorder %v3698_v8, 0.0  ;;  %v4954_v16 = vmul.f32 0.2, %v3698_v8  ;;  %vm4570_vm2 = vcmp.gt.f32.partialorder %v4018_v9, 0.0 }
 0x3d7   : > { %v5082_v17 = vmul.f32 0.2, %v4018_v9  ;;  %vm4187_vm4 = vcmp.gt.f32.partialorder %v3061_v15, 0.0  ;;  %v4699_v18 = vmul.f32 0.2, %v3061_v15  ;;  %vm4315_vm5 = vcmp.gt.f32.partialorder %v3381_v51, 0.0  ;;  %7822 = vmatmul.msk.bf16.gmra.mxu0 %vm2027_vm0, %v8080_v6  ;;  %7886 = vmatmul.msk.bf16.gmra.mxu1 %vm2027_vm0, %v8144_v7 }
 0x3d8   : > { %v5466_v19 = vsel %vm4442_vm1, %v3698_v8, %v4954_v16  ;;  %v4827_v39 = vmul.f32 0.2, %v3381_v51  ;;  %7950 = vmatmul.msk.bf16.gmra.mxu2 %vm2027_vm0, %v8208_v12  ;;  %8014 = vmatmul.msk.bf16.gmra.mxu3 %vm2027_vm0, %v8272_v14 }
 0x3d9   : > { %v5978_v20 = vpack.c.bf16 %v5466_v19, %v5466_v19  ;;  %v5594_v21 = vsel %vm4570_vm2, %v4018_v9, %v5082_v17  ;;  %v5211_v22 = vsel %vm4187_vm4, %v3061_v15, %v4699_v18 }
 0x3da   : > { %v6106_v24 = vpack.c.bf16 %v5594_v21, %v5594_v21  ;;  %v5723_v25 = vpack.c.bf16 %v5211_v22, %v5211_v22  ;;  %v5339_v26 = vsel %vm4315_vm5, %v3381_v51, %v4827_v39 }
 0x3db   : > { %6491 = vst.msk [vmem:[%s8472_s10 + $0x594] sm:$0xf] %vm6133_vm3, %v5978_v20  ;;  %v5851_v27 = vpack.c.bf16 %v5339_v26, %v5339_v26  ;;  %v3700_v29 = vpop.f32.mrf.mxu2  ;;  %v4020_v30 = vpop.f32.mrf.mxu3 }
 0x3dc   : > { %6619 = vst.msk [vmem:[%s8472_s10 + $0x794] sm:$0xf] %vm6133_vm3, %v6106_v24  ;;  %v3701_v2 = vadd.f32 %v10038_v23, %v3700_v29  ;;  %v4021_v31 = vadd.f32 %v10038_v23, %v4020_v30  ;;  %v3062_v32 = vpop.f32.mrf.mxu0  ;;  %v3382_v33 = vpop.f32.mrf.mxu1 }
 0x3dd   : > { %6236 = vst.msk [vmem:[%s8472_s10 + $0x198] sm:$0xf] %vm6133_vm3, %v5723_v25  ;;  %v3063_v34 = vadd.f32 %v10038_v23, %v3062_v32  ;;  %v3383_v35 = vadd.f32 %v10038_v23, %v3382_v33  ;;  %v8146_v32 = vld [vmem:[%s8386_s5 + $0x3e8] sm:$0xff] }
 0x3de   : > { %6364 = vst.msk [vmem:[%s8472_s10 + $0x398] sm:$0xf] %vm6133_vm3, %v5851_v27  ;;  %vm4443_vm6 = vcmp.gt.f32.partialorder %v3701_v2, 0.0  ;;  %v4955_v36 = vmul.f32 0.2, %v3701_v2  ;;  %vm4571_vm7 = vcmp.gt.f32.partialorder %v4021_v31, 0.0 }
 0x3df   : > { %v5083_v37 = vmul.f32 0.2, %v4021_v31  ;;  %vm4188_vm8 = vcmp.gt.f32.partialorder %v3063_v34, 0.0  ;;  %v4700_v38 = vmul.f32 0.2, %v3063_v34  ;;  %vm4316_vm9 = vcmp.gt.f32.partialorder %v3383_v35, 0.0 }
 0x3e0   : > { %v5467_v41 = vsel %vm4443_vm6, %v3701_v2, %v4955_v36  ;;  %v4828_v42 = vmul.f32 0.2, %v3383_v35 }
 0x3e1   : > { %v5979_v13 = vpack.c.bf16 %v5467_v41, %v5467_v41  ;;  %v5595_v43 = vsel %vm4571_vm7, %v4021_v31, %v5083_v37  ;;  %v5212_v44 = vsel %vm4188_vm8, %v3063_v34, %v4700_v38  ;;  %v8082_v31 = vld [vmem:[%s8386_s5 + $0x1e8] sm:$0xff] }
 0x3e2   : > { %v6107_v45 = vpack.c.bf16 %v5595_v43, %v5595_v43  ;;  %v5724_v46 = vpack.c.bf16 %v5212_v44, %v5212_v44  ;;  %v5340_v47 = vsel %vm4316_vm9, %v3383_v35, %v4828_v42  ;;  %v8210_v37 = vld [vmem:[%s8386_s5 + $0x5e8] sm:$0xff] }
 0x3e3   : > { %6492 = vst.msk [vmem:[%s8472_s10 + $0x598] sm:$0xf] %vm6133_vm3, %v5979_v13  ;;  %v5852_v48 = vpack.c.bf16 %v5340_v47, %v5340_v47  ;;  %v3702_v49 = vpop.f32.mrf.mxu2  ;;  %v4022_v50 = vpop.f32.mrf.mxu3  ;;  %v8274_v38 = vld [vmem:[%s8386_s5 + $0x7e8] sm:$0xff] }
 0x3e4   : > { %6620 = vst.msk [vmem:[%s8472_s10 + $0x798] sm:$0xf] %vm6133_vm3, %v6107_v45  ;;  %v3703_v54 = vadd.f32 %v10038_v23, %v3702_v49  ;;  %v4023_v55 = vadd.f32 %v10038_v23, %v4022_v50  ;;  %v3065_v56 = vpop.f32.mrf.mxu0  ;;  %v3385_v57 = vpop.f32.mrf.mxu1 }
 0x3e5   : > { %6237 = vst.msk [vmem:[%s8472_s10 + $0x19c] sm:$0xf] %vm6133_vm3, %v5724_v46  ;;  %v3066_v59 = vadd.f32 %v10038_v23, %v3065_v56  ;;  %v3386_v60 = vadd.f32 %v10038_v23, %v3385_v57 }
 0x3e6   : > { %6365 = vst.msk [vmem:[%s8472_s10 + $0x39c] sm:$0xf] %vm6133_vm3, %v5852_v48  ;;  %vm4444_vm10 = vcmp.gt.f32.partialorder %v3703_v54, 0.0  ;;  %v4956_v61 = vmul.f32 0.2, %v3703_v54  ;;  %vm4572_vm11 = vcmp.gt.f32.partialorder %v4023_v55, 0.0 }
 0x3e7   : > { %v5084_v62 = vmul.f32 0.2, %v4023_v55  ;;  %vm4189_vm12 = vcmp.gt.f32.partialorder %v3066_v59, 0.0  ;;  %v4701_v63 = vmul.f32 0.2, %v3066_v59  ;;  %vm4317_vm13 = vcmp.gt.f32.partialorder %v3386_v60, 0.0  ;;  %7823 = vmatmul.msk.bf16.gmra.mxu0 %vm2027_vm0, %v8081_v52  ;;  %7887 = vmatmul.msk.bf16.gmra.mxu1 %vm2027_vm0, %v8145_v53 }
 0x3e8   : > { %v5468_v0 = vsel %vm4444_vm10, %v3703_v54, %v4956_v61  ;;  %v4829_v1 = vmul.f32 0.2, %v3386_v60  ;;  %7951 = vmatmul.msk.bf16.gmra.mxu2 %vm2027_vm0, %v8209_v28  ;;  %8015 = vmatmul.msk.bf16.gmra.mxu3 %vm2027_vm0, %v8273_v58 }
 0x3e9   : > { %v5980_v3 = vpack.c.bf16 %v5468_v0, %v5468_v0  ;;  %v5596_v4 = vsel %vm4572_vm11, %v4023_v55, %v5084_v62  ;;  %v5213_v40 = vsel %vm4189_vm12, %v3066_v59, %v4701_v63 }
 0x3ea   : > { %v6108_v5 = vpack.c.bf16 %v5596_v4, %v5596_v4  ;;  %v5725_v6 = vpack.c.bf16 %v5213_v40, %v5213_v40  ;;  %v5341_v7 = vsel %vm4317_vm13, %v3386_v60, %v4829_v1 }
 0x3eb   : > { %6493 = vst.msk [vmem:[%s8472_s10 + $0x59c] sm:$0xf] %vm6133_vm3, %v5980_v3  ;;  %v5853_v8 = vpack.c.bf16 %v5341_v7, %v5341_v7  ;;  %v3705_v9 = vpop.f32.mrf.mxu2  ;;  %v4025_v10 = vpop.f32.mrf.mxu3 }
 0x3ec   : > { %6621 = vst.msk [vmem:[%s8472_s10 + $0x79c] sm:$0xf] %vm6133_vm3, %v6108_v5  ;;  %v3706_v11 = vadd.f32 %v10038_v23, %v3705_v9  ;;  %v4026_v12 = vadd.f32 %v10038_v23, %v4025_v10  ;;  %v3067_v14 = vpop.f32.mrf.mxu0  ;;  %v3387_v15 = vpop.f32.mrf.mxu1 }
 0x3ed   : > { %6238 = vst.msk [vmem:[%s8472_s10 + $0x1a0] sm:$0xf] %vm6133_vm3, %v5725_v6  ;;  %v3068_v51 = vadd.f32 %v10038_v23, %v3067_v14  ;;  %v3388_v16 = vadd.f32 %v10038_v23, %v3387_v15  ;;  %v8147_v14 = vld [vmem:[%s8386_s5 + $0x3f0] sm:$0xff] }
 0x3ee   : > { %6366 = vst.msk [vmem:[%s8472_s10 + $0x3a0] sm:$0xf] %vm6133_vm3, %v5853_v8  ;;  %vm4445_vm14 = vcmp.gt.f32.partialorder %v3706_v11, 0.0  ;;  %v4957_v17 = vmul.f32 0.2, %v3706_v11  ;;  %vm4573_vm15 = vcmp.gt.f32.partialorder %v4026_v12, 0.0 }
 0x3ef   : > { %v5085_v18 = vmul.f32 0.2, %v4026_v12  ;;  %vm4190_vm1 = vcmp.gt.f32.partialorder %v3068_v51, 0.0  ;;  %v4702_v19 = vmul.f32 0.2, %v3068_v51  ;;  %vm4318_vm2 = vcmp.gt.f32.partialorder %v3388_v16, 0.0 }
 0x3f0   : > { %v5469_v39 = vsel %vm4445_vm14, %v3706_v11, %v4957_v17  ;;  %v4830_v20 = vmul.f32 0.2, %v3388_v16 }
 0x3f1   : > { %v5981_v21 = vpack.c.bf16 %v5469_v39, %v5469_v39  ;;  %v5597_v22 = vsel %vm4573_vm15, %v4026_v12, %v5085_v18  ;;  %v5214_v24 = vsel %vm4190_vm1, %v3068_v51, %v4702_v19  ;;  %v8083_v12 = vld [vmem:[%s8386_s5 + $0x1f0] sm:$0xff] }
 0x3f2   : > { %v6109_v25 = vpack.c.bf16 %v5597_v22, %v5597_v22  ;;  %v5726_v26 = vpack.c.bf16 %v5214_v24, %v5214_v24  ;;  %v5342_v27 = vsel %vm4318_vm2, %v3388_v16, %v4830_v20  ;;  %v8211_v18 = vld [vmem:[%s8386_s5 + $0x5f0] sm:$0xff] }
 0x3f3   : > { %6494 = vst.msk [vmem:[%s8472_s10 + $0x5a0] sm:$0xf] %vm6133_vm3, %v5981_v21  ;;  %v5854_v29 = vpack.c.bf16 %v5342_v27, %v5342_v27  ;;  %v3707_v30 = vpop.f32.mrf.mxu2  ;;  %v4027_v2 = vpop.f32.mrf.mxu3  ;;  %v8275_v19 = vld [vmem:[%s8386_s5 + $0x7f0] sm:$0xff] }
 0x3f4   : > { %6622 = vst.msk [vmem:[%s8472_s10 + $0x7a0] sm:$0xf] %vm6133_vm3, %v6109_v25  ;;  %v3708_v33 = vadd.f32 %v10038_v23, %v3707_v30  ;;  %v4028_v34 = vadd.f32 %v10038_v23, %v4027_v2  ;;  %v3070_v35 = vpop.f32.mrf.mxu0  ;;  %v3390_v36 = vpop.f32.mrf.mxu1 }
 0x3f5   : > { %6239 = vst.msk [vmem:[%s8472_s10 + $0x1a4] sm:$0xf] %vm6133_vm3, %v5726_v26  ;;  %v3071_v41 = vadd.f32 %v10038_v23, %v3070_v35  ;;  %v3391_v42 = vadd.f32 %v10038_v23, %v3390_v36 }
 0x3f6   : > { %6367 = vst.msk [vmem:[%s8472_s10 + $0x3a4] sm:$0xf] %vm6133_vm3, %v5854_v29  ;;  %vm4446_vm4 = vcmp.gt.f32.partialorder %v3708_v33, 0.0  ;;  %v4958_v13 = vmul.f32 0.2, %v3708_v33  ;;  %vm4574_vm5 = vcmp.gt.f32.partialorder %v4028_v34, 0.0 }
 0x3f7   : > { %v5086_v43 = vmul.f32 0.2, %v4028_v34  ;;  %vm4191_vm6 = vcmp.gt.f32.partialorder %v3071_v41, 0.0  ;;  %v4703_v44 = vmul.f32 0.2, %v3071_v41  ;;  %vm4319_vm7 = vcmp.gt.f32.partialorder %v3391_v42, 0.0  ;;  %7824 = vmatmul.msk.bf16.gmra.mxu0 %vm2027_vm0, %v8082_v31  ;;  %7888 = vmatmul.msk.bf16.gmra.mxu1 %vm2027_vm0, %v8146_v32 }
 0x3f8   : > { %v5470_v45 = vsel %vm4446_vm4, %v3708_v33, %v4958_v13  ;;  %v4831_v46 = vmul.f32 0.2, %v3391_v42  ;;  %7952 = vmatmul.msk.bf16.gmra.mxu2 %vm2027_vm0, %v8210_v37  ;;  %8016 = vmatmul.msk.bf16.gmra.mxu3 %vm2027_vm0, %v8274_v38 }
 0x3f9   : > { %v5982_v47 = vpack.c.bf16 %v5470_v45, %v5470_v45  ;;  %v5598_v48 = vsel %vm4574_vm5, %v4028_v34, %v5086_v43  ;;  %v5215_v49 = vsel %vm4191_vm6, %v3071_v41, %v4703_v44 }
 0x3fa   : > { %v6110_v50 = vpack.c.bf16 %v5598_v48, %v5598_v48  ;;  %v5727_v52 = vpack.c.bf16 %v5215_v49, %v5215_v49  ;;  %v5343_v53 = vsel %vm4319_vm7, %v3391_v42, %v4831_v46 }
 0x3fb   : > { %6495 = vst.msk [vmem:[%s8472_s10 + $0x5a4] sm:$0xf] %vm6133_vm3, %v5982_v47  ;;  %v5855_v54 = vpack.c.bf16 %v5343_v53, %v5343_v53  ;;  %v3710_v55 = vpop.f32.mrf.mxu2  ;;  %v4030_v56 = vpop.f32.mrf.mxu3 }
 0x3fc   : > { %6623 = vst.msk [vmem:[%s8472_s10 + $0x7a4] sm:$0xf] %vm6133_vm3, %v6110_v50  ;;  %v3711_v57 = vadd.f32 %v10038_v23, %v3710_v55  ;;  %v4031_v28 = vadd.f32 %v10038_v23, %v4030_v56  ;;  %v3072_v58 = vpop.f32.mrf.mxu0  ;;  %v3392_v59 = vpop.f32.mrf.mxu1 }
 0x3fd   : > { %6240 = vst.msk [vmem:[%s8472_s10 + $0x1a8] sm:$0xf] %vm6133_vm3, %v5727_v52  ;;  %v3073_v60 = vadd.f32 %v10038_v23, %v3072_v58  ;;  %v3393_v61 = vadd.f32 %v10038_v23, %v3392_v59  ;;  %v8148_v58 = vld [vmem:[%s8386_s5 + $0x3f8] sm:$0xff] }
 0x3fe   : > { %6368 = vst.msk [vmem:[%s8472_s10 + $0x3a8] sm:$0xf] %vm6133_vm3, %v5855_v54  ;;  %vm4447_vm8 = vcmp.gt.f32.partialorder %v3711_v57, 0.0  ;;  %v4959_v62 = vmul.f32 0.2, %v3711_v57  ;;  %vm4575_vm9 = vcmp.gt.f32.partialorder %v4031_v28, 0.0 }
 0x3ff   : > { %v5087_v63 = vmul.f32 0.2, %v4031_v28  ;;  %vm4192_vm10 = vcmp.gt.f32.partialorder %v3073_v60, 0.0  ;;  %v4704_v0 = vmul.f32 0.2, %v3073_v60  ;;  %vm4320_vm11 = vcmp.gt.f32.partialorder %v3393_v61, 0.0 }
 0x400   : > { %v5471_v1 = vsel %vm4447_vm8, %v3711_v57, %v4959_v62  ;;  %v4832_v3 = vmul.f32 0.2, %v3393_v61 }
 0x401   : > { %v5983_v4 = vpack.c.bf16 %v5471_v1, %v5471_v1  ;;  %v5599_v40 = vsel %vm4575_vm9, %v4031_v28, %v5087_v63  ;;  %v5216_v5 = vsel %vm4192_vm10, %v3073_v60, %v4704_v0  ;;  %v8084_v28 = vld [vmem:[%s8386_s5 + $0x1f8] sm:$0xff] }
 0x402   : > { %v6111_v6 = vpack.c.bf16 %v5599_v40, %v5599_v40  ;;  %v5728_v7 = vpack.c.bf16 %v5216_v5, %v5216_v5  ;;  %v5344_v8 = vsel %vm4320_vm11, %v3393_v61, %v4832_v3  ;;  %v8212_v63 = vld [vmem:[%s8386_s5 + $0x5f8] sm:$0xff] }
 0x403   : > { %6496 = vst.msk [vmem:[%s8472_s10 + $0x5a8] sm:$0xf] %vm6133_vm3, %v5983_v4  ;;  %v5856_v9 = vpack.c.bf16 %v5344_v8, %v5344_v8  ;;  %v3712_v10 = vpop.f32.mrf.mxu2  ;;  %v4032_v11 = vpop.f32.mrf.mxu3  ;;  %v8276_v0 = vld [vmem:[%s8386_s5 + $0x7f8] sm:$0xff] }
 0x404   : > { %6624 = vst.msk [vmem:[%s8472_s10 + $0x7a8] sm:$0xf] %vm6133_vm3, %v6111_v6  ;;  %v3713_v15 = vadd.f32 %v10038_v23, %v3712_v10  ;;  %v4033_v51 = vadd.f32 %v10038_v23, %v4032_v11  ;;  %v3075_v16 = vpop.f32.mrf.mxu0  ;;  %v3395_v17 = vpop.f32.mrf.mxu1 }
 0x405   : > { %6241 = vst.msk [vmem:[%s8472_s10 + $0x1ac] sm:$0xf] %vm6133_vm3, %v5728_v7  ;;  %v3076_v39 = vadd.f32 %v10038_v23, %v3075_v16  ;;  %v3396_v20 = vadd.f32 %v10038_v23, %v3395_v17 }
 0x406   : > { %6369 = vst.msk [vmem:[%s8472_s10 + $0x3ac] sm:$0xf] %vm6133_vm3, %v5856_v9  ;;  %vm4448_vm12 = vcmp.gt.f32.partialorder %v3713_v15, 0.0  ;;  %v4960_v21 = vmul.f32 0.2, %v3713_v15  ;;  %vm4576_vm13 = vcmp.gt.f32.partialorder %v4033_v51, 0.0 }
 0x407   : > { %v5088_v22 = vmul.f32 0.2, %v4033_v51  ;;  %vm4193_vm14 = vcmp.gt.f32.partialorder %v3076_v39, 0.0  ;;  %v4705_v24 = vmul.f32 0.2, %v3076_v39  ;;  %vm4321_vm15 = vcmp.gt.f32.partialorder %v3396_v20, 0.0  ;;  %7825 = vmatmul.msk.bf16.gmra.mxu0 %vm2027_vm0, %v8083_v12  ;;  %7889 = vmatmul.msk.bf16.gmra.mxu1 %vm2027_vm0, %v8147_v14 }
 0x408   : > { %v5472_v25 = vsel %vm4448_vm12, %v3713_v15, %v4960_v21  ;;  %v4833_v26 = vmul.f32 0.2, %v3396_v20  ;;  %7953 = vmatmul.msk.bf16.gmra.mxu2 %vm2027_vm0, %v8211_v18  ;;  %8017 = vmatmul.msk.bf16.gmra.mxu3 %vm2027_vm0, %v8275_v19 }
 0x409   : > { %v5984_v27 = vpack.c.bf16 %v5472_v25, %v5472_v25  ;;  %v5600_v29 = vsel %vm4576_vm13, %v4033_v51, %v5088_v22  ;;  %v5217_v30 = vsel %vm4193_vm14, %v3076_v39, %v4705_v24 }
 0x40a   : > { %v6112_v2 = vpack.c.bf16 %v5600_v29, %v5600_v29  ;;  %v5729_v31 = vpack.c.bf16 %v5217_v30, %v5217_v30  ;;  %v5345_v32 = vsel %vm4321_vm15, %v3396_v20, %v4833_v26 }
 0x40b   : > { %6497 = vst.msk [vmem:[%s8472_s10 + $0x5ac] sm:$0xf] %vm6133_vm3, %v5984_v27  ;;  %v5857_v33 = vpack.c.bf16 %v5345_v32, %v5345_v32  ;;  %v3715_v34 = vpop.f32.mrf.mxu2  ;;  %v4035_v35 = vpop.f32.mrf.mxu3 }
 0x40c   : > { %6625 = vst.msk [vmem:[%s8472_s10 + $0x7ac] sm:$0xf] %vm6133_vm3, %v6112_v2  ;;  %v3716_v36 = vadd.f32 %v10038_v23, %v3715_v34  ;;  %v4036_v37 = vadd.f32 %v10038_v23, %v4035_v35  ;;  %v3077_v38 = vpop.f32.mrf.mxu0  ;;  %v3397_v41 = vpop.f32.mrf.mxu1 }
 0x40d   : > { %6242 = vst.msk [vmem:[%s8472_s10 + $0x1b0] sm:$0xf] %vm6133_vm3, %v5729_v31  ;;  %v3078_v42 = vadd.f32 %v10038_v23, %v3077_v38  ;;  %v3398_v13 = vadd.f32 %v10038_v23, %v3397_v41 }
 0x40e   : > { %6370 = vst.msk [vmem:[%s8472_s10 + $0x3b0] sm:$0xf] %vm6133_vm3, %v5857_v33  ;;  %vm4449_vm1 = vcmp.gt.f32.partialorder %v3716_v36, 0.0  ;;  %v4961_v43 = vmul.f32 0.2, %v3716_v36  ;;  %vm4577_vm2 = vcmp.gt.f32.partialorder %v4036_v37, 0.0 }
 0x40f   : > { %v5089_v44 = vmul.f32 0.2, %v4036_v37  ;;  %vm4194_vm4 = vcmp.gt.f32.partialorder %v3078_v42, 0.0  ;;  %v4706_v45 = vmul.f32 0.2, %v3078_v42  ;;  %vm4322_vm5 = vcmp.gt.f32.partialorder %v3398_v13, 0.0 }
 0x410   : > { %v5473_v46 = vsel %vm4449_vm1, %v3716_v36, %v4961_v43  ;;  %v4834_v47 = vmul.f32 0.2, %v3398_v13 }
 0x411   : > { %v5985_v48 = vpack.c.bf16 %v5473_v46, %v5473_v46  ;;  %v5601_v49 = vsel %vm4577_vm2, %v4036_v37, %v5089_v44  ;;  %v5218_v50 = vsel %vm4194_vm4, %v3078_v42, %v4706_v45 }
 0x412   : > { %v6113_v52 = vpack.c.bf16 %v5601_v49, %v5601_v49  ;;  %v5730_v53 = vpack.c.bf16 %v5218_v50, %v5218_v50  ;;  %v5346_v54 = vsel %vm4322_vm5, %v3398_v13, %v4834_v47 }
 0x413   : > { %6498 = vst.msk [vmem:[%s8472_s10 + $0x5b0] sm:$0xf] %vm6133_vm3, %v5985_v48  ;;  %v5858_v55 = vpack.c.bf16 %v5346_v54, %v5346_v54  ;;  %v3717_v56 = vpop.f32.mrf.mxu2  ;;  %v4037_v57 = vpop.f32.mrf.mxu3 }
 0x414   : > { %6626 = vst.msk [vmem:[%s8472_s10 + $0x7b0] sm:$0xf] %vm6133_vm3, %v6113_v52  ;;  %v3718_v59 = vadd.f32 %v10038_v23, %v3717_v56  ;;  %v4038_v60 = vadd.f32 %v10038_v23, %v4037_v57  ;;  %v3080_v61 = vpop.f32.mrf.mxu0  ;;  %v3400_v62 = vpop.f32.mrf.mxu1 }
 0x415   : > { %6243 = vst.msk [vmem:[%s8472_s10 + $0x1b4] sm:$0xf] %vm6133_vm3, %v5730_v53  ;;  %v3081_v1 = vadd.f32 %v10038_v23, %v3080_v61  ;;  %v3401_v3 = vadd.f32 %v10038_v23, %v3400_v62 }
 0x416   : > { %6371 = vst.msk [vmem:[%s8472_s10 + $0x3b4] sm:$0xf] %vm6133_vm3, %v5858_v55  ;;  %vm4450_vm6 = vcmp.gt.f32.partialorder %v3718_v59, 0.0  ;;  %v4962_v4 = vmul.f32 0.2, %v3718_v59  ;;  %vm4578_vm7 = vcmp.gt.f32.partialorder %v4038_v60, 0.0 }
 0x417   : > { %v5090_v40 = vmul.f32 0.2, %v4038_v60  ;;  %vm4195_vm8 = vcmp.gt.f32.partialorder %v3081_v1, 0.0  ;;  %v4707_v5 = vmul.f32 0.2, %v3081_v1  ;;  %vm4323_vm9 = vcmp.gt.f32.partialorder %v3401_v3, 0.0  ;;  %7826 = vmatmul.msk.bf16.gmra.mxu0 %vm2027_vm0, %v8084_v28  ;;  %7890 = vmatmul.msk.bf16.gmra.mxu1 %vm2027_vm0, %v8148_v58 }
 0x418   : > { %v5474_v6 = vsel %vm4450_vm6, %v3718_v59, %v4962_v4  ;;  %v4835_v7 = vmul.f32 0.2, %v3401_v3  ;;  %7954 = vmatmul.msk.bf16.gmra.mxu2 %vm2027_vm0, %v8212_v63  ;;  %8018 = vmatmul.msk.bf16.gmra.mxu3 %vm2027_vm0, %v8276_v0 }
 0x419   : > { %v5986_v8 = vpack.c.bf16 %v5474_v6, %v5474_v6  ;;  %v5602_v9 = vsel %vm4578_vm7, %v4038_v60, %v5090_v40  ;;  %v5219_v10 = vsel %vm4195_vm8, %v3081_v1, %v4707_v5 }
 0x41a   : > { %v6114_v11 = vpack.c.bf16 %v5602_v9, %v5602_v9  ;;  %v5731_v12 = vpack.c.bf16 %v5219_v10, %v5219_v10  ;;  %v5347_v14 = vsel %vm4323_vm9, %v3401_v3, %v4835_v7 }
 0x41b   : > { %6499 = vst.msk [vmem:[%s8472_s10 + $0x5b4] sm:$0xf] %vm6133_vm3, %v5986_v8  ;;  %v5859_v15 = vpack.c.bf16 %v5347_v14, %v5347_v14  ;;  %v3720_v51 = vpop.f32.mrf.mxu2  ;;  %v4040_v16 = vpop.f32.mrf.mxu3  ;;  %v10303_v14 = vld [vmem:[%s10488_s2] ss:$0 sm:$0xff] }
 0x41c   : > { %6627 = vst.msk [vmem:[%s8472_s10 + $0x7b4] sm:$0xf] %vm6133_vm3, %v6114_v11  ;;  %v3721_v17 = vadd.f32 %v10038_v23, %v3720_v51  ;;  %v4041_v18 = vadd.f32 %v10038_v23, %v4040_v16  ;;  %v3082_v19 = vpop.f32.mrf.mxu0  ;;  %v3402_v39 = vpop.f32.mrf.mxu1 }
 0x41d   : > { %6244 = vst.msk [vmem:[%s8472_s10 + $0x1b8] sm:$0xf] %vm6133_vm3, %v5731_v12  ;;  %v3083_v20 = vadd.f32 %v10038_v23, %v3082_v19  ;;  %v3403_v21 = vadd.f32 %v10038_v23, %v3402_v39 }
 0x41e   : > { %6372 = vst.msk [vmem:[%s8472_s10 + $0x3b8] sm:$0xf] %vm6133_vm3, %v5859_v15  ;;  %vm4451_vm0 = vcmp.gt.f32.partialorder %v3721_v17, 0.0  ;;  %v4963_v22 = vmul.f32 0.2, %v3721_v17  ;;  %vm4579_vm10 = vcmp.gt.f32.partialorder %v4041_v18, 0.0 }
 0x41f   : > { %v5091_v24 = vmul.f32 0.2, %v4041_v18  ;;  %vm4196_vm11 = vcmp.gt.f32.partialorder %v3083_v20, 0.0  ;;  %v4708_v25 = vmul.f32 0.2, %v3083_v20  ;;  %vm4324_vm12 = vcmp.gt.f32.partialorder %v3403_v21, 0.0 }
 0x420   : > { %v5475_v26 = vsel %vm4451_vm0, %v3721_v17, %v4963_v22  ;;  %v4836_v27 = vmul.f32 0.2, %v3403_v21 }
 0x421   : > { %v5987_v29 = vpack.c.bf16 %v5475_v26, %v5475_v26  ;;  %v5603_v30 = vsel %vm4579_vm10, %v4041_v18, %v5091_v24  ;;  %v5220_v2 = vsel %vm4196_vm11, %v3083_v20, %v4708_v25 }
 0x422   : > { %v6115_v31 = vpack.c.bf16 %v5603_v30, %v5603_v30  ;;  %v5732_v32 = vpack.c.bf16 %v5220_v2, %v5220_v2  ;;  %v5348_v33 = vsel %vm4324_vm12, %v3403_v21, %v4836_v27 }
 0x423   : > { %6500 = vst.msk [vmem:[%s8472_s10 + $0x5b8] sm:$0xf] %vm6133_vm3, %v5987_v29  ;;  %v5860_v34 = vpack.c.bf16 %v5348_v33, %v5348_v33  ;;  %v3722_v35 = vpop.f32.mrf.mxu2  ;;  %v4042_v36 = vpop.f32.mrf.mxu3 }
 0x424   : > { %6628 = vst.msk [vmem:[%s8472_s10 + $0x7b8] sm:$0xf] %vm6133_vm3, %v6115_v31  ;;  %v3723_v37 = vadd.f32 %v10038_v23, %v3722_v35  ;;  %v4043_v38 = vadd.f32 %v10038_v23, %v4042_v36  ;;  %v3085_v41 = vpop.f32.mrf.mxu0  ;;  %v3405_v42 = vpop.f32.mrf.mxu1 }
 0x425   : > { %6245 = vst.msk [vmem:[%s8472_s10 + $0x1bc] sm:$0xf] %vm6133_vm3, %v5732_v32  ;;  %v3086_v13 = vadd.f32 %v10038_v23, %v3085_v41  ;;  %v3406_v43 = vadd.f32 %v10038_v23, %v3405_v42 }
 0x426   : > { %6373 = vst.msk [vmem:[%s8472_s10 + $0x3bc] sm:$0xf] %vm6133_vm3, %v5860_v34  ;;  %vm4452_vm13 = vcmp.gt.f32.partialorder %v3723_v37, 0.0  ;;  %v4964_v44 = vmul.f32 0.2, %v3723_v37  ;;  %vm4580_vm14 = vcmp.gt.f32.partialorder %v4043_v38, 0.0 }
 0x427   : > { %v5092_v45 = vmul.f32 0.2, %v4043_v38  ;;  %vm4197_vm15 = vcmp.gt.f32.partialorder %v3086_v13, 0.0  ;;  %v4709_v46 = vmul.f32 0.2, %v3086_v13  ;;  %vm4325_vm1 = vcmp.gt.f32.partialorder %v3406_v43, 0.0 }
 0x428   : > { %v5476_v47 = vsel %vm4452_vm13, %v3723_v37, %v4964_v44  ;;  %v4837_v48 = vmul.f32 0.2, %v3406_v43 }
 0x429   : > { %v5988_v49 = vpack.c.bf16 %v5476_v47, %v5476_v47  ;;  %v5604_v50 = vsel %vm4580_vm14, %v4043_v38, %v5092_v45  ;;  %v5221_v52 = vsel %vm4197_vm15, %v3086_v13, %v4709_v46 }
 0x42a   : > { %v6116_v53 = vpack.c.bf16 %v5604_v50, %v5604_v50  ;;  %v5733_v54 = vpack.c.bf16 %v5221_v52, %v5221_v52  ;;  %v5349_v55 = vsel %vm4325_vm1, %v3406_v43, %v4837_v48 }
 0x42b   : > { %6501 = vst.msk [vmem:[%s8472_s10 + $0x5bc] sm:$0xf] %vm6133_vm3, %v5988_v49  ;;  %v5861_v56 = vpack.c.bf16 %v5349_v55, %v5349_v55  ;;  %v3725_v57 = vpop.f32.mrf.mxu2  ;;  %v4045_v28 = vpop.f32.mrf.mxu3 }
 0x42c   : > { %6629 = vst.msk [vmem:[%s8472_s10 + $0x7bc] sm:$0xf] %vm6133_vm3, %v6116_v53  ;;  %v3726_v58 = vadd.f32 %v10038_v23, %v3725_v57  ;;  %v4046_v59 = vadd.f32 %v10038_v23, %v4045_v28  ;;  %v3087_v60 = vpop.f32.mrf.mxu0  ;;  %v3407_v61 = vpop.f32.mrf.mxu1 }
 0x42d   : > { %6246 = vst.msk [vmem:[%s8472_s10 + $0x1c0] sm:$0xf] %vm6133_vm3, %v5733_v54  ;;  %v3088_v62 = vadd.f32 %v10038_v23, %v3087_v60  ;;  %v3408_v63 = vadd.f32 %v10038_v23, %v3407_v61 }
 0x42e   : > { %6374 = vst.msk [vmem:[%s8472_s10 + $0x3c0] sm:$0xf] %vm6133_vm3, %v5861_v56  ;;  %vm4453_vm2 = vcmp.gt.f32.partialorder %v3726_v58, 0.0  ;;  %v4965_v0 = vmul.f32 0.2, %v3726_v58  ;;  %vm4581_vm4 = vcmp.gt.f32.partialorder %v4046_v59, 0.0 }
 0x42f   : > { %v5093_v1 = vmul.f32 0.2, %v4046_v59  ;;  %vm4198_vm5 = vcmp.gt.f32.partialorder %v3088_v62, 0.0  ;;  %v4710_v3 = vmul.f32 0.2, %v3088_v62  ;;  %vm4326_vm6 = vcmp.gt.f32.partialorder %v3408_v63, 0.0 }
 0x430   : > { %v5477_v4 = vsel %vm4453_vm2, %v3726_v58, %v4965_v0  ;;  %v4838_v40 = vmul.f32 0.2, %v3408_v63 }
 0x431   : > { %v5989_v5 = vpack.c.bf16 %v5477_v4, %v5477_v4  ;;  %v5605_v6 = vsel %vm4581_vm4, %v4046_v59, %v5093_v1  ;;  %v5222_v7 = vsel %vm4198_vm5, %v3088_v62, %v4710_v3 }
 0x432   : > { %v6117_v8 = vpack.c.bf16 %v5605_v6, %v5605_v6  ;;  %v5734_v23 = vpack.c.bf16 %v5222_v7, %v5222_v7  ;;  %v5350_v9 = vsel %vm4326_vm6, %v3408_v63, %v4838_v40 }
 0x433   : > { %6502 = vst.msk [vmem:[%s8472_s10 + $0x5c0] sm:$0xf] %vm6133_vm3, %v5989_v5  ;;  %v5862_v10 = vpack.c.bf16 %v5350_v9, %v5350_v9  ;;  %v3727_v11 = vpop.f32.mrf.mxu2  ;;  %v4047_v12 = vpop.f32.mrf.mxu3 }
 0x434   : > { %6630 = vst.msk [vmem:[%s8472_s10 + $0x7c0] sm:$0xf] %vm6133_vm3, %v6117_v8  ;;  %v3728_v15 = vadd.f32 %v10303_v14, %v3727_v11  ;;  %v4048_v51 = vadd.f32 %v10303_v14, %v4047_v12  ;;  %v3090_v16 = vpop.f32.mrf.mxu0  ;;  %v3410_v17 = vpop.f32.mrf.mxu1 }
 0x435   : > { %6247 = vst.msk [vmem:[%s8472_s10 + $0x1c4] sm:$0xf] %vm6133_vm3, %v5734_v23  ;;  %v3091_v18 = vadd.f32 %v10303_v14, %v3090_v16  ;;  %v3411_v19 = vadd.f32 %v10303_v14, %v3410_v17 }
 0x436   : > { %6375 = vst.msk [vmem:[%s8472_s10 + $0x3c4] sm:$0xf] %vm6133_vm3, %v5862_v10  ;;  %vm4454_vm7 = vcmp.gt.f32.partialorder %v3728_v15, 0.0  ;;  %v4966_v39 = vmul.f32 0.2, %v3728_v15  ;;  %vm4582_vm8 = vcmp.gt.f32.partialorder %v4048_v51, 0.0 }
 0x437   : > { %v5094_v20 = vmul.f32 0.2, %v4048_v51  ;;  %vm4199_vm9 = vcmp.gt.f32.partialorder %v3091_v18, 0.0  ;;  %v4711_v21 = vmul.f32 0.2, %v3091_v18  ;;  %vm4327_vm0 = vcmp.gt.f32.partialorder %v3411_v19, 0.0 }
 0x438   : > { %v5478_v22 = vsel %vm4454_vm7, %v3728_v15, %v4966_v39  ;;  %v4839_v24 = vmul.f32 0.2, %v3411_v19 }
 0x439   : > { %v5990_v25 = vpack.c.bf16 %v5478_v22, %v5478_v22  ;;  %v5606_v26 = vsel %vm4582_vm8, %v4048_v51, %v5094_v20  ;;  %v5223_v27 = vsel %vm4199_vm9, %v3091_v18, %v4711_v21 }
 0x43a   : > { %v6118_v29 = vpack.c.bf16 %v5606_v26, %v5606_v26  ;;  %v5735_v30 = vpack.c.bf16 %v5223_v27, %v5223_v27  ;;  %v5351_v2 = vsel %vm4327_vm0, %v3411_v19, %v4839_v24 }
 0x43b   : > { %6503 = vst.msk [vmem:[%s8472_s10 + $0x5c4] sm:$0xf] %vm6133_vm3, %v5990_v25  ;;  %v5863_v31 = vpack.c.bf16 %v5351_v2, %v5351_v2  ;;  %v3730_v32 = vpop.f32.mrf.mxu2  ;;  %v4050_v33 = vpop.f32.mrf.mxu3 }
 0x43c   : > { %6631 = vst.msk [vmem:[%s8472_s10 + $0x7c4] sm:$0xf] %vm6133_vm3, %v6118_v29  ;;  %v3731_v34 = vadd.f32 %v10303_v14, %v3730_v32  ;;  %v4051_v35 = vadd.f32 %v10303_v14, %v4050_v33  ;;  %v3092_v36 = vpop.f32.mrf.mxu0  ;;  %v3412_v37 = vpop.f32.mrf.mxu1 }
 0x43d   : > { %6248 = vst.msk [vmem:[%s8472_s10 + $0x1c8] sm:$0xf] %vm6133_vm3, %v5735_v30  ;;  %v3093_v38 = vadd.f32 %v10303_v14, %v3092_v36  ;;  %v3413_v41 = vadd.f32 %v10303_v14, %v3412_v37 }
 0x43e   : > { %6376 = vst.msk [vmem:[%s8472_s10 + $0x3c8] sm:$0xf] %vm6133_vm3, %v5863_v31  ;;  %vm4455_vm10 = vcmp.gt.f32.partialorder %v3731_v34, 0.0  ;;  %v4967_v42 = vmul.f32 0.2, %v3731_v34  ;;  %vm4583_vm11 = vcmp.gt.f32.partialorder %v4051_v35, 0.0 }
 0x43f   : > { %v5095_v13 = vmul.f32 0.2, %v4051_v35  ;;  %vm4200_vm12 = vcmp.gt.f32.partialorder %v3093_v38, 0.0  ;;  %v4712_v43 = vmul.f32 0.2, %v3093_v38  ;;  %vm4328_vm13 = vcmp.gt.f32.partialorder %v3413_v41, 0.0 }
 0x440   : > { %v5479_v44 = vsel %vm4455_vm10, %v3731_v34, %v4967_v42  ;;  %v4840_v45 = vmul.f32 0.2, %v3413_v41 }
 0x441   : > { %v5991_v46 = vpack.c.bf16 %v5479_v44, %v5479_v44  ;;  %v5607_v47 = vsel %vm4583_vm11, %v4051_v35, %v5095_v13  ;;  %v5224_v48 = vsel %vm4200_vm12, %v3093_v38, %v4712_v43 }
 0x442   : > { %v6119_v49 = vpack.c.bf16 %v5607_v47, %v5607_v47  ;;  %v5736_v50 = vpack.c.bf16 %v5224_v48, %v5224_v48  ;;  %v5352_v52 = vsel %vm4328_vm13, %v3413_v41, %v4840_v45 }
 0x443   : > { %6504 = vst.msk [vmem:[%s8472_s10 + $0x5c8] sm:$0xf] %vm6133_vm3, %v5991_v46  ;;  %v5864_v53 = vpack.c.bf16 %v5352_v52, %v5352_v52  ;;  %v3732_v54 = vpop.f32.mrf.mxu2  ;;  %v4052_v55 = vpop.f32.mrf.mxu3 }
 0x444   : > { %6632 = vst.msk [vmem:[%s8472_s10 + $0x7c8] sm:$0xf] %vm6133_vm3, %v6119_v49  ;;  %v3733_v56 = vadd.f32 %v10303_v14, %v3732_v54  ;;  %v4053_v57 = vadd.f32 %v10303_v14, %v4052_v55  ;;  %v3095_v28 = vpop.f32.mrf.mxu0  ;;  %v3415_v58 = vpop.f32.mrf.mxu1 }
 0x445   : > { %6249 = vst.msk [vmem:[%s8472_s10 + $0x1cc] sm:$0xf] %vm6133_vm3, %v5736_v50  ;;  %v3096_v59 = vadd.f32 %v10303_v14, %v3095_v28  ;;  %v3416_v60 = vadd.f32 %v10303_v14, %v3415_v58 }
 0x446   : > { %6377 = vst.msk [vmem:[%s8472_s10 + $0x3cc] sm:$0xf] %vm6133_vm3, %v5864_v53  ;;  %vm4456_vm14 = vcmp.gt.f32.partialorder %v3733_v56, 0.0  ;;  %v4968_v61 = vmul.f32 0.2, %v3733_v56  ;;  %vm4584_vm15 = vcmp.gt.f32.partialorder %v4053_v57, 0.0 }
 0x447   : > { %v5096_v62 = vmul.f32 0.2, %v4053_v57  ;;  %vm4201_vm1 = vcmp.gt.f32.partialorder %v3096_v59, 0.0  ;;  %v4713_v63 = vmul.f32 0.2, %v3096_v59  ;;  %vm4329_vm2 = vcmp.gt.f32.partialorder %v3416_v60, 0.0 }
 0x448   : > { %v5480_v0 = vsel %vm4456_vm14, %v3733_v56, %v4968_v61  ;;  %v4841_v1 = vmul.f32 0.2, %v3416_v60 }
 0x449   : > { %v5992_v3 = vpack.c.bf16 %v5480_v0, %v5480_v0  ;;  %v5608_v4 = vsel %vm4584_vm15, %v4053_v57, %v5096_v62  ;;  %v5225_v40 = vsel %vm4201_vm1, %v3096_v59, %v4713_v63 }
 0x44a   : > { %v6120_v5 = vpack.c.bf16 %v5608_v4, %v5608_v4  ;;  %v5737_v6 = vpack.c.bf16 %v5225_v40, %v5225_v40  ;;  %v5353_v7 = vsel %vm4329_vm2, %v3416_v60, %v4841_v1 }
 0x44b   : > { %6505 = vst.msk [vmem:[%s8472_s10 + $0x5cc] sm:$0xf] %vm6133_vm3, %v5992_v3  ;;  %v5865_v8 = vpack.c.bf16 %v5353_v7, %v5353_v7  ;;  %v3735_v23 = vpop.f32.mrf.mxu2  ;;  %v4055_v9 = vpop.f32.mrf.mxu3 }
 0x44c   : > { %6633 = vst.msk [vmem:[%s8472_s10 + $0x7cc] sm:$0xf] %vm6133_vm3, %v6120_v5  ;;  %v3736_v10 = vadd.f32 %v10303_v14, %v3735_v23  ;;  %v4056_v11 = vadd.f32 %v10303_v14, %v4055_v9  ;;  %v3097_v12 = vpop.f32.mrf.mxu0  ;;  %v3417_v15 = vpop.f32.mrf.mxu1 }
 0x44d   : > { %6250 = vst.msk [vmem:[%s8472_s10 + $0x1d0] sm:$0xf] %vm6133_vm3, %v5737_v6  ;;  %v3098_v51 = vadd.f32 %v10303_v14, %v3097_v12  ;;  %v3418_v16 = vadd.f32 %v10303_v14, %v3417_v15 }
 0x44e   : > { %6378 = vst.msk [vmem:[%s8472_s10 + $0x3d0] sm:$0xf] %vm6133_vm3, %v5865_v8  ;;  %vm4457_vm4 = vcmp.gt.f32.partialorder %v3736_v10, 0.0  ;;  %v4969_v17 = vmul.f32 0.2, %v3736_v10  ;;  %vm4585_vm5 = vcmp.gt.f32.partialorder %v4056_v11, 0.0 }
 0x44f   : > { %v5097_v18 = vmul.f32 0.2, %v4056_v11  ;;  %vm4202_vm6 = vcmp.gt.f32.partialorder %v3098_v51, 0.0  ;;  %v4714_v19 = vmul.f32 0.2, %v3098_v51  ;;  %vm4330_vm7 = vcmp.gt.f32.partialorder %v3418_v16, 0.0 }
 0x450   : > { %v5481_v39 = vsel %vm4457_vm4, %v3736_v10, %v4969_v17  ;;  %v4842_v20 = vmul.f32 0.2, %v3418_v16 }
 0x451   : > { %v5993_v21 = vpack.c.bf16 %v5481_v39, %v5481_v39  ;;  %v5609_v22 = vsel %vm4585_vm5, %v4056_v11, %v5097_v18  ;;  %v5226_v24 = vsel %vm4202_vm6, %v3098_v51, %v4714_v19 }
 0x452   : > { %v6121_v25 = vpack.c.bf16 %v5609_v22, %v5609_v22  ;;  %v5738_v26 = vpack.c.bf16 %v5226_v24, %v5226_v24  ;;  %v5354_v27 = vsel %vm4330_vm7, %v3418_v16, %v4842_v20 }
 0x453   : > { %6506 = vst.msk [vmem:[%s8472_s10 + $0x5d0] sm:$0xf] %vm6133_vm3, %v5993_v21  ;;  %v5866_v29 = vpack.c.bf16 %v5354_v27, %v5354_v27  ;;  %v3737_v30 = vpop.f32.mrf.mxu2  ;;  %v4057_v2 = vpop.f32.mrf.mxu3 }
 0x454   : > { %6634 = vst.msk [vmem:[%s8472_s10 + $0x7d0] sm:$0xf] %vm6133_vm3, %v6121_v25  ;;  %v3738_v31 = vadd.f32 %v10303_v14, %v3737_v30  ;;  %v4058_v32 = vadd.f32 %v10303_v14, %v4057_v2  ;;  %v3100_v33 = vpop.f32.mrf.mxu0  ;;  %v3420_v34 = vpop.f32.mrf.mxu1 }
 0x455   : > { %6251 = vst.msk [vmem:[%s8472_s10 + $0x1d4] sm:$0xf] %vm6133_vm3, %v5738_v26  ;;  %v3101_v35 = vadd.f32 %v10303_v14, %v3100_v33  ;;  %v3421_v36 = vadd.f32 %v10303_v14, %v3420_v34 }
 0x456   : > { %6379 = vst.msk [vmem:[%s8472_s10 + $0x3d4] sm:$0xf] %vm6133_vm3, %v5866_v29  ;;  %vm4458_vm8 = vcmp.gt.f32.partialorder %v3738_v31, 0.0  ;;  %v4970_v37 = vmul.f32 0.2, %v3738_v31  ;;  %vm4586_vm9 = vcmp.gt.f32.partialorder %v4058_v32, 0.0 }
 0x457   : > { %v5098_v38 = vmul.f32 0.2, %v4058_v32  ;;  %vm4203_vm0 = vcmp.gt.f32.partialorder %v3101_v35, 0.0  ;;  %v4715_v41 = vmul.f32 0.2, %v3101_v35  ;;  %vm4331_vm10 = vcmp.gt.f32.partialorder %v3421_v36, 0.0 }
 0x458   : > { %v5482_v42 = vsel %vm4458_vm8, %v3738_v31, %v4970_v37  ;;  %v4843_v13 = vmul.f32 0.2, %v3421_v36 }
 0x459   : > { %v5994_v43 = vpack.c.bf16 %v5482_v42, %v5482_v42  ;;  %v5610_v44 = vsel %vm4586_vm9, %v4058_v32, %v5098_v38  ;;  %v5227_v45 = vsel %vm4203_vm0, %v3101_v35, %v4715_v41 }
 0x45a   : > { %v6122_v46 = vpack.c.bf16 %v5610_v44, %v5610_v44  ;;  %v5739_v47 = vpack.c.bf16 %v5227_v45, %v5227_v45  ;;  %v5355_v48 = vsel %vm4331_vm10, %v3421_v36, %v4843_v13 }
 0x45b   : > { %6507 = vst.msk [vmem:[%s8472_s10 + $0x5d4] sm:$0xf] %vm6133_vm3, %v5994_v43  ;;  %v5867_v49 = vpack.c.bf16 %v5355_v48, %v5355_v48  ;;  %v3740_v50 = vpop.f32.mrf.mxu2  ;;  %v4060_v52 = vpop.f32.mrf.mxu3 }
 0x45c   : > { %6635 = vst.msk [vmem:[%s8472_s10 + $0x7d4] sm:$0xf] %vm6133_vm3, %v6122_v46  ;;  %v3741_v53 = vadd.f32 %v10303_v14, %v3740_v50  ;;  %v4061_v54 = vadd.f32 %v10303_v14, %v4060_v52  ;;  %v3102_v55 = vpop.f32.mrf.mxu0  ;;  %v3422_v56 = vpop.f32.mrf.mxu1 }
 0x45d   : > { %6252 = vst.msk [vmem:[%s8472_s10 + $0x1d8] sm:$0xf] %vm6133_vm3, %v5739_v47  ;;  %v3103_v57 = vadd.f32 %v10303_v14, %v3102_v55  ;;  %v3423_v28 = vadd.f32 %v10303_v14, %v3422_v56 }
 0x45e   : > { %6380 = vst.msk [vmem:[%s8472_s10 + $0x3d8] sm:$0xf] %vm6133_vm3, %v5867_v49  ;;  %vm4459_vm11 = vcmp.gt.f32.partialorder %v3741_v53, 0.0  ;;  %v4971_v58 = vmul.f32 0.2, %v3741_v53  ;;  %vm4587_vm12 = vcmp.gt.f32.partialorder %v4061_v54, 0.0 }
 0x45f   : > { %v5099_v59 = vmul.f32 0.2, %v4061_v54  ;;  %vm4204_vm13 = vcmp.gt.f32.partialorder %v3103_v57, 0.0  ;;  %v4716_v60 = vmul.f32 0.2, %v3103_v57  ;;  %vm4332_vm14 = vcmp.gt.f32.partialorder %v3423_v28, 0.0 }
 0x460   : > { %v5483_v61 = vsel %vm4459_vm11, %v3741_v53, %v4971_v58  ;;  %v4844_v62 = vmul.f32 0.2, %v3423_v28 }
 0x461   : > { %v5995_v63 = vpack.c.bf16 %v5483_v61, %v5483_v61  ;;  %v5611_v0 = vsel %vm4587_vm12, %v4061_v54, %v5099_v59  ;;  %v5228_v1 = vsel %vm4204_vm13, %v3103_v57, %v4716_v60 }
 0x462   : > { %v6123_v3 = vpack.c.bf16 %v5611_v0, %v5611_v0  ;;  %v5740_v4 = vpack.c.bf16 %v5228_v1, %v5228_v1  ;;  %v5356_v40 = vsel %vm4332_vm14, %v3423_v28, %v4844_v62 }
 0x463   : > { %6508 = vst.msk [vmem:[%s8472_s10 + $0x5d8] sm:$0xf] %vm6133_vm3, %v5995_v63  ;;  %v5868_v5 = vpack.c.bf16 %v5356_v40, %v5356_v40  ;;  %v3742_v6 = vpop.f32.mrf.mxu2  ;;  %v4062_v7 = vpop.f32.mrf.mxu3 }
 0x464   : > { %6636 = vst.msk [vmem:[%s8472_s10 + $0x7d8] sm:$0xf] %vm6133_vm3, %v6123_v3  ;;  %v3743_v8 = vadd.f32 %v10303_v14, %v3742_v6  ;;  %v4063_v23 = vadd.f32 %v10303_v14, %v4062_v7  ;;  %v3105_v9 = vpop.f32.mrf.mxu0  ;;  %v3425_v10 = vpop.f32.mrf.mxu1 }
 0x465   : > { %6253 = vst.msk [vmem:[%s8472_s10 + $0x1dc] sm:$0xf] %vm6133_vm3, %v5740_v4  ;;  %v3106_v11 = vadd.f32 %v10303_v14, %v3105_v9  ;;  %v3426_v12 = vadd.f32 %v10303_v14, %v3425_v10 }
 0x466   : > { %6381 = vst.msk [vmem:[%s8472_s10 + $0x3dc] sm:$0xf] %vm6133_vm3, %v5868_v5  ;;  %vm4460_vm15 = vcmp.gt.f32.partialorder %v3743_v8, 0.0  ;;  %v4972_v15 = vmul.f32 0.2, %v3743_v8  ;;  %vm4588_vm1 = vcmp.gt.f32.partialorder %v4063_v23, 0.0 }
 0x467   : > { %v5100_v51 = vmul.f32 0.2, %v4063_v23  ;;  %vm4205_vm2 = vcmp.gt.f32.partialorder %v3106_v11, 0.0  ;;  %v4717_v16 = vmul.f32 0.2, %v3106_v11  ;;  %vm4333_vm4 = vcmp.gt.f32.partialorder %v3426_v12, 0.0 }
 0x468   : > { %v5484_v17 = vsel %vm4460_vm15, %v3743_v8, %v4972_v15  ;;  %v4845_v18 = vmul.f32 0.2, %v3426_v12 }
 0x469   : > { %v5996_v19 = vpack.c.bf16 %v5484_v17, %v5484_v17  ;;  %v5612_v39 = vsel %vm4588_vm1, %v4063_v23, %v5100_v51  ;;  %v5229_v20 = vsel %vm4205_vm2, %v3106_v11, %v4717_v16 }
 0x46a   : > { %v6124_v21 = vpack.c.bf16 %v5612_v39, %v5612_v39  ;;  %v5741_v22 = vpack.c.bf16 %v5229_v20, %v5229_v20  ;;  %v5357_v24 = vsel %vm4333_vm4, %v3426_v12, %v4845_v18 }
 0x46b   : > { %6509 = vst.msk [vmem:[%s8472_s10 + $0x5dc] sm:$0xf] %vm6133_vm3, %v5996_v19  ;;  %v5869_v25 = vpack.c.bf16 %v5357_v24, %v5357_v24  ;;  %v3745_v26 = vpop.f32.mrf.mxu2  ;;  %v4065_v27 = vpop.f32.mrf.mxu3 }
 0x46c   : > { %6637 = vst.msk [vmem:[%s8472_s10 + $0x7dc] sm:$0xf] %vm6133_vm3, %v6124_v21  ;;  %v3746_v29 = vadd.f32 %v10303_v14, %v3745_v26  ;;  %v4066_v30 = vadd.f32 %v10303_v14, %v4065_v27  ;;  %v3107_v2 = vpop.f32.mrf.mxu0  ;;  %v3427_v31 = vpop.f32.mrf.mxu1 }
 0x46d   : > { %6254 = vst.msk [vmem:[%s8472_s10 + $0x1e0] sm:$0xf] %vm6133_vm3, %v5741_v22  ;;  %v3108_v32 = vadd.f32 %v10303_v14, %v3107_v2  ;;  %v3428_v33 = vadd.f32 %v10303_v14, %v3427_v31 }
 0x46e   : > { %6382 = vst.msk [vmem:[%s8472_s10 + $0x3e0] sm:$0xf] %vm6133_vm3, %v5869_v25  ;;  %vm4461_vm5 = vcmp.gt.f32.partialorder %v3746_v29, 0.0  ;;  %v4973_v34 = vmul.f32 0.2, %v3746_v29  ;;  %vm4589_vm6 = vcmp.gt.f32.partialorder %v4066_v30, 0.0 }
 0x46f   : > { %v5101_v35 = vmul.f32 0.2, %v4066_v30  ;;  %vm4206_vm7 = vcmp.gt.f32.partialorder %v3108_v32, 0.0  ;;  %v4718_v36 = vmul.f32 0.2, %v3108_v32  ;;  %vm4334_vm8 = vcmp.gt.f32.partialorder %v3428_v33, 0.0 }
 0x470   : > { %v5485_v37 = vsel %vm4461_vm5, %v3746_v29, %v4973_v34  ;;  %v4846_v38 = vmul.f32 0.2, %v3428_v33 }
 0x471   : > { %v5997_v41 = vpack.c.bf16 %v5485_v37, %v5485_v37  ;;  %v5613_v42 = vsel %vm4589_vm6, %v4066_v30, %v5101_v35  ;;  %v5230_v13 = vsel %vm4206_vm7, %v3108_v32, %v4718_v36 }
 0x472   : > { %v6125_v43 = vpack.c.bf16 %v5613_v42, %v5613_v42  ;;  %v5742_v44 = vpack.c.bf16 %v5230_v13, %v5230_v13  ;;  %v5358_v45 = vsel %vm4334_vm8, %v3428_v33, %v4846_v38 }
 0x473   : > { %6510 = vst.msk [vmem:[%s8472_s10 + $0x5e0] sm:$0xf] %vm6133_vm3, %v5997_v41  ;;  %v5870_v46 = vpack.c.bf16 %v5358_v45, %v5358_v45  ;;  %v3747_v47 = vpop.f32.mrf.mxu2  ;;  %v4067_v48 = vpop.f32.mrf.mxu3 }
 0x474   : > { %6638 = vst.msk [vmem:[%s8472_s10 + $0x7e0] sm:$0xf] %vm6133_vm3, %v6125_v43  ;;  %v3748_v49 = vadd.f32 %v10303_v14, %v3747_v47  ;;  %v4068_v50 = vadd.f32 %v10303_v14, %v4067_v48  ;;  %v3110_v52 = vpop.f32.mrf.mxu0  ;;  %v3430_v53 = vpop.f32.mrf.mxu1 }
 0x475   : > { %6255 = vst.msk [vmem:[%s8472_s10 + $0x1e4] sm:$0xf] %vm6133_vm3, %v5742_v44  ;;  %v3111_v54 = vadd.f32 %v10303_v14, %v3110_v52  ;;  %v3431_v55 = vadd.f32 %v10303_v14, %v3430_v53 }
 0x476   : > { %6383 = vst.msk [vmem:[%s8472_s10 + $0x3e4] sm:$0xf] %vm6133_vm3, %v5870_v46  ;;  %vm4462_vm9 = vcmp.gt.f32.partialorder %v3748_v49, 0.0  ;;  %v4974_v56 = vmul.f32 0.2, %v3748_v49  ;;  %vm4590_vm0 = vcmp.gt.f32.partialorder %v4068_v50, 0.0 }
 0x477   : > { %v5102_v57 = vmul.f32 0.2, %v4068_v50  ;;  %vm4207_vm10 = vcmp.gt.f32.partialorder %v3111_v54, 0.0  ;;  %v4719_v28 = vmul.f32 0.2, %v3111_v54  ;;  %vm4335_vm11 = vcmp.gt.f32.partialorder %v3431_v55, 0.0 }
 0x478   : > { %v5486_v58 = vsel %vm4462_vm9, %v3748_v49, %v4974_v56  ;;  %v4847_v59 = vmul.f32 0.2, %v3431_v55 }
 0x479   : > { %v5998_v60 = vpack.c.bf16 %v5486_v58, %v5486_v58  ;;  %v5614_v61 = vsel %vm4590_vm0, %v4068_v50, %v5102_v57  ;;  %v5231_v62 = vsel %vm4207_vm10, %v3111_v54, %v4719_v28 }
 0x47a   : > { %v6126_v63 = vpack.c.bf16 %v5614_v61, %v5614_v61  ;;  %v5743_v0 = vpack.c.bf16 %v5231_v62, %v5231_v62  ;;  %v5359_v1 = vsel %vm4335_vm11, %v3431_v55, %v4847_v59 }
 0x47b   : > { %6511 = vst.msk [vmem:[%s8472_s10 + $0x5e4] sm:$0xf] %vm6133_vm3, %v5998_v60  ;;  %v5871_v3 = vpack.c.bf16 %v5359_v1, %v5359_v1  ;;  %v3750_v4 = vpop.f32.mrf.mxu2  ;;  %v4070_v40 = vpop.f32.mrf.mxu3 }
 0x47c   : > { %6639 = vst.msk [vmem:[%s8472_s10 + $0x7e4] sm:$0xf] %vm6133_vm3, %v6126_v63  ;;  %v3751_v5 = vadd.f32 %v10303_v14, %v3750_v4  ;;  %v4071_v6 = vadd.f32 %v10303_v14, %v4070_v40  ;;  %v3112_v7 = vpop.f32.mrf.mxu0  ;;  %v3432_v8 = vpop.f32.mrf.mxu1 }
 0x47d   : > { %6256 = vst.msk [vmem:[%s8472_s10 + $0x1e8] sm:$0xf] %vm6133_vm3, %v5743_v0  ;;  %v3113_v23 = vadd.f32 %v10303_v14, %v3112_v7  ;;  %v3433_v9 = vadd.f32 %v10303_v14, %v3432_v8 }
 0x47e   : > { %6384 = vst.msk [vmem:[%s8472_s10 + $0x3e8] sm:$0xf] %vm6133_vm3, %v5871_v3  ;;  %vm4463_vm12 = vcmp.gt.f32.partialorder %v3751_v5, 0.0  ;;  %v4975_v10 = vmul.f32 0.2, %v3751_v5  ;;  %vm4591_vm13 = vcmp.gt.f32.partialorder %v4071_v6, 0.0 }
 0x47f   : > { %v5103_v11 = vmul.f32 0.2, %v4071_v6  ;;  %vm4208_vm14 = vcmp.gt.f32.partialorder %v3113_v23, 0.0  ;;  %v4720_v12 = vmul.f32 0.2, %v3113_v23  ;;  %vm4336_vm15 = vcmp.gt.f32.partialorder %v3433_v9, 0.0 }
 0x480   : > { %v5487_v15 = vsel %vm4463_vm12, %v3751_v5, %v4975_v10  ;;  %v4848_v51 = vmul.f32 0.2, %v3433_v9 }
 0x481   : > { %v5999_v16 = vpack.c.bf16 %v5487_v15, %v5487_v15  ;;  %v5615_v17 = vsel %vm4591_vm13, %v4071_v6, %v5103_v11  ;;  %v5232_v18 = vsel %vm4208_vm14, %v3113_v23, %v4720_v12 }
 0x482   : > { %v6127_v19 = vpack.c.bf16 %v5615_v17, %v5615_v17  ;;  %v5744_v39 = vpack.c.bf16 %v5232_v18, %v5232_v18  ;;  %v5360_v20 = vsel %vm4336_vm15, %v3433_v9, %v4848_v51 }
 0x483   : > { %6512 = vst.msk [vmem:[%s8472_s10 + $0x5e8] sm:$0xf] %vm6133_vm3, %v5999_v16  ;;  %v5872_v21 = vpack.c.bf16 %v5360_v20, %v5360_v20  ;;  %v3752_v22 = vpop.f32.mrf.mxu2  ;;  %v4072_v24 = vpop.f32.mrf.mxu3 }
 0x484   : > { %6640 = vst.msk [vmem:[%s8472_s10 + $0x7e8] sm:$0xf] %vm6133_vm3, %v6127_v19  ;;  %v3753_v25 = vadd.f32 %v10303_v14, %v3752_v22  ;;  %v4073_v26 = vadd.f32 %v10303_v14, %v4072_v24  ;;  %v3115_v27 = vpop.f32.mrf.mxu0  ;;  %v3435_v29 = vpop.f32.mrf.mxu1 }
 0x485   : > { %6257 = vst.msk [vmem:[%s8472_s10 + $0x1ec] sm:$0xf] %vm6133_vm3, %v5744_v39  ;;  %v3116_v30 = vadd.f32 %v10303_v14, %v3115_v27  ;;  %v3436_v2 = vadd.f32 %v10303_v14, %v3435_v29 }
 0x486   : > { %6385 = vst.msk [vmem:[%s8472_s10 + $0x3ec] sm:$0xf] %vm6133_vm3, %v5872_v21  ;;  %vm4464_vm1 = vcmp.gt.f32.partialorder %v3753_v25, 0.0  ;;  %v4976_v31 = vmul.f32 0.2, %v3753_v25  ;;  %vm4592_vm2 = vcmp.gt.f32.partialorder %v4073_v26, 0.0 }
 0x487   : > { %v5104_v32 = vmul.f32 0.2, %v4073_v26  ;;  %vm4209_vm4 = vcmp.gt.f32.partialorder %v3116_v30, 0.0  ;;  %v4721_v33 = vmul.f32 0.2, %v3116_v30  ;;  %vm4337_vm5 = vcmp.gt.f32.partialorder %v3436_v2, 0.0 }
 0x488   : > { %v5488_v34 = vsel %vm4464_vm1, %v3753_v25, %v4976_v31  ;;  %v4849_v35 = vmul.f32 0.2, %v3436_v2 }
 0x489   : > { %v6000_v36 = vpack.c.bf16 %v5488_v34, %v5488_v34  ;;  %v5616_v37 = vsel %vm4592_vm2, %v4073_v26, %v5104_v32  ;;  %v5233_v38 = vsel %vm4209_vm4, %v3116_v30, %v4721_v33 }
 0x48a   : > { %v6128_v41 = vpack.c.bf16 %v5616_v37, %v5616_v37  ;;  %v5745_v42 = vpack.c.bf16 %v5233_v38, %v5233_v38  ;;  %v5361_v13 = vsel %vm4337_vm5, %v3436_v2, %v4849_v35 }
 0x48b   : > { %6513 = vst.msk [vmem:[%s8472_s10 + $0x5ec] sm:$0xf] %vm6133_vm3, %v6000_v36  ;;  %v5873_v43 = vpack.c.bf16 %v5361_v13, %v5361_v13  ;;  %v3755_v44 = vpop.f32.mrf.mxu2  ;;  %v4075_v45 = vpop.f32.mrf.mxu3 }
 0x48c   : > { %6641 = vst.msk [vmem:[%s8472_s10 + $0x7ec] sm:$0xf] %vm6133_vm3, %v6128_v41  ;;  %v3756_v46 = vadd.f32 %v10303_v14, %v3755_v44  ;;  %v4076_v47 = vadd.f32 %v10303_v14, %v4075_v45  ;;  %v3117_v48 = vpop.f32.mrf.mxu0  ;;  %v3437_v49 = vpop.f32.mrf.mxu1 }
 0x48d   : > { %6258 = vst.msk [vmem:[%s8472_s10 + $0x1f0] sm:$0xf] %vm6133_vm3, %v5745_v42  ;;  %v3118_v50 = vadd.f32 %v10303_v14, %v3117_v48  ;;  %v3438_v52 = vadd.f32 %v10303_v14, %v3437_v49 }
 0x48e   : > { %6386 = vst.msk [vmem:[%s8472_s10 + $0x3f0] sm:$0xf] %vm6133_vm3, %v5873_v43  ;;  %vm4465_vm6 = vcmp.gt.f32.partialorder %v3756_v46, 0.0  ;;  %v4977_v53 = vmul.f32 0.2, %v3756_v46  ;;  %vm4593_vm7 = vcmp.gt.f32.partialorder %v4076_v47, 0.0 }
 0x48f   : > { %v5105_v54 = vmul.f32 0.2, %v4076_v47  ;;  %vm4210_vm8 = vcmp.gt.f32.partialorder %v3118_v50, 0.0  ;;  %v4722_v55 = vmul.f32 0.2, %v3118_v50  ;;  %vm4338_vm9 = vcmp.gt.f32.partialorder %v3438_v52, 0.0 }
 0x490   : > { %v5489_v56 = vsel %vm4465_vm6, %v3756_v46, %v4977_v53  ;;  %v4850_v57 = vmul.f32 0.2, %v3438_v52 }
 0x491   : > { %v6001_v28 = vpack.c.bf16 %v5489_v56, %v5489_v56  ;;  %v5617_v58 = vsel %vm4593_vm7, %v4076_v47, %v5105_v54  ;;  %v5234_v59 = vsel %vm4210_vm8, %v3118_v50, %v4722_v55 }
 0x492   : > { %v6129_v60 = vpack.c.bf16 %v5617_v58, %v5617_v58  ;;  %v5746_v61 = vpack.c.bf16 %v5234_v59, %v5234_v59  ;;  %v5362_v62 = vsel %vm4338_vm9, %v3438_v52, %v4850_v57 }
 0x493   : > { %6514 = vst.msk [vmem:[%s8472_s10 + $0x5f0] sm:$0xf] %vm6133_vm3, %v6001_v28  ;;  %v5874_v63 = vpack.c.bf16 %v5362_v62, %v5362_v62  ;;  %v3757_v0 = vpop.f32.mrf.mxu2  ;;  %v4077_v1 = vpop.f32.mrf.mxu3 }
 0x494   : > { %6642 = vst.msk [vmem:[%s8472_s10 + $0x7f0] sm:$0xf] %vm6133_vm3, %v6129_v60  ;;  %v3758_v3 = vadd.f32 %v10303_v14, %v3757_v0  ;;  %v4078_v4 = vadd.f32 %v10303_v14, %v4077_v1  ;;  %v3120_v40 = vpop.f32.mrf.mxu0  ;;  %v3440_v5 = vpop.f32.mrf.mxu1 }
 0x495   : > { %6259 = vst.msk [vmem:[%s8472_s10 + $0x1f4] sm:$0xf] %vm6133_vm3, %v5746_v61  ;;  %v3121_v6 = vadd.f32 %v10303_v14, %v3120_v40  ;;  %v3441_v7 = vadd.f32 %v10303_v14, %v3440_v5 }
 0x496   : > { %6387 = vst.msk [vmem:[%s8472_s10 + $0x3f4] sm:$0xf] %vm6133_vm3, %v5874_v63  ;;  %vm4466_vm0 = vcmp.gt.f32.partialorder %v3758_v3, 0.0  ;;  %v4978_v8 = vmul.f32 0.2, %v3758_v3  ;;  %vm4594_vm10 = vcmp.gt.f32.partialorder %v4078_v4, 0.0 }
 0x497   : > { %v5106_v23 = vmul.f32 0.2, %v4078_v4  ;;  %vm4211_vm11 = vcmp.gt.f32.partialorder %v3121_v6, 0.0  ;;  %v4723_v9 = vmul.f32 0.2, %v3121_v6  ;;  %vm4339_vm12 = vcmp.gt.f32.partialorder %v3441_v7, 0.0 }
 0x498   : > { %v5490_v10 = vsel %vm4466_vm0, %v3758_v3, %v4978_v8  ;;  %v4851_v11 = vmul.f32 0.2, %v3441_v7 }
 0x499   : > { %v6002_v12 = vpack.c.bf16 %v5490_v10, %v5490_v10  ;;  %v5618_v15 = vsel %vm4594_vm10, %v4078_v4, %v5106_v23  ;;  %v5235_v51 = vsel %vm4211_vm11, %v3121_v6, %v4723_v9 }
 0x49a   : > { %v6130_v16 = vpack.c.bf16 %v5618_v15, %v5618_v15  ;;  %v5747_v17 = vpack.c.bf16 %v5235_v51, %v5235_v51  ;;  %v5363_v18 = vsel %vm4339_vm12, %v3441_v7, %v4851_v11 }
 0x49b   : > { %6515 = vst.msk [vmem:[%s8472_s10 + $0x5f4] sm:$0xf] %vm6133_vm3, %v6002_v12  ;;  %v5875_v19 = vpack.c.bf16 %v5363_v18, %v5363_v18  ;;  %v3760_v39 = vpop.f32.mrf.mxu2  ;;  %v4080_v20 = vpop.f32.mrf.mxu3 }
 0x49c   : > { %6643 = vst.msk [vmem:[%s8472_s10 + $0x7f4] sm:$0xf] %vm6133_vm3, %v6130_v16  ;;  %v3761_v21 = vadd.f32 %v10303_v14, %v3760_v39  ;;  %v4081_v22 = vadd.f32 %v10303_v14, %v4080_v20  ;;  %v3122_v24 = vpop.f32.mrf.mxu0  ;;  %v3442_v25 = vpop.f32.mrf.mxu1 }
 0x49d   : > { %6260 = vst.msk [vmem:[%s8472_s10 + $0x1f8] sm:$0xf] %vm6133_vm3, %v5747_v17  ;;  %v3123_v26 = vadd.f32 %v10303_v14, %v3122_v24  ;;  %v3443_v27 = vadd.f32 %v10303_v14, %v3442_v25 }
 0x49e   : > { %6388 = vst.msk [vmem:[%s8472_s10 + $0x3f8] sm:$0xf] %vm6133_vm3, %v5875_v19  ;;  %vm4467_vm13 = vcmp.gt.f32.partialorder %v3761_v21, 0.0  ;;  %v4979_v29 = vmul.f32 0.2, %v3761_v21  ;;  %vm4595_vm14 = vcmp.gt.f32.partialorder %v4081_v22, 0.0 }
 0x49f   : > { %v5107_v30 = vmul.f32 0.2, %v4081_v22  ;;  %vm4212_vm15 = vcmp.gt.f32.partialorder %v3123_v26, 0.0  ;;  %v4724_v2 = vmul.f32 0.2, %v3123_v26  ;;  %vm4340_vm1 = vcmp.gt.f32.partialorder %v3443_v27, 0.0 }
 0x4a0   : > { %v5491_v31 = vsel %vm4467_vm13, %v3761_v21, %v4979_v29  ;;  %v4852_v32 = vmul.f32 0.2, %v3443_v27 }
 0x4a1   : > { %v6003_v33 = vpack.c.bf16 %v5491_v31, %v5491_v31  ;;  %v5619_v34 = vsel %vm4595_vm14, %v4081_v22, %v5107_v30  ;;  %v5236_v35 = vsel %vm4212_vm15, %v3123_v26, %v4724_v2 }
 0x4a2   : > { %v6131_v36 = vpack.c.bf16 %v5619_v34, %v5619_v34  ;;  %v5748_v37 = vpack.c.bf16 %v5236_v35, %v5236_v35  ;;  %v5364_v38 = vsel %vm4340_vm1, %v3443_v27, %v4852_v32 }
 0x4a3   : > { %6516 = vst.msk [vmem:[%s8472_s10 + $0x5f8] sm:$0xf] %vm6133_vm3, %v6003_v33  ;;  %v5876_v41 = vpack.c.bf16 %v5364_v38, %v5364_v38  ;;  %v3762_v42 = vpop.f32.mrf.mxu2  ;;  %v4082_v13 = vpop.f32.mrf.mxu3 }
 0x4a4   : > { %6644 = vst.msk [vmem:[%s8472_s10 + $0x7f8] sm:$0xf] %vm6133_vm3, %v6131_v36  ;;  %v3763_v43 = vadd.f32 %v10303_v14, %v3762_v42  ;;  %v4083_v44 = vadd.f32 %v10303_v14, %v4082_v13 }
 0x4a5   : > { %6261 = vst.msk [vmem:[%s8472_s10 + $0x1fc] sm:$0xf] %vm6133_vm3, %v5748_v37 }
 0x4a6   : > { %6389 = vst.msk [vmem:[%s8472_s10 + $0x3fc] sm:$0xf] %vm6133_vm3, %v5876_v41  ;;  %vm4468_vm2 = vcmp.gt.f32.partialorder %v3763_v43, 0.0  ;;  %v4980_v45 = vmul.f32 0.2, %v3763_v43  ;;  %vm4596_vm4 = vcmp.gt.f32.partialorder %v4083_v44, 0.0 }
 0x4a7   : > { %v5108_v46 = vmul.f32 0.2, %v4083_v44 }
 0x4a8   : > { %v5492_v47 = vsel %vm4468_vm2, %v3763_v43, %v4980_v45 }
 0x4a9   : > { %v6004_v48 = vpack.c.bf16 %v5492_v47, %v5492_v47  ;;  %v5620_v49 = vsel %vm4596_vm4, %v4083_v44, %v5108_v46 }
 0x4aa   : > { %v6132_v50 = vpack.c.bf16 %v5620_v49, %v5620_v49 }
 0x4ab   : > { %6517 = vst.msk [vmem:[%s8472_s10 + $0x5fc] sm:$0xf] %vm6133_vm3, %v6004_v48 }
 0x4ac   : > { %6645 = vst.msk [vmem:[%s8472_s10 + $0x7fc] sm:$0xf] %vm6133_vm3, %v6132_v50 }
 0x4ad PF: > { %s13_s12 = sadd.s32 1, %s8327_s12  }
 0x4ae   : > { %p10_p4 = scmp.ge.s32.totalorder %s13_s12, 18  }
 0x4b0   :  { %12 = sbr.rel (!%p10_p4) target bundleno = 1 (0x1), region = 62 }

</bundles_post_ra>
